<compile_context>
chip_gen: v6e
topology: v6e:2x2x1
jax: 0.10.0
libtpu: 0.0.40
codegen_flags: <defaults>
</compile_context>

<pallas_src>
import functools

import jax
import jax.numpy as jnp
from jax import lax
from jax.experimental import pallas as pl
from jax.experimental.pallas import tpu as pltpu


# ----------------------------------------------------------------------------
# Fused Inception kernel (one batch element per grid step).
# ----------------------------------------------------------------------------
def _make_inception_kernel(H, W, Cin, c1, c2, c3, c4, cdtype):
    c2_0, c2_1 = c2
    c3_0, c3_1 = c3
    HW = H * W
    off1 = c1
    off2 = c1 + c2_1
    off3 = c1 + c2_1 + c3_1
    c_tot = off3 + c4

    def fill_halo(ref, ph, pw, value):
        # Write only the halo border strips.  The interior is fully rewritten
        # every grid step, and border-only fills are megacore-safe (each
        # TensorCore has its own scratch) while removing the previous full
        # (H+2p)*(W+2p)*C fill per iteration.
        Hp, Wp, C = ref.shape
        ref[0:ph, :, :] = jnp.full((ph, Wp, C), value, ref.dtype)
        ref[Hp - ph:Hp, :, :] = jnp.full((ph, Wp, C), value, ref.dtype)
        ref[:, 0:pw, :] = jnp.full((Hp, pw, C), value, ref.dtype)
        ref[:, Wp - pw:Wp, :] = jnp.full((Hp, pw, C), value, ref.dtype)

    def kernel(x_ref, w1_ref, b1_ref, w2r_ref, b2r_ref, w33_ref, b33_ref,
               w3r_ref, b3r_ref, w55_ref, b55_ref, w4_ref, b4_ref,
               o_ref, xpad_ref, r2pad_ref, r3pad_ref):
        # Halo init (cheap border strips only).
        fill_halo(xpad_ref, 1, 1, -jnp.inf)   # max-pool padding (PyTorch: -inf)
        fill_halo(r2pad_ref, 1, 1, 0.0)       # conv zero halo
        fill_halo(r3pad_ref, 2, 2, 0.0)       # conv zero halo

        x = x_ref[0]                           # [H, W, Cin]  (compute dtype)
        x2 = x.reshape(HW, Cin)

        # ---- branch 1: 1x1 conv + ReLU -> output channels [0 : c1)
        b1 = jnp.maximum(
            jnp.dot(x2, w1_ref[...], preferred_element_type=jnp.float32)
            + b1_ref[...], 0.0)
        o_ref[:, :, :, 0:off1] = b1.reshape(1, H, W, c1).astype(o_ref.dtype)

        # ---- branch 2: 1x1 reduce + 3x3 same conv (per-tap accumulation)
        r2 = jnp.maximum(
            jnp.dot(x2, w2r_ref[...], preferred_element_type=jnp.float32)
            + b2r_ref[...], 0.0)
        r2pad_ref[1:H + 1, 1:W + 1, :] = r2.reshape(H, W, c2_0).astype(cdtype)
        acc2 = jnp.zeros((HW, c2_1), jnp.float32)
        for kh in range(3):
            for kw in range(3):
                tap = r2pad_ref[kh:kh + H, kw:kw + W, :].reshape(HW, c2_0)
                acc2 = acc2 + jnp.dot(tap, w33_ref[kh * 3 + kw],
                                      preferred_element_type=jnp.float32)
        b2 = jnp.maximum(acc2 + b33_ref[...], 0.0)
        o_ref[:, :, :, off1:off2] = b2.reshape(1, H, W, c2_1).astype(o_ref.dtype)

        # ---- branch 3: 1x1 reduce + 5x5 same conv (per-tap accumulation)
        r3 = jnp.maximum(
            jnp.dot(x2, w3r_ref[...], preferred_element_type=jnp.float32)
            + b3r_ref[...], 0.0)
        r3pad_ref[2:H + 2, 2:W + 2, :] = r3.reshape(H, W, c3_0).astype(cdtype)
        acc3 = jnp.zeros((HW, c3_1), jnp.float32)
        for kh in range(5):
            for kw in range(5):
                tap = r3pad_ref[kh:kh + H, kw:kw + W, :].reshape(HW, c3_0)
                acc3 = acc3 + jnp.dot(tap, w55_ref[kh * 5 + kw],
                                      preferred_element_type=jnp.float32)
        b3 = jnp.maximum(acc3 + b55_ref[...], 0.0)
        o_ref[:, :, :, off2:off3] = b3.reshape(1, H, W, c3_1).astype(o_ref.dtype)

        # ---- branch 4: separable 3x3/s1/p1 max-pool (-inf padding) + 1x1 conv
        xpad_ref[1:H + 1, 1:W + 1, :] = x
        row = jnp.maximum(
            jnp.maximum(xpad_ref[:, 0:W, :], xpad_ref[:, 1:W + 1, :]),
            xpad_ref[:, 2:W + 2, :])                       # [H+2, W, Cin]
        m = jnp.maximum(jnp.maximum(row[0:H], row[1:H + 1]), row[2:H + 2])
        b4 = jnp.maximum(
            jnp.dot(m.reshape(HW, Cin), w4_ref[...],
                    preferred_element_type=jnp.float32) + b4_ref[...], 0.0)
        o_ref[:, :, :, off3:c_tot] = b4.reshape(1, H, W, c4).astype(o_ref.dtype)

    return kernel


# ----------------------------------------------------------------------------
# NHWC core (no transposes) and an NCHW wrapper matching the PyTorch module.
# ----------------------------------------------------------------------------
def inception_forward_nhwc(x, params, *, compute_dtype=jnp.bfloat16):
    N, H, W, Cin = x.shape
    c1 = params["b1_1_w"].shape[-1]
    c2 = (params["b2_2_w"].shape[2], params["b2_2_w"].shape[3])
    c3 = (params["b3_2_w"].shape[2], params["b3_2_w"].shape[3])
    c4 = params["b4_2_w"].shape[-1]
    c_tot = c1 + c2[1] + c3[1] + c4
    out_dtype = x.dtype
    cd = compute_dtype

    # MXU operands in the compute dtype; biases stay f32 (added post-matmul).
    xc = x.astype(cd)
    w1 = params["b1_1_w"].astype(cd)
    w2r = params["b2_1_w"].astype(cd)
    w33 = params["b2_2_w"].astype(cd).reshape(9, c2[0], c2[1])
    w3r = params["b3_1_w"].astype(cd)
    w55 = params["b3_2_w"].astype(cd).reshape(25, c3[0], c3[1])
    w4 = params["b4_2_w"].astype(cd)
    b1b = params["b1_1_b"].astype(jnp.float32)
    b2rb = params["b2_1_b"].astype(jnp.float32)
    b33b = params["b2_2_b"].astype(jnp.float32)
    b3rb = params["b3_1_b"].astype(jnp.float32)
    b55b = params["b3_2_b"].astype(jnp.float32)
    b4b = params["b4_2_b"].astype(jnp.float32)

    kernel = _make_inception_kernel(H, W, Cin, c1, c2, c3, c4, cd)

    # Per-step VMEM working set (double-buffered x/out blocks + scratches +
    # weights); used to set an explicit scoped-VMEM limit.
    isz_c = jnp.dtype(cd).itemsize
    isz_o = jnp.dtype(out_dtype).itemsize
    weight_bytes = sum(int(a.size) * isz_c for a in (w1, w2r, w33, w3r, w55, w4))
    bias_bytes = sum(int(a.size) * 4 for a in (b1b, b2rb, b33b, b3rb, b55b, b4b))
    est = (2 * H * W * Cin * isz_c
           + 2 * H * W * c_tot * isz_o
           + (H + 2) * (W + 2) * (Cin + c2[0]) * isz_c
           + (H + 4) * (W + 4) * c3[0] * isz_c
           + 2 * (weight_bytes + bias_bytes))
    vmem_limit = int(max(32 * 2**20, min(2 * est, 64 * 2**20)))

    return pl.pallas_call(
        kernel,
        out_shape=jax.ShapeDtypeStruct((N, H, W, c_tot), out_dtype),
        grid=(N,),
        in_specs=[
            pl.BlockSpec((1, H, W, Cin), lambda n: (n, 0, 0, 0)),
            pl.BlockSpec(w1.shape, lambda n: (0, 0)),
            pl.BlockSpec(b1b.shape, lambda n: (0, 0)),
            pl.BlockSpec(w2r.shape, lambda n: (0, 0)),
            pl.BlockSpec(b2rb.shape, lambda n: (0, 0)),
            pl.BlockSpec(w33.shape, lambda n: (0, 0, 0)),
            pl.BlockSpec(b33b.shape, lambda n: (0, 0)),
            pl.BlockSpec(w3r.shape, lambda n: (0, 0)),
            pl.BlockSpec(b3rb.shape, lambda n: (0, 0)),
            pl.BlockSpec(w55.shape, lambda n: (0, 0, 0)),
            pl.BlockSpec(b55b.shape, lambda n: (0, 0)),
            pl.BlockSpec(w4.shape, lambda n: (0, 0)),
            pl.BlockSpec(b4b.shape, lambda n: (0, 0)),
        ],
        out_specs=pl.BlockSpec((1, H, W, c_tot), lambda n: (n, 0, 0, 0)),
        scratch_shapes=[
            pltpu.VMEM((H + 2, W + 2, Cin), cd),     # -inf-padded x (max-pool)
            pltpu.VMEM((H + 2, W + 2, c2[0]), cd),   # zero-padded r2 (3x3 conv)
            pltpu.VMEM((H + 4, W + 4, c3[0]), cd),   # zero-padded r3 (5x5 conv)
        ],
        compiler_params=pltpu.CompilerParams(
            dimension_semantics=("parallel",),
            vmem_limit_bytes=vmem_limit),
    )(xc, w1, b1b, w2r, b2rb, w33, b33b, w3r, b3rb, w55, b55b, w4, b4b)


@functools.partial(jax.jit, static_argnames=("compute_dtype",))
def inception_forward(x_nchw, params, compute_dtype=jnp.bfloat16):
    # NCHW wrapper for parity with the PyTorch module; NHWC callers should use
    # inception_forward_nhwc directly and skip both transposes.
    x = jnp.transpose(x_nchw, (0, 2, 3, 1))                    # NCHW -> NHWC
    y = inception_forward_nhwc(x, params, compute_dtype=compute_dtype)
    return jnp.transpose(y, (0, 3, 1, 2))                      # NHWC -> NCHW


# ----------------------------------------------------------------------------
# Parameter init (deterministic).
# ----------------------------------------------------------------------------
def init_inception_params(key, c_in, c1, c2, c3, c4):
    keys = jax.random.split(key, 12)

    def conv_w(k, kk, cin, cout):       # HWIO layout
        return 0.1 * jax.random.normal(k, (kk, kk, cin, cout), jnp.float32)

    def bias(k, cout):
        return 0.01 * jax.random.normal(k, (1, cout), jnp.float32)

    return {
        "b1_1_w": conv_w(keys[0], 1, c_in, c1)[0, 0],    "b1_1_b": bias(keys[1], c1),
        "b2_1_w": conv_w(keys[2], 1, c_in, c2[0])[0, 0], "b2_1_b": bias(keys[3], c2[0]),
        "b2_2_w": conv_w(keys[4], 3, c2[0], c2[1]),      "b2_2_b": bias(keys[5], c2[1]),
        "b3_1_w": conv_w(keys[6], 1, c_in, c3[0])[0, 0], "b3_1_b": bias(keys[7], c3[0]),
        "b3_2_w": conv_w(keys[8], 5, c3[0], c3[1]),      "b3_2_b": bias(keys[9], c3[1]),
        "b4_2_w": conv_w(keys[10], 1, c_in, c4)[0, 0],   "b4_2_b": bias(keys[11], c4),
    }


# ----------------------------------------------------------------------------
# Plain-JAX reference (lax convs) used only for the correctness check.
# ----------------------------------------------------------------------------
def _ref_conv(x, w, b, pad):
    dn = ("NHWC", "HWIO", "NHWC")
    w4 = w if w.ndim == 4 else w[None, None]
    y = lax.conv_general_dilated(x, w4, (1, 1), [(pad, pad), (pad, pad)],
                                 dimension_numbers=dn)
    return jnp.maximum(y + b.reshape(1, 1, 1, -1), 0.0)


def reference_forward(x_nchw, params):
    x = jnp.transpose(x_nchw, (0, 2, 3, 1))
    b1 = _ref_conv(x, params["b1_1_w"], params["b1_1_b"], 0)
    b2 = _ref_conv(x, params["b2_1_w"], params["b2_1_b"], 0)
    b2 = _ref_conv(b2, params["b2_2_w"], params["b2_2_b"], 1)
    b3 = _ref_conv(x, params["b3_1_w"], params["b3_1_b"], 0)
    b3 = _ref_conv(b3, params["b3_2_w"], params["b3_2_b"], 2)
    pooled = lax.reduce_window(x, -jnp.inf, lax.max, (1, 3, 3, 1), (1, 1, 1, 1),
                               ((0, 0), (1, 1), (1, 1), (0, 0)))
    b4 = _ref_conv(pooled, params["b4_2_w"], params["b4_2_b"], 0)
    y = jnp.concatenate([b1, b2, b3, b4], axis=-1)
    return jnp.transpose(y, (0, 3, 1, 2))


if __name__ == "__main__":
    key = jax.random.PRNGKey(0)
    k_x, k_p = jax.random.split(key)

    N, C_in, H, W = 2, 4, 16, 16
    c1, c2, c3, c4 = 4, (4, 8), (2, 4), 4     # output channels = 4+8+4+4 = 20

    x = jax.random.normal(k_x, (N, C_in, H, W), jnp.float32)   # NCHW (PyTorch)
    params = init_inception_params(k_p, C_in, c1, c2, c3, c4)

    ref = jax.block_until_ready(reference_forward(x, params))

    # Exact-parity mode (f32 operands) -> tight tolerance vs. the lax reference.
    out_f32 = jax.block_until_ready(
        inception_forward(x, params, compute_dtype=jnp.float32))
    assert out_f32.shape == (N, c1 + c2[1] + c3[1] + c4, H, W), out_f32.shape
    assert jnp.allclose(out_f32, ref, atol=1e-4, rtol=1e-4), float(
        jnp.max(jnp.abs(out_f32 - ref)))

    # Default bf16-MXU mode (f32 accumulation / bias / ReLU) -> looser tolerance.
    out_bf16 = jax.block_until_ready(inception_forward(x, params))
    assert out_bf16.shape == out_f32.shape, out_bf16.shape
    assert jnp.allclose(out_bf16, ref, atol=2e-2, rtol=2e-2), float(
        jnp.max(jnp.abs(out_bf16 - ref)))

    print("KERNEL_OK")
</pallas_src>

<mosaic_0001>
module attributes {stable_mosaic.version = 11 : i64} {
  func.func @kernel(%arg0: i32, %arg1: memref<1x16x16x4xf32, #tpu.memory_space<vmem>>, %arg2: memref<4x4xf32, #tpu.memory_space<vmem>>, %arg3: memref<1x4xf32, #tpu.memory_space<vmem>>, %arg4: memref<4x4xf32, #tpu.memory_space<vmem>>, %arg5: memref<1x4xf32, #tpu.memory_space<vmem>>, %arg6: memref<9x4x8xf32, #tpu.memory_space<vmem>>, %arg7: memref<1x8xf32, #tpu.memory_space<vmem>>, %arg8: memref<4x2xf32, #tpu.memory_space<vmem>>, %arg9: memref<1x2xf32, #tpu.memory_space<vmem>>, %arg10: memref<25x2x4xf32, #tpu.memory_space<vmem>>, %arg11: memref<1x4xf32, #tpu.memory_space<vmem>>, %arg12: memref<4x4xf32, #tpu.memory_space<vmem>>, %arg13: memref<1x4xf32, #tpu.memory_space<vmem>>, %arg14: memref<1x16x16x20xf32, #tpu.memory_space<vmem>>, %arg15: memref<18x18x4xf32, #tpu.memory_space<vmem>>, %arg16: memref<18x18x4xf32, #tpu.memory_space<vmem>>, %arg17: memref<20x20x2xf32, #tpu.memory_space<vmem>>) attributes {dimension_semantics = [#tpu.dimension_semantics<parallel>], iteration_bounds = array<i64: 2>, scalar_prefetch = 0 : i64, scratch_operands = 3 : i64, tpu.core_type = #tpu.core_type<tc>, window_params = [{transform_indices = @transform_0, window_bounds = array<i64: 1, 16, 16, 4>}, {pipeline_mode = #tpu.pipeline_mode<synchronous>, transform_indices = @transform_1, window_bounds = array<i64: 4, 4>}, {pipeline_mode = #tpu.pipeline_mode<synchronous>, transform_indices = @transform_2, window_bounds = array<i64: 1, 4>}, {pipeline_mode = #tpu.pipeline_mode<synchronous>, transform_indices = @transform_3, window_bounds = array<i64: 4, 4>}, {pipeline_mode = #tpu.pipeline_mode<synchronous>, transform_indices = @transform_4, window_bounds = array<i64: 1, 4>}, {pipeline_mode = #tpu.pipeline_mode<synchronous>, transform_indices = @transform_5, window_bounds = array<i64: 9, 4, 8>}, {pipeline_mode = #tpu.pipeline_mode<synchronous>, transform_indices = @transform_6, window_bounds = array<i64: 1, 8>}, {pipeline_mode = #tpu.pipeline_mode<synchronous>, transform_indices = @transform_7, window_bounds = array<i64: 4, 2>}, {pipeline_mode = #tpu.pipeline_mode<synchronous>, transform_indices = @transform_8, window_bounds = array<i64: 1, 2>}, {pipeline_mode = #tpu.pipeline_mode<synchronous>, transform_indices = @transform_9, window_bounds = array<i64: 25, 2, 4>}, {pipeline_mode = #tpu.pipeline_mode<synchronous>, transform_indices = @transform_10, window_bounds = array<i64: 1, 4>}, {pipeline_mode = #tpu.pipeline_mode<synchronous>, transform_indices = @transform_11, window_bounds = array<i64: 4, 4>}, {pipeline_mode = #tpu.pipeline_mode<synchronous>, transform_indices = @transform_12, window_bounds = array<i64: 1, 4>}, {transform_indices = @transform_13, window_bounds = array<i64: 1, 16, 16, 20>}]} {
    %cst = arith.constant 0xFF800000 : f32
    %0 = vector.broadcast %cst : f32 to vector<1x18x4xf32>
    %c0 = arith.constant 0 : index
    %c0_0 = arith.constant 0 : index
    %c0_1 = arith.constant 0 : index
    %1 = vector.load %arg15[%c0, %c0_0, %c0_1] : memref<18x18x4xf32, #tpu.memory_space<vmem>>, vector<1x18x4xf32>
    tpu.vector_store %arg15[%c0, %c0_0, %c0_1], %0 {strides = array<i32>} : memref<18x18x4xf32, #tpu.memory_space<vmem>>, vector<1x18x4xf32>,
    %cst_2 = arith.constant 0xFF800000 : f32
    %2 = vector.broadcast %cst_2 : f32 to vector<1x18x4xf32>
    %c17 = arith.constant 17 : index
    %c0_3 = arith.constant 0 : index
    %c0_4 = arith.constant 0 : index
    %3 = vector.load %arg15[%c17, %c0_3, %c0_4] : memref<18x18x4xf32, #tpu.memory_space<vmem>>, vector<1x18x4xf32>
    tpu.vector_store %arg15[%c17, %c0_3, %c0_4], %2 {strides = array<i32>} : memref<18x18x4xf32, #tpu.memory_space<vmem>>, vector<1x18x4xf32>,
    %cst_5 = arith.constant 0xFF800000 : f32
    %4 = vector.broadcast %cst_5 : f32 to vector<18x1x4xf32>
    %c0_6 = arith.constant 0 : index
    %c0_7 = arith.constant 0 : index
    %c0_8 = arith.constant 0 : index
    %5 = vector.load %arg15[%c0_6, %c0_7, %c0_8] : memref<18x18x4xf32, #tpu.memory_space<vmem>>, vector<18x1x4xf32>
    tpu.vector_store %arg15[%c0_6, %c0_7, %c0_8], %4 {strides = array<i32>} : memref<18x18x4xf32, #tpu.memory_space<vmem>>, vector<18x1x4xf32>,
    %cst_9 = arith.constant 0xFF800000 : f32
    %6 = vector.broadcast %cst_9 : f32 to vector<18x1x4xf32>
    %c0_10 = arith.constant 0 : index
    %c17_11 = arith.constant 17 : index
    %c0_12 = arith.constant 0 : index
    %7 = vector.load %arg15[%c0_10, %c17_11, %c0_12] : memref<18x18x4xf32, #tpu.memory_space<vmem>>, vector<18x1x4xf32>
    tpu.vector_store %arg15[%c0_10, %c17_11, %c0_12], %6 {strides = array<i32>} : memref<18x18x4xf32, #tpu.memory_space<vmem>>, vector<18x1x4xf32>,
    %cst_13 = arith.constant 0.000000e+00 : f32
    %8 = vector.broadcast %cst_13 : f32 to vector<1x18x4xf32>
    %c0_14 = arith.constant 0 : index
    %c0_15 = arith.constant 0 : index
    %c0_16 = arith.constant 0 : index
    %9 = vector.load %arg16[%c0_14, %c0_15, %c0_16] : memref<18x18x4xf32, #tpu.memory_space<vmem>>, vector<1x18x4xf32>
    tpu.vector_store %arg16[%c0_14, %c0_15, %c0_16], %8 {strides = array<i32>} : memref<18x18x4xf32, #tpu.memory_space<vmem>>, vector<1x18x4xf32>,
    %cst_17 = arith.constant 0.000000e+00 : f32
    %10 = vector.broadcast %cst_17 : f32 to vector<1x18x4xf32>
    %c17_18 = arith.constant 17 : index
    %c0_19 = arith.constant 0 : index
    %c0_20 = arith.constant 0 : index
    %11 = vector.load %arg16[%c17_18, %c0_19, %c0_20] : memref<18x18x4xf32, #tpu.memory_space<vmem>>, vector<1x18x4xf32>
    tpu.vector_store %arg16[%c17_18, %c0_19, %c0_20], %10 {strides = array<i32>} : memref<18x18x4xf32, #tpu.memory_space<vmem>>, vector<1x18x4xf32>,
    %cst_21 = arith.constant 0.000000e+00 : f32
    %12 = vector.broadcast %cst_21 : f32 to vector<18x1x4xf32>
    %c0_22 = arith.constant 0 : index
    %c0_23 = arith.constant 0 : index
    %c0_24 = arith.constant 0 : index
    %13 = vector.load %arg16[%c0_22, %c0_23, %c0_24] : memref<18x18x4xf32, #tpu.memory_space<vmem>>, vector<18x1x4xf32>
    tpu.vector_store %arg16[%c0_22, %c0_23, %c0_24], %12 {strides = array<i32>} : memref<18x18x4xf32, #tpu.memory_space<vmem>>, vector<18x1x4xf32>,
    %cst_25 = arith.constant 0.000000e+00 : f32
    %14 = vector.broadcast %cst_25 : f32 to vector<18x1x4xf32>
    %c0_26 = arith.constant 0 : index
    %c17_27 = arith.constant 17 : index
    %c0_28 = arith.constant 0 : index
    %15 = vector.load %arg16[%c0_26, %c17_27, %c0_28] : memref<18x18x4xf32, #tpu.memory_space<vmem>>, vector<18x1x4xf32>
    tpu.vector_store %arg16[%c0_26, %c17_27, %c0_28], %14 {strides = array<i32>} : memref<18x18x4xf32, #tpu.memory_space<vmem>>, vector<18x1x4xf32>,
    %cst_29 = arith.constant 0.000000e+00 : f32
    %16 = vector.broadcast %cst_29 : f32 to vector<2x20x2xf32>
    %c0_30 = arith.constant 0 : index
    %c0_31 = arith.constant 0 : index
    %c0_32 = arith.constant 0 : index
    %17 = vector.load %arg17[%c0_30, %c0_31, %c0_32] : memref<20x20x2xf32, #tpu.memory_space<vmem>>, vector<2x20x2xf32>
    tpu.vector_store %arg17[%c0_30, %c0_31, %c0_32], %16 {strides = array<i32>} : memref<20x20x2xf32, #tpu.memory_space<vmem>>, vector<2x20x2xf32>,
    %cst_33 = arith.constant 0.000000e+00 : f32
    %18 = vector.broadcast %cst_33 : f32 to vector<2x20x2xf32>
    %c18 = arith.constant 18 : index
    %c0_34 = arith.constant 0 : index
    %c0_35 = arith.constant 0 : index
    %19 = vector.load %arg17[%c18, %c0_34, %c0_35] : memref<20x20x2xf32, #tpu.memory_space<vmem>>, vector<2x20x2xf32>
    tpu.vector_store %arg17[%c18, %c0_34, %c0_35], %18 {strides = array<i32>} : memref<20x20x2xf32, #tpu.memory_space<vmem>>, vector<2x20x2xf32>,
    %cst_36 = arith.constant 0.000000e+00 : f32
    %20 = vector.broadcast %cst_36 : f32 to vector<20x2x2xf32>
    %c0_37 = arith.constant 0 : index
    %c0_38 = arith.constant 0 : index
    %c0_39 = arith.constant 0 : index
    %21 = vector.load %arg17[%c0_37, %c0_38, %c0_39] : memref<20x20x2xf32, #tpu.memory_space<vmem>>, vector<20x2x2xf32>
    tpu.vector_store %arg17[%c0_37, %c0_38, %c0_39], %20 {strides = array<i32>} : memref<20x20x2xf32, #tpu.memory_space<vmem>>, vector<20x2x2xf32>,
    %cst_40 = arith.constant 0.000000e+00 : f32
    %22 = vector.broadcast %cst_40 : f32 to vector<20x2x2xf32>
    %c0_41 = arith.constant 0 : index
    %c18_42 = arith.constant 18 : index
    %c0_43 = arith.constant 0 : index
    %23 = vector.load %arg17[%c0_41, %c18_42, %c0_43] : memref<20x20x2xf32, #tpu.memory_space<vmem>>, vector<20x2x2xf32>
    tpu.vector_store %arg17[%c0_41, %c18_42, %c0_43], %22 {strides = array<i32>} : memref<20x20x2xf32, #tpu.memory_space<vmem>>, vector<20x2x2xf32>,
    %c0_44 = arith.constant 0 : index
    %c0_45 = arith.constant 0 : index
    %c0_46 = arith.constant 0 : index
    %c0_47 = arith.constant 0 : index
    %24 = vector.load %arg1[%c0_44, %c0_45, %c0_46, %c0_47] : memref<1x16x16x4xf32, #tpu.memory_space<vmem>>, vector<1x16x16x4xf32>
    %25 = vector.shape_cast %24 : vector<1x16x16x4xf32> to vector<16x16x4xf32>
    %26 = vector.shape_cast %25 : vector<16x16x4xf32> to vector<256x4xf32>
    %c0_48 = arith.constant 0 : index
    %c0_49 = arith.constant 0 : index
    %27 = vector.load %arg2[%c0_48, %c0_49] : memref<4x4xf32, #tpu.memory_space<vmem>>, vector<4x4xf32>
    %cst_50 = arith.constant dense<0.000000e+00> : vector<256x4xf32>
    %28 = tpu.matmul %26, %27, %cst_50 {dimension_numbers = #tpu.dot_dimension_numbers<[1], [0], [0], [1], [0, 0, 1, 1], [], []>} : vector<256x4xf32>, vector<4x4xf32>, vector<256x4xf32> -> vector<256x4xf32>
    %c0_51 = arith.constant 0 : index
    %c0_52 = arith.constant 0 : index
    %29 = vector.load %arg3[%c0_51, %c0_52] : memref<1x4xf32, #tpu.memory_space<vmem>>, vector<1x4xf32>
    %30 = vector.broadcast %29 : vector<1x4xf32> to vector<256x4xf32>
    %31 = arith.addf %28, %30 : vector<256x4xf32>
    %cst_53 = arith.constant 0.000000e+00 : f32
    %32 = vector.broadcast %cst_53 : f32 to vector<256x4xf32>
    %33 = arith.maximumf %31, %32 : vector<256x4xf32>
    %34 = vector.shape_cast %33 : vector<256x4xf32> to vector<1x16x16x4xf32>
    %c0_54 = arith.constant 0 : index
    %c0_55 = arith.constant 0 : index
    %c0_56 = arith.constant 0 : index
    %c0_57 = arith.constant 0 : index
    %35 = vector.load %arg14[%c0_54, %c0_55, %c0_56, %c0_57] : memref<1x16x16x20xf32, #tpu.memory_space<vmem>>, vector<1x16x16x4xf32>
    tpu.vector_store %arg14[%c0_54, %c0_55, %c0_56, %c0_57], %34 {strides = array<i32>} : memref<1x16x16x20xf32, #tpu.memory_space<vmem>>, vector<1x16x16x4xf32>,
    %c0_58 = arith.constant 0 : index
    %c0_59 = arith.constant 0 : index
    %36 = vector.load %arg4[%c0_58, %c0_59] : memref<4x4xf32, #tpu.memory_space<vmem>>, vector<4x4xf32>
    %cst_60 = arith.constant dense<0.000000e+00> : vector<256x4xf32>
    %37 = tpu.matmul %26, %36, %cst_60 {dimension_numbers = #tpu.dot_dimension_numbers<[1], [0], [0], [1], [0, 0, 1, 1], [], []>} : vector<256x4xf32>, vector<4x4xf32>, vector<256x4xf32> -> vector<256x4xf32>
    %c0_61 = arith.constant 0 : index
    %c0_62 = arith.constant 0 : index
    %38 = vector.load %arg5[%c0_61, %c0_62] : memref<1x4xf32, #tpu.memory_space<vmem>>, vector<1x4xf32>
    %39 = vector.broadcast %38 : vector<1x4xf32> to vector<256x4xf32>
    %40 = arith.addf %37, %39 : vector<256x4xf32>
    %cst_63 = arith.constant 0.000000e+00 : f32
    %41 = vector.broadcast %cst_63 : f32 to vector<256x4xf32>
    %42 = arith.maximumf %40, %41 : vector<256x4xf32>
    %43 = vector.shape_cast %42 : vector<256x4xf32> to vector<16x16x4xf32>
    %c1 = arith.constant 1 : index
    %c1_64 = arith.constant 1 : index
    %c0_65 = arith.constant 0 : index
    %44 = vector.load %arg16[%c1, %c1_64, %c0_65] : memref<18x18x4xf32, #tpu.memory_space<vmem>>, vector<16x16x4xf32>
    tpu.vector_store %arg16[%c1, %c1_64, %c0_65], %43 {strides = array<i32>} : memref<18x18x4xf32, #tpu.memory_space<vmem>>, vector<16x16x4xf32>,
    %cst_66 = arith.constant 0.000000e+00 : f32
    %45 = vector.broadcast %cst_66 : f32 to vector<256x8xf32>
    %c0_67 = arith.constant 0 : index
    %c0_68 = arith.constant 0 : index
    %c0_69 = arith.constant 0 : index
    %46 = vector.load %arg16[%c0_67, %c0_68, %c0_69] : memref<18x18x4xf32, #tpu.memory_space<vmem>>, vector<16x16x4xf32>
    %47 = vector.shape_cast %46 : vector<16x16x4xf32> to vector<256x4xf32>
    %c0_70 = arith.constant 0 : index
    %c0_71 = arith.constant 0 : index
    %c0_72 = arith.constant 0 : index
    %48 = vector.load %arg6[%c0_70, %c0_71, %c0_72] : memref<9x4x8xf32, #tpu.memory_space<vmem>>, vector<1x4x8xf32>
    %49 = vector.shape_cast %48 : vector<1x4x8xf32> to vector<4x8xf32>
    %cst_73 = arith.constant dense<0.000000e+00> : vector<256x8xf32>
    %50 = tpu.matmul %47, %49, %cst_73 {dimension_numbers = #tpu.dot_dimension_numbers<[1], [0], [0], [1], [0, 0, 1, 1], [], []>} : vector<256x4xf32>, vector<4x8xf32>, vector<256x8xf32> -> vector<256x8xf32>
    %51 = arith.addf %45, %50 : vector<256x8xf32>
    %c0_74 = arith.constant 0 : index
    %c1_75 = arith.constant 1 : index
    %c0_76 = arith.constant 0 : index
    %52 = vector.load %arg16[%c0_74, %c1_75, %c0_76] : memref<18x18x4xf32, #tpu.memory_space<vmem>>, vector<16x16x4xf32>
    %53 = vector.shape_cast %52 : vector<16x16x4xf32> to vector<256x4xf32>
    %c1_77 = arith.constant 1 : index
    %c0_78 = arith.constant 0 : index
    %c0_79 = arith.constant 0 : index
    %54 = vector.load %arg6[%c1_77, %c0_78, %c0_79] : memref<9x4x8xf32, #tpu.memory_space<vmem>>, vector<1x4x8xf32>
    %55 = vector.shape_cast %54 : vector<1x4x8xf32> to vector<4x8xf32>
    %cst_80 = arith.constant dense<0.000000e+00> : vector<256x8xf32>
    %56 = tpu.matmul %53, %55, %cst_80 {dimension_numbers = #tpu.dot_dimension_numbers<[1], [0], [0], [1], [0, 0, 1, 1], [], []>} : vector<256x4xf32>, vector<4x8xf32>, vector<256x8xf32> -> vector<256x8xf32>
    %57 = arith.addf %51, %56 : vector<256x8xf32>
    %c0_81 = arith.constant 0 : index
    %c2 = arith.constant 2 : index
    %c0_82 = arith.constant 0 : index
    %58 = vector.load %arg16[%c0_81, %c2, %c0_82] : memref<18x18x4xf32, #tpu.memory_space<vmem>>, vector<16x16x4xf32>
    %59 = vector.shape_cast %58 : vector<16x16x4xf32> to vector<256x4xf32>
    %c2_83 = arith.constant 2 : index
    %c0_84 = arith.constant 0 : index
    %c0_85 = arith.constant 0 : index
    %60 = vector.load %arg6[%c2_83, %c0_84, %c0_85] : memref<9x4x8xf32, #tpu.memory_space<vmem>>, vector<1x4x8xf32>
    %61 = vector.shape_cast %60 : vector<1x4x8xf32> to vector<4x8xf32>
    %cst_86 = arith.constant dense<0.000000e+00> : vector<256x8xf32>
    %62 = tpu.matmul %59, %61, %cst_86 {dimension_numbers = #tpu.dot_dimension_numbers<[1], [0], [0], [1], [0, 0, 1, 1], [], []>} : vector<256x4xf32>, vector<4x8xf32>, vector<256x8xf32> -> vector<256x8xf32>
    %63 = arith.addf %57, %62 : vector<256x8xf32>
    %c1_87 = arith.constant 1 : index
    %c0_88 = arith.constant 0 : index
    %c0_89 = arith.constant 0 : index
    %64 = vector.load %arg16[%c1_87, %c0_88, %c0_89] : memref<18x18x4xf32, #tpu.memory_space<vmem>>, vector<16x16x4xf32>
    %65 = vector.shape_cast %64 : vector<16x16x4xf32> to vector<256x4xf32>
    %c3 = arith.constant 3 : index
    %c0_90 = arith.constant 0 : index
    %c0_91 = arith.constant 0 : index
    %66 = vector.load %arg6[%c3, %c0_90, %c0_91] : memref<9x4x8xf32, #tpu.memory_space<vmem>>, vector<1x4x8xf32>
    %67 = vector.shape_cast %66 : vector<1x4x8xf32> to vector<4x8xf32>
    %cst_92 = arith.constant dense<0.000000e+00> : vector<256x8xf32>
    %68 = tpu.matmul %65, %67, %cst_92 {dimension_numbers = #tpu.dot_dimension_numbers<[1], [0], [0], [1], [0, 0, 1, 1], [], []>} : vector<256x4xf32>, vector<4x8xf32>, vector<256x8xf32> -> vector<256x8xf32>
    %69 = arith.addf %63, %68 : vector<256x8xf32>
    %c1_93 = arith.constant 1 : index
    %c1_94 = arith.constant 1 : index
    %c0_95 = arith.constant 0 : index
    %70 = vector.load %arg16[%c1_93, %c1_94, %c0_95] : memref<18x18x4xf32, #tpu.memory_space<vmem>>, vector<16x16x4xf32>
    %71 = vector.shape_cast %70 : vector<16x16x4xf32> to vector<256x4xf32>
    %c4 = arith.constant 4 : index
    %c0_96 = arith.constant 0 : index
    %c0_97 = arith.constant 0 : index
    %72 = vector.load %arg6[%c4, %c0_96, %c0_97] : memref<9x4x8xf32, #tpu.memory_space<vmem>>, vector<1x4x8xf32>
    %73 = vector.shape_cast %72 : vector<1x4x8xf32> to vector<4x8xf32>
    %cst_98 = arith.constant dense<0.000000e+00> : vector<256x8xf32>
    %74 = tpu.matmul %71, %73, %cst_98 {dimension_numbers = #tpu.dot_dimension_numbers<[1], [0], [0], [1], [0, 0, 1, 1], [], []>} : vector<256x4xf32>, vector<4x8xf32>, vector<256x8xf32> -> vector<256x8xf32>
    %75 = arith.addf %69, %74 : vector<256x8xf32>
    %c1_99 = arith.constant 1 : index
    %c2_100 = arith.constant 2 : index
    %c0_101 = arith.constant 0 : index
    %76 = vector.load %arg16[%c1_99, %c2_100, %c0_101] : memref<18x18x4xf32, #tpu.memory_space<vmem>>, vector<16x16x4xf32>
    %77 = vector.shape_cast %76 : vector<16x16x4xf32> to vector<256x4xf32>
    %c5 = arith.constant 5 : index
    %c0_102 = arith.constant 0 : index
    %c0_103 = arith.constant 0 : index
    %78 = vector.load %arg6[%c5, %c0_102, %c0_103] : memref<9x4x8xf32, #tpu.memory_space<vmem>>, vector<1x4x8xf32>
    %79 = vector.shape_cast %78 : vector<1x4x8xf32> to vector<4x8xf32>
    %cst_104 = arith.constant dense<0.000000e+00> : vector<256x8xf32>
    %80 = tpu.matmul %77, %79, %cst_104 {dimension_numbers = #tpu.dot_dimension_numbers<[1], [0], [0], [1], [0, 0, 1, 1], [], []>} : vector<256x4xf32>, vector<4x8xf32>, vector<256x8xf32> -> vector<256x8xf32>
    %81 = arith.addf %75, %80 : vector<256x8xf32>
    %c2_105 = arith.constant 2 : index
    %c0_106 = arith.constant 0 : index
    %c0_107 = arith.constant 0 : index
    %82 = vector.load %arg16[%c2_105, %c0_106, %c0_107] : memref<18x18x4xf32, #tpu.memory_space<vmem>>, vector<16x16x4xf32>
    %83 = vector.shape_cast %82 : vector<16x16x4xf32> to vector<256x4xf32>
    %c6 = arith.constant 6 : index
    %c0_108 = arith.constant 0 : index
    %c0_109 = arith.constant 0 : index
    %84 = vector.load %arg6[%c6, %c0_108, %c0_109] : memref<9x4x8xf32, #tpu.memory_space<vmem>>, vector<1x4x8xf32>
    %85 = vector.shape_cast %84 : vector<1x4x8xf32> to vector<4x8xf32>
    %cst_110 = arith.constant dense<0.000000e+00> : vector<256x8xf32>
    %86 = tpu.matmul %83, %85, %cst_110 {dimension_numbers = #tpu.dot_dimension_numbers<[1], [0], [0], [1], [0, 0, 1, 1], [], []>} : vector<256x4xf32>, vector<4x8xf32>, vector<256x8xf32> -> vector<256x8xf32>
    %87 = arith.addf %81, %86 : vector<256x8xf32>
    %c2_111 = arith.constant 2 : index
    %c1_112 = arith.constant 1 : index
    %c0_113 = arith.constant 0 : index
    %88 = vector.load %arg16[%c2_111, %c1_112, %c0_113] : memref<18x18x4xf32, #tpu.memory_space<vmem>>, vector<16x16x4xf32>
    %89 = vector.shape_cast %88 : vector<16x16x4xf32> to vector<256x4xf32>
    %c7 = arith.constant 7 : index
    %c0_114 = arith.constant 0 : index
    %c0_115 = arith.constant 0 : index
    %90 = vector.load %arg6[%c7, %c0_114, %c0_115] : memref<9x4x8xf32, #tpu.memory_space<vmem>>, vector<1x4x8xf32>
    %91 = vector.shape_cast %90 : vector<1x4x8xf32> to vector<4x8xf32>
    %cst_116 = arith.constant dense<0.000000e+00> : vector<256x8xf32>
    %92 = tpu.matmul %89, %91, %cst_116 {dimension_numbers = #tpu.dot_dimension_numbers<[1], [0], [0], [1], [0, 0, 1, 1], [], []>} : vector<256x4xf32>, vector<4x8xf32>, vector<256x8xf32> -> vector<256x8xf32>
    %93 = arith.addf %87, %92 : vector<256x8xf32>
    %c2_117 = arith.constant 2 : index
    %c2_118 = arith.constant 2 : index
    %c0_119 = arith.constant 0 : index
    %94 = vector.load %arg16[%c2_117, %c2_118, %c0_119] : memref<18x18x4xf32, #tpu.memory_space<vmem>>, vector<16x16x4xf32>
    %95 = vector.shape_cast %94 : vector<16x16x4xf32> to vector<256x4xf32>
    %c8 = arith.constant 8 : index
    %c0_120 = arith.constant 0 : index
    %c0_121 = arith.constant 0 : index
    %96 = vector.load %arg6[%c8, %c0_120, %c0_121] : memref<9x4x8xf32, #tpu.memory_space<vmem>>, vector<1x4x8xf32>
    %97 = vector.shape_cast %96 : vector<1x4x8xf32> to vector<4x8xf32>
    %cst_122 = arith.constant dense<0.000000e+00> : vector<256x8xf32>
    %98 = tpu.matmul %95, %97, %cst_122 {dimension_numbers = #tpu.dot_dimension_numbers<[1], [0], [0], [1], [0, 0, 1, 1], [], []>} : vector<256x4xf32>, vector<4x8xf32>, vector<256x8xf32> -> vector<256x8xf32>
    %99 = arith.addf %93, %98 : vector<256x8xf32>
    %c0_123 = arith.constant 0 : index
    %c0_124 = arith.constant 0 : index
    %100 = vector.load %arg7[%c0_123, %c0_124] : memref<1x8xf32, #tpu.memory_space<vmem>>, vector<1x8xf32>
    %101 = vector.broadcast %100 : vector<1x8xf32> to vector<256x8xf32>
    %102 = arith.addf %99, %101 : vector<256x8xf32>
    %cst_125 = arith.constant 0.000000e+00 : f32
    %103 = vector.broadcast %cst_125 : f32 to vector<256x8xf32>
    %104 = arith.maximumf %102, %103 : vector<256x8xf32>
    %105 = vector.shape_cast %104 : vector<256x8xf32> to vector<1x16x16x8xf32>
    %c0_126 = arith.constant 0 : index
    %c0_127 = arith.constant 0 : index
    %c0_128 = arith.constant 0 : index
    %c4_129 = arith.constant 4 : index
    %106 = vector.load %arg14[%c0_126, %c0_127, %c0_128, %c4_129] : memref<1x16x16x20xf32, #tpu.memory_space<vmem>>, vector<1x16x16x8xf32>
    tpu.vector_store %arg14[%c0_126, %c0_127, %c0_128, %c4_129], %105 {strides = array<i32>} : memref<1x16x16x20xf32, #tpu.memory_space<vmem>>, vector<1x16x16x8xf32>,
    %c0_130 = arith.constant 0 : index
    %c0_131 = arith.constant 0 : index
    %107 = vector.load %arg8[%c0_130, %c0_131] : memref<4x2xf32, #tpu.memory_space<vmem>>, vector<4x2xf32>
    %cst_132 = arith.constant dense<0.000000e+00> : vector<256x2xf32>
    %108 = tpu.matmul %26, %107, %cst_132 {dimension_numbers = #tpu.dot_dimension_numbers<[1], [0], [0], [1], [0, 0, 1, 1], [], []>} : vector<256x4xf32>, vector<4x2xf32>, vector<256x2xf32> -> vector<256x2xf32>
    %c0_133 = arith.constant 0 : index
    %c0_134 = arith.constant 0 : index
    %109 = vector.load %arg9[%c0_133, %c0_134] : memref<1x2xf32, #tpu.memory_space<vmem>>, vector<1x2xf32>
    %110 = vector.broadcast %109 : vector<1x2xf32> to vector<256x2xf32>
    %111 = arith.addf %108, %110 : vector<256x2xf32>
    %cst_135 = arith.constant 0.000000e+00 : f32
    %112 = vector.broadcast %cst_135 : f32 to vector<256x2xf32>
    %113 = arith.maximumf %111, %112 : vector<256x2xf32>
    %114 = vector.shape_cast %113 : vector<256x2xf32> to vector<16x16x2xf32>
    %c2_136 = arith.constant 2 : index
    %c2_137 = arith.constant 2 : index
    %c0_138 = arith.constant 0 : index
    %115 = vector.load %arg17[%c2_136, %c2_137, %c0_138] : memref<20x20x2xf32, #tpu.memory_space<vmem>>, vector<16x16x2xf32>
    tpu.vector_store %arg17[%c2_136, %c2_137, %c0_138], %114 {strides = array<i32>} : memref<20x20x2xf32, #tpu.memory_space<vmem>>, vector<16x16x2xf32>,
    %cst_139 = arith.constant 0.000000e+00 : f32
    %116 = vector.broadcast %cst_139 : f32 to vector<256x4xf32>
    %c0_140 = arith.constant 0 : index
    %c0_141 = arith.constant 0 : index
    %c0_142 = arith.constant 0 : index
    %117 = vector.load %arg17[%c0_140, %c0_141, %c0_142] : memref<20x20x2xf32, #tpu.memory_space<vmem>>, vector<16x16x2xf32>
    %118 = vector.shape_cast %117 : vector<16x16x2xf32> to vector<256x2xf32>
    %c0_143 = arith.constant 0 : index
    %c0_144 = arith.constant 0 : index
    %c0_145 = arith.constant 0 : index
    %119 = vector.load %arg10[%c0_143, %c0_144, %c0_145] : memref<25x2x4xf32, #tpu.memory_space<vmem>>, vector<1x2x4xf32>
    %120 = vector.shape_cast %119 : vector<1x2x4xf32> to vector<2x4xf32>
    %cst_146 = arith.constant dense<0.000000e+00> : vector<256x4xf32>
    %121 = tpu.matmul %118, %120, %cst_146 {dimension_numbers = #tpu.dot_dimension_numbers<[1], [0], [0], [1], [0, 0, 1, 1], [], []>} : vector<256x2xf32>, vector<2x4xf32>, vector<256x4xf32> -> vector<256x4xf32>
    %122 = arith.addf %116, %121 : vector<256x4xf32>
    %c0_147 = arith.constant 0 : index
    %c1_148 = arith.constant 1 : index
    %c0_149 = arith.constant 0 : index
    %123 = vector.load %arg17[%c0_147, %c1_148, %c0_149] : memref<20x20x2xf32, #tpu.memory_space<vmem>>, vector<16x16x2xf32>
    %124 = vector.shape_cast %123 : vector<16x16x2xf32> to vector<256x2xf32>
    %c1_150 = arith.constant 1 : index
    %c0_151 = arith.constant 0 : index
    %c0_152 = arith.constant 0 : index
    %125 = vector.load %arg10[%c1_150, %c0_151, %c0_152] : memref<25x2x4xf32, #tpu.memory_space<vmem>>, vector<1x2x4xf32>
    %126 = vector.shape_cast %125 : vector<1x2x4xf32> to vector<2x4xf32>
    %cst_153 = arith.constant dense<0.000000e+00> : vector<256x4xf32>
    %127 = tpu.matmul %124, %126, %cst_153 {dimension_numbers = #tpu.dot_dimension_numbers<[1], [0], [0], [1], [0, 0, 1, 1], [], []>} : vector<256x2xf32>, vector<2x4xf32>, vector<256x4xf32> -> vector<256x4xf32>
    %128 = arith.addf %122, %127 : vector<256x4xf32>
    %c0_154 = arith.constant 0 : index
    %c2_155 = arith.constant 2 : index
    %c0_156 = arith.constant 0 : index
    %129 = vector.load %arg17[%c0_154, %c2_155, %c0_156] : memref<20x20x2xf32, #tpu.memory_space<vmem>>, vector<16x16x2xf32>
    %130 = vector.shape_cast %129 : vector<16x16x2xf32> to vector<256x2xf32>
    %c2_157 = arith.constant 2 : index
    %c0_158 = arith.constant 0 : index
    %c0_159 = arith.constant 0 : index
    %131 = vector.load %arg10[%c2_157, %c0_158, %c0_159] : memref<25x2x4xf32, #tpu.memory_space<vmem>>, vector<1x2x4xf32>
    %132 = vector.shape_cast %131 : vector<1x2x4xf32> to vector<2x4xf32>
    %cst_160 = arith.constant dense<0.000000e+00> : vector<256x4xf32>
    %133 = tpu.matmul %130, %132, %cst_160 {dimension_numbers = #tpu.dot_dimension_numbers<[1], [0], [0], [1], [0, 0, 1, 1], [], []>} : vector<256x2xf32>, vector<2x4xf32>, vector<256x4xf32> -> vector<256x4xf32>
    %134 = arith.addf %128, %133 : vector<256x4xf32>
    %c0_161 = arith.constant 0 : index
    %c3_162 = arith.constant 3 : index
    %c0_163 = arith.constant 0 : index
    %135 = vector.load %arg17[%c0_161, %c3_162, %c0_163] : memref<20x20x2xf32, #tpu.memory_space<vmem>>, vector<16x16x2xf32>
    %136 = vector.shape_cast %135 : vector<16x16x2xf32> to vector<256x2xf32>
    %c3_164 = arith.constant 3 : index
    %c0_165 = arith.constant 0 : index
    %c0_166 = arith.constant 0 : index
    %137 = vector.load %arg10[%c3_164, %c0_165, %c0_166] : memref<25x2x4xf32, #tpu.memory_space<vmem>>, vector<1x2x4xf32>
    %138 = vector.shape_cast %137 : vector<1x2x4xf32> to vector<2x4xf32>
    %cst_167 = arith.constant dense<0.000000e+00> : vector<256x4xf32>
    %139 = tpu.matmul %136, %138, %cst_167 {dimension_numbers = #tpu.dot_dimension_numbers<[1], [0], [0], [1], [0, 0, 1, 1], [], []>} : vector<256x2xf32>, vector<2x4xf32>, vector<256x4xf32> -> vector<256x4xf32>
    %140 = arith.addf %134, %139 : vector<256x4xf32>
    %c0_168 = arith.constant 0 : index
    %c4_169 = arith.constant 4 : index
    %c0_170 = arith.constant 0 : index
    %141 = vector.load %arg17[%c0_168, %c4_169, %c0_170] : memref<20x20x2xf32, #tpu.memory_space<vmem>>, vector<16x16x2xf32>
    %142 = vector.shape_cast %141 : vector<16x16x2xf32> to vector<256x2xf32>
    %c4_171 = arith.constant 4 : index
    %c0_172 = arith.constant 0 : index
    %c0_173 = arith.constant 0 : index
    %143 = vector.load %arg10[%c4_171, %c0_172, %c0_173] : memref<25x2x4xf32, #tpu.memory_space<vmem>>, vector<1x2x4xf32>
    %144 = vector.shape_cast %143 : vector<1x2x4xf32> to vector<2x4xf32>
    %cst_174 = arith.constant dense<0.000000e+00> : vector<256x4xf32>
    %145 = tpu.matmul %142, %144, %cst_174 {dimension_numbers = #tpu.dot_dimension_numbers<[1], [0], [0], [1], [0, 0, 1, 1], [], []>} : vector<256x2xf32>, vector<2x4xf32>, vector<256x4xf32> -> vector<256x4xf32>
    %146 = arith.addf %140, %145 : vector<256x4xf32>
    %c1_175 = arith.constant 1 : index
    %c0_176 = arith.constant 0 : index
    %c0_177 = arith.constant 0 : index
    %147 = vector.load %arg17[%c1_175, %c0_176, %c0_177] : memref<20x20x2xf32, #tpu.memory_space<vmem>>, vector<16x16x2xf32>
    %148 = vector.shape_cast %147 : vector<16x16x2xf32> to vector<256x2xf32>
    %c5_178 = arith.constant 5 : index
    %c0_179 = arith.constant 0 : index
    %c0_180 = arith.constant 0 : index
    %149 = vector.load %arg10[%c5_178, %c0_179, %c0_180] : memref<25x2x4xf32, #tpu.memory_space<vmem>>, vector<1x2x4xf32>
    %150 = vector.shape_cast %149 : vector<1x2x4xf32> to vector<2x4xf32>
    %cst_181 = arith.constant dense<0.000000e+00> : vector<256x4xf32>
    %151 = tpu.matmul %148, %150, %cst_181 {dimension_numbers = #tpu.dot_dimension_numbers<[1], [0], [0], [1], [0, 0, 1, 1], [], []>} : vector<256x2xf32>, vector<2x4xf32>, vector<256x4xf32> -> vector<256x4xf32>
    %152 = arith.addf %146, %151 : vector<256x4xf32>
    %c1_182 = arith.constant 1 : index
    %c1_183 = arith.constant 1 : index
    %c0_184 = arith.constant 0 : index
    %153 = vector.load %arg17[%c1_182, %c1_183, %c0_184] : memref<20x20x2xf32, #tpu.memory_space<vmem>>, vector<16x16x2xf32>
    %154 = vector.shape_cast %153 : vector<16x16x2xf32> to vector<256x2xf32>
    %c6_185 = arith.constant 6 : index
    %c0_186 = arith.constant 0 : index
    %c0_187 = arith.constant 0 : index
    %155 = vector.load %arg10[%c6_185, %c0_186, %c0_187] : memref<25x2x4xf32, #tpu.memory_space<vmem>>, vector<1x2x4xf32>
    %156 = vector.shape_cast %155 : vector<1x2x4xf32> to vector<2x4xf32>
    %cst_188 = arith.constant dense<0.000000e+00> : vector<256x4xf32>
    %157 = tpu.matmul %154, %156, %cst_188 {dimension_numbers = #tpu.dot_dimension_numbers<[1], [0], [0], [1], [0, 0, 1, 1], [], []>} : vector<256x2xf32>, vector<2x4xf32>, vector<256x4xf32> -> vector<256x4xf32>
    %158 = arith.addf %152, %157 : vector<256x4xf32>
    %c1_189 = arith.constant 1 : index
    %c2_190 = arith.constant 2 : index
    %c0_191 = arith.constant 0 : index
    %159 = vector.load %arg17[%c1_189, %c2_190, %c0_191] : memref<20x20x2xf32, #tpu.memory_space<vmem>>, vector<16x16x2xf32>
    %160 = vector.shape_cast %159 : vector<16x16x2xf32> to vector<256x2xf32>
    %c7_192 = arith.constant 7 : index
    %c0_193 = arith.constant 0 : index
    %c0_194 = arith.constant 0 : index
    %161 = vector.load %arg10[%c7_192, %c0_193, %c0_194] : memref<25x2x4xf32, #tpu.memory_space<vmem>>, vector<1x2x4xf32>
    %162 = vector.shape_cast %161 : vector<1x2x4xf32> to vector<2x4xf32>
    %cst_195 = arith.constant dense<0.000000e+00> : vector<256x4xf32>
    %163 = tpu.matmul %160, %162, %cst_195 {dimension_numbers = #tpu.dot_dimension_numbers<[1], [0], [0], [1], [0, 0, 1, 1], [], []>} : vector<256x2xf32>, vector<2x4xf32>, vector<256x4xf32> -> vector<256x4xf32>
    %164 = arith.addf %158, %163 : vector<256x4xf32>
    %c1_196 = arith.constant 1 : index
    %c3_197 = arith.constant 3 : index
    %c0_198 = arith.constant 0 : index
    %165 = vector.load %arg17[%c1_196, %c3_197, %c0_198] : memref<20x20x2xf32, #tpu.memory_space<vmem>>, vector<16x16x2xf32>
    %166 = vector.shape_cast %165 : vector<16x16x2xf32> to vector<256x2xf32>
    %c8_199 = arith.constant 8 : index
    %c0_200 = arith.constant 0 : index
    %c0_201 = arith.constant 0 : index
    %167 = vector.load %arg10[%c8_199, %c0_200, %c0_201] : memref<25x2x4xf32, #tpu.memory_space<vmem>>, vector<1x2x4xf32>
    %168 = vector.shape_cast %167 : vector<1x2x4xf32> to vector<2x4xf32>
    %cst_202 = arith.constant dense<0.000000e+00> : vector<256x4xf32>
    %169 = tpu.matmul %166, %168, %cst_202 {dimension_numbers = #tpu.dot_dimension_numbers<[1], [0], [0], [1], [0, 0, 1, 1], [], []>} : vector<256x2xf32>, vector<2x4xf32>, vector<256x4xf32> -> vector<256x4xf32>
    %170 = arith.addf %164, %169 : vector<256x4xf32>
    %c1_203 = arith.constant 1 : index
    %c4_204 = arith.constant 4 : index
    %c0_205 = arith.constant 0 : index
    %171 = vector.load %arg17[%c1_203, %c4_204, %c0_205] : memref<20x20x2xf32, #tpu.memory_space<vmem>>, vector<16x16x2xf32>
    %172 = vector.shape_cast %171 : vector<16x16x2xf32> to vector<256x2xf32>
    %c9 = arith.constant 9 : index
    %c0_206 = arith.constant 0 : index
    %c0_207 = arith.constant 0 : index
    %173 = vector.load %arg10[%c9, %c0_206, %c0_207] : memref<25x2x4xf32, #tpu.memory_space<vmem>>, vector<1x2x4xf32>
    %174 = vector.shape_cast %173 : vector<1x2x4xf32> to vector<2x4xf32>
    %cst_208 = arith.constant dense<0.000000e+00> : vector<256x4xf32>
    %175 = tpu.matmul %172, %174, %cst_208 {dimension_numbers = #tpu.dot_dimension_numbers<[1], [0], [0], [1], [0, 0, 1, 1], [], []>} : vector<256x2xf32>, vector<2x4xf32>, vector<256x4xf32> -> vector<256x4xf32>
    %176 = arith.addf %170, %175 : vector<256x4xf32>
    %c2_209 = arith.constant 2 : index
    %c0_210 = arith.constant 0 : index
    %c0_211 = arith.constant 0 : index
    %177 = vector.load %arg17[%c2_209, %c0_210, %c0_211] : memref<20x20x2xf32, #tpu.memory_space<vmem>>, vector<16x16x2xf32>
    %178 = vector.shape_cast %177 : vector<16x16x2xf32> to vector<256x2xf32>
    %c10 = arith.constant 10 : index
    %c0_212 = arith.constant 0 : index
    %c0_213 = arith.constant 0 : index
    %179 = vector.load %arg10[%c10, %c0_212, %c0_213] : memref<25x2x4xf32, #tpu.memory_space<vmem>>, vector<1x2x4xf32>
    %180 = vector.shape_cast %179 : vector<1x2x4xf32> to vector<2x4xf32>
    %cst_214 = arith.constant dense<0.000000e+00> : vector<256x4xf32>
    %181 = tpu.matmul %178, %180, %cst_214 {dimension_numbers = #tpu.dot_dimension_numbers<[1], [0], [0], [1], [0, 0, 1, 1], [], []>} : vector<256x2xf32>, vector<2x4xf32>, vector<256x4xf32> -> vector<256x4xf32>
    %182 = arith.addf %176, %181 : vector<256x4xf32>
    %c2_215 = arith.constant 2 : index
    %c1_216 = arith.constant 1 : index
    %c0_217 = arith.constant 0 : index
    %183 = vector.load %arg17[%c2_215, %c1_216, %c0_217] : memref<20x20x2xf32, #tpu.memory_space<vmem>>, vector<16x16x2xf32>
    %184 = vector.shape_cast %183 : vector<16x16x2xf32> to vector<256x2xf32>
    %c11 = arith.constant 11 : index
    %c0_218 = arith.constant 0 : index
    %c0_219 = arith.constant 0 : index
    %185 = vector.load %arg10[%c11, %c0_218, %c0_219] : memref<25x2x4xf32, #tpu.memory_space<vmem>>, vector<1x2x4xf32>
    %186 = vector.shape_cast %185 : vector<1x2x4xf32> to vector<2x4xf32>
    %cst_220 = arith.constant dense<0.000000e+00> : vector<256x4xf32>
    %187 = tpu.matmul %184, %186, %cst_220 {dimension_numbers = #tpu.dot_dimension_numbers<[1], [0], [0], [1], [0, 0, 1, 1], [], []>} : vector<256x2xf32>, vector<2x4xf32>, vector<256x4xf32> -> vector<256x4xf32>
    %188 = arith.addf %182, %187 : vector<256x4xf32>
    %c2_221 = arith.constant 2 : index
    %c2_222 = arith.constant 2 : index
    %c0_223 = arith.constant 0 : index
    %189 = vector.load %arg17[%c2_221, %c2_222, %c0_223] : memref<20x20x2xf32, #tpu.memory_space<vmem>>, vector<16x16x2xf32>
    %190 = vector.shape_cast %189 : vector<16x16x2xf32> to vector<256x2xf32>
    %c12 = arith.constant 12 : index
    %c0_224 = arith.constant 0 : index
    %c0_225 = arith.constant 0 : index
    %191 = vector.load %arg10[%c12, %c0_224, %c0_225] : memref<25x2x4xf32, #tpu.memory_space<vmem>>, vector<1x2x4xf32>
    %192 = vector.shape_cast %191 : vector<1x2x4xf32> to vector<2x4xf32>
    %cst_226 = arith.constant dense<0.000000e+00> : vector<256x4xf32>
    %193 = tpu.matmul %190, %192, %cst_226 {dimension_numbers = #tpu.dot_dimension_numbers<[1], [0], [0], [1], [0, 0, 1, 1], [], []>} : vector<256x2xf32>, vector<2x4xf32>, vector<256x4xf32> -> vector<256x4xf32>
    %194 = arith.addf %188, %193 : vector<256x4xf32>
    %c2_227 = arith.constant 2 : index
    %c3_228 = arith.constant 3 : index
    %c0_229 = arith.constant 0 : index
    %195 = vector.load %arg17[%c2_227, %c3_228, %c0_229] : memref<20x20x2xf32, #tpu.memory_space<vmem>>, vector<16x16x2xf32>
    %196 = vector.shape_cast %195 : vector<16x16x2xf32> to vector<256x2xf32>
    %c13 = arith.constant 13 : index
    %c0_230 = arith.constant 0 : index
    %c0_231 = arith.constant 0 : index
    %197 = vector.load %arg10[%c13, %c0_230, %c0_231] : memref<25x2x4xf32, #tpu.memory_space<vmem>>, vector<1x2x4xf32>
    %198 = vector.shape_cast %197 : vector<1x2x4xf32> to vector<2x4xf32>
    %cst_232 = arith.constant dense<0.000000e+00> : vector<256x4xf32>
    %199 = tpu.matmul %196, %198, %cst_232 {dimension_numbers = #tpu.dot_dimension_numbers<[1], [0], [0], [1], [0, 0, 1, 1], [], []>} : vector<256x2xf32>, vector<2x4xf32>, vector<256x4xf32> -> vector<256x4xf32>
    %200 = arith.addf %194, %199 : vector<256x4xf32>
    %c2_233 = arith.constant 2 : index
    %c4_234 = arith.constant 4 : index
    %c0_235 = arith.constant 0 : index
    %201 = vector.load %arg17[%c2_233, %c4_234, %c0_235] : memref<20x20x2xf32, #tpu.memory_space<vmem>>, vector<16x16x2xf32>
    %202 = vector.shape_cast %201 : vector<16x16x2xf32> to vector<256x2xf32>
    %c14 = arith.constant 14 : index
    %c0_236 = arith.constant 0 : index
    %c0_237 = arith.constant 0 : index
    %203 = vector.load %arg10[%c14, %c0_236, %c0_237] : memref<25x2x4xf32, #tpu.memory_space<vmem>>, vector<1x2x4xf32>
    %204 = vector.shape_cast %203 : vector<1x2x4xf32> to vector<2x4xf32>
    %cst_238 = arith.constant dense<0.000000e+00> : vector<256x4xf32>
    %205 = tpu.matmul %202, %204, %cst_238 {dimension_numbers = #tpu.dot_dimension_numbers<[1], [0], [0], [1], [0, 0, 1, 1], [], []>} : vector<256x2xf32>, vector<2x4xf32>, vector<256x4xf32> -> vector<256x4xf32>
    %206 = arith.addf %200, %205 : vector<256x4xf32>
    %c3_239 = arith.constant 3 : index
    %c0_240 = arith.constant 0 : index
    %c0_241 = arith.constant 0 : index
    %207 = vector.load %arg17[%c3_239, %c0_240, %c0_241] : memref<20x20x2xf32, #tpu.memory_space<vmem>>, vector<16x16x2xf32>
    %208 = vector.shape_cast %207 : vector<16x16x2xf32> to vector<256x2xf32>
    %c15 = arith.constant 15 : index
    %c0_242 = arith.constant 0 : index
    %c0_243 = arith.constant 0 : index
    %209 = vector.load %arg10[%c15, %c0_242, %c0_243] : memref<25x2x4xf32, #tpu.memory_space<vmem>>, vector<1x2x4xf32>
    %210 = vector.shape_cast %209 : vector<1x2x4xf32> to vector<2x4xf32>
    %cst_244 = arith.constant dense<0.000000e+00> : vector<256x4xf32>
    %211 = tpu.matmul %208, %210, %cst_244 {dimension_numbers = #tpu.dot_dimension_numbers<[1], [0], [0], [1], [0, 0, 1, 1], [], []>} : vector<256x2xf32>, vector<2x4xf32>, vector<256x4xf32> -> vector<256x4xf32>
    %212 = arith.addf %206, %211 : vector<256x4xf32>
    %c3_245 = arith.constant 3 : index
    %c1_246 = arith.constant 1 : index
    %c0_247 = arith.constant 0 : index
    %213 = vector.load %arg17[%c3_245, %c1_246, %c0_247] : memref<20x20x2xf32, #tpu.memory_space<vmem>>, vector<16x16x2xf32>
    %214 = vector.shape_cast %213 : vector<16x16x2xf32> to vector<256x2xf32>
    %c16 = arith.constant 16 : index
    %c0_248 = arith.constant 0 : index
    %c0_249 = arith.constant 0 : index
    %215 = vector.load %arg10[%c16, %c0_248, %c0_249] : memref<25x2x4xf32, #tpu.memory_space<vmem>>, vector<1x2x4xf32>
    %216 = vector.shape_cast %215 : vector<1x2x4xf32> to vector<2x4xf32>
    %cst_250 = arith.constant dense<0.000000e+00> : vector<256x4xf32>
    %217 = tpu.matmul %214, %216, %cst_250 {dimension_numbers = #tpu.dot_dimension_numbers<[1], [0], [0], [1], [0, 0, 1, 1], [], []>} : vector<256x2xf32>, vector<2x4xf32>, vector<256x4xf32> -> vector<256x4xf32>
    %218 = arith.addf %212, %217 : vector<256x4xf32>
    %c3_251 = arith.constant 3 : index
    %c2_252 = arith.constant 2 : index
    %c0_253 = arith.constant 0 : index
    %219 = vector.load %arg17[%c3_251, %c2_252, %c0_253] : memref<20x20x2xf32, #tpu.memory_space<vmem>>, vector<16x16x2xf32>
    %220 = vector.shape_cast %219 : vector<16x16x2xf32> to vector<256x2xf32>
    %c17_254 = arith.constant 17 : index
    %c0_255 = arith.constant 0 : index
    %c0_256 = arith.constant 0 : index
    %221 = vector.load %arg10[%c17_254, %c0_255, %c0_256] : memref<25x2x4xf32, #tpu.memory_space<vmem>>, vector<1x2x4xf32>
    %222 = vector.shape_cast %221 : vector<1x2x4xf32> to vector<2x4xf32>
    %cst_257 = arith.constant dense<0.000000e+00> : vector<256x4xf32>
    %223 = tpu.matmul %220, %222, %cst_257 {dimension_numbers = #tpu.dot_dimension_numbers<[1], [0], [0], [1], [0, 0, 1, 1], [], []>} : vector<256x2xf32>, vector<2x4xf32>, vector<256x4xf32> -> vector<256x4xf32>
    %224 = arith.addf %218, %223 : vector<256x4xf32>
    %c3_258 = arith.constant 3 : index
    %c3_259 = arith.constant 3 : index
    %c0_260 = arith.constant 0 : index
    %225 = vector.load %arg17[%c3_258, %c3_259, %c0_260] : memref<20x20x2xf32, #tpu.memory_space<vmem>>, vector<16x16x2xf32>
    %226 = vector.shape_cast %225 : vector<16x16x2xf32> to vector<256x2xf32>
    %c18_261 = arith.constant 18 : index
    %c0_262 = arith.constant 0 : index
    %c0_263 = arith.constant 0 : index
    %227 = vector.load %arg10[%c18_261, %c0_262, %c0_263] : memref<25x2x4xf32, #tpu.memory_space<vmem>>, vector<1x2x4xf32>
    %228 = vector.shape_cast %227 : vector<1x2x4xf32> to vector<2x4xf32>
    %cst_264 = arith.constant dense<0.000000e+00> : vector<256x4xf32>
    %229 = tpu.matmul %226, %228, %cst_264 {dimension_numbers = #tpu.dot_dimension_numbers<[1], [0], [0], [1], [0, 0, 1, 1], [], []>} : vector<256x2xf32>, vector<2x4xf32>, vector<256x4xf32> -> vector<256x4xf32>
    %230 = arith.addf %224, %229 : vector<256x4xf32>
    %c3_265 = arith.constant 3 : index
    %c4_266 = arith.constant 4 : index
    %c0_267 = arith.constant 0 : index
    %231 = vector.load %arg17[%c3_265, %c4_266, %c0_267] : memref<20x20x2xf32, #tpu.memory_space<vmem>>, vector<16x16x2xf32>
    %232 = vector.shape_cast %231 : vector<16x16x2xf32> to vector<256x2xf32>
    %c19 = arith.constant 19 : index
    %c0_268 = arith.constant 0 : index
    %c0_269 = arith.constant 0 : index
    %233 = vector.load %arg10[%c19, %c0_268, %c0_269] : memref<25x2x4xf32, #tpu.memory_space<vmem>>, vector<1x2x4xf32>
    %234 = vector.shape_cast %233 : vector<1x2x4xf32> to vector<2x4xf32>
    %cst_270 = arith.constant dense<0.000000e+00> : vector<256x4xf32>
    %235 = tpu.matmul %232, %234, %cst_270 {dimension_numbers = #tpu.dot_dimension_numbers<[1], [0], [0], [1], [0, 0, 1, 1], [], []>} : vector<256x2xf32>, vector<2x4xf32>, vector<256x4xf32> -> vector<256x4xf32>
    %236 = arith.addf %230, %235 : vector<256x4xf32>
    %c4_271 = arith.constant 4 : index
    %c0_272 = arith.constant 0 : index
    %c0_273 = arith.constant 0 : index
    %237 = vector.load %arg17[%c4_271, %c0_272, %c0_273] : memref<20x20x2xf32, #tpu.memory_space<vmem>>, vector<16x16x2xf32>
    %238 = vector.shape_cast %237 : vector<16x16x2xf32> to vector<256x2xf32>
    %c20 = arith.constant 20 : index
    %c0_274 = arith.constant 0 : index
    %c0_275 = arith.constant 0 : index
    %239 = vector.load %arg10[%c20, %c0_274, %c0_275] : memref<25x2x4xf32, #tpu.memory_space<vmem>>, vector<1x2x4xf32>
    %240 = vector.shape_cast %239 : vector<1x2x4xf32> to vector<2x4xf32>
    %cst_276 = arith.constant dense<0.000000e+00> : vector<256x4xf32>
    %241 = tpu.matmul %238, %240, %cst_276 {dimension_numbers = #tpu.dot_dimension_numbers<[1], [0], [0], [1], [0, 0, 1, 1], [], []>} : vector<256x2xf32>, vector<2x4xf32>, vector<256x4xf32> -> vector<256x4xf32>
    %242 = arith.addf %236, %241 : vector<256x4xf32>
    %c4_277 = arith.constant 4 : index
    %c1_278 = arith.constant 1 : index
    %c0_279 = arith.constant 0 : index
    %243 = vector.load %arg17[%c4_277, %c1_278, %c0_279] : memref<20x20x2xf32, #tpu.memory_space<vmem>>, vector<16x16x2xf32>
    %244 = vector.shape_cast %243 : vector<16x16x2xf32> to vector<256x2xf32>
    %c21 = arith.constant 21 : index
    %c0_280 = arith.constant 0 : index
    %c0_281 = arith.constant 0 : index
    %245 = vector.load %arg10[%c21, %c0_280, %c0_281] : memref<25x2x4xf32, #tpu.memory_space<vmem>>, vector<1x2x4xf32>
    %246 = vector.shape_cast %245 : vector<1x2x4xf32> to vector<2x4xf32>
    %cst_282 = arith.constant dense<0.000000e+00> : vector<256x4xf32>
    %247 = tpu.matmul %244, %246, %cst_282 {dimension_numbers = #tpu.dot_dimension_numbers<[1], [0], [0], [1], [0, 0, 1, 1], [], []>} : vector<256x2xf32>, vector<2x4xf32>, vector<256x4xf32> -> vector<256x4xf32>
    %248 = arith.addf %242, %247 : vector<256x4xf32>
    %c4_283 = arith.constant 4 : index
    %c2_284 = arith.constant 2 : index
    %c0_285 = arith.constant 0 : index
    %249 = vector.load %arg17[%c4_283, %c2_284, %c0_285] : memref<20x20x2xf32, #tpu.memory_space<vmem>>, vector<16x16x2xf32>
    %250 = vector.shape_cast %249 : vector<16x16x2xf32> to vector<256x2xf32>
    %c22 = arith.constant 22 : index
    %c0_286 = arith.constant 0 : index
    %c0_287 = arith.constant 0 : index
    %251 = vector.load %arg10[%c22, %c0_286, %c0_287] : memref<25x2x4xf32, #tpu.memory_space<vmem>>, vector<1x2x4xf32>
    %252 = vector.shape_cast %251 : vector<1x2x4xf32> to vector<2x4xf32>
    %cst_288 = arith.constant dense<0.000000e+00> : vector<256x4xf32>
    %253 = tpu.matmul %250, %252, %cst_288 {dimension_numbers = #tpu.dot_dimension_numbers<[1], [0], [0], [1], [0, 0, 1, 1], [], []>} : vector<256x2xf32>, vector<2x4xf32>, vector<256x4xf32> -> vector<256x4xf32>
    %254 = arith.addf %248, %253 : vector<256x4xf32>
    %c4_289 = arith.constant 4 : index
    %c3_290 = arith.constant 3 : index
    %c0_291 = arith.constant 0 : index
    %255 = vector.load %arg17[%c4_289, %c3_290, %c0_291] : memref<20x20x2xf32, #tpu.memory_space<vmem>>, vector<16x16x2xf32>
    %256 = vector.shape_cast %255 : vector<16x16x2xf32> to vector<256x2xf32>
    %c23 = arith.constant 23 : index
    %c0_292 = arith.constant 0 : index
    %c0_293 = arith.constant 0 : index
    %257 = vector.load %arg10[%c23, %c0_292, %c0_293] : memref<25x2x4xf32, #tpu.memory_space<vmem>>, vector<1x2x4xf32>
    %258 = vector.shape_cast %257 : vector<1x2x4xf32> to vector<2x4xf32>
    %cst_294 = arith.constant dense<0.000000e+00> : vector<256x4xf32>
    %259 = tpu.matmul %256, %258, %cst_294 {dimension_numbers = #tpu.dot_dimension_numbers<[1], [0], [0], [1], [0, 0, 1, 1], [], []>} : vector<256x2xf32>, vector<2x4xf32>, vector<256x4xf32> -> vector<256x4xf32>
    %260 = arith.addf %254, %259 : vector<256x4xf32>
    %c4_295 = arith.constant 4 : index
    %c4_296 = arith.constant 4 : index
    %c0_297 = arith.constant 0 : index
    %261 = vector.load %arg17[%c4_295, %c4_296, %c0_297] : memref<20x20x2xf32, #tpu.memory_space<vmem>>, vector<16x16x2xf32>
    %262 = vector.shape_cast %261 : vector<16x16x2xf32> to vector<256x2xf32>
    %c24 = arith.constant 24 : index
    %c0_298 = arith.constant 0 : index
    %c0_299 = arith.constant 0 : index
    %263 = vector.load %arg10[%c24, %c0_298, %c0_299] : memref<25x2x4xf32, #tpu.memory_space<vmem>>, vector<1x2x4xf32>
    %264 = vector.shape_cast %263 : vector<1x2x4xf32> to vector<2x4xf32>
    %cst_300 = arith.constant dense<0.000000e+00> : vector<256x4xf32>
    %265 = tpu.matmul %262, %264, %cst_300 {dimension_numbers = #tpu.dot_dimension_numbers<[1], [0], [0], [1], [0, 0, 1, 1], [], []>} : vector<256x2xf32>, vector<2x4xf32>, vector<256x4xf32> -> vector<256x4xf32>
    %266 = arith.addf %260, %265 : vector<256x4xf32>
    %c0_301 = arith.constant 0 : index
    %c0_302 = arith.constant 0 : index
    %267 = vector.load %arg11[%c0_301, %c0_302] : memref<1x4xf32, #tpu.memory_space<vmem>>, vector<1x4xf32>
    %268 = vector.broadcast %267 : vector<1x4xf32> to vector<256x4xf32>
    %269 = arith.addf %266, %268 : vector<256x4xf32>
    %cst_303 = arith.constant 0.000000e+00 : f32
    %270 = vector.broadcast %cst_303 : f32 to vector<256x4xf32>
    %271 = arith.maximumf %269, %270 : vector<256x4xf32>
    %272 = vector.shape_cast %271 : vector<256x4xf32> to vector<1x16x16x4xf32>
    %c0_304 = arith.constant 0 : index
    %c0_305 = arith.constant 0 : index
    %c0_306 = arith.constant 0 : index
    %c12_307 = arith.constant 12 : index
    %273 = vector.load %arg14[%c0_304, %c0_305, %c0_306, %c12_307] : memref<1x16x16x20xf32, #tpu.memory_space<vmem>>, vector<1x16x16x4xf32>
    tpu.vector_store %arg14[%c0_304, %c0_305, %c0_306, %c12_307], %272 {strides = array<i32>} : memref<1x16x16x20xf32, #tpu.memory_space<vmem>>, vector<1x16x16x4xf32>,
    %c1_308 = arith.constant 1 : index
    %c1_309 = arith.constant 1 : index
    %c0_310 = arith.constant 0 : index
    %274 = vector.load %arg15[%c1_308, %c1_309, %c0_310] : memref<18x18x4xf32, #tpu.memory_space<vmem>>, vector<16x16x4xf32>
    tpu.vector_store %arg15[%c1_308, %c1_309, %c0_310], %25 {strides = array<i32>} : memref<18x18x4xf32, #tpu.memory_space<vmem>>, vector<16x16x4xf32>,
    %c0_311 = arith.constant 0 : index
    %c0_312 = arith.constant 0 : index
    %c0_313 = arith.constant 0 : index
    %275 = vector.load %arg15[%c0_311, %c0_312, %c0_313] : memref<18x18x4xf32, #tpu.memory_space<vmem>>, vector<18x16x4xf32>
    %c0_314 = arith.constant 0 : index
    %c1_315 = arith.constant 1 : index
    %c0_316 = arith.constant 0 : index
    %276 = vector.load %arg15[%c0_314, %c1_315, %c0_316] : memref<18x18x4xf32, #tpu.memory_space<vmem>>, vector<18x16x4xf32>
    %277 = arith.maximumf %275, %276 : vector<18x16x4xf32>
    %c0_317 = arith.constant 0 : index
    %c2_318 = arith.constant 2 : index
    %c0_319 = arith.constant 0 : index
    %278 = vector.load %arg15[%c0_317, %c2_318, %c0_319] : memref<18x18x4xf32, #tpu.memory_space<vmem>>, vector<18x16x4xf32>
    %279 = arith.maximumf %277, %278 : vector<18x16x4xf32>
    %280 = vector.extract_strided_slice %279 {offsets = [0, 0, 0], sizes = [16, 16, 4], strides = [1, 1, 1]} : vector<18x16x4xf32> to vector<16x16x4xf32>
    %281 = vector.extract_strided_slice %279 {offsets = [1, 0, 0], sizes = [16, 16, 4], strides = [1, 1, 1]} : vector<18x16x4xf32> to vector<16x16x4xf32>
    %282 = arith.maximumf %280, %281 : vector<16x16x4xf32>
    %283 = vector.extract_strided_slice %279 {offsets = [2, 0, 0], sizes = [16, 16, 4], strides = [1, 1, 1]} : vector<18x16x4xf32> to vector<16x16x4xf32>
    %284 = arith.maximumf %282, %283 : vector<16x16x4xf32>
    %285 = vector.shape_cast %284 : vector<16x16x4xf32> to vector<256x4xf32>
    %c0_320 = arith.constant 0 : index
    %c0_321 = arith.constant 0 : index
    %286 = vector.load %arg12[%c0_320, %c0_321] : memref<4x4xf32, #tpu.memory_space<vmem>>, vector<4x4xf32>
    %cst_322 = arith.constant dense<0.000000e+00> : vector<256x4xf32>
    %287 = tpu.matmul %285, %286, %cst_322 {dimension_numbers = #tpu.dot_dimension_numbers<[1], [0], [0], [1], [0, 0, 1, 1], [], []>} : vector<256x4xf32>, vector<4x4xf32>, vector<256x4xf32> -> vector<256x4xf32>
    %c0_323 = arith.constant 0 : index
    %c0_324 = arith.constant 0 : index
    %288 = vector.load %arg13[%c0_323, %c0_324] : memref<1x4xf32, #tpu.memory_space<vmem>>, vector<1x4xf32>
    %289 = vector.broadcast %288 : vector<1x4xf32> to vector<256x4xf32>
    %290 = arith.addf %287, %289 : vector<256x4xf32>
    %cst_325 = arith.constant 0.000000e+00 : f32
    %291 = vector.broadcast %cst_325 : f32 to vector<256x4xf32>
    %292 = arith.maximumf %290, %291 : vector<256x4xf32>
    %293 = vector.shape_cast %292 : vector<256x4xf32> to vector<1x16x16x4xf32>
    %c0_326 = arith.constant 0 : index
    %c0_327 = arith.constant 0 : index
    %c0_328 = arith.constant 0 : index
    %c16_329 = arith.constant 16 : index
    %294 = vector.load %arg14[%c0_326, %c0_327, %c0_328, %c16_329] : memref<1x16x16x20xf32, #tpu.memory_space<vmem>>, vector<1x16x16x4xf32>
    tpu.vector_store %arg14[%c0_326, %c0_327, %c0_328, %c16_329], %293 {strides = array<i32>} : memref<1x16x16x20xf32, #tpu.memory_space<vmem>>, vector<1x16x16x4xf32>,
    return
  }
  func.func @transform_0(%arg0: i32) -> (i32, i32, i32, i32) {
    %c0_i32 = arith.constant 0 : i32
    %c0_i32_0 = arith.constant 0 : i32
    %c0_i32_1 = arith.constant 0 : i32
    %c0_i32_2 = arith.constant 0 : i32
    return %arg0, %c0_i32, %c0_i32_0, %c0_i32_1 : i32, i32, i32, i32
  }
  func.func @transform_1(%arg0: i32) -> (i32, i32) {
    %c0_i32 = arith.constant 0 : i32
    %c0_i32_0 = arith.constant 0 : i32
    %c0_i32_1 = arith.constant 0 : i32
    return %c0_i32, %c0_i32_0 : i32, i32
  }
  func.func @transform_2(%arg0: i32) -> (i32, i32) {
    %c0_i32 = arith.constant 0 : i32
    %c0_i32_0 = arith.constant 0 : i32
    %c0_i32_1 = arith.constant 0 : i32
    return %c0_i32, %c0_i32_0 : i32, i32
  }
  func.func @transform_3(%arg0: i32) -> (i32, i32) {
    %c0_i32 = arith.constant 0 : i32
    %c0_i32_0 = arith.constant 0 : i32
    %c0_i32_1 = arith.constant 0 : i32
    return %c0_i32, %c0_i32_0 : i32, i32
  }
  func.func @transform_4(%arg0: i32) -> (i32, i32) {
    %c0_i32 = arith.constant 0 : i32
    %c0_i32_0 = arith.constant 0 : i32
    %c0_i32_1 = arith.constant 0 : i32
    return %c0_i32, %c0_i32_0 : i32, i32
  }
  func.func @transform_5(%arg0: i32) -> (i32, i32, i32) {
    %c0_i32 = arith.constant 0 : i32
    %c0_i32_0 = arith.constant 0 : i32
    %c0_i32_1 = arith.constant 0 : i32
    %c0_i32_2 = arith.constant 0 : i32
    return %c0_i32, %c0_i32_0, %c0_i32_1 : i32, i32, i32
  }
  func.func @transform_6(%arg0: i32) -> (i32, i32) {
    %c0_i32 = arith.constant 0 : i32
    %c0_i32_0 = arith.constant 0 : i32
    %c0_i32_1 = arith.constant 0 : i32
    return %c0_i32, %c0_i32_0 : i32, i32
  }
  func.func @transform_7(%arg0: i32) -> (i32, i32) {
    %c0_i32 = arith.constant 0 : i32
    %c0_i32_0 = arith.constant 0 : i32
    %c0_i32_1 = arith.constant 0 : i32
    return %c0_i32, %c0_i32_0 : i32, i32
  }
  func.func @transform_8(%arg0: i32) -> (i32, i32) {
    %c0_i32 = arith.constant 0 : i32
    %c0_i32_0 = arith.constant 0 : i32
    %c0_i32_1 = arith.constant 0 : i32
    return %c0_i32, %c0_i32_0 : i32, i32
  }
  func.func @transform_9(%arg0: i32) -> (i32, i32, i32) {
    %c0_i32 = arith.constant 0 : i32
    %c0_i32_0 = arith.constant 0 : i32
    %c0_i32_1 = arith.constant 0 : i32
    %c0_i32_2 = arith.constant 0 : i32
    return %c0_i32, %c0_i32_0, %c0_i32_1 : i32, i32, i32
  }
  func.func @transform_10(%arg0: i32) -> (i32, i32) {
    %c0_i32 = arith.constant 0 : i32
    %c0_i32_0 = arith.constant 0 : i32
    %c0_i32_1 = arith.constant 0 : i32
    return %c0_i32, %c0_i32_0 : i32, i32
  }
  func.func @transform_11(%arg0: i32) -> (i32, i32) {
    %c0_i32 = arith.constant 0 : i32
    %c0_i32_0 = arith.constant 0 : i32
    %c0_i32_1 = arith.constant 0 : i32
    return %c0_i32, %c0_i32_0 : i32, i32
  }
  func.func @transform_12(%arg0: i32) -> (i32, i32) {
    %c0_i32 = arith.constant 0 : i32
    %c0_i32_0 = arith.constant 0 : i32
    %c0_i32_1 = arith.constant 0 : i32
    return %c0_i32, %c0_i32_0 : i32, i32
  }
  func.func @transform_13(%arg0: i32) -> (i32, i32, i32, i32) {
    %c0_i32 = arith.constant 0 : i32
    %c0_i32_0 = arith.constant 0 : i32
    %c0_i32_1 = arith.constant 0 : i32
    %c0_i32_2 = arith.constant 0 : i32
    return %arg0, %c0_i32, %c0_i32_0, %c0_i32_1 : i32, i32, i32, i32
  }
}

</mosaic_0001>

<bundles_post_ra>
// kernel: inception_forward.1
= control target key start
LH: loop header
LB: loop body
LE: loop exit
PB: predicated region body
PF: predicated region fallthrough
CT: control target
= control target key end

     0   :  { %s26920_s0 = inlined_call_operand.vmem [shape: f32[2,16,16,4], index: 0, kind: input, shape index: {}]   ;;  %s26921_s1 = inlined_call_operand.vmem [shape: f32[4,4], index: 1, kind: input, shape index: {}]   ;;  %s26922_s2 = inlined_call_operand.vmem [shape: f32[1,4], index: 2, kind: input, shape index: {}]   ;;  %s26923_s3 = inlined_call_operand.vmem [shape: f32[4,4], index: 3, kind: input, shape index: {}]   ;;  %s26924_s4 = inlined_call_operand.vmem [shape: f32[1,4], index: 4, kind: input, shape index: {}]   ;;  %s26925_s5 = inlined_call_operand.vmem [shape: f32[9,4,8], index: 5, kind: input, shape index: {}]   ;;  %s26926_s6 = inlined_call_operand.vmem [shape: f32[1,8], index: 6, kind: input, shape index: {}]   ;;  %s26927_s7 = inlined_call_operand.vmem [shape: f32[4,2], index: 7, kind: input, shape index: {}]   ;;  %s26928_s8 = inlined_call_operand.vmem [shape: f32[1,2], index: 8, kind: input, shape index: {}]   ;;  %s26929_s9 = inlined_call_operand.vmem [shape: f32[25,2,4], index: 9, kind: input, shape index: {}]   ;;  %s26930_s10 = inlined_call_operand.vmem [shape: f32[1,4], index: 10, kind: input, shape index: {}]   ;;  %s26931_s11 = inlined_call_operand.vmem [shape: f32[4,4], index: 11, kind: input, shape index: {}]   ;;  %s26932_s12 = inlined_call_operand.vmem [shape: f32[1,4], index: 12, kind: input, shape index: {}]   ;;  %s26933_s13 = inlined_call_operand.hbm [shape: f32[2,16,16,20], index: 13, kind: output, shape index: {}]  }
   0x1   :  { %27144 = sst [smem:[#allocation64_spill]] %s26920_s0 }
   0x2   :  { %27145 = sst [smem:[#allocation65_spill]] %s26921_s1 }
   0x3   :  { %27146 = sst [smem:[#allocation66_spill]] %s26922_s2 }
   0x4   :  { %18 = vsyncpa [#allocation6], 0 }
   0x5   :  { %20 = vsyncpa [#allocation6 + $0x1], 0  ;;  %s20748_s25 = smov 0   ;;  %s20750_s26 = smov 0  }
   0x6   :  { %s20752_s27 = smov 0   ;;  %s20754_s28 = smov 0  }
   0x7 LB: > { %s20769_s29 = sadd.s32 4294967295, %s20668_s28   ;;  %s16092_s30 = sadd.s32 4294967294, %s20668_s28   ;;  %s20668_s28 = sphi %s20754_s28, %s27698_s28   ;;  %s20664_s27 = sphi %s20752_s27, %s27697_s27   ;;  %s20660_s26 = sphi %s20750_s26, %s27696_s26   ;;  %s20656_s25 = sphi %s20748_s25, %s27695_s25  }
   0x8   : > { %s20773_s14 = sadd.s32 1, %s20668_s28   ;;  %s311_s15 = sadd.s32 1, %s20664_s27 }
   0x9   : > { %s308_s16 = ssub.s32 %s20668_s28, %s20773_s14  ;;  %p321_p0 = scmp.ne.s32.totalorder %s20664_s27, %s20660_s26 }
   0xa   : > { %p309_p1 = scmp.eq.s32.totalorder %s308_s16, 0  ;;  %p322_p2 = scmp.eq.s32.totalorder %s20769_s29, 1 }
   0xb   : > { %p327_p3 = scmp.ne.s32.totalorder %s20660_s26, %s20656_s25  ;;  %p328_p4 = scmp.eq.s32.totalorder %s16092_s30, 1 }
   0xc   : > { %s20784_s17 = scalar_select %p309_p1, %s20664_s27, %s311_s15  }
   0xd   : > { %p20786_p5 = por %p322_p2, %p321_p0  ;;  %p20790_p6 = por %p328_p4, %p327_p3 }
   0xe   : > { %p16095_p7 = scmp.ge.s32.totalorder %s20668_s28, 1  ;;  %p390_p8 = scmp.lt.s32.totalorder %s20668_s28, 3 }
  0x10   : > { %p391_p9 = pnand %p16095_p7, %p390_p8 }
  0x12   : > { %394 = sbr.rel (%p391_p9) target bundleno = 1919 (0x77f), region = 72 }
  0x17   : > { %vm720_vm0 = vcmask 1043456   ;;  %v1013_v0 = vld [vmem:[%s26923_s3] sm:$0xf]  ;;  %p434_p10 = scmp.lt.s32.totalorder %s20769_s29, 1  ;;  %s27149_s1 = sld [smem:[#allocation65_spill]]  ;;  %vm439_vm1 = vcmask 31744  }
  0x18   : > { %18702 = vmatprep.subr.msk.mxu1 %vm720_vm0, %v1013_v0  ;;  %v1346_v2 = vld [vmem:[%s26925_s5] sm:$0xf]  ;;  %s27150_s0 = sld [smem:[#allocation64_spill]]  ;;  %v26934_v35 = vmov 0.0   ;;  %vm448_vm2 = vcmask 24576   ;;  %vm442_vm3 = vcmask 25600  }
  0x19   : > { %18703 = vmatpush3.msk.msra.mxu1 %vm720_vm0, %v1013_v0  ;;  %s435_s15 = scalar_select %p434_p10, %s20769_s29, 1  ;;  %485 = vst.msk [vmem:[#allocation3] sm:$0xff] %vm439_vm1, %v26934_v35  ;;  %486 = vst.msk [vmem:[#allocation3 + $0x8] sm:$0xff] %vm439_vm1, %v26934_v35  ;;  %v16167_v36 = vld [vmem:[%s26925_s5 + $0x4] sm:$0xf]  ;;  %v20671_v42 = vmov -inf  }
  0x1a   : > { %18802 = vmatprep.subr.msk.mxu1 %vm720_vm0, %v1346_v2  ;;  %489 = vst.msk [vmem:[#allocation3 + $0x198] sm:$0xff] %vm439_vm1, %v26934_v35  ;;  %490 = vst.msk [vmem:[#allocation3 + $0x1a0] sm:$0xff] %vm439_vm1, %v26934_v35  ;;  %v16268_v41 = vld [vmem:[%s26925_s5 + $0xc] sm:$0xf]  ;;  %v16234_v43 = vld [vmem:[%s26925_s5 + $0x8] sm:$0xf] }
  0x1b   : > { %s17396_s16 = sshll.u32 %s435_s15, 8  ;;  %492 = vst.msk [vmem:[#allocation3] sm:$0x1] %vm448_vm2, %v26934_v35  ;;  %493 = vst.msk [vmem:[#allocation3 + $0x18] sm:$0x1] %vm448_vm2, %v26934_v35  ;;  %s431_s30 = sand.u32 1, %s20660_s26  }
  0x1c   : > { %494 = vst.msk [vmem:[#allocation3 + $0x30] sm:$0x1] %vm448_vm2, %v26934_v35  ;;  %495 = vst.msk [vmem:[#allocation3 + $0x48] sm:$0x1] %vm448_vm2, %v26934_v35  ;;  %v21252_v44 = vld [vmem:[%s26925_s5 + $0x14] sm:$0xf] }
  0x1d   : > { %v616_v1 = vld [vmem:[%s27149_s1] sm:$0xf]  ;;  %496 = vst.msk [vmem:[#allocation3 + $0x60] sm:$0x1] %vm448_vm2, %v26934_v35  ;;  %497 = vst.msk [vmem:[#allocation3 + $0x78] sm:$0x1] %vm448_vm2, %v26934_v35 }
  0x1e   : > { %18652 = vmatprep.subr.msk.mxu0 %vm720_vm0, %v616_v1  ;;  %s20815_s22 = scalar_lea.vmem %s27150_s0, %s17396_s16  ;;  %498 = vst.msk [vmem:[#allocation3 + $0x90] sm:$0x1] %vm448_vm2, %v26934_v35  ;;  %499 = vst.msk [vmem:[#allocation3 + $0xa8] sm:$0x1] %vm448_vm2, %v26934_v35  ;;  %v21261_v45 = vld [vmem:[%s26924_s4] ss:$0 sm:$0xff] }
  0x1f   : > { %18653 = vmatpush3.msk.msra.mxu0 %vm720_vm0, %v616_v1  ;;  %v20818_v3 = vld [vmem:[%s20815_s22] sm:$0xff]  ;;  %v20821_v4 = vld [vmem:[%s20815_s22 + $0x8] sm:$0xff]  ;;  %v20824_v5 = vld [vmem:[%s20815_s22 + $0x10] sm:$0xff]  ;;  %500 = vst.msk [vmem:[#allocation3 + $0xc0] sm:$0x1] %vm448_vm2, %v26934_v35  ;;  %s27183_s2 = sld [smem:[#allocation66_spill]] }
  0x20   : > { %27151 = vst [vmem:[#allocation8_spill] sm:$0xff] %v20818_v3  ;;  %27152 = vst [vmem:[#allocation9_spill] sm:$0xff] %v20821_v4  ;;  %18704 = vmatprep.mubr.msk.f32.mxu1 %vm439_vm1, %v20818_v3  ;;  %v20835_v6 = vld [vmem:[%s20815_s22 + $0x18] sm:$0xff]  ;;  %v20838_v7 = vld [vmem:[%s20815_s22 + $0x20] sm:$0xff]  ;;  %18654 = vmatprep.mubr.msk.f32.mxu0 %vm439_vm1, %v20818_v3  ;;  %vm5456_vm4 = vcmask 1041408   ;;  %vm528_vm5 = vcmask 15360  }
  0x21   : > { %27153 = vst [vmem:[#allocation10_spill] sm:$0xff] %v20824_v5  ;;  %15215 = vst.msk [vmem:[#allocation2 + $0x19] sm:$0xff] %vm439_vm1, %v20818_v3  ;;  %v20841_v8 = vld [vmem:[%s20815_s22 + $0x28] sm:$0xff]  ;;  %18705 = vmatmul.mubr.msk.f32.vlgmr.msra.gmra.mxu1 %vm439_vm1, %v20821_v4  ;;  %v20854_v9 = vld [vmem:[%s20815_s22 + $0x30] sm:$0xff]  ;;  %18655 = vmatmul.mubr.msk.f32.vlgmr.msra.gmra.mxu0 %vm439_vm1, %v20821_v4  ;;  %vm543_vm6 = vcmask 9216   ;;  %vm531_vm7 = vcmask 11264  }
  0x22   : > { %15216 = vst.msk [vmem:[#allocation2 + $0x21] sm:$0xff] %vm439_vm1, %v20821_v4  ;;  %15217 = vst.msk [vmem:[#allocation2 + $0x31] sm:$0xff] %vm439_vm1, %v20824_v5  ;;  %v20857_v10 = vld [vmem:[%s20815_s22 + $0x38] sm:$0xff]  ;;  %v20860_v11 = vld [vmem:[%s20815_s22 + $0x40] sm:$0xff]  ;;  %18707 = vmatprep.mubr.msk.f32.mxu1 %vm439_vm1, %v20824_v5  ;;  %18803 = vmatpush3.msk.msra.mxu1 %vm720_vm0, %v1346_v2  ;;  %s20672_s24 = smov 4   ;;  %vm4959_vm8 = vcmask 97312  }
  0x23   : > { %27154 = vst [vmem:[#allocation11_spill] sm:$0xff] %v20835_v6  ;;  %27155 = vst [vmem:[#allocation12_spill] sm:$0xff] %v20838_v7  ;;  %v20873_v12 = vld [vmem:[%s20815_s22 + $0x48] sm:$0xff]  ;;  %v20876_v13 = vld [vmem:[%s20815_s22 + $0x50] sm:$0xff]  ;;  %18657 = vmatprep.mubr.msk.f32.mxu0 %vm439_vm1, %v20824_v5  ;;  %18752 = vmatprep.subr.msk.mxu0 %vm720_vm0, %v16167_v36  ;;  %s20673_s15 = smov 16   ;;  %s20674_s16 = smov 12  }
  0x24   : > { %27156 = vst [vmem:[#allocation13_spill] sm:$0xff] %v20841_v8  ;;  %15218 = vst.msk [vmem:[#allocation2 + $0x39] sm:$0xff] %vm439_vm1, %v20835_v6  ;;  %v20879_v14 = vld [vmem:[%s20815_s22 + $0x58] sm:$0xff]  ;;  %v20889_v15 = vld [vmem:[%s20815_s22 + $0x60] sm:$0xff]  ;;  %18753 = vmatpush3.msk.msra.mxu0 %vm720_vm0, %v16167_v36  ;;  %18902 = vmatprep.subr.msk.mxu1 %vm720_vm0, %v16268_v41  ;;  %vm15181_vm9 = vcmask 130144   ;;  %vm15983_vm10 = vcmask 162944  }
  0x25   : > { %15219 = vst.msk [vmem:[#allocation2 + $0x49] sm:$0xff] %vm439_vm1, %v20838_v7  ;;  %15220 = vst.msk [vmem:[#allocation2 + $0x51] sm:$0xff] %vm439_vm1, %v20841_v8  ;;  %v20892_v16 = vld [vmem:[%s20815_s22 + $0x68] sm:$0xff]  ;;  %v20895_v17 = vld [vmem:[%s20815_s22 + $0x70] sm:$0xff]  ;;  %18708 = vmatmul.mubr.msk.f32.gmra.mxu1 %vm439_vm1, %v20835_v6  ;;  %18658 = vmatmul.mubr.msk.f32.gmra.mxu0 %vm439_vm1, %v20835_v6  ;;  %s17397_s20 = sshll.u32 %s20769_s29, 12  ;;  %s26880_s29 = scalar_lea.sflag [#allocation6], %s431_s30 }
  0x26   : > { %27157 = vst [vmem:[#allocation14_spill] sm:$0xff] %v20854_v9  ;;  %27158 = vst [vmem:[#allocation15_spill] sm:$0xff] %v20857_v10  ;;  %v20906_v18 = vld [vmem:[%s20815_s22 + $0x78] sm:$0xff]  ;;  %v20909_v19 = vld [vmem:[%s20815_s22 + $0x80] sm:$0xff]  ;;  %18710 = vmatprep.mubr.msk.f32.mxu1 %vm439_vm1, %v20838_v7  ;;  %18660 = vmatprep.mubr.msk.f32.mxu0 %vm439_vm1, %v20838_v7 }
  0x27   : > { %27159 = vst [vmem:[#allocation16_spill] sm:$0xff] %v20860_v11  ;;  %15221 = vst.msk [vmem:[#allocation2 + $0x61] sm:$0xff] %vm439_vm1, %v20854_v9  ;;  %v20912_v20 = vld [vmem:[%s20815_s22 + $0x88] sm:$0xff]  ;;  %v20923_v21 = vld [vmem:[%s20815_s22 + $0x90] sm:$0xff]  ;;  %18852 = vmatprep.subr.msk.mxu0 %vm720_vm0, %v16234_v43 }
  0x28   : > { %15222 = vst.msk [vmem:[#allocation2 + $0x69] sm:$0xff] %vm439_vm1, %v20857_v10  ;;  %15223 = vst.msk [vmem:[#allocation2 + $0x79] sm:$0xff] %vm439_vm1, %v20860_v11  ;;  %v20926_v22 = vld [vmem:[%s20815_s22 + $0x98] sm:$0xff]  ;;  %v20929_v23 = vld [vmem:[%s20815_s22 + $0xa0] sm:$0xff] }
  0x29   : > { %27160 = vst [vmem:[#allocation17_spill] sm:$0xff] %v20873_v12  ;;  %27161 = vst [vmem:[#allocation18_spill] sm:$0xff] %v20876_v13  ;;  %v20942_v24 = vld [vmem:[%s20815_s22 + $0xa8] sm:$0xff]  ;;  %v20945_v25 = vld [vmem:[%s20815_s22 + $0xb0] sm:$0xff]  ;;  %18711 = vmatmul.mubr.msk.f32.gmra.mxu1 %vm439_vm1, %v20841_v8  ;;  %18661 = vmatmul.mubr.msk.f32.gmra.mxu0 %vm439_vm1, %v20841_v8 }
  0x2a   : > { %27162 = vst [vmem:[#allocation19_spill] sm:$0xff] %v20879_v14  ;;  %15224 = vst.msk [vmem:[#allocation2 + $0x81] sm:$0xff] %vm439_vm1, %v20873_v12  ;;  %v20948_v26 = vld [vmem:[%s20815_s22 + $0xb8] sm:$0xff]  ;;  %v20959_v27 = vld [vmem:[%s20815_s22 + $0xc0] sm:$0xff]  ;;  %18713 = vmatprep.mubr.msk.f32.mxu1 %vm439_vm1, %v20854_v9  ;;  %18663 = vmatprep.mubr.msk.f32.mxu0 %vm439_vm1, %v20854_v9 }
  0x2b   : > { %15225 = vst.msk [vmem:[#allocation2 + $0x91] sm:$0xff] %vm439_vm1, %v20876_v13  ;;  %15226 = vst.msk [vmem:[#allocation2 + $0x99] sm:$0xff] %vm439_vm1, %v20879_v14  ;;  %v20962_v28 = vld [vmem:[%s20815_s22 + $0xc8] sm:$0xff]  ;;  %v20965_v29 = vld [vmem:[%s20815_s22 + $0xd0] sm:$0xff] }
  0x2c   : > { %27163 = vst [vmem:[#allocation20_spill] sm:$0xff] %v20889_v15  ;;  %27164 = vst [vmem:[#allocation21_spill] sm:$0xff] %v20892_v16  ;;  %v20974_v30 = vld [vmem:[%s20815_s22 + $0xd8] sm:$0xff]  ;;  %v20977_v31 = vld [vmem:[%s20815_s22 + $0xe0] sm:$0xff] }
  0x2d   : > { %27165 = vst [vmem:[#allocation22_spill] sm:$0xff] %v20895_v17  ;;  %15227 = vst.msk [vmem:[#allocation2 + $0xa9] sm:$0xff] %vm439_vm1, %v20889_v15  ;;  %v20980_v32 = vld [vmem:[%s20815_s22 + $0xe8] sm:$0xff]  ;;  %v20991_v33 = vld [vmem:[%s20815_s22 + $0xf0] sm:$0xff]  ;;  %18714 = vmatmul.mubr.msk.f32.gmra.mxu1 %vm439_vm1, %v20857_v10  ;;  %18664 = vmatmul.mubr.msk.f32.gmra.mxu0 %vm439_vm1, %v20857_v10 }
  0x2e   : > { %15228 = vst.msk [vmem:[#allocation2 + $0xb1] sm:$0xff] %vm439_vm1, %v20892_v16  ;;  %15229 = vst.msk [vmem:[#allocation2 + $0xc1] sm:$0xff] %vm439_vm1, %v20895_v17  ;;  %v20994_v34 = vld [vmem:[%s20815_s22 + $0xf8] sm:$0xff]  ;;  %18716 = vmatprep.mubr.msk.f32.mxu1 %vm439_vm1, %v20860_v11  ;;  %18666 = vmatprep.mubr.msk.f32.mxu0 %vm439_vm1, %v20860_v11  ;;  %v1314_v38 = vld [vmem:[#allocation3] sm:$0xff]  ;;  %s16096_s22 = sshll.u32 %s431_s30, 8 }
  0x2f   : > { %27166 = vst [vmem:[#allocation23_spill] sm:$0xff] %v20906_v18  ;;  %27167 = vst [vmem:[#allocation24_spill] sm:$0xff] %v20909_v19  ;;  %v1347_v37 = vld [vmem:[#allocation3 + $0x1] sm:$0xff]  ;;  %v21275_v61 = vld [vmem:[%s27183_s2] ss:$0 sm:$0xff]  ;;  %s21298_s23 = scalar_lea.vmem [#allocation5], %s16096_s22 }
  0x30   : > { %27168 = vst [vmem:[#allocation25_spill] sm:$0xff] %v20912_v20  ;;  %15230 = vst.msk [vmem:[#allocation2 + $0xc9] sm:$0xff] %vm439_vm1, %v20906_v18  ;;  %v1315_v40 = vld [vmem:[#allocation3 + $0x8] sm:$0xff]  ;;  %v21280_v62 = vld [vmem:[%s26925_s5 + $0x10] sm:$0xf]  ;;  %s16030_s21 = sshll.u32 %s21298_s23, 4  ;;  %s26872_s21 = int_to_ptr.vmem [resolvable:$true] %s16030_s21 }
  0x31   : > { %15231 = vst.msk [vmem:[#allocation2 + $0xd9] sm:$0xff] %vm439_vm1, %v20909_v19  ;;  %15232 = vst.msk [vmem:[#allocation2 + $0xe1] sm:$0xff] %vm439_vm1, %v20912_v20  ;;  %18717 = vmatmul.mubr.msk.f32.gmra.mxu1 %vm439_vm1, %v20873_v12  ;;  %18667 = vmatmul.mubr.msk.f32.gmra.mxu0 %vm439_vm1, %v20873_v12 }
  0x32   : > { %27169 = vst [vmem:[#allocation26_spill] sm:$0xff] %v20923_v21  ;;  %27170 = vst [vmem:[#allocation27_spill] sm:$0xff] %v20926_v22  ;;  %18719 = vmatprep.mubr.msk.f32.mxu1 %vm439_vm1, %v20876_v13  ;;  %18669 = vmatprep.mubr.msk.f32.mxu0 %vm439_vm1, %v20876_v13 }
  0x33   : > { %27171 = vst [vmem:[#allocation28_spill] sm:$0xff] %v20929_v23  ;;  %15233 = vst.msk [vmem:[#allocation2 + $0xf1] sm:$0xff] %vm439_vm1, %v20923_v21 }
  0x34   : > { %15234 = vst.msk [vmem:[#allocation2 + $0xf9] sm:$0xff] %vm439_vm1, %v20926_v22  ;;  %15235 = vst.msk [vmem:[#allocation2 + $0x109] sm:$0xff] %vm439_vm1, %v20929_v23 }
  0x35   : > { %27172 = vst [vmem:[#allocation29_spill] sm:$0xff] %v20942_v24  ;;  %27173 = vst [vmem:[#allocation30_spill] sm:$0xff] %v20945_v25  ;;  %18720 = vmatmul.mubr.msk.f32.gmra.mxu1 %vm439_vm1, %v20879_v14  ;;  %18670 = vmatmul.mubr.msk.f32.gmra.mxu0 %vm439_vm1, %v20879_v14 }
  0x36   : > { %27174 = vst [vmem:[#allocation31_spill] sm:$0xff] %v20948_v26  ;;  %15236 = vst.msk [vmem:[#allocation2 + $0x111] sm:$0xff] %vm439_vm1, %v20942_v24  ;;  %18722 = vmatprep.mubr.msk.f32.mxu1 %vm439_vm1, %v20889_v15  ;;  %18672 = vmatprep.mubr.msk.f32.mxu0 %vm439_vm1, %v20889_v15 }
  0x37   : > { %15237 = vst.msk [vmem:[#allocation2 + $0x121] sm:$0xff] %vm439_vm1, %v20945_v25  ;;  %15238 = vst.msk [vmem:[#allocation2 + $0x129] sm:$0xff] %vm439_vm1, %v20948_v26 }
  0x38   : > { %27175 = vst [vmem:[#allocation32_spill] sm:$0xff] %v20959_v27  ;;  %27176 = vst [vmem:[#allocation33_spill] sm:$0xff] %v20962_v28 }
  0x39   : > { %27177 = vst [vmem:[#allocation34_spill] sm:$0xff] %v20965_v29  ;;  %15239 = vst.msk [vmem:[#allocation2 + $0x139] sm:$0xff] %vm439_vm1, %v20959_v27  ;;  %18723 = vmatmul.mubr.msk.f32.gmra.mxu1 %vm439_vm1, %v20892_v16  ;;  %18673 = vmatmul.mubr.msk.f32.gmra.mxu0 %vm439_vm1, %v20892_v16 }
  0x3a   : > { %15240 = vst.msk [vmem:[#allocation2 + $0x141] sm:$0xff] %vm439_vm1, %v20962_v28  ;;  %15241 = vst.msk [vmem:[#allocation2 + $0x151] sm:$0xff] %vm439_vm1, %v20965_v29  ;;  %18725 = vmatprep.mubr.msk.f32.mxu1 %vm439_vm1, %v20895_v17  ;;  %18675 = vmatprep.mubr.msk.f32.mxu0 %vm439_vm1, %v20895_v17 }
  0x3b   : > { %27178 = vst [vmem:[#allocation35_spill] sm:$0xff] %v20974_v30  ;;  %27179 = vst [vmem:[#allocation36_spill] sm:$0xff] %v20977_v31 }
  0x3c   : > { %27180 = vst [vmem:[#allocation37_spill] sm:$0xff] %v20980_v32  ;;  %15242 = vst.msk [vmem:[#allocation2 + $0x159] sm:$0xff] %vm439_vm1, %v20974_v30 }
  0x3d   : > { %15243 = vst.msk [vmem:[#allocation2 + $0x169] sm:$0xff] %vm439_vm1, %v20977_v31  ;;  %15244 = vst.msk [vmem:[#allocation2 + $0x171] sm:$0xff] %vm439_vm1, %v20980_v32  ;;  %18726 = vmatmul.mubr.msk.f32.gmra.mxu1 %vm439_vm1, %v20906_v18  ;;  %18676 = vmatmul.mubr.msk.f32.gmra.mxu0 %vm439_vm1, %v20906_v18 }
  0x3e   : > { %27181 = vst [vmem:[#allocation38_spill] sm:$0xff] %v20991_v33  ;;  %27182 = vst [vmem:[#allocation39_spill] sm:$0xff] %v20994_v34  ;;  %18728 = vmatprep.mubr.msk.f32.mxu1 %vm439_vm1, %v20909_v19  ;;  %18678 = vmatprep.mubr.msk.f32.mxu0 %vm439_vm1, %v20909_v19 }
  0x3f   : > { %15245 = vst.msk [vmem:[#allocation2 + $0x181] sm:$0xff] %vm439_vm1, %v20991_v33  ;;  %15246 = vst.msk [vmem:[#allocation2 + $0x189] sm:$0xff] %vm439_vm1, %v20994_v34 }
  0x40   : > { %501 = vst.msk [vmem:[#allocation3 + $0xd8] sm:$0x1] %vm448_vm2, %v26934_v35  ;;  %502 = vst.msk [vmem:[#allocation3 + $0xf0] sm:$0x1] %vm448_vm2, %v26934_v35 }
  0x41   : > { %18729 = vmatmul.mubr.msk.f32.gmra.mxu1 %vm439_vm1, %v20912_v20  ;;  %18679 = vmatmul.mubr.msk.f32.gmra.mxu0 %vm439_vm1, %v20912_v20  ;;  %503 = vst.msk [vmem:[#allocation3 + $0x108] sm:$0x1] %vm448_vm2, %v26934_v35  ;;  %504 = vst.msk [vmem:[#allocation3 + $0x120] sm:$0x1] %vm448_vm2, %v26934_v35 }
  0x42   : > { %18731 = vmatprep.mubr.msk.f32.mxu1 %vm439_vm1, %v20923_v21  ;;  %18681 = vmatprep.mubr.msk.f32.mxu0 %vm439_vm1, %v20923_v21  ;;  %505 = vst.msk [vmem:[#allocation3 + $0x138] sm:$0x1] %vm448_vm2, %v26934_v35  ;;  %506 = vst.msk [vmem:[#allocation3 + $0x150] sm:$0x1] %vm448_vm2, %v26934_v35 }
  0x43   : > { %507 = vst.msk [vmem:[#allocation3 + $0x168] sm:$0x1] %vm448_vm2, %v26934_v35  ;;  %508 = vst.msk [vmem:[#allocation3 + $0x180] sm:$0x1] %vm448_vm2, %v26934_v35 }
  0x44   : > { %509 = vst.msk [vmem:[#allocation3 + $0x198] sm:$0x1] %vm448_vm2, %v26934_v35  ;;  %511 = vst.msk [vmem:[#allocation3 + $0x29] sm:$0x1] %vm448_vm2, %v26934_v35 }
  0x45   : > { %18732 = vmatmul.mubr.msk.f32.gmra.mxu1 %vm439_vm1, %v20926_v22  ;;  %18682 = vmatmul.mubr.msk.f32.gmra.mxu0 %vm439_vm1, %v20926_v22  ;;  %512 = vst.msk [vmem:[#allocation3 + $0x41] sm:$0x1] %vm448_vm2, %v26934_v35  ;;  %513 = vst.msk [vmem:[#allocation3 + $0x59] sm:$0x1] %vm448_vm2, %v26934_v35 }
  0x46   : > { %18734 = vmatprep.mubr.msk.f32.mxu1 %vm439_vm1, %v20929_v23  ;;  %18684 = vmatprep.mubr.msk.f32.mxu0 %vm439_vm1, %v20929_v23  ;;  %514 = vst.msk [vmem:[#allocation3 + $0x71] sm:$0x1] %vm448_vm2, %v26934_v35  ;;  %515 = vst.msk [vmem:[#allocation3 + $0x89] sm:$0x1] %vm448_vm2, %v26934_v35 }
  0x47   : > { %516 = vst.msk [vmem:[#allocation3 + $0xa1] sm:$0x1] %vm448_vm2, %v26934_v35  ;;  %517 = vst.msk [vmem:[#allocation3 + $0xb9] sm:$0x1] %vm448_vm2, %v26934_v35 }
  0x48   : > { %518 = vst.msk [vmem:[#allocation3 + $0xd1] sm:$0x1] %vm448_vm2, %v26934_v35  ;;  %519 = vst.msk [vmem:[#allocation3 + $0xe9] sm:$0x1] %vm448_vm2, %v26934_v35 }
  0x49   : > { %18735 = vmatmul.mubr.msk.f32.gmra.mxu1 %vm439_vm1, %v20942_v24  ;;  %18685 = vmatmul.mubr.msk.f32.gmra.mxu0 %vm439_vm1, %v20942_v24  ;;  %520 = vst.msk [vmem:[#allocation3 + $0x101] sm:$0x1] %vm448_vm2, %v26934_v35  ;;  %521 = vst.msk [vmem:[#allocation3 + $0x119] sm:$0x1] %vm448_vm2, %v26934_v35 }
  0x4a   : > { %18737 = vmatprep.mubr.msk.f32.mxu1 %vm439_vm1, %v20945_v25  ;;  %18687 = vmatprep.mubr.msk.f32.mxu0 %vm439_vm1, %v20945_v25  ;;  %522 = vst.msk [vmem:[#allocation3 + $0x131] sm:$0x1] %vm448_vm2, %v26934_v35  ;;  %523 = vst.msk [vmem:[#allocation3 + $0x149] sm:$0x1] %vm448_vm2, %v26934_v35 }
  0x4b   : > { %524 = vst.msk [vmem:[#allocation3 + $0x161] sm:$0x1] %vm448_vm2, %v26934_v35  ;;  %525 = vst.msk [vmem:[#allocation3 + $0x179] sm:$0x1] %vm448_vm2, %v26934_v35 }
  0x4c   : > { %526 = vst.msk [vmem:[#allocation3 + $0x191] sm:$0x1] %vm448_vm2, %v26934_v35  ;;  %450 = vst.msk [vmem:[#allocation2 + $0x18] sm:$0x1] %vm448_vm2, %v20671_v42 }
  0x4d   : > { %18738 = vmatmul.mubr.msk.f32.gmra.mxu1 %vm439_vm1, %v20948_v26  ;;  %18688 = vmatmul.mubr.msk.f32.gmra.mxu0 %vm439_vm1, %v20948_v26  ;;  %487 = vst.msk [vmem:[#allocation3 + $0x10] sm:$0x3] %vm442_vm3, %v26934_v35  ;;  %491 = vst.msk [vmem:[#allocation3 + $0x1a8] sm:$0x3] %vm442_vm3, %v26934_v35 }
  0x4e   : > { %18740 = vmatprep.mubr.msk.f32.mxu1 %vm439_vm1, %v20959_v27  ;;  %18690 = vmatprep.mubr.msk.f32.mxu0 %vm439_vm1, %v20959_v27  ;;  %510 = vst.msk [vmem:[#allocation3 + $0x11] sm:$0x1] %vm448_vm2, %v26934_v35  ;;  %527 = vst.msk [vmem:[#allocation3 + $0x1a9] sm:$0x1] %vm448_vm2, %v26934_v35 }
  0x4f   : > { %443 = vst.msk [vmem:[#allocation2 + $0x10] sm:$0x3] %vm442_vm3, %v20671_v42  ;;  %447 = vst.msk [vmem:[#allocation2 + $0x1a8] sm:$0x3] %vm442_vm3, %v20671_v42 }
  0x50   : > { %440 = vst.msk [vmem:[#allocation2] sm:$0xff] %vm439_vm1, %v20671_v42  ;;  %441 = vst.msk [vmem:[#allocation2 + $0x8] sm:$0xff] %vm439_vm1, %v20671_v42 }
  0x51   : > { %18741 = vmatmul.mubr.msk.f32.gmra.mxu1 %vm439_vm1, %v20962_v28  ;;  %18691 = vmatmul.mubr.msk.f32.gmra.mxu0 %vm439_vm1, %v20962_v28  ;;  %445 = vst.msk [vmem:[#allocation2 + $0x198] sm:$0xff] %vm439_vm1, %v20671_v42  ;;  %446 = vst.msk [vmem:[#allocation2 + $0x1a0] sm:$0xff] %vm439_vm1, %v20671_v42 }
  0x52   : > { %18743 = vmatprep.mubr.msk.f32.mxu1 %vm439_vm1, %v20965_v29  ;;  %18693 = vmatprep.mubr.msk.f32.mxu0 %vm439_vm1, %v20965_v29  ;;  %451 = vst.msk [vmem:[#allocation2 + $0x30] sm:$0x1] %vm448_vm2, %v20671_v42  ;;  %452 = vst.msk [vmem:[#allocation2 + $0x48] sm:$0x1] %vm448_vm2, %v20671_v42 }
  0x53   : > { %453 = vst.msk [vmem:[#allocation2 + $0x60] sm:$0x1] %vm448_vm2, %v20671_v42  ;;  %454 = vst.msk [vmem:[#allocation2 + $0x78] sm:$0x1] %vm448_vm2, %v20671_v42 }
  0x54   : > { %v1348_v39 = vld [vmem:[#allocation3 + $0x9] sm:$0xff]  ;;  %455 = vst.msk [vmem:[#allocation2 + $0x90] sm:$0x1] %vm448_vm2, %v20671_v42  ;;  %456 = vst.msk [vmem:[#allocation2 + $0xa8] sm:$0x1] %vm448_vm2, %v20671_v42 }
  0x55   : > { %18744 = vmatmul.mubr.msk.f32.gmra.mxu1 %vm439_vm1, %v20974_v30  ;;  %18694 = vmatmul.mubr.msk.f32.gmra.mxu0 %vm439_vm1, %v20974_v30  ;;  %457 = vst.msk [vmem:[#allocation2 + $0xc0] sm:$0x1] %vm448_vm2, %v20671_v42  ;;  %458 = vst.msk [vmem:[#allocation2 + $0xd8] sm:$0x1] %vm448_vm2, %v20671_v42 }
  0x56   : > { %18746 = vmatprep.mubr.msk.f32.mxu1 %vm439_vm1, %v20977_v31  ;;  %18696 = vmatprep.mubr.msk.f32.mxu0 %vm439_vm1, %v20977_v31  ;;  %459 = vst.msk [vmem:[#allocation2 + $0xf0] sm:$0x1] %vm448_vm2, %v20671_v42  ;;  %460 = vst.msk [vmem:[#allocation2 + $0x108] sm:$0x1] %vm448_vm2, %v20671_v42 }
  0x57   : > { %461 = vst.msk [vmem:[#allocation2 + $0x120] sm:$0x1] %vm448_vm2, %v20671_v42  ;;  %462 = vst.msk [vmem:[#allocation2 + $0x138] sm:$0x1] %vm448_vm2, %v20671_v42 }
  0x58   : > { %463 = vst.msk [vmem:[#allocation2 + $0x150] sm:$0x1] %vm448_vm2, %v20671_v42  ;;  %464 = vst.msk [vmem:[#allocation2 + $0x168] sm:$0x1] %vm448_vm2, %v20671_v42 }
  0x59   : > { %18747 = vmatmul.mubr.msk.f32.gmra.mxu1 %vm439_vm1, %v20980_v32  ;;  %18697 = vmatmul.mubr.msk.f32.gmra.mxu0 %vm439_vm1, %v20980_v32  ;;  %465 = vst.msk [vmem:[#allocation2 + $0x180] sm:$0x1] %vm448_vm2, %v20671_v42  ;;  %468 = vst.msk [vmem:[#allocation2 + $0x29] sm:$0x1] %vm448_vm2, %v20671_v42 }
  0x5a   : > { %18749 = vmatprep.mubr.msk.f32.mxu1 %vm439_vm1, %v20991_v33  ;;  %18699 = vmatprep.mubr.msk.f32.mxu0 %vm439_vm1, %v20991_v33  ;;  %469 = vst.msk [vmem:[#allocation2 + $0x41] sm:$0x1] %vm448_vm2, %v20671_v42  ;;  %470 = vst.msk [vmem:[#allocation2 + $0x59] sm:$0x1] %vm448_vm2, %v20671_v42 }
  0x5b   : > { %471 = vst.msk [vmem:[#allocation2 + $0x71] sm:$0x1] %vm448_vm2, %v20671_v42  ;;  %472 = vst.msk [vmem:[#allocation2 + $0x89] sm:$0x1] %vm448_vm2, %v20671_v42 }
  0x5c   : > { %473 = vst.msk [vmem:[#allocation2 + $0xa1] sm:$0x1] %vm448_vm2, %v20671_v42  ;;  %474 = vst.msk [vmem:[#allocation2 + $0xb9] sm:$0x1] %vm448_vm2, %v20671_v42 }
  0x5d   : > { %18750 = vmatmul.mubr.msk.f32.gmra.mxu1 %vm439_vm1, %v20994_v34  ;;  %18700 = vmatmul.mubr.msk.f32.gmra.mxu0 %vm439_vm1, %v20994_v34  ;;  %475 = vst.msk [vmem:[#allocation2 + $0xd1] sm:$0x1] %vm448_vm2, %v20671_v42  ;;  %476 = vst.msk [vmem:[#allocation2 + $0xe9] sm:$0x1] %vm448_vm2, %v20671_v42 }
  0x5e   : > { %18754 = vmatprep.mubr.msk.f32.mxu0 %vm439_vm1, %v1347_v37  ;;  %18804 = vmatprep.mubr.msk.f32.mxu1 %vm439_vm1, %v1314_v38  ;;  %477 = vst.msk [vmem:[#allocation2 + $0x101] sm:$0x1] %vm448_vm2, %v20671_v42  ;;  %478 = vst.msk [vmem:[#allocation2 + $0x119] sm:$0x1] %vm448_vm2, %v20671_v42 }
  0x5f   : > { %479 = vst.msk [vmem:[#allocation2 + $0x131] sm:$0x1] %vm448_vm2, %v20671_v42  ;;  %480 = vst.msk [vmem:[#allocation2 + $0x149] sm:$0x1] %vm448_vm2, %v20671_v42 }
  0x60   : > { %481 = vst.msk [vmem:[#allocation2 + $0x161] sm:$0x1] %vm448_vm2, %v20671_v42  ;;  %482 = vst.msk [vmem:[#allocation2 + $0x179] sm:$0x1] %vm448_vm2, %v20671_v42 }
  0x61   : > { %18755 = vmatmul.mubr.msk.f32.vlgmr.msra.gmra.mxu0 %vm439_vm1, %v1348_v39  ;;  %18805 = vmatmul.mubr.msk.f32.vlgmr.msra.gmra.mxu1 %vm439_vm1, %v1315_v40  ;;  %483 = vst.msk [vmem:[#allocation2 + $0x191] sm:$0x1] %vm448_vm2, %v20671_v42  ;;  %467 = vst.msk [vmem:[#allocation2 + $0x11] sm:$0x1] %vm448_vm2, %v20671_v42 }
  0x62   : > { %449 = vst.msk [vmem:[#allocation2] sm:$0x1] %vm448_vm2, %v20671_v42  ;;  %466 = vst.msk [vmem:[#allocation2 + $0x198] sm:$0x1] %vm448_vm2, %v20671_v42  ;;  %18903 = vmatpush3.msk.msra.mxu1 %vm720_vm0, %v16268_v41  ;;  %18853 = vmatpush3.msk.msra.mxu0 %vm720_vm0, %v16234_v43 }
  0x63   : > { %484 = vst.msk [vmem:[#allocation2 + $0x1a9] sm:$0x1] %vm448_vm2, %v20671_v42  ;;  %19002 = vmatprep.subr.msk.mxu1 %vm720_vm0, %v21252_v44  ;;  %18952 = vmatprep.subr.msk.mxu0 %vm720_vm0, %v21280_v62 }
  0xe1   : > { %v18706_v46 = vpop.f32.mrf.mxu1  ;;  %v18656_v60 = vpop.f32.mrf.mxu0 }
  0xe2   : > { %v1096_v47 = vadd.f32 %v18706_v46, %v21261_v45  ;;  %v796_v0 = vadd.f32 %v18656_v60, %v21275_v61 }
  0xe3   : > { %v1090_v48 = vpop.f32.mrf.mxu1  ;;  %v790_v36 = vpop.f32.mrf.mxu0 }
  0xe4   : > { %v1250_v49 = vmax.f32 %v1096_v47, 0.0  ;;  %v1091_v50 = vadd.f32 %v21261_v45, %v1090_v48  ;;  %v950_v38 = vmax.f32 %v796_v0, 0.0  ;;  %v791_v39 = vadd.f32 %v21275_v61, %v790_v36 }
  0xe5   : > { %v18709_v51 = vpop.f32.mrf.mxu1 }
  0xe6   : > { %1283 = vst.msk [vmem:[#allocation3 + $0x21] sm:$0xff] %vm439_vm1, %v1250_v49  ;;  %v1249_v52 = vmax.f32 %v1091_v50, 0.0  ;;  %v1106_v53 = vadd.f32 %v18709_v51, %v21261_v45  ;;  %982 = vst.msk [vmem:[%s21298_s23 + $0x8] sm:$0xff] %vm439_vm1, %v950_v38  ;;  %v949_v48 = vmax.f32 %v791_v39, 0.0  ;;  %v18659_v49 = vpop.f32.mrf.mxu0 }
  0xe7   : > { %v1100_v54 = vpop.f32.mrf.mxu1 }
  0xe8   : > { %1282 = vst.msk [vmem:[#allocation3 + $0x19] sm:$0xff] %vm439_vm1, %v1249_v52  ;;  %v1252_v55 = vmax.f32 %v1106_v53, 0.0  ;;  %v1101_v56 = vadd.f32 %v21261_v45, %v1100_v54  ;;  %v806_v53 = vadd.f32 %v18659_v49, %v21275_v61  ;;  %981 = vst.msk [vmem:[%s21298_s23] sm:$0xff] %vm439_vm1, %v949_v48 }
  0xe9   : > { %v18712_v57 = vpop.f32.mrf.mxu1 }
  0xea   : > { %1285 = vst.msk [vmem:[#allocation3 + $0x39] sm:$0xff] %vm439_vm1, %v1252_v55  ;;  %v1251_v58 = vmax.f32 %v1101_v56, 0.0  ;;  %v1116_v59 = vadd.f32 %v18712_v57, %v21261_v45  ;;  %v800_v55 = vpop.f32.mrf.mxu0 }
  0xeb   : > { %v1110_v63 = vpop.f32.mrf.mxu1 }
  0xec   : > { %1284 = vst.msk [vmem:[#allocation3 + $0x31] sm:$0xff] %vm439_vm1, %v1251_v58  ;;  %v1254_v1 = vmax.f32 %v1116_v59, 0.0  ;;  %v1111_v2 = vadd.f32 %v21261_v45, %v1110_v63  ;;  %v952_v58 = vmax.f32 %v806_v53, 0.0  ;;  %v801_v59 = vadd.f32 %v21275_v61, %v800_v55 }
  0xed   : > { %v18715_v37 = vpop.f32.mrf.mxu1  ;;  %v21308_v52 = vld [vmem:[#allocation3 + $0x21] sm:$0xff] }
  0xee   : > { %1287 = vst.msk [vmem:[#allocation3 + $0x51] sm:$0xff] %vm439_vm1, %v1254_v1  ;;  %v1253_v40 = vmax.f32 %v1111_v2, 0.0  ;;  %v1126_v41 = vadd.f32 %v18715_v37, %v21261_v45  ;;  %v18662_v2 = vpop.f32.mrf.mxu0  ;;  %984 = vst.msk [vmem:[%s21298_s23 + $0x18] sm:$0xff] %vm439_vm1, %v952_v58  ;;  %v951_v39 = vmax.f32 %v801_v59, 0.0 }
  0xef   : > { %v1120_v42 = vpop.f32.mrf.mxu1  ;;  %v21292_v43 = vld [vmem:[#allocation3 + $0x19] sm:$0xff] }
  0xf0   : > { %v21294_v46 = vld [vmem:[#allocation3 + $0x18] sm:$0xff]  ;;  %v21296_v47 = vld [vmem:[#allocation3 + $0x20] sm:$0xff]  ;;  %1286 = vst.msk [vmem:[#allocation3 + $0x49] sm:$0xff] %vm439_vm1, %v1253_v40  ;;  %v1256_v50 = vmax.f32 %v1126_v41, 0.0  ;;  %v1121_v51 = vadd.f32 %v21261_v45, %v1120_v42  ;;  %18757 = vmatprep.mubr.msk.f32.mxu0 %vm439_vm1, %v21292_v43  ;;  %v816_v40 = vadd.f32 %v18662_v2, %v21275_v61  ;;  %v810_v42 = vpop.f32.mrf.mxu0  ;;  %983 = vst.msk [vmem:[%s21298_s23 + $0x10] sm:$0xff] %vm439_vm1, %v951_v39 }
  0xf1   : > { %18807 = vmatprep.mubr.msk.f32.mxu1 %vm439_vm1, %v21294_v46  ;;  %v18718_v54 = vpop.f32.mrf.mxu1  ;;  %18758 = vmatmul.mubr.msk.f32.gmra.mxu0 %vm439_vm1, %v21308_v52  ;;  %v21332_v38 = vld [vmem:[#allocation3 + $0x39] sm:$0xff] }
  0xf2   : > { %18808 = vmatmul.mubr.msk.f32.gmra.mxu1 %vm439_vm1, %v21296_v47  ;;  %1289 = vst.msk [vmem:[#allocation3 + $0x69] sm:$0xff] %vm439_vm1, %v1256_v50  ;;  %v1255_v56 = vmax.f32 %v1121_v51, 0.0  ;;  %v1136_v57 = vadd.f32 %v18718_v54, %v21261_v45  ;;  %v954_v50 = vmax.f32 %v816_v40, 0.0  ;;  %v811_v51 = vadd.f32 %v21275_v61, %v810_v42 }
  0xf3   : > { %v1130_v60 = vpop.f32.mrf.mxu1  ;;  %v21320_v63 = vld [vmem:[#allocation3 + $0x31] sm:$0xff] }
  0xf4   : > { %v21322_v0 = vld [vmem:[#allocation3 + $0x30] sm:$0xff]  ;;  %v21324_v1 = vld [vmem:[#allocation3 + $0x38] sm:$0xff]  ;;  %1288 = vst.msk [vmem:[#allocation3 + $0x61] sm:$0xff] %vm439_vm1, %v1255_v56  ;;  %v1258_v36 = vmax.f32 %v1136_v57, 0.0  ;;  %v1131_v37 = vadd.f32 %v21261_v45, %v1130_v60  ;;  %18760 = vmatprep.mubr.msk.f32.mxu0 %vm439_vm1, %v21320_v63  ;;  %v18665_v57 = vpop.f32.mrf.mxu0  ;;  %986 = vst.msk [vmem:[%s21298_s23 + $0x28] sm:$0xff] %vm439_vm1, %v954_v50  ;;  %v953_v2 = vmax.f32 %v811_v51, 0.0 }
  0xf5   : > { %18810 = vmatprep.mubr.msk.f32.mxu1 %vm439_vm1, %v21322_v0  ;;  %v18721_v41 = vpop.f32.mrf.mxu1  ;;  %18761 = vmatmul.mubr.msk.f32.gmra.mxu0 %vm439_vm1, %v21332_v38  ;;  %v21358_v60 = vld [vmem:[#allocation3 + $0x51] sm:$0xff] }
  0xf6   : > { %18811 = vmatmul.mubr.msk.f32.gmra.mxu1 %vm439_vm1, %v21324_v1  ;;  %1291 = vst.msk [vmem:[#allocation3 + $0x81] sm:$0xff] %vm439_vm1, %v1258_v36  ;;  %v1257_v48 = vmax.f32 %v1131_v37, 0.0  ;;  %v1146_v49 = vadd.f32 %v18721_v41, %v21261_v45  ;;  %v826_v36 = vadd.f32 %v18665_v57, %v21275_v61  ;;  %v820_v39 = vpop.f32.mrf.mxu0  ;;  %985 = vst.msk [vmem:[%s21298_s23 + $0x20] sm:$0xff] %vm439_vm1, %v953_v2 }
  0xf7   : > { %v1140_v53 = vpop.f32.mrf.mxu1  ;;  %v21346_v54 = vld [vmem:[#allocation3 + $0x49] sm:$0xff] }
  0xf8   : > { %v21348_v55 = vld [vmem:[#allocation3 + $0x48] sm:$0xff]  ;;  %v21350_v56 = vld [vmem:[#allocation3 + $0x50] sm:$0xff]  ;;  %1290 = vst.msk [vmem:[#allocation3 + $0x79] sm:$0xff] %vm439_vm1, %v1257_v48  ;;  %v1260_v58 = vmax.f32 %v1146_v49, 0.0  ;;  %v1141_v59 = vadd.f32 %v21261_v45, %v1140_v53  ;;  %18763 = vmatprep.mubr.msk.f32.mxu0 %vm439_vm1, %v21346_v54  ;;  %v956_v42 = vmax.f32 %v826_v36, 0.0  ;;  %v821_v48 = vadd.f32 %v21275_v61, %v820_v39  ;;  %v18668_v57 = vpop.f32.mrf.mxu0 }
  0xf9   : > { %18813 = vmatprep.mubr.msk.f32.mxu1 %vm439_vm1, %v21348_v55  ;;  %v18724_v37 = vpop.f32.mrf.mxu1  ;;  %18764 = vmatmul.mubr.msk.f32.gmra.mxu0 %vm439_vm1, %v21358_v60  ;;  %v21384_v2 = vld [vmem:[#allocation3 + $0x69] sm:$0xff] }
  0xfa   : > { %18814 = vmatmul.mubr.msk.f32.gmra.mxu1 %vm439_vm1, %v21350_v56  ;;  %1293 = vst.msk [vmem:[#allocation3 + $0x99] sm:$0xff] %vm439_vm1, %v1260_v58  ;;  %v1259_v40 = vmax.f32 %v1141_v59, 0.0  ;;  %v1156_v41 = vadd.f32 %v18724_v37, %v21261_v45  ;;  %988 = vst.msk [vmem:[%s21298_s23 + $0x38] sm:$0xff] %vm439_vm1, %v956_v42  ;;  %v955_v36 = vmax.f32 %v821_v48, 0.0  ;;  %v836_v37 = vadd.f32 %v18668_v57, %v21275_v61 }
  0xfb   : > { %v1150_v49 = vpop.f32.mrf.mxu1  ;;  %v21372_v50 = vld [vmem:[#allocation3 + $0x61] sm:$0xff] }
  0xfc   : > { %v21374_v51 = vld [vmem:[#allocation3 + $0x60] sm:$0xff]  ;;  %v21376_v53 = vld [vmem:[#allocation3 + $0x68] sm:$0xff]  ;;  %1292 = vst.msk [vmem:[#allocation3 + $0x91] sm:$0xff] %vm439_vm1, %v1259_v40  ;;  %v1262_v58 = vmax.f32 %v1156_v41, 0.0  ;;  %v1151_v59 = vadd.f32 %v21261_v45, %v1150_v49  ;;  %18766 = vmatprep.mubr.msk.f32.mxu0 %vm439_vm1, %v21372_v50  ;;  %v830_v40 = vpop.f32.mrf.mxu0  ;;  %987 = vst.msk [vmem:[%s21298_s23 + $0x30] sm:$0xff] %vm439_vm1, %v955_v36  ;;  %v958_v42 = vmax.f32 %v836_v37, 0.0 }
  0xfd   : > { %18816 = vmatprep.mubr.msk.f32.mxu1 %vm439_vm1, %v21374_v51  ;;  %v18727_v39 = vpop.f32.mrf.mxu1  ;;  %18767 = vmatmul.mubr.msk.f32.gmra.mxu0 %vm439_vm1, %v21384_v2  ;;  %v831_v48 = vadd.f32 %v21275_v61, %v830_v40  ;;  %v21410_v36 = vld [vmem:[#allocation3 + $0x81] sm:$0xff] }
  0xfe   : > { %18817 = vmatmul.mubr.msk.f32.gmra.mxu1 %vm439_vm1, %v21376_v53  ;;  %1295 = vst.msk [vmem:[#allocation3 + $0xb1] sm:$0xff] %vm439_vm1, %v1262_v58  ;;  %v1261_v41 = vmax.f32 %v1151_v59, 0.0  ;;  %v1166_v49 = vadd.f32 %v18727_v39, %v21261_v45  ;;  %v18671_v32 = vpop.f32.mrf.mxu0  ;;  %990 = vst.msk [vmem:[%s21298_s23 + $0x48] sm:$0xff] %vm439_vm1, %v958_v42 }
  0xff   : > { %v1160_v57 = vpop.f32.mrf.mxu1  ;;  %v21398_v35 = vld [vmem:[#allocation3 + $0x79] sm:$0xff]  ;;  %v957_v37 = vmax.f32 %v831_v48, 0.0  ;;  %v846_v39 = vadd.f32 %v18671_v32, %v21275_v61 }
 0x100   : > { %v21400_v34 = vld [vmem:[#allocation3 + $0x78] sm:$0xff]  ;;  %v21402_v33 = vld [vmem:[#allocation3 + $0x80] sm:$0xff]  ;;  %1294 = vst.msk [vmem:[#allocation3 + $0xa9] sm:$0xff] %vm439_vm1, %v1261_v41  ;;  %v1264_v58 = vmax.f32 %v1166_v49, 0.0  ;;  %v1161_v59 = vadd.f32 %v21261_v45, %v1160_v57  ;;  %18769 = vmatprep.mubr.msk.f32.mxu0 %vm439_vm1, %v21398_v35  ;;  %v840_v41 = vpop.f32.mrf.mxu0 }
 0x101   : > { %18819 = vmatprep.mubr.msk.f32.mxu1 %vm439_vm1, %v21400_v34  ;;  %v18730_v40 = vpop.f32.mrf.mxu1  ;;  %18770 = vmatmul.mubr.msk.f32.gmra.mxu0 %vm439_vm1, %v21410_v36  ;;  %989 = vst.msk [vmem:[%s21298_s23 + $0x40] sm:$0xff] %vm439_vm1, %v957_v37  ;;  %v960_v42 = vmax.f32 %v846_v39, 0.0  ;;  %v841_v48 = vadd.f32 %v21275_v61, %v840_v41  ;;  %v21436_v37 = vld [vmem:[#allocation3 + $0x99] sm:$0xff] }
 0x102   : > { %18820 = vmatmul.mubr.msk.f32.gmra.mxu1 %vm439_vm1, %v21402_v33  ;;  %1297 = vst.msk [vmem:[#allocation3 + $0xc9] sm:$0xff] %vm439_vm1, %v1264_v58  ;;  %v1263_v49 = vmax.f32 %v1161_v59, 0.0  ;;  %v1176_v57 = vadd.f32 %v18730_v40, %v21261_v45  ;;  %v18674_v28 = vpop.f32.mrf.mxu0 }
 0x103   : > { %v1170_v32 = vpop.f32.mrf.mxu1  ;;  %v21424_v31 = vld [vmem:[#allocation3 + $0x91] sm:$0xff]  ;;  %992 = vst.msk [vmem:[%s21298_s23 + $0x58] sm:$0xff] %vm439_vm1, %v960_v42  ;;  %v959_v39 = vmax.f32 %v841_v48, 0.0  ;;  %v856_v40 = vadd.f32 %v18674_v28, %v21275_v61 }
 0x104   : > { %v21426_v30 = vld [vmem:[#allocation3 + $0x90] sm:$0xff]  ;;  %v21428_v29 = vld [vmem:[#allocation3 + $0x98] sm:$0xff]  ;;  %1296 = vst.msk [vmem:[#allocation3 + $0xc1] sm:$0xff] %vm439_vm1, %v1263_v49  ;;  %v1266_v58 = vmax.f32 %v1176_v57, 0.0  ;;  %v1171_v59 = vadd.f32 %v21261_v45, %v1170_v32  ;;  %18772 = vmatprep.mubr.msk.f32.mxu0 %vm439_vm1, %v21424_v31  ;;  %v850_v49 = vpop.f32.mrf.mxu0 }
 0x105   : > { %18822 = vmatprep.mubr.msk.f32.mxu1 %vm439_vm1, %v21426_v30  ;;  %v18733_v41 = vpop.f32.mrf.mxu1  ;;  %18773 = vmatmul.mubr.msk.f32.gmra.mxu0 %vm439_vm1, %v21436_v37  ;;  %991 = vst.msk [vmem:[%s21298_s23 + $0x50] sm:$0xff] %vm439_vm1, %v959_v39  ;;  %v962_v42 = vmax.f32 %v856_v40, 0.0  ;;  %v851_v48 = vadd.f32 %v21275_v61, %v850_v49  ;;  %v21462_v39 = vld [vmem:[#allocation3 + $0xb1] sm:$0xff] }
 0x106   : > { %18823 = vmatmul.mubr.msk.f32.gmra.mxu1 %vm439_vm1, %v21428_v29  ;;  %1299 = vst.msk [vmem:[#allocation3 + $0xe1] sm:$0xff] %vm439_vm1, %v1266_v58  ;;  %v1265_v57 = vmax.f32 %v1171_v59, 0.0  ;;  %v1186_v32 = vadd.f32 %v18733_v41, %v21261_v45  ;;  %v18677_v24 = vpop.f32.mrf.mxu0 }
 0x107   : > { %v1180_v28 = vpop.f32.mrf.mxu1  ;;  %v21450_v27 = vld [vmem:[#allocation3 + $0xa9] sm:$0xff]  ;;  %994 = vst.msk [vmem:[%s21298_s23 + $0x68] sm:$0xff] %vm439_vm1, %v962_v42  ;;  %v961_v40 = vmax.f32 %v851_v48, 0.0  ;;  %v866_v41 = vadd.f32 %v18677_v24, %v21275_v61 }
 0x108   : > { %v21452_v26 = vld [vmem:[#allocation3 + $0xa8] sm:$0xff]  ;;  %v21454_v25 = vld [vmem:[#allocation3 + $0xb0] sm:$0xff]  ;;  %1298 = vst.msk [vmem:[#allocation3 + $0xd9] sm:$0xff] %vm439_vm1, %v1265_v57  ;;  %v1268_v58 = vmax.f32 %v1186_v32, 0.0  ;;  %v1181_v59 = vadd.f32 %v21261_v45, %v1180_v28  ;;  %18775 = vmatprep.mubr.msk.f32.mxu0 %vm439_vm1, %v21450_v27  ;;  %v860_v57 = vpop.f32.mrf.mxu0 }
 0x109   : > { %18825 = vmatprep.mubr.msk.f32.mxu1 %vm439_vm1, %v21452_v26  ;;  %v18736_v49 = vpop.f32.mrf.mxu1  ;;  %18776 = vmatmul.mubr.msk.f32.gmra.mxu0 %vm439_vm1, %v21462_v39  ;;  %993 = vst.msk [vmem:[%s21298_s23 + $0x60] sm:$0xff] %vm439_vm1, %v961_v40  ;;  %v964_v42 = vmax.f32 %v866_v41, 0.0  ;;  %v861_v48 = vadd.f32 %v21275_v61, %v860_v57  ;;  %v21488_v40 = vld [vmem:[#allocation3 + $0xc9] sm:$0xff] }
 0x10a   : > { %18826 = vmatmul.mubr.msk.f32.gmra.mxu1 %vm439_vm1, %v21454_v25  ;;  %1301 = vst.msk [vmem:[#allocation3 + $0xf9] sm:$0xff] %vm439_vm1, %v1268_v58  ;;  %v1267_v32 = vmax.f32 %v1181_v59, 0.0  ;;  %v1196_v28 = vadd.f32 %v18736_v49, %v21261_v45  ;;  %v18680_v20 = vpop.f32.mrf.mxu0 }
 0x10b   : > { %v1190_v24 = vpop.f32.mrf.mxu1  ;;  %v21476_v23 = vld [vmem:[#allocation3 + $0xc1] sm:$0xff]  ;;  %996 = vst.msk [vmem:[%s21298_s23 + $0x78] sm:$0xff] %vm439_vm1, %v964_v42  ;;  %v963_v41 = vmax.f32 %v861_v48, 0.0  ;;  %v876_v49 = vadd.f32 %v18680_v20, %v21275_v61 }
 0x10c   : > { %v21478_v22 = vld [vmem:[#allocation3 + $0xc0] sm:$0xff]  ;;  %v21480_v21 = vld [vmem:[#allocation3 + $0xc8] sm:$0xff]  ;;  %1300 = vst.msk [vmem:[#allocation3 + $0xf1] sm:$0xff] %vm439_vm1, %v1267_v32  ;;  %v1270_v58 = vmax.f32 %v1196_v28, 0.0  ;;  %v1191_v59 = vadd.f32 %v21261_v45, %v1190_v24  ;;  %18778 = vmatprep.mubr.msk.f32.mxu0 %vm439_vm1, %v21476_v23  ;;  %v870_v32 = vpop.f32.mrf.mxu0 }
 0x10d   : > { %18828 = vmatprep.mubr.msk.f32.mxu1 %vm439_vm1, %v21478_v22  ;;  %v18739_v57 = vpop.f32.mrf.mxu1  ;;  %18779 = vmatmul.mubr.msk.f32.gmra.mxu0 %vm439_vm1, %v21488_v40  ;;  %995 = vst.msk [vmem:[%s21298_s23 + $0x70] sm:$0xff] %vm439_vm1, %v963_v41  ;;  %v966_v42 = vmax.f32 %v876_v49, 0.0  ;;  %v871_v48 = vadd.f32 %v21275_v61, %v870_v32  ;;  %v21514_v41 = vld [vmem:[#allocation3 + $0xe1] sm:$0xff] }
 0x10e   : > { %18829 = vmatmul.mubr.msk.f32.gmra.mxu1 %vm439_vm1, %v21480_v21  ;;  %1303 = vst.msk [vmem:[#allocation3 + $0x111] sm:$0xff] %vm439_vm1, %v1270_v58  ;;  %v1269_v28 = vmax.f32 %v1191_v59, 0.0  ;;  %v1206_v24 = vadd.f32 %v18739_v57, %v21261_v45  ;;  %v18683_v16 = vpop.f32.mrf.mxu0 }
 0x10f   : > { %v1200_v20 = vpop.f32.mrf.mxu1  ;;  %v21502_v19 = vld [vmem:[#allocation3 + $0xd9] sm:$0xff]  ;;  %998 = vst.msk [vmem:[%s21298_s23 + $0x88] sm:$0xff] %vm439_vm1, %v966_v42  ;;  %v965_v49 = vmax.f32 %v871_v48, 0.0  ;;  %v886_v57 = vadd.f32 %v18683_v16, %v21275_v61 }
 0x110   : > { %v21504_v18 = vld [vmem:[#allocation3 + $0xd8] sm:$0xff]  ;;  %v21506_v17 = vld [vmem:[#allocation3 + $0xe0] sm:$0xff]  ;;  %1302 = vst.msk [vmem:[#allocation3 + $0x109] sm:$0xff] %vm439_vm1, %v1269_v28  ;;  %v1272_v58 = vmax.f32 %v1206_v24, 0.0  ;;  %v1201_v59 = vadd.f32 %v21261_v45, %v1200_v20  ;;  %18781 = vmatprep.mubr.msk.f32.mxu0 %vm439_vm1, %v21502_v19  ;;  %v880_v28 = vpop.f32.mrf.mxu0 }
 0x111   : > { %18831 = vmatprep.mubr.msk.f32.mxu1 %vm439_vm1, %v21504_v18  ;;  %v18742_v32 = vpop.f32.mrf.mxu1  ;;  %18782 = vmatmul.mubr.msk.f32.gmra.mxu0 %vm439_vm1, %v21514_v41  ;;  %997 = vst.msk [vmem:[%s21298_s23 + $0x80] sm:$0xff] %vm439_vm1, %v965_v49  ;;  %v968_v42 = vmax.f32 %v886_v57, 0.0  ;;  %v881_v48 = vadd.f32 %v21275_v61, %v880_v28  ;;  %v21540_v49 = vld [vmem:[#allocation3 + $0xf9] sm:$0xff] }
 0x112   : > { %18832 = vmatmul.mubr.msk.f32.gmra.mxu1 %vm439_vm1, %v21506_v17  ;;  %1305 = vst.msk [vmem:[#allocation3 + $0x129] sm:$0xff] %vm439_vm1, %v1272_v58  ;;  %v1271_v24 = vmax.f32 %v1201_v59, 0.0  ;;  %v1216_v20 = vadd.f32 %v18742_v32, %v21261_v45  ;;  %v18686_v12 = vpop.f32.mrf.mxu0 }
 0x113   : > { %v1210_v16 = vpop.f32.mrf.mxu1  ;;  %v21528_v15 = vld [vmem:[#allocation3 + $0xf1] sm:$0xff]  ;;  %1000 = vst.msk [vmem:[%s21298_s23 + $0x98] sm:$0xff] %vm439_vm1, %v968_v42  ;;  %v967_v57 = vmax.f32 %v881_v48, 0.0  ;;  %v896_v32 = vadd.f32 %v18686_v12, %v21275_v61 }
 0x114   : > { %v21530_v14 = vld [vmem:[#allocation3 + $0xf0] sm:$0xff]  ;;  %v21532_v13 = vld [vmem:[#allocation3 + $0xf8] sm:$0xff]  ;;  %1304 = vst.msk [vmem:[#allocation3 + $0x121] sm:$0xff] %vm439_vm1, %v1271_v24  ;;  %v1274_v58 = vmax.f32 %v1216_v20, 0.0  ;;  %v1211_v59 = vadd.f32 %v21261_v45, %v1210_v16  ;;  %18784 = vmatprep.mubr.msk.f32.mxu0 %vm439_vm1, %v21528_v15  ;;  %v890_v24 = vpop.f32.mrf.mxu0 }
 0x115   : > { %18834 = vmatprep.mubr.msk.f32.mxu1 %vm439_vm1, %v21530_v14  ;;  %v18745_v28 = vpop.f32.mrf.mxu1  ;;  %18785 = vmatmul.mubr.msk.f32.gmra.mxu0 %vm439_vm1, %v21540_v49  ;;  %999 = vst.msk [vmem:[%s21298_s23 + $0x90] sm:$0xff] %vm439_vm1, %v967_v57  ;;  %v970_v42 = vmax.f32 %v896_v32, 0.0  ;;  %v891_v48 = vadd.f32 %v21275_v61, %v890_v24  ;;  %v21566_v57 = vld [vmem:[#allocation3 + $0x111] sm:$0xff] }
 0x116   : > { %18835 = vmatmul.mubr.msk.f32.gmra.mxu1 %vm439_vm1, %v21532_v13  ;;  %1307 = vst.msk [vmem:[#allocation3 + $0x141] sm:$0xff] %vm439_vm1, %v1274_v58  ;;  %v1273_v20 = vmax.f32 %v1211_v59, 0.0  ;;  %v1226_v16 = vadd.f32 %v18745_v28, %v21261_v45  ;;  %v18689_v8 = vpop.f32.mrf.mxu0  ;;  %27184 = vst [vmem:[#allocation40_spill] sm:$0xff] %v21566_v57 }
 0x117   : > { %v1220_v12 = vpop.f32.mrf.mxu1  ;;  %v21554_v11 = vld [vmem:[#allocation3 + $0x109] sm:$0xff]  ;;  %1002 = vst.msk [vmem:[%s21298_s23 + $0xa8] sm:$0xff] %vm439_vm1, %v970_v42  ;;  %v969_v32 = vmax.f32 %v891_v48, 0.0  ;;  %v906_v28 = vadd.f32 %v18689_v8, %v21275_v61 }
 0x118   : > { %v21556_v10 = vld [vmem:[#allocation3 + $0x108] sm:$0xff]  ;;  %v21558_v9 = vld [vmem:[#allocation3 + $0x110] sm:$0xff]  ;;  %1306 = vst.msk [vmem:[#allocation3 + $0x139] sm:$0xff] %vm439_vm1, %v1273_v20  ;;  %v1276_v58 = vmax.f32 %v1226_v16, 0.0  ;;  %v1221_v59 = vadd.f32 %v21261_v45, %v1220_v12  ;;  %18787 = vmatprep.mubr.msk.f32.mxu0 %vm439_vm1, %v21554_v11  ;;  %v900_v20 = vpop.f32.mrf.mxu0 }
 0x119   : > { %18837 = vmatprep.mubr.msk.f32.mxu1 %vm439_vm1, %v21556_v10  ;;  %v18748_v24 = vpop.f32.mrf.mxu1  ;;  %18788 = vmatmul.mubr.msk.f32.gmra.mxu0 %vm439_vm1, %v21566_v57  ;;  %1001 = vst.msk [vmem:[%s21298_s23 + $0xa0] sm:$0xff] %vm439_vm1, %v969_v32  ;;  %v972_v42 = vmax.f32 %v906_v28, 0.0  ;;  %v901_v48 = vadd.f32 %v21275_v61, %v900_v20  ;;  %v21592_v32 = vld [vmem:[#allocation3 + $0x129] sm:$0xff] }
 0x11a   : > { %18838 = vmatmul.mubr.msk.f32.gmra.mxu1 %vm439_vm1, %v21558_v9  ;;  %1309 = vst.msk [vmem:[#allocation3 + $0x159] sm:$0xff] %vm439_vm1, %v1276_v58  ;;  %v1275_v16 = vmax.f32 %v1221_v59, 0.0  ;;  %v1236_v12 = vadd.f32 %v18748_v24, %v21261_v45  ;;  %v18692_v4 = vpop.f32.mrf.mxu0  ;;  %27186 = vst [vmem:[#allocation42_spill] sm:$0xff] %v21592_v32 }
 0x11b   : > { %v1230_v8 = vpop.f32.mrf.mxu1  ;;  %v21580_v7 = vld [vmem:[#allocation3 + $0x121] sm:$0xff]  ;;  %1004 = vst.msk [vmem:[%s21298_s23 + $0xb8] sm:$0xff] %vm439_vm1, %v972_v42  ;;  %v971_v28 = vmax.f32 %v901_v48, 0.0  ;;  %v916_v24 = vadd.f32 %v18692_v4, %v21275_v61 }
 0x11c   : > { %27185 = vst [vmem:[#allocation41_spill] sm:$0xff] %v21580_v7  ;;  %v21582_v6 = vld [vmem:[#allocation3 + $0x120] sm:$0xff]  ;;  %v21584_v5 = vld [vmem:[#allocation3 + $0x128] sm:$0xff]  ;;  %1308 = vst.msk [vmem:[#allocation3 + $0x151] sm:$0xff] %vm439_vm1, %v1275_v16  ;;  %v1278_v58 = vmax.f32 %v1236_v12, 0.0  ;;  %v1231_v59 = vadd.f32 %v21261_v45, %v1230_v8  ;;  %18790 = vmatprep.mubr.msk.f32.mxu0 %vm439_vm1, %v21580_v7  ;;  %v910_v16 = vpop.f32.mrf.mxu0 }
 0x11d   : > { %18840 = vmatprep.mubr.msk.f32.mxu1 %vm439_vm1, %v21582_v6  ;;  %18791 = vmatmul.mubr.msk.f32.gmra.mxu0 %vm439_vm1, %v21592_v32  ;;  %v18751_v20 = vpop.f32.mrf.mxu1  ;;  %1003 = vst.msk [vmem:[%s21298_s23 + $0xb0] sm:$0xff] %vm439_vm1, %v971_v28  ;;  %v974_v42 = vmax.f32 %v916_v24, 0.0  ;;  %v911_v48 = vadd.f32 %v21275_v61, %v910_v16 }
 0x11e   : > { %18841 = vmatmul.mubr.msk.f32.gmra.mxu1 %vm439_vm1, %v21584_v5  ;;  %1311 = vst.msk [vmem:[#allocation3 + $0x171] sm:$0xff] %vm439_vm1, %v1278_v58  ;;  %v1277_v12 = vmax.f32 %v1231_v59, 0.0  ;;  %v1246_v8 = vadd.f32 %v18751_v20, %v21261_v45  ;;  %v18695_v57 = vpop.f32.mrf.mxu0  ;;  %v21617_v58 = vld [vmem:[#allocation3 + $0x141] sm:$0xff] }
 0x11f   : > { %v21606_v4 = vld [vmem:[#allocation3 + $0x139] sm:$0xff]  ;;  %v1240_v7 = vpop.f32.mrf.mxu1  ;;  %27188 = vst [vmem:[#allocation44_spill] sm:$0xff] %v21617_v58  ;;  %1006 = vst.msk [vmem:[%s21298_s23 + $0xc8] sm:$0xff] %vm439_vm1, %v974_v42  ;;  %v973_v24 = vmax.f32 %v911_v48, 0.0  ;;  %v926_v20 = vadd.f32 %v18695_v57, %v21275_v61 }
 0x120   : > { %27187 = vst [vmem:[#allocation43_spill] sm:$0xff] %v21606_v4  ;;  %v21608_v3 = vld [vmem:[#allocation3 + $0x138] sm:$0xff]  ;;  %v21610_v32 = vld [vmem:[#allocation3 + $0x140] sm:$0xff]  ;;  %1310 = vst.msk [vmem:[#allocation3 + $0x169] sm:$0xff] %vm439_vm1, %v1277_v12  ;;  %18793 = vmatprep.mubr.msk.f32.mxu0 %vm439_vm1, %v21606_v4  ;;  %v1280_v59 = vmax.f32 %v1246_v8, 0.0  ;;  %v1241_v28 = vadd.f32 %v21261_v45, %v1240_v7  ;;  %v920_v16 = vpop.f32.mrf.mxu0 }
 0x121   : > { %18843 = vmatprep.mubr.msk.f32.mxu1 %vm439_vm1, %v21608_v3  ;;  %18794 = vmatmul.mubr.msk.f32.gmra.mxu0 %vm439_vm1, %v21617_v58  ;;  %1005 = vst.msk [vmem:[%s21298_s23 + $0xc0] sm:$0xff] %vm439_vm1, %v973_v24  ;;  %v976_v8 = vmax.f32 %v926_v20, 0.0  ;;  %v921_v7 = vadd.f32 %v21275_v61, %v920_v16  ;;  %v2029_v16 = vld [vmem:[#allocation3 + $0x2] sm:$0xff]  ;;  %v18806_v4 = vpop.f32.mrf.mxu1 }
 0x122   : > { %18844 = vmatmul.mubr.msk.f32.gmra.mxu1 %vm439_vm1, %v21610_v32  ;;  %1313 = vst.msk [vmem:[#allocation3 + $0x189] sm:$0xff] %vm439_vm1, %v1280_v59  ;;  %v1279_v12 = vmax.f32 %v1241_v28, 0.0  ;;  %v18698_v48 = vpop.f32.mrf.mxu0  ;;  %v21641_v59 = vld [vmem:[#allocation3 + $0x159] sm:$0xff] }
 0x123   : > { %v21631_v45 = vld [vmem:[#allocation3 + $0x151] sm:$0xff]  ;;  %27190 = vst [vmem:[#allocation46_spill] sm:$0xff] %v21641_v59  ;;  %1008 = vst.msk [vmem:[%s21298_s23 + $0xd8] sm:$0xff] %vm439_vm1, %v976_v8  ;;  %v975_v28 = vmax.f32 %v921_v7, 0.0  ;;  %v936_v24 = vadd.f32 %v18698_v48, %v21275_v61 }
 0x124   : > { %27189 = vst [vmem:[#allocation45_spill] sm:$0xff] %v21631_v45  ;;  %v21633_v57 = vld [vmem:[#allocation3 + $0x150] sm:$0xff]  ;;  %v21635_v42 = vld [vmem:[#allocation3 + $0x158] sm:$0xff]  ;;  %18796 = vmatprep.mubr.msk.f32.mxu0 %vm439_vm1, %v21631_v45  ;;  %1312 = vst.msk [vmem:[#allocation3 + $0x181] sm:$0xff] %vm439_vm1, %v1279_v12  ;;  %v930_v20 = vpop.f32.mrf.mxu0 }
 0x125   : > { %18846 = vmatprep.mubr.msk.f32.mxu1 %vm439_vm1, %v21633_v57  ;;  %18797 = vmatmul.mubr.msk.f32.gmra.mxu0 %vm439_vm1, %v21641_v59  ;;  %1007 = vst.msk [vmem:[%s21298_s23 + $0xd0] sm:$0xff] %vm439_vm1, %v975_v28  ;;  %v978_v45 = vmax.f32 %v936_v24, 0.0  ;;  %v931_v58 = vadd.f32 %v21275_v61, %v930_v20  ;;  %v21664_v59 = vld [vmem:[#allocation3 + $0x171] sm:$0xff] }
 0x126   : > { %18847 = vmatmul.mubr.msk.f32.gmra.mxu1 %vm439_vm1, %v21635_v42  ;;  %v18701_v48 = vpop.f32.mrf.mxu0  ;;  %27192 = vst [vmem:[#allocation48_spill] sm:$0xff] %v21664_v59 }
 0x127   : > { %v21654_v12 = vld [vmem:[#allocation3 + $0x169] sm:$0xff]  ;;  %1010 = vst.msk [vmem:[%s21298_s23 + $0xe8] sm:$0xff] %vm439_vm1, %v978_v45  ;;  %v977_v28 = vmax.f32 %v931_v58, 0.0  ;;  %v946_v24 = vadd.f32 %v18701_v48, %v21275_v61 }
 0x128   : > { %27191 = vst [vmem:[#allocation47_spill] sm:$0xff] %v21654_v12  ;;  %v21656_v8 = vld [vmem:[#allocation3 + $0x168] sm:$0xff]  ;;  %v21658_v7 = vld [vmem:[#allocation3 + $0x170] sm:$0xff]  ;;  %18799 = vmatprep.mubr.msk.f32.mxu0 %vm439_vm1, %v21654_v12  ;;  %v940_v20 = vpop.f32.mrf.mxu0 }
 0x129   : > { %18849 = vmatprep.mubr.msk.f32.mxu1 %vm439_vm1, %v21656_v8  ;;  %18800 = vmatmul.mubr.msk.f32.gmra.mxu0 %vm439_vm1, %v21664_v59  ;;  %v2030_v12 = vld [vmem:[#allocation3 + $0xa] sm:$0xff]  ;;  %1009 = vst.msk [vmem:[%s21298_s23 + $0xe0] sm:$0xff] %vm439_vm1, %v977_v28  ;;  %v980_v45 = vmax.f32 %v946_v24, 0.0  ;;  %v941_v58 = vadd.f32 %v21275_v61, %v940_v20 }
 0x12a   : > { %18850 = vmatmul.mubr.msk.f32.gmra.mxu1 %vm439_vm1, %v21658_v7  ;;  %18854 = vmatprep.mubr.msk.f32.mxu0 %vm439_vm1, %v2029_v16  ;;  %v18756_v59 = vpop.f32.mrf.mxu0  ;;  %v21689_v16 = vld [vmem:[%s26925_s5 + $0x1c] sm:$0xf]  ;;  %v21696_v61 = vld [vmem:[%s26925_s5 + $0x18] sm:$0xf]  ;;  %v3983_v24 = vld [vmem:[#allocation3 + $0x51] sm:$0xff] }
 0x12b   : > { %18904 = vmatprep.mubr.msk.f32.mxu1 %vm439_vm1, %v21294_v46  ;;  %1012 = vst.msk [vmem:[%s21298_s23 + $0xf8] sm:$0xff] %vm439_vm1, %v980_v45  ;;  %v979_v48 = vmax.f32 %v941_v58, 0.0  ;;  %v21684_v46 = vld [vmem:[#allocation3 + $0x1a] sm:$0xff]  ;;  %v21691_v28 = vadd.f32 %v18806_v4, %v18756_v59  ;;  %v21884_v59 = vld [vmem:[#allocation3 + $0x188] sm:$0xff] }
 0x12c   : > { %v21870_v4 = vld [vmem:[#allocation3 + $0x15a] sm:$0xff] }
 0x12d   : > { %18855 = vmatmul.mubr.msk.f32.vlgmr.msra.gmra.mxu0 %vm439_vm1, %v2030_v12  ;;  %1011 = vst.msk [vmem:[%s21298_s23 + $0xf0] sm:$0xff] %vm439_vm1, %v979_v48  ;;  %v21901_v12 = vld [vmem:[%s26927_s7] sm:$0xf]  ;;  %v3594_v58 = vld [vmem:[#allocation3 + $0x60] sm:$0xff] }
 0x12e   : > { %18905 = vmatmul.mubr.msk.f32.vlgmr.msra.gmra.mxu1 %vm439_vm1, %v21296_v47  ;;  %18857 = vmatprep.mubr.msk.f32.mxu0 %vm439_vm1, %v21684_v46  ;;  %v21708_v47 = vld [vmem:[#allocation3 + $0x22] sm:$0xff] }
 0x12f   : > { %19003 = vmatpush3.msk.msra.mxu1 %vm720_vm0, %v21252_v44  ;;  %18907 = vmatprep.mubr.msk.f32.mxu1 %vm439_vm1, %v21322_v0  ;;  %v21718_v44 = vld [vmem:[#allocation3 + $0x32] sm:$0xff]  ;;  %v21730_v0 = vld [vmem:[#allocation3 + $0x4a] sm:$0xff]  ;;  %v3984_v48 = vld [vmem:[#allocation3 + $0x61] sm:$0xff] }
 0x130   : > { %18953 = vmatpush3.msk.msra.mxu0 %vm720_vm0, %v21280_v62  ;;  %19102 = vmatprep.subr.msk.mxu1 %vm720_vm0, %v21689_v16  ;;  %v21724_v62 = vld [vmem:[#allocation3 + $0x3a] sm:$0xff] }
 0x131   : > { %19052 = vmatprep.subr.msk.mxu0 %vm720_vm0, %v21696_v61  ;;  %18858 = vmatmul.mubr.msk.f32.gmra.mxu0 %vm439_vm1, %v21708_v47 }
 0x132   : > { %18908 = vmatmul.mubr.msk.f32.gmra.mxu1 %vm439_vm1, %v21324_v1  ;;  %18860 = vmatprep.mubr.msk.f32.mxu0 %vm439_vm1, %v21718_v44  ;;  %v21736_v1 = vld [vmem:[#allocation3 + $0x52] sm:$0xff] }
 0x133   : > { %18910 = vmatprep.mubr.msk.f32.mxu1 %vm439_vm1, %v21348_v55  ;;  %v21742_v55 = vld [vmem:[#allocation3 + $0x62] sm:$0xff] }
 0x135   : > { %18861 = vmatmul.mubr.msk.f32.gmra.mxu0 %vm439_vm1, %v21724_v62 }
 0x136   : > { %18911 = vmatmul.mubr.msk.f32.gmra.mxu1 %vm439_vm1, %v21350_v56  ;;  %18863 = vmatprep.mubr.msk.f32.mxu0 %vm439_vm1, %v21730_v0  ;;  %v21748_v56 = vld [vmem:[#allocation3 + $0x6a] sm:$0xff] }
 0x137   : > { %18913 = vmatprep.mubr.msk.f32.mxu1 %vm439_vm1, %v21374_v51  ;;  %v21754_v51 = vld [vmem:[#allocation3 + $0x7a] sm:$0xff] }
 0x139   : > { %18864 = vmatmul.mubr.msk.f32.gmra.mxu0 %vm439_vm1, %v21736_v1 }
 0x13a   : > { %18914 = vmatmul.mubr.msk.f32.gmra.mxu1 %vm439_vm1, %v21376_v53  ;;  %18866 = vmatprep.mubr.msk.f32.mxu0 %vm439_vm1, %v21742_v55  ;;  %v21760_v53 = vld [vmem:[#allocation3 + $0x82] sm:$0xff] }
 0x13b   : > { %18916 = vmatprep.mubr.msk.f32.mxu1 %vm439_vm1, %v21400_v34  ;;  %v21766_v34 = vld [vmem:[#allocation3 + $0x92] sm:$0xff] }
 0x13d   : > { %18867 = vmatmul.mubr.msk.f32.gmra.mxu0 %vm439_vm1, %v21748_v56 }
 0x13e   : > { %18917 = vmatmul.mubr.msk.f32.gmra.mxu1 %vm439_vm1, %v21402_v33  ;;  %18869 = vmatprep.mubr.msk.f32.mxu0 %vm439_vm1, %v21754_v51  ;;  %v21772_v33 = vld [vmem:[#allocation3 + $0x9a] sm:$0xff] }
 0x13f   : > { %18919 = vmatprep.mubr.msk.f32.mxu1 %vm439_vm1, %v21426_v30  ;;  %v21778_v30 = vld [vmem:[#allocation3 + $0xaa] sm:$0xff] }
 0x141   : > { %18870 = vmatmul.mubr.msk.f32.gmra.mxu0 %vm439_vm1, %v21760_v53 }
 0x142   : > { %18920 = vmatmul.mubr.msk.f32.gmra.mxu1 %vm439_vm1, %v21428_v29  ;;  %18872 = vmatprep.mubr.msk.f32.mxu0 %vm439_vm1, %v21766_v34  ;;  %v21784_v29 = vld [vmem:[#allocation3 + $0xb2] sm:$0xff] }
 0x143   : > { %18922 = vmatprep.mubr.msk.f32.mxu1 %vm439_vm1, %v21452_v26  ;;  %v21790_v26 = vld [vmem:[#allocation3 + $0xc2] sm:$0xff] }
 0x145   : > { %18873 = vmatmul.mubr.msk.f32.gmra.mxu0 %vm439_vm1, %v21772_v33 }
 0x146   : > { %18923 = vmatmul.mubr.msk.f32.gmra.mxu1 %vm439_vm1, %v21454_v25  ;;  %18875 = vmatprep.mubr.msk.f32.mxu0 %vm439_vm1, %v21778_v30  ;;  %v21796_v25 = vld [vmem:[#allocation3 + $0xca] sm:$0xff] }
 0x147   : > { %18925 = vmatprep.mubr.msk.f32.mxu1 %vm439_vm1, %v21478_v22  ;;  %v21802_v22 = vld [vmem:[#allocation3 + $0xda] sm:$0xff] }
 0x149   : > { %18876 = vmatmul.mubr.msk.f32.gmra.mxu0 %vm439_vm1, %v21784_v29 }
 0x14a   : > { %18926 = vmatmul.mubr.msk.f32.gmra.mxu1 %vm439_vm1, %v21480_v21  ;;  %18878 = vmatprep.mubr.msk.f32.mxu0 %vm439_vm1, %v21790_v26  ;;  %v21808_v21 = vld [vmem:[#allocation3 + $0xe2] sm:$0xff] }
 0x14b   : > { %18928 = vmatprep.mubr.msk.f32.mxu1 %vm439_vm1, %v21504_v18  ;;  %v21814_v18 = vld [vmem:[#allocation3 + $0xf2] sm:$0xff] }
 0x14d   : > { %18879 = vmatmul.mubr.msk.f32.gmra.mxu0 %vm439_vm1, %v21796_v25 }
 0x14e   : > { %18929 = vmatmul.mubr.msk.f32.gmra.mxu1 %vm439_vm1, %v21506_v17  ;;  %18881 = vmatprep.mubr.msk.f32.mxu0 %vm439_vm1, %v21802_v22  ;;  %v21820_v17 = vld [vmem:[#allocation3 + $0xfa] sm:$0xff] }
 0x14f   : > { %18931 = vmatprep.mubr.msk.f32.mxu1 %vm439_vm1, %v21530_v14  ;;  %v21826_v14 = vld [vmem:[#allocation3 + $0x10a] sm:$0xff] }
 0x151   : > { %18882 = vmatmul.mubr.msk.f32.gmra.mxu0 %vm439_vm1, %v21808_v21 }
 0x152   : > { %18932 = vmatmul.mubr.msk.f32.gmra.mxu1 %vm439_vm1, %v21532_v13  ;;  %18884 = vmatprep.mubr.msk.f32.mxu0 %vm439_vm1, %v21814_v18  ;;  %v21832_v13 = vld [vmem:[#allocation3 + $0x112] sm:$0xff] }
 0x153   : > { %18934 = vmatprep.mubr.msk.f32.mxu1 %vm439_vm1, %v21556_v10  ;;  %v21838_v10 = vld [vmem:[#allocation3 + $0x122] sm:$0xff] }
 0x155   : > { %18885 = vmatmul.mubr.msk.f32.gmra.mxu0 %vm439_vm1, %v21820_v17 }
 0x156   : > { %18935 = vmatmul.mubr.msk.f32.gmra.mxu1 %vm439_vm1, %v21558_v9  ;;  %18887 = vmatprep.mubr.msk.f32.mxu0 %vm439_vm1, %v21826_v14  ;;  %v21844_v9 = vld [vmem:[#allocation3 + $0x12a] sm:$0xff] }
 0x157   : > { %18937 = vmatprep.mubr.msk.f32.mxu1 %vm439_vm1, %v21582_v6  ;;  %v21850_v6 = vld [vmem:[#allocation3 + $0x13a] sm:$0xff] }
 0x159   : > { %18888 = vmatmul.mubr.msk.f32.gmra.mxu0 %vm439_vm1, %v21832_v13 }
 0x15a   : > { %18938 = vmatmul.mubr.msk.f32.gmra.mxu1 %vm439_vm1, %v21584_v5  ;;  %18890 = vmatprep.mubr.msk.f32.mxu0 %vm439_vm1, %v21838_v10  ;;  %v21856_v5 = vld [vmem:[#allocation3 + $0x142] sm:$0xff] }
 0x15b   : > { %18940 = vmatprep.mubr.msk.f32.mxu1 %vm439_vm1, %v21608_v3  ;;  %v21862_v3 = vld [vmem:[#allocation3 + $0x152] sm:$0xff] }
 0x15d   : > { %18891 = vmatmul.mubr.msk.f32.gmra.mxu0 %vm439_vm1, %v21844_v9 }
 0x15e   : > { %18941 = vmatmul.mubr.msk.f32.gmra.mxu1 %vm439_vm1, %v21610_v32  ;;  %18893 = vmatprep.mubr.msk.f32.mxu0 %vm439_vm1, %v21850_v6  ;;  %v21868_v32 = vld [vmem:[#allocation3 + $0x180] sm:$0xff] }
 0x15f   : > { %18943 = vmatprep.mubr.msk.f32.mxu1 %vm439_vm1, %v21633_v57  ;;  %v21876_v57 = vld [vmem:[#allocation3 + $0x16a] sm:$0xff] }
 0x161   : > { %18894 = vmatmul.mubr.msk.f32.gmra.mxu0 %vm439_vm1, %v21856_v5 }
 0x162   : > { %18944 = vmatmul.mubr.msk.f32.gmra.mxu1 %vm439_vm1, %v21635_v42  ;;  %18896 = vmatprep.mubr.msk.f32.mxu0 %vm439_vm1, %v21862_v3  ;;  %v21882_v42 = vld [vmem:[#allocation3 + $0x172] sm:$0xff] }
 0x163   : > { %18946 = vmatprep.mubr.msk.f32.mxu1 %vm439_vm1, %v21656_v8  ;;  %v21906_v8 = vld [vmem:[%s26925_s5 + $0x20] sm:$0xf] }
 0x165   : > { %18897 = vmatmul.mubr.msk.f32.gmra.mxu0 %vm439_vm1, %v21870_v4 }
 0x166   : > { %18947 = vmatmul.mubr.msk.f32.gmra.mxu1 %vm439_vm1, %v21658_v7  ;;  %18899 = vmatprep.mubr.msk.f32.mxu0 %vm439_vm1, %v21876_v57  ;;  %v3593_v7 = vld [vmem:[#allocation3 + $0x50] sm:$0xff] }
 0x167   : > { %18949 = vmatprep.mubr.msk.f32.mxu1 %vm439_vm1, %v21868_v32 }
 0x169   : > { %18900 = vmatmul.mubr.msk.f32.gmra.mxu0 %vm439_vm1, %v21882_v42 }
 0x16a   : > { %18950 = vmatmul.mubr.msk.f32.gmra.mxu1 %vm439_vm1, %v21884_v59  ;;  %18954 = vmatprep.mubr.msk.f32.mxu0 %vm439_vm1, %v21292_v43  ;;  %v27200_v43 = vld [vmem:[#allocation47_spill] sm:$0xff] }
 0x16b   : > { %19004 = vmatprep.mubr.msk.f32.mxu1 %vm439_vm1, %v21684_v46 }
 0x16d   : > { %18955 = vmatmul.mubr.msk.f32.vlgmr.msra.gmra.mxu0 %vm439_vm1, %v21308_v52  ;;  %v27201_v52 = vld [vmem:[#allocation48_spill] sm:$0xff] }
 0x16e   : > { %19005 = vmatmul.mubr.msk.f32.vlgmr.msra.gmra.mxu1 %vm439_vm1, %v21708_v47  ;;  %18957 = vmatprep.mubr.msk.f32.mxu0 %vm439_vm1, %v21320_v63  ;;  %v22028_v63 = vld [vmem:[#allocation3 + $0x181] sm:$0xff] }
 0x16f   : > { %19103 = vmatpush3.msk.msra.mxu1 %vm720_vm0, %v21689_v16  ;;  %19007 = vmatprep.mubr.msk.f32.mxu1 %vm439_vm1, %v21718_v44  ;;  %v3595_v44 = vld [vmem:[#allocation3 + $0x68] sm:$0xff] }
 0x170   : > { %19053 = vmatpush3.msk.msra.mxu0 %vm720_vm0, %v21696_v61  ;;  %19202 = vmatprep.subr.msk.mxu1 %vm720_vm0, %v21901_v12 }
 0x171   : > { %19152 = vmatprep.subr.msk.mxu0 %vm720_vm0, %v21906_v8  ;;  %18958 = vmatmul.mubr.msk.f32.gmra.mxu0 %vm439_vm1, %v21332_v38  ;;  %v22030_v38 = vld [vmem:[#allocation3 + $0x182] sm:$0xff] }
 0x172   : > { %19008 = vmatmul.mubr.msk.f32.gmra.mxu1 %vm439_vm1, %v21724_v62  ;;  %18960 = vmatprep.mubr.msk.f32.mxu0 %vm439_vm1, %v21346_v54  ;;  %v22036_v54 = vld [vmem:[#allocation3 + $0x189] sm:$0xff] }
 0x173   : > { %19010 = vmatprep.mubr.msk.f32.mxu1 %vm439_vm1, %v21730_v0  ;;  %v3985_v62 = vld [vmem:[#allocation3 + $0x69] sm:$0xff] }
 0x175   : > { %18961 = vmatmul.mubr.msk.f32.gmra.mxu0 %vm439_vm1, %v21358_v60  ;;  %v22038_v60 = vld [vmem:[#allocation3 + $0x18a] sm:$0xff] }
 0x176   : > { %19011 = vmatmul.mubr.msk.f32.gmra.mxu1 %vm439_vm1, %v21736_v1  ;;  %18963 = vmatprep.mubr.msk.f32.mxu0 %vm439_vm1, %v21372_v50  ;;  %v3590_v50 = vld [vmem:[#allocation3 + $0x30] sm:$0xff] }
 0x177   : > { %19013 = vmatprep.mubr.msk.f32.mxu1 %vm439_vm1, %v21742_v55  ;;  %v3596_v55 = vld [vmem:[#allocation3 + $0x78] sm:$0xff] }
 0x179   : > { %18964 = vmatmul.mubr.msk.f32.gmra.mxu0 %vm439_vm1, %v21384_v2  ;;  %v3980_v2 = vld [vmem:[#allocation3 + $0x31] sm:$0xff] }
 0x17a   : > { %19014 = vmatmul.mubr.msk.f32.gmra.mxu1 %vm439_vm1, %v21748_v56  ;;  %18966 = vmatprep.mubr.msk.f32.mxu0 %vm439_vm1, %v21398_v35  ;;  %v27199_v35 = vld [vmem:[#allocation46_spill] sm:$0xff] }
 0x17b   : > { %19016 = vmatprep.mubr.msk.f32.mxu1 %vm439_vm1, %v21754_v51  ;;  %v3986_v56 = vld [vmem:[#allocation3 + $0x79] sm:$0xff] }
 0x17d   : > { %18967 = vmatmul.mubr.msk.f32.gmra.mxu0 %vm439_vm1, %v21410_v36  ;;  %v3591_v36 = vld [vmem:[#allocation3 + $0x38] sm:$0xff] }
 0x17e   : > { %19017 = vmatmul.mubr.msk.f32.gmra.mxu1 %vm439_vm1, %v21760_v53  ;;  %18969 = vmatprep.mubr.msk.f32.mxu0 %vm439_vm1, %v21424_v31  ;;  %v27198_v31 = vld [vmem:[#allocation45_spill] sm:$0xff] }
 0x17f   : > { %19019 = vmatprep.mubr.msk.f32.mxu1 %vm439_vm1, %v21766_v34 }
 0x181   : > { %18970 = vmatmul.mubr.msk.f32.gmra.mxu0 %vm439_vm1, %v21436_v37  ;;  %v3981_v37 = vld [vmem:[#allocation3 + $0x39] sm:$0xff] }
 0x182   : > { %19020 = vmatmul.mubr.msk.f32.gmra.mxu1 %vm439_vm1, %v21772_v33  ;;  %18972 = vmatprep.mubr.msk.f32.mxu0 %vm439_vm1, %v21450_v27  ;;  %v27197_v27 = vld [vmem:[#allocation44_spill] sm:$0xff] }
 0x183   : > { %19022 = vmatprep.mubr.msk.f32.mxu1 %vm439_vm1, %v21778_v30  ;;  %v3597_v30 = vld [vmem:[#allocation3 + $0x80] sm:$0xff] }
 0x185   : > { %18973 = vmatmul.mubr.msk.f32.gmra.mxu0 %vm439_vm1, %v21462_v39  ;;  %v3592_v39 = vld [vmem:[#allocation3 + $0x48] sm:$0xff] }
 0x186   : > { %19023 = vmatmul.mubr.msk.f32.gmra.mxu1 %vm439_vm1, %v21784_v29  ;;  %18975 = vmatprep.mubr.msk.f32.mxu0 %vm439_vm1, %v21476_v23  ;;  %v27195_v23 = vld [vmem:[#allocation42_spill] sm:$0xff] }
 0x187   : > { %19025 = vmatprep.mubr.msk.f32.mxu1 %vm439_vm1, %v21790_v26  ;;  %v3987_v29 = vld [vmem:[#allocation3 + $0x81] sm:$0xff] }
 0x189   : > { %18976 = vmatmul.mubr.msk.f32.gmra.mxu0 %vm439_vm1, %v21488_v40  ;;  %v3982_v40 = vld [vmem:[#allocation3 + $0x49] sm:$0xff] }
 0x18a   : > { %19026 = vmatmul.mubr.msk.f32.gmra.mxu1 %vm439_vm1, %v21796_v25  ;;  %18978 = vmatprep.mubr.msk.f32.mxu0 %vm439_vm1, %v21502_v19  ;;  %v27193_v19 = vld [vmem:[#allocation40_spill] sm:$0xff] }
 0x18b   : > { %19028 = vmatprep.mubr.msk.f32.mxu1 %vm439_vm1, %v21802_v22  ;;  %v3598_v22 = vld [vmem:[#allocation3 + $0x90] sm:$0xff] }
 0x18d   : > { %18979 = vmatmul.mubr.msk.f32.gmra.mxu0 %vm439_vm1, %v21514_v41  ;;  %v22051_v41 = vpop.f32.mrf.mxu0 }
 0x18e   : > { %19029 = vmatmul.mubr.msk.f32.gmra.mxu1 %vm439_vm1, %v21808_v21  ;;  %18981 = vmatprep.mubr.msk.f32.mxu0 %vm439_vm1, %v21528_v15  ;;  %v27194_v15 = vld [vmem:[#allocation41_spill] sm:$0xff] }
 0x18f   : > { %19031 = vmatprep.mubr.msk.f32.mxu1 %vm439_vm1, %v21814_v18  ;;  %v3988_v21 = vld [vmem:[#allocation3 + $0x91] sm:$0xff] }
 0x191   : > { %18982 = vmatmul.mubr.msk.f32.gmra.mxu0 %vm439_vm1, %v21540_v49  ;;  %v22053_v49 = vpop.f32.mrf.mxu1 }
 0x192   : > { %19032 = vmatmul.mubr.msk.f32.gmra.mxu1 %vm439_vm1, %v21820_v17  ;;  %18984 = vmatprep.mubr.msk.f32.mxu0 %vm439_vm1, %v21554_v11  ;;  %v27196_v11 = vld [vmem:[#allocation43_spill] sm:$0xff] }
 0x193   : > { %19034 = vmatprep.mubr.msk.f32.mxu1 %vm439_vm1, %v21826_v14 }
 0x195   : > { %18985 = vmatmul.mubr.msk.f32.gmra.mxu0 %vm439_vm1, %v27193_v19  ;;  %v3601_v19 = vld [vmem:[#allocation3 + $0xb0] sm:$0xff] }
 0x196   : > { %19035 = vmatmul.mubr.msk.f32.gmra.mxu1 %vm439_vm1, %v21832_v13  ;;  %18987 = vmatprep.mubr.msk.f32.mxu0 %vm439_vm1, %v27194_v15  ;;  %v3991_v15 = vld [vmem:[#allocation3 + $0xb1] sm:$0xff] }
 0x197   : > { %19037 = vmatprep.mubr.msk.f32.mxu1 %vm439_vm1, %v21838_v10  ;;  %v3599_v10 = vld [vmem:[#allocation3 + $0x98] sm:$0xff] }
 0x199   : > { %18988 = vmatmul.mubr.msk.f32.gmra.mxu0 %vm439_vm1, %v27195_v23 }
 0x19a   : > { %19038 = vmatmul.mubr.msk.f32.gmra.mxu1 %vm439_vm1, %v21844_v9  ;;  %18990 = vmatprep.mubr.msk.f32.mxu0 %vm439_vm1, %v27196_v11  ;;  %v3989_v9 = vld [vmem:[#allocation3 + $0x99] sm:$0xff] }
 0x19b   : > { %19040 = vmatprep.mubr.msk.f32.mxu1 %vm439_vm1, %v21850_v6 }
 0x19d   : > { %18991 = vmatmul.mubr.msk.f32.gmra.mxu0 %vm439_vm1, %v27197_v27  ;;  %v3602_v27 = vld [vmem:[#allocation3 + $0xc0] sm:$0xff] }
 0x19e   : > { %19041 = vmatmul.mubr.msk.f32.gmra.mxu1 %vm439_vm1, %v21856_v5  ;;  %18993 = vmatprep.mubr.msk.f32.mxu0 %vm439_vm1, %v27198_v31  ;;  %v3992_v31 = vld [vmem:[#allocation3 + $0xc1] sm:$0xff] }
 0x19f   : > { %19043 = vmatprep.mubr.msk.f32.mxu1 %vm439_vm1, %v21862_v3  ;;  %v3600_v3 = vld [vmem:[#allocation3 + $0xa8] sm:$0xff] }
 0x1a1   : > { %18994 = vmatmul.mubr.msk.f32.gmra.mxu0 %vm439_vm1, %v27199_v35 }
 0x1a2   : > { %19044 = vmatmul.mubr.msk.f32.gmra.mxu1 %vm439_vm1, %v21870_v4  ;;  %18996 = vmatprep.mubr.msk.f32.mxu0 %vm439_vm1, %v27200_v43  ;;  %v3990_v4 = vld [vmem:[#allocation3 + $0xa9] sm:$0xff] }
 0x1a3   : > { %19046 = vmatprep.mubr.msk.f32.mxu1 %vm439_vm1, %v21876_v57 }
 0x1a5   : > { %18997 = vmatmul.mubr.msk.f32.gmra.mxu0 %vm439_vm1, %v27201_v52 }
 0x1a6   : > { %19047 = vmatmul.mubr.msk.f32.gmra.mxu1 %vm439_vm1, %v21882_v42  ;;  %18999 = vmatprep.mubr.msk.f32.mxu0 %vm439_vm1, %v22028_v63 }
 0x1a7   : > { %19049 = vmatprep.mubr.msk.f32.mxu1 %vm439_vm1, %v22030_v38 }
 0x1a9   : > { %19000 = vmatmul.mubr.msk.f32.gmra.mxu0 %vm439_vm1, %v22036_v54 }
 0x1aa   : > { %19050 = vmatmul.mubr.msk.f32.gmra.mxu1 %vm439_vm1, %v22038_v60  ;;  %19054 = vmatprep.mubr.msk.f32.mxu0 %vm439_vm1, %v3590_v50 }
 0x1ab   : > { %19104 = vmatprep.mubr.msk.f32.mxu1 %vm439_vm1, %v3980_v2  ;;  %v3603_v2 = vld [vmem:[#allocation3 + $0xc8] sm:$0xff] }
 0x1ad   : > { %19055 = vmatmul.mubr.msk.f32.vlgmr.msra.gmra.mxu0 %vm439_vm1, %v3591_v36  ;;  %v3993_v36 = vld [vmem:[#allocation3 + $0xc9] sm:$0xff] }
 0x1ae   : > { %19105 = vmatmul.mubr.msk.f32.vlgmr.msra.gmra.mxu1 %vm439_vm1, %v3981_v37  ;;  %19057 = vmatprep.mubr.msk.f32.mxu0 %vm439_vm1, %v3592_v39 }
 0x1af   : > { %19203 = vmatpush3.msk.msra.mxu1 %vm720_vm0, %v21901_v12  ;;  %19107 = vmatprep.mubr.msk.f32.mxu1 %vm439_vm1, %v3982_v40  ;;  %v3604_v40 = vld [vmem:[#allocation3 + $0xd8] sm:$0xff] }
 0x1b0   : > { %19153 = vmatpush3.msk.msra.mxu0 %vm720_vm0, %v21906_v8 }
 0x1b1   : > { %v18759_v20 = vpop.f32.mrf.mxu0  ;;  %19058 = vmatmul.mubr.msk.f32.gmra.mxu0 %vm439_vm1, %v3593_v7  ;;  %v3994_v7 = vld [vmem:[#allocation3 + $0xd9] sm:$0xff] }
 0x1b2   : > { %v18809_v45 = vpop.f32.mrf.mxu1  ;;  %19108 = vmatmul.mubr.msk.f32.gmra.mxu1 %vm439_vm1, %v3983_v24  ;;  %19060 = vmatprep.mubr.msk.f32.mxu0 %vm439_vm1, %v3594_v58 }
 0x1b3   : > { %v22060_v46 = vadd.f32 %v18809_v45, %v18759_v20  ;;  %19110 = vmatprep.mubr.msk.f32.mxu1 %vm439_vm1, %v3984_v48  ;;  %v1556_v16 = vpop.f32.mrf.mxu0  ;;  %v3605_v48 = vld [vmem:[#allocation3 + $0xe0] sm:$0xff] }
 0x1b4   : > { %v1880_v61 = vpop.f32.mrf.mxu1 }
 0x1b5   : > { %v22064_v47 = vadd.f32 %v1880_v61, %v1556_v16  ;;  %v18762_v0 = vpop.f32.mrf.mxu0  ;;  %19061 = vmatmul.mubr.msk.f32.gmra.mxu0 %vm439_vm1, %v3595_v44  ;;  %v3995_v16 = vld [vmem:[#allocation3 + $0xe1] sm:$0xff] }
 0x1b6   : > { %v18812_v1 = vpop.f32.mrf.mxu1  ;;  %19111 = vmatmul.mubr.msk.f32.gmra.mxu1 %vm439_vm1, %v3985_v62  ;;  %19063 = vmatprep.mubr.msk.f32.mxu0 %vm439_vm1, %v3596_v55  ;;  %v3606_v62 = vld [vmem:[#allocation3 + $0xf0] sm:$0xff] }
 0x1b7   : > { %v22068_v51 = vadd.f32 %v18812_v1, %v18762_v0  ;;  %19113 = vmatprep.mubr.msk.f32.mxu1 %vm439_vm1, %v3986_v56  ;;  %v1566_v53 = vpop.f32.mrf.mxu0  ;;  %v3996_v0 = vld [vmem:[#allocation3 + $0xf1] sm:$0xff] }
 0x1b8   : > { %v1890_v34 = vpop.f32.mrf.mxu1 }
 0x1b9   : > { %v22072_v33 = vadd.f32 %v1890_v34, %v1566_v53  ;;  %v18765_v26 = vpop.f32.mrf.mxu0  ;;  %19064 = vmatmul.mubr.msk.f32.gmra.mxu0 %vm439_vm1, %v3597_v30  ;;  %v3607_v34 = vld [vmem:[#allocation3 + $0xf8] sm:$0xff] }
 0x1ba   : > { %v18815_v25 = vpop.f32.mrf.mxu1  ;;  %19114 = vmatmul.mubr.msk.f32.gmra.mxu1 %vm439_vm1, %v3987_v29  ;;  %19066 = vmatprep.mubr.msk.f32.mxu0 %vm439_vm1, %v3598_v22  ;;  %v3997_v30 = vld [vmem:[#allocation3 + $0xf9] sm:$0xff]  ;;  %v3998_v22 = vld [vmem:[#allocation3 + $0x109] sm:$0xff] }
 0x1bb   : > { %v22076_v18 = vadd.f32 %v18815_v25, %v18765_v26  ;;  %19116 = vmatprep.mubr.msk.f32.mxu1 %vm439_vm1, %v3988_v21  ;;  %v1576_v17 = vpop.f32.mrf.mxu0  ;;  %v3608_v25 = vld [vmem:[#allocation3 + $0x108] sm:$0xff] }
 0x1bc   : > { %v1900_v14 = vpop.f32.mrf.mxu1 }
 0x1bd   : > { %v22080_v13 = vadd.f32 %v1900_v14, %v1576_v17  ;;  %v18768_v6 = vpop.f32.mrf.mxu0  ;;  %19067 = vmatmul.mubr.msk.f32.gmra.mxu0 %vm439_vm1, %v3599_v10 }
 0x1be   : > { %v18818_v5 = vpop.f32.mrf.mxu1  ;;  %19117 = vmatmul.mubr.msk.f32.gmra.mxu1 %vm439_vm1, %v3989_v9  ;;  %19069 = vmatprep.mubr.msk.f32.mxu0 %vm439_vm1, %v3600_v3  ;;  %v3609_v9 = vld [vmem:[#allocation3 + $0x110] sm:$0xff] }
 0x1bf   : > { %v22084_v57 = vadd.f32 %v18818_v5, %v18768_v6  ;;  %19119 = vmatprep.mubr.msk.f32.mxu1 %vm439_vm1, %v3990_v4  ;;  %v1586_v42 = vpop.f32.mrf.mxu0  ;;  %v3999_v6 = vld [vmem:[#allocation3 + $0x111] sm:$0xff]  ;;  %v3610_v4 = vld [vmem:[#allocation3 + $0x120] sm:$0xff] }
 0x1c0   : > { %v1910_v12 = vpop.f32.mrf.mxu1 }
 0x1c1   : > { %v22088_v8 = vadd.f32 %v1910_v12, %v1586_v42  ;;  %v18771_v23 = vpop.f32.mrf.mxu0  ;;  %19070 = vmatmul.mubr.msk.f32.gmra.mxu0 %vm439_vm1, %v3601_v19  ;;  %v4000_v42 = vld [vmem:[#allocation3 + $0x121] sm:$0xff] }
 0x1c2   : > { %v18821_v11 = vpop.f32.mrf.mxu1  ;;  %19120 = vmatmul.mubr.msk.f32.gmra.mxu1 %vm439_vm1, %v3991_v15  ;;  %19072 = vmatprep.mubr.msk.f32.mxu0 %vm439_vm1, %v3602_v27  ;;  %v4001_v27 = vld [vmem:[#allocation3 + $0x129] sm:$0xff] }
 0x1c3   : > { %v22092_v35 = vadd.f32 %v18821_v11, %v18771_v23  ;;  %19122 = vmatprep.mubr.msk.f32.mxu1 %vm439_vm1, %v3992_v31  ;;  %v1596_v43 = vpop.f32.mrf.mxu0  ;;  %v3611_v11 = vld [vmem:[#allocation3 + $0x128] sm:$0xff] }
 0x1c4   : > { %v1920_v52 = vpop.f32.mrf.mxu1 }
 0x1c5   : > { %v22096_v50 = vadd.f32 %v1920_v52, %v1596_v43  ;;  %v18774_v37 = vpop.f32.mrf.mxu0  ;;  %19073 = vmatmul.mubr.msk.f32.gmra.mxu0 %vm439_vm1, %v3603_v2  ;;  %v3612_v52 = vld [vmem:[#allocation3 + $0x138] sm:$0xff] }
 0x1c6   : > { %v18824_v39 = vpop.f32.mrf.mxu1  ;;  %19123 = vmatmul.mubr.msk.f32.gmra.mxu1 %vm439_vm1, %v3993_v36  ;;  %19075 = vmatprep.mubr.msk.f32.mxu0 %vm439_vm1, %v3604_v40  ;;  %v4002_v2 = vld [vmem:[#allocation3 + $0x139] sm:$0xff] }
 0x1c7   : > { %v22100_v24 = vadd.f32 %v18824_v39, %v18774_v37  ;;  %19125 = vmatprep.mubr.msk.f32.mxu1 %vm439_vm1, %v3994_v7  ;;  %v1606_v20 = vpop.f32.mrf.mxu0  ;;  %v3613_v7 = vld [vmem:[#allocation3 + $0x140] sm:$0xff] }
 0x1c8   : > { %v1930_v45 = vpop.f32.mrf.mxu1 }
 0x1c9   : > { %v22104_v58 = vadd.f32 %v1930_v45, %v1606_v20  ;;  %v18777_v61 = vpop.f32.mrf.mxu0  ;;  %19076 = vmatmul.mubr.msk.f32.gmra.mxu0 %vm439_vm1, %v3605_v48  ;;  %v4003_v20 = vld [vmem:[#allocation3 + $0x141] sm:$0xff] }
 0x1ca   : > { %v18827_v44 = vpop.f32.mrf.mxu1  ;;  %19126 = vmatmul.mubr.msk.f32.gmra.mxu1 %vm439_vm1, %v3995_v16  ;;  %19078 = vmatprep.mubr.msk.f32.mxu0 %vm439_vm1, %v3606_v62  ;;  %v3614_v16 = vld [vmem:[#allocation3 + $0x150] sm:$0xff] }
 0x1cb   : > { %v22108_v1 = vadd.f32 %v18827_v44, %v18777_v61  ;;  %19128 = vmatprep.mubr.msk.f32.mxu1 %vm439_vm1, %v3996_v0  ;;  %v1616_v55 = vpop.f32.mrf.mxu0  ;;  %v4004_v61 = vld [vmem:[#allocation3 + $0x151] sm:$0xff] }
 0x1cc   : > { %v1940_v56 = vpop.f32.mrf.mxu1 }
 0x1cd   : > { %v22112_v53 = vadd.f32 %v1940_v56, %v1616_v55  ;;  %v18780_v29 = vpop.f32.mrf.mxu0  ;;  %19079 = vmatmul.mubr.msk.f32.gmra.mxu0 %vm439_vm1, %v3607_v34  ;;  %v3615_v56 = vld [vmem:[#allocation3 + $0x158] sm:$0xff] }
 0x1ce   : > { %v18830_v26 = vpop.f32.mrf.mxu1  ;;  %19129 = vmatmul.mubr.msk.f32.gmra.mxu1 %vm439_vm1, %v3997_v30  ;;  %19081 = vmatprep.mubr.msk.f32.mxu0 %vm439_vm1, %v3608_v25  ;;  %v4005_v34 = vld [vmem:[#allocation3 + $0x159] sm:$0xff]  ;;  %v4006_v25 = vld [vmem:[#allocation3 + $0x169] sm:$0xff] }
 0x1cf   : > { %v22116_v21 = vadd.f32 %v18830_v26, %v18780_v29  ;;  %19131 = vmatprep.mubr.msk.f32.mxu1 %vm439_vm1, %v3998_v22  ;;  %v1626_v17 = vpop.f32.mrf.mxu0  ;;  %v3616_v26 = vld [vmem:[#allocation3 + $0x168] sm:$0xff] }
 0x1d0   : > { %v1950_v14 = vpop.f32.mrf.mxu1 }
 0x1d1   : > { %v22120_v10 = vadd.f32 %v1950_v14, %v1626_v17  ;;  %v18783_v5 = vpop.f32.mrf.mxu0  ;;  %19082 = vmatmul.mubr.msk.f32.gmra.mxu0 %vm439_vm1, %v3609_v9 }
 0x1d2   : > { %v18833_v3 = vpop.f32.mrf.mxu1  ;;  %19132 = vmatmul.mubr.msk.f32.gmra.mxu1 %vm439_vm1, %v3999_v6  ;;  %19084 = vmatprep.mubr.msk.f32.mxu0 %vm439_vm1, %v3610_v4  ;;  %v3617_v6 = vld [vmem:[#allocation3 + $0x170] sm:$0xff] }
 0x1d3   : > { %v22124_v12 = vadd.f32 %v18833_v3, %v18783_v5  ;;  %19134 = vmatprep.mubr.msk.f32.mxu1 %vm439_vm1, %v4000_v42  ;;  %v1636_v19 = vpop.f32.mrf.mxu0  ;;  %v4007_v5 = vld [vmem:[#allocation3 + $0x171] sm:$0xff] }
 0x1d4   : > { %v1960_v15 = vpop.f32.mrf.mxu1 }
 0x1d5   : > { %v22128_v23 = vadd.f32 %v1960_v15, %v1636_v19  ;;  %v18786_v31 = vpop.f32.mrf.mxu0  ;;  %19085 = vmatmul.mubr.msk.f32.gmra.mxu0 %vm439_vm1, %v3611_v11  ;;  %v3620_v11 = vld [vmem:[#allocation3 + $0x198] sm:$0xff] }
 0x1d6   : > { %v18836_v43 = vpop.f32.mrf.mxu1  ;;  %19135 = vmatmul.mubr.msk.f32.gmra.mxu1 %vm439_vm1, %v4001_v27  ;;  %19087 = vmatprep.mubr.msk.f32.mxu0 %vm439_vm1, %v3612_v52  ;;  %v4010_v27 = vld [vmem:[#allocation3 + $0x199] sm:$0xff] }
 0x1d7   : > { %v22132_v36 = vadd.f32 %v18836_v43, %v18786_v31  ;;  %19137 = vmatprep.mubr.msk.f32.mxu1 %vm439_vm1, %v4002_v2  ;;  %v1646_v37 = vpop.f32.mrf.mxu0 }
 0x1d8   : > { %v1970_v39 = vpop.f32.mrf.mxu1 }
 0x1d9   : > { %v22136_v40 = vadd.f32 %v1970_v39, %v1646_v37  ;;  %v18789_v45 = vpop.f32.mrf.mxu0  ;;  %19088 = vmatmul.mubr.msk.f32.gmra.mxu0 %vm439_vm1, %v3613_v7 }
 0x1da   : > { %v18839_v48 = vpop.f32.mrf.mxu1  ;;  %19138 = vmatmul.mubr.msk.f32.gmra.mxu1 %vm439_vm1, %v4003_v20  ;;  %19090 = vmatprep.mubr.msk.f32.mxu0 %vm439_vm1, %v3614_v16 }
 0x1db   : > { %27202 = vst [vmem:[#allocation40_spill] sm:$0xff] %v22136_v40  ;;  %v22140_v44 = vadd.f32 %v18839_v48, %v18789_v45  ;;  %19140 = vmatprep.mubr.msk.f32.mxu1 %vm439_vm1, %v4004_v61  ;;  %v1656_v62 = vpop.f32.mrf.mxu0  ;;  %v27207_v48 = vld [vmem:[#allocation8_spill] sm:$0xff] }
 0x1dc   : > { %v1980_v0 = vpop.f32.mrf.mxu1 }
 0x1dd   : > { %v22144_v55 = vadd.f32 %v1980_v0, %v1656_v62  ;;  %v18792_v30 = vpop.f32.mrf.mxu0  ;;  %19091 = vmatmul.mubr.msk.f32.gmra.mxu0 %vm439_vm1, %v3615_v56  ;;  %v4371_v0 = vld [vmem:[#allocation3 + $0x3a] sm:$0xff] }
 0x1de   : > { %v18842_v29 = vpop.f32.mrf.mxu1  ;;  %19141 = vmatmul.mubr.msk.f32.gmra.mxu1 %vm439_vm1, %v4005_v34  ;;  %19093 = vmatprep.mubr.msk.f32.mxu0 %vm439_vm1, %v3616_v26  ;;  %v1871_v26 = vadd.f32 %v22053_v49, %v22051_v41  ;;  %v4374_v41 = vld [vmem:[#allocation3 + $0x62] sm:$0xff] }
 0x1df   : > { %27203 = vst [vmem:[#allocation41_spill] sm:$0xff] %v22144_v55  ;;  %v22148_v22 = vadd.f32 %v18842_v29, %v18792_v30  ;;  %19143 = vmatprep.mubr.msk.f32.mxu1 %vm439_vm1, %v4006_v25  ;;  %v1666_v17 = vpop.f32.mrf.mxu0  ;;  %v27209_v30 = vld [vmem:[#allocation9_spill] sm:$0xff]  ;;  %v4372_v29 = vld [vmem:[#allocation3 + $0x4a] sm:$0xff] }
 0x1e0   : > { %v1990_v14 = vpop.f32.mrf.mxu1 }
 0x1e1   : > { %v22152_v9 = vadd.f32 %v1990_v14, %v1666_v17  ;;  %v18795_v3 = vpop.f32.mrf.mxu0  ;;  %19094 = vmatmul.mubr.msk.f32.gmra.mxu0 %vm439_vm1, %v3617_v6  ;;  %v27210_v17 = vld [vmem:[#allocation10_spill] sm:$0xff] }
 0x1e2   : > { %v18845_v4 = vpop.f32.mrf.mxu1  ;;  %19144 = vmatmul.mubr.msk.f32.gmra.mxu1 %vm439_vm1, %v4007_v5  ;;  %19096 = vmatprep.mubr.msk.f32.mxu0 %vm439_vm1, %v21868_v32  ;;  %v3621_v32 = vld [vmem:[#allocation3 + $0x1a0] sm:$0xff] }
 0x1e3   : > { %27204 = vst [vmem:[#allocation42_spill] sm:$0xff] %v22152_v9  ;;  %v22156_v42 = vadd.f32 %v18845_v4, %v18795_v3  ;;  %19146 = vmatprep.mubr.msk.f32.mxu1 %vm439_vm1, %v22028_v63  ;;  %v1676_v19 = vpop.f32.mrf.mxu0  ;;  %v4011_v63 = vld [vmem:[#allocation3 + $0x1a1] sm:$0xff]  ;;  %v4373_v4 = vld [vmem:[#allocation3 + $0x52] sm:$0xff] }
 0x1e4   : > { %v2000_v15 = vpop.f32.mrf.mxu1 }
 0x1e5   : > { %v22162_v31 = vadd.f32 %v2000_v15, %v1676_v19  ;;  %v18798_v43 = vpop.f32.mrf.mxu0  ;;  %19097 = vmatmul.mubr.msk.f32.gmra.mxu0 %vm439_vm1, %v21884_v59  ;;  %v4370_v59 = vld [vmem:[#allocation3 + $0x32] sm:$0xff] }
 0x1e6   : > { %v18848_v52 = vpop.f32.mrf.mxu1  ;;  %19147 = vmatmul.mubr.msk.f32.gmra.mxu1 %vm439_vm1, %v22036_v54  ;;  %19099 = vmatprep.mubr.msk.f32.mxu0 %vm439_vm1, %v3620_v11  ;;  %v27211_v11 = vld [vmem:[#allocation11_spill] sm:$0xff] }
 0x1e7   : > { %27205 = vst [vmem:[#allocation43_spill] sm:$0xff] %v22162_v31  ;;  %v22168_v2 = vadd.f32 %v18848_v52, %v18798_v43  ;;  %19149 = vmatprep.mubr.msk.f32.mxu1 %vm439_vm1, %v4010_v27  ;;  %v1686_v37 = vpop.f32.mrf.mxu0  ;;  %v27212_v27 = vld [vmem:[#allocation12_spill] sm:$0xff] }
 0x1e8   : > { %v2010_v39 = vpop.f32.mrf.mxu1 }
 0x1e9   : > { %v22172_v7 = vadd.f32 %v2010_v39, %v1686_v37  ;;  %v18801_v20 = vpop.f32.mrf.mxu0  ;;  %19100 = vmatmul.mubr.msk.f32.gmra.mxu0 %vm439_vm1, %v3621_v32  ;;  %v4375_v37 = vld [vmem:[#allocation3 + $0x6a] sm:$0xff] }
 0x1ea   : > { %v18851_v45 = vpop.f32.mrf.mxu1  ;;  %19150 = vmatmul.mubr.msk.f32.gmra.mxu1 %vm439_vm1, %v4011_v63  ;;  %19154 = vmatprep.mubr.msk.f32.mxu0 %vm439_vm1, %v4370_v59 }
 0x1eb   : > { %27206 = vst [vmem:[#allocation44_spill] sm:$0xff] %v22172_v7  ;;  %v22176_v54 = vadd.f32 %v18851_v45, %v18801_v20  ;;  %19204 = vmatprep.mubr.msk.f32.mxu1 %vm439_vm1, %v27207_v48  ;;  %v1696_v16 = vpop.f32.mrf.mxu0  ;;  %v27213_v45 = vld [vmem:[#allocation13_spill] sm:$0xff] }
 0x1ec   : > { %v2020_v61 = vpop.f32.mrf.mxu1 }
 0x1ed   : > { %v22181_v62 = vadd.f32 %v2020_v61, %v1696_v16  ;;  %v18856_v56 = vpop.f32.mrf.mxu0  ;;  %19155 = vmatmul.mubr.msk.f32.vlgmr.msra.gmra.mxu0 %vm439_vm1, %v4371_v0  ;;  %v27214_v16 = vld [vmem:[#allocation14_spill] sm:$0xff] }
 0x1ee   : > { %v18906_v34 = vpop.f32.mrf.mxu1  ;;  %19205 = vmatmul.mubr.msk.f32.vlgmr.msra.gmra.mxu1 %vm439_vm1, %v27209_v30  ;;  %v2388_v25 = vadd.f32 %v18856_v56, %v21691_v28  ;;  %19157 = vmatprep.mubr.msk.f32.mxu0 %vm439_vm1, %v4372_v29  ;;  %v4377_v30 = vld [vmem:[#allocation3 + $0x82] sm:$0xff] }
 0x1ef   : > { %27208 = vst [vmem:[#allocation45_spill] sm:$0xff] %v22181_v62  ;;  %19207 = vmatprep.mubr.msk.f32.mxu1 %vm439_vm1, %v27210_v17  ;;  %v2228_v14 = vpop.f32.mrf.mxu0  ;;  %v4378_v17 = vld [vmem:[#allocation3 + $0x92] sm:$0xff] }
 0x1f0   : > { %v2618_v6 = vpop.f32.mrf.mxu1  ;;  %v22192_v5 = vadd.f32 %v18906_v34, %v2388_v25  ;;  %v2387_v3 = vadd.f32 %v2228_v14, %v1871_v26  ;;  %v27215_v25 = vld [vmem:[#allocation15_spill] sm:$0xff] }
 0x1f1   : > { %v18859_v19 = vpop.f32.mrf.mxu0  ;;  %19158 = vmatmul.mubr.msk.f32.gmra.mxu0 %vm439_vm1, %v4373_v4 }
 0x1f2   : > { %v18909_v15 = vpop.f32.mrf.mxu1  ;;  %19208 = vmatmul.mubr.msk.f32.gmra.mxu1 %vm439_vm1, %v27211_v11  ;;  %v22197_v28 = vadd.f32 %v2618_v6, %v2387_v3  ;;  %v2390_v49 = vadd.f32 %v18859_v19, %v22060_v46  ;;  %19160 = vmatprep.mubr.msk.f32.mxu0 %vm439_vm1, %v4374_v41  ;;  %v4376_v46 = vld [vmem:[#allocation3 + $0x7a] sm:$0xff] }
 0x1f3   : > { %19210 = vmatprep.mubr.msk.f32.mxu1 %vm439_vm1, %v27212_v27  ;;  %v2238_v43 = vpop.f32.mrf.mxu0  ;;  %v4379_v11 = vld [vmem:[#allocation3 + $0x9a] sm:$0xff]  ;;  %v4380_v27 = vld [vmem:[#allocation3 + $0xaa] sm:$0xff] }
 0x1f4   : > { %v2628_v52 = vpop.f32.mrf.mxu1  ;;  %v22203_v32 = vadd.f32 %v18909_v15, %v2390_v49  ;;  %v2389_v63 = vadd.f32 %v2238_v43, %v22064_v47  ;;  %v5325_v47 = vld [vmem:[%s26929_s9] sm:$0x3] }
 0x1f5   : > { %v18862_v39 = vpop.f32.mrf.mxu0  ;;  %19161 = vmatmul.mubr.msk.f32.gmra.mxu0 %vm439_vm1, %v4375_v37  ;;  %19302 = vmatprep.subr.msk.mxu1 %vm5456_vm4, %v5325_v47 }
 0x1f6   : > { %v18912_v20 = vpop.f32.mrf.mxu1  ;;  %19211 = vmatmul.mubr.msk.f32.gmra.mxu1 %vm439_vm1, %v27213_v45  ;;  %v22209_v59 = vadd.f32 %v2628_v52, %v2389_v63  ;;  %v2392_v48 = vadd.f32 %v18862_v39, %v22068_v51  ;;  %19163 = vmatprep.mubr.msk.f32.mxu0 %vm439_vm1, %v4376_v46  ;;  %v16507_v51 = vld [vmem:[%s26929_s9 + $0x2] sm:$0x3]  ;;  %v27218_v63 = vld [vmem:[#allocation18_spill] sm:$0xff] }
 0x1f7   : > { %19213 = vmatprep.mubr.msk.f32.mxu1 %vm439_vm1, %v27214_v16  ;;  %v2248_v61 = vpop.f32.mrf.mxu0  ;;  %19303 = vmatpush3.msk.msra.mxu1 %vm5456_vm4, %v5325_v47  ;;  %v4381_v45 = vld [vmem:[#allocation3 + $0xb2] sm:$0xff]  ;;  %v27219_v16 = vld [vmem:[#allocation19_spill] sm:$0xff] }
 0x1f8   : > { %v2638_v0 = vpop.f32.mrf.mxu1  ;;  %v22219_v56 = vadd.f32 %v18912_v20, %v2392_v48  ;;  %v2391_v34 = vadd.f32 %v2248_v61, %v22072_v33  ;;  %v27216_v33 = vld [vmem:[#allocation16_spill] sm:$0xff]  ;;  %19252 = vmatprep.subr.msk.mxu0 %vm5456_vm4, %v16507_v51 }
 0x1f9   : > { %v18865_v29 = vpop.f32.mrf.mxu0  ;;  %19164 = vmatmul.mubr.msk.f32.gmra.mxu0 %vm439_vm1, %v4377_v30 }
 0x1fa   : > { %v18915_v26 = vpop.f32.mrf.mxu1  ;;  %19214 = vmatmul.mubr.msk.f32.gmra.mxu1 %vm439_vm1, %v27215_v25  ;;  %v22229_v14 = vadd.f32 %v2638_v0, %v2391_v34  ;;  %v2394_v6 = vadd.f32 %v18865_v29, %v22076_v18  ;;  %19166 = vmatprep.mubr.msk.f32.mxu0 %vm439_vm1, %v4378_v17  ;;  %v27217_v18 = vld [vmem:[#allocation17_spill] sm:$0xff]  ;;  %v27220_v0 = vld [vmem:[#allocation20_spill] sm:$0xff] }
 0x1fb   : > { %19216 = vmatprep.mubr.msk.f32.mxu1 %vm439_vm1, %v27216_v33  ;;  %v2258_v3 = vpop.f32.mrf.mxu0  ;;  %19253 = vmatpush3.msk.msra.mxu0 %vm5456_vm4, %v16507_v51  ;;  %v4383_v29 = vld [vmem:[#allocation3 + $0xca] sm:$0xff]  ;;  %v27221_v17 = vld [vmem:[#allocation21_spill] sm:$0xff] }
 0x1fc   : > { %v2648_v4 = vpop.f32.mrf.mxu1  ;;  %v22236_v19 = vadd.f32 %v18915_v26, %v2394_v6  ;;  %v2393_v15 = vadd.f32 %v2258_v3, %v22080_v13  ;;  %v27222_v3 = vld [vmem:[#allocation22_spill] sm:$0xff] }
 0x1fd   : > { %v18868_v41 = vpop.f32.mrf.mxu0  ;;  %19167 = vmatmul.mubr.msk.f32.gmra.mxu0 %vm439_vm1, %v4379_v11 }
 0x1fe   : > { %v18918_v49 = vpop.f32.mrf.mxu1  ;;  %19217 = vmatmul.mubr.msk.f32.gmra.mxu1 %vm439_vm1, %v27217_v18  ;;  %v22243_v43 = vadd.f32 %v2648_v4, %v2393_v15  ;;  %v2396_v52 = vadd.f32 %v18868_v41, %v22084_v57  ;;  %19169 = vmatprep.mubr.msk.f32.mxu0 %vm439_vm1, %v4380_v27  ;;  %v4382_v57 = vld [vmem:[#allocation3 + $0xc2] sm:$0xff] }
 0x1ff   : > { %19219 = vmatprep.mubr.msk.f32.mxu1 %vm439_vm1, %v27218_v63  ;;  %v2268_v13 = vpop.f32.mrf.mxu0  ;;  %v4385_v41 = vld [vmem:[#allocation3 + $0xe2] sm:$0xff] }
 0x200   : > { %v2658_v37 = vpop.f32.mrf.mxu1  ;;  %v22249_v39 = vadd.f32 %v18918_v49, %v2396_v52  ;;  %v2395_v20 = vadd.f32 %v2268_v13, %v22088_v8  ;;  %v27223_v27 = vld [vmem:[#allocation23_spill] sm:$0xff]  ;;  %v27224_v13 = vld [vmem:[#allocation24_spill] sm:$0xff] }
 0x201   : > { %v18871_v46 = vpop.f32.mrf.mxu0  ;;  %19170 = vmatmul.mubr.msk.f32.gmra.mxu0 %vm439_vm1, %v4381_v45 }
 0x202   : > { %v18921_v48 = vpop.f32.mrf.mxu1  ;;  %19220 = vmatmul.mubr.msk.f32.gmra.mxu1 %vm439_vm1, %v27219_v16  ;;  %v22255_v47 = vadd.f32 %v2658_v37, %v2395_v20  ;;  %v2398_v61 = vadd.f32 %v18871_v46, %v22092_v35  ;;  %19172 = vmatprep.mubr.msk.f32.mxu0 %vm439_vm1, %v4382_v57  ;;  %v4384_v35 = vld [vmem:[#allocation3 + $0xda] sm:$0xff] }
 0x203   : > { %19222 = vmatprep.mubr.msk.f32.mxu1 %vm439_vm1, %v27220_v0  ;;  %v2278_v34 = vpop.f32.mrf.mxu0  ;;  %v4387_v46 = vld [vmem:[#allocation3 + $0xfa] sm:$0xff] }
 0x204   : > { %v2668_v8 = vpop.f32.mrf.mxu1  ;;  %v22261_v30 = vadd.f32 %v18921_v48, %v2398_v61  ;;  %v2397_v51 = vadd.f32 %v2278_v34, %v22096_v50  ;;  %v27225_v57 = vld [vmem:[#allocation25_spill] sm:$0xff]  ;;  %v27227_v34 = vld [vmem:[#allocation26_spill] sm:$0xff] }
 0x205   : > { %v18874_v26 = vpop.f32.mrf.mxu0  ;;  %19173 = vmatmul.mubr.msk.f32.gmra.mxu0 %vm439_vm1, %v4383_v29 }
 0x206   : > { %v18924_v25 = vpop.f32.mrf.mxu1  ;;  %19223 = vmatmul.mubr.msk.f32.gmra.mxu1 %vm439_vm1, %v27221_v17  ;;  %v22267_v6 = vadd.f32 %v2668_v8, %v2397_v51  ;;  %v2400_v33 = vadd.f32 %v18874_v26, %v22100_v24  ;;  %19175 = vmatprep.mubr.msk.f32.mxu0 %vm439_vm1, %v4384_v35  ;;  %v4386_v24 = vld [vmem:[#allocation3 + $0xf2] sm:$0xff]  ;;  %v27228_v35 = vld [vmem:[#allocation27_spill] sm:$0xff] }
 0x207   : > { %19225 = vmatprep.mubr.msk.f32.mxu1 %vm439_vm1, %v27222_v3  ;;  %v2288_v4 = vpop.f32.mrf.mxu0  ;;  %v4389_v26 = vld [vmem:[#allocation3 + $0x112] sm:$0xff] }
 0x208   : > { %v2678_v50 = vpop.f32.mrf.mxu1  ;;  %v22273_v15 = vadd.f32 %v18924_v25, %v2400_v33  ;;  %v2399_v11 = vadd.f32 %v2288_v4, %v22104_v58  ;;  %v27230_v4 = vld [vmem:[#allocation28_spill] sm:$0xff] }
 0x209   : > { %v18877_v49 = vpop.f32.mrf.mxu0  ;;  %19176 = vmatmul.mubr.msk.f32.gmra.mxu0 %vm439_vm1, %v4385_v41 }
 0x20a   : > { %v18927_v18 = vpop.f32.mrf.mxu1  ;;  %19226 = vmatmul.mubr.msk.f32.gmra.mxu1 %vm439_vm1, %v27223_v27  ;;  %v22279_v52 = vadd.f32 %v2678_v50, %v2399_v11  ;;  %v2402_v63 = vadd.f32 %v18877_v49, %v22108_v1  ;;  %19178 = vmatprep.mubr.msk.f32.mxu0 %vm439_vm1, %v4386_v24  ;;  %v4388_v1 = vld [vmem:[#allocation3 + $0x10a] sm:$0xff]  ;;  %v27231_v24 = vld [vmem:[#allocation29_spill] sm:$0xff] }
 0x20b   : > { %19228 = vmatprep.mubr.msk.f32.mxu1 %vm439_vm1, %v27224_v13  ;;  %v2298_v37 = vpop.f32.mrf.mxu0  ;;  %v4391_v49 = vld [vmem:[#allocation3 + $0x12a] sm:$0xff] }
 0x20c   : > { %v2688_v58 = vpop.f32.mrf.mxu1  ;;  %v22285_v20 = vadd.f32 %v18927_v18, %v2402_v63  ;;  %v2401_v45 = vadd.f32 %v2298_v37, %v22112_v53  ;;  %v27233_v37 = vld [vmem:[#allocation30_spill] sm:$0xff] }
 0x20d   : > { %v18880_v48 = vpop.f32.mrf.mxu0  ;;  %19179 = vmatmul.mubr.msk.f32.gmra.mxu0 %vm439_vm1, %v4387_v46  ;;  %v4393_v46 = vld [vmem:[#allocation3 + $0x142] sm:$0xff] }
 0x20e   : > { %v18930_v16 = vpop.f32.mrf.mxu1  ;;  %19229 = vmatmul.mubr.msk.f32.gmra.mxu1 %vm439_vm1, %v27225_v57  ;;  %v22291_v61 = vadd.f32 %v2688_v58, %v2401_v45  ;;  %v2404_v0 = vadd.f32 %v18880_v48, %v22116_v21  ;;  %19181 = vmatprep.mubr.msk.f32.mxu0 %vm439_vm1, %v4388_v1  ;;  %v4390_v21 = vld [vmem:[#allocation3 + $0x122] sm:$0xff] }
 0x20f   : > { %19231 = vmatprep.mubr.msk.f32.mxu1 %vm439_vm1, %v27227_v34  ;;  %v2308_v8 = vpop.f32.mrf.mxu0  ;;  %v27236_v57 = vld [vmem:[#allocation31_spill] sm:$0xff] }
 0x210   : > { %27226 = vst [vmem:[#allocation46_spill] sm:$0xff] %v22291_v61  ;;  %v2698_v53 = vpop.f32.mrf.mxu1  ;;  %v22297_v51 = vadd.f32 %v18930_v16, %v2404_v0  ;;  %v2403_v29 = vadd.f32 %v2308_v8, %v22120_v10  ;;  %v27237_v0 = vld [vmem:[#allocation32_spill] sm:$0xff] }
 0x211   : > { %v18883_v25 = vpop.f32.mrf.mxu0  ;;  %19182 = vmatmul.mubr.msk.f32.gmra.mxu0 %vm439_vm1, %v4389_v26 }
 0x212   : > { %v18933_v17 = vpop.f32.mrf.mxu1  ;;  %19232 = vmatmul.mubr.msk.f32.gmra.mxu1 %vm439_vm1, %v27228_v35  ;;  %v22303_v33 = vadd.f32 %v2698_v53, %v2403_v29  ;;  %v2406_v3 = vadd.f32 %v18883_v25, %v22124_v12  ;;  %19184 = vmatprep.mubr.msk.f32.mxu0 %vm439_vm1, %v4390_v21  ;;  %v4392_v12 = vld [vmem:[#allocation3 + $0x13a] sm:$0xff] }
 0x213   : > { %19234 = vmatprep.mubr.msk.f32.mxu1 %vm439_vm1, %v27230_v4  ;;  %v2318_v50 = vpop.f32.mrf.mxu0  ;;  %v4395_v29 = vld [vmem:[#allocation3 + $0x15a] sm:$0xff] }
 0x214   : > { %27229 = vst [vmem:[#allocation47_spill] sm:$0xff] %v22303_v33  ;;  %v2708_v10 = vpop.f32.mrf.mxu1  ;;  %v22309_v11 = vadd.f32 %v18933_v17, %v2406_v3  ;;  %v2405_v41 = vadd.f32 %v2318_v50, %v22128_v23  ;;  %v27240_v17 = vld [vmem:[#allocation33_spill] sm:$0xff]  ;;  %v27241_v21 = vld [vmem:[#allocation34_spill] sm:$0xff] }
 0x215   : > { %v18886_v18 = vpop.f32.mrf.mxu0  ;;  %19185 = vmatmul.mubr.msk.f32.gmra.mxu0 %vm439_vm1, %v4391_v49 }
 0x216   : > { %v18936_v27 = vpop.f32.mrf.mxu1  ;;  %19235 = vmatmul.mubr.msk.f32.gmra.mxu1 %vm439_vm1, %v27231_v24  ;;  %v22315_v63 = vadd.f32 %v2708_v10, %v2405_v41  ;;  %v2408_v13 = vadd.f32 %v18886_v18, %v22132_v36  ;;  %19187 = vmatprep.mubr.msk.f32.mxu0 %vm439_vm1, %v4392_v12  ;;  %v4394_v36 = vld [vmem:[#allocation3 + $0x152] sm:$0xff]  ;;  %v27244_v18 = vld [vmem:[#allocation35_spill] sm:$0xff] }
 0x217   : > { %19237 = vmatprep.mubr.msk.f32.mxu1 %vm439_vm1, %v27233_v37  ;;  %v22321_v58 = vpop.f32.mrf.mxu0  ;;  %v4397_v10 = vld [vmem:[#allocation3 + $0x172] sm:$0xff] }
 0x218   : > { %27232 = vst [vmem:[#allocation48_spill] sm:$0xff] %v22315_v63  ;;  %27234 = vst [vmem:[#allocation8_spill] sm:$0xff] %v22321_v58  ;;  %v22323_v23 = vpop.f32.mrf.mxu1  ;;  %v22325_v45 = vadd.f32 %v18936_v27, %v2408_v13  ;;  %v27245_v27 = vld [vmem:[#allocation36_spill] sm:$0xff]  ;;  %v4400_v13 = vld [vmem:[#allocation3 + $0x19a] sm:$0xff] }
 0x219   : > { %27235 = vst [vmem:[#allocation9_spill] sm:$0xff] %v22323_v23  ;;  %v18889_v48 = vpop.f32.mrf.mxu0  ;;  %19188 = vmatmul.mubr.msk.f32.gmra.mxu0 %vm439_vm1, %v4393_v46 }
 0x21a   : > { %v18939_v16 = vpop.f32.mrf.mxu1  ;;  %19238 = vmatmul.mubr.msk.f32.gmra.mxu1 %vm439_vm1, %v27236_v57  ;;  %v2410_v1 = vadd.f32 %v18889_v48, %v22140_v44  ;;  %19190 = vmatprep.mubr.msk.f32.mxu0 %vm439_vm1, %v4394_v36  ;;  %v4396_v44 = vld [vmem:[#allocation3 + $0x16a] sm:$0xff]  ;;  %v27249_v57 = vld [vmem:[#allocation38_spill] sm:$0xff] }
 0x21b   : > { %19240 = vmatprep.mubr.msk.f32.mxu1 %vm439_vm1, %v27237_v0  ;;  %v22334_v34 = vpop.f32.mrf.mxu0 }
 0x21c   : > { %27238 = vst [vmem:[#allocation10_spill] sm:$0xff] %v22334_v34  ;;  %v22336_v8 = vpop.f32.mrf.mxu1  ;;  %v22338_v53 = vadd.f32 %v18939_v16, %v2410_v1  ;;  %v27248_v16 = vld [vmem:[#allocation37_spill] sm:$0xff] }
 0x21d   : > { %27239 = vst [vmem:[#allocation11_spill] sm:$0xff] %v22336_v8  ;;  %v18892_v26 = vpop.f32.mrf.mxu0  ;;  %19191 = vmatmul.mubr.msk.f32.gmra.mxu0 %vm439_vm1, %v4395_v29  ;;  %v16642_v34 = vld [vmem:[%s26929_s9 + $0x8] sm:$0x3] }
 0x21e   : > { %v18942_v25 = vpop.f32.mrf.mxu1  ;;  %19241 = vmatmul.mubr.msk.f32.gmra.mxu1 %vm439_vm1, %v27240_v17  ;;  %v2412_v35 = vadd.f32 %v18892_v26, %v22148_v22  ;;  %19193 = vmatprep.mubr.msk.f32.mxu0 %vm439_vm1, %v4396_v44 }
 0x21f   : > { %19243 = vmatprep.mubr.msk.f32.mxu1 %vm439_vm1, %v27241_v21  ;;  %v22347_v3 = vpop.f32.mrf.mxu0 }
 0x220   : > { %27242 = vst [vmem:[#allocation12_spill] sm:$0xff] %v22347_v3  ;;  %v22349_v4 = vpop.f32.mrf.mxu1  ;;  %v22351_v50 = vadd.f32 %v18942_v25, %v2412_v35  ;;  %v27255_v35 = vmov 0.0  }
 0x221   : > { %27243 = vst [vmem:[#allocation13_spill] sm:$0xff] %v22349_v4  ;;  %v18895_v41 = vpop.f32.mrf.mxu0  ;;  %19194 = vmatmul.mubr.msk.f32.gmra.mxu0 %vm439_vm1, %v4397_v10  ;;  %529 = vst.msk [vmem:[#allocation4] sm:$0xff] %vm528_vm5, %v27255_v35 }
 0x222   : > { %v18945_v49 = vpop.f32.mrf.mxu1  ;;  %19244 = vmatmul.mubr.msk.f32.gmra.mxu1 %vm439_vm1, %v27244_v18  ;;  %v2414_v22 = vadd.f32 %v18895_v41, %v22156_v42  ;;  %19196 = vmatprep.mubr.msk.f32.mxu0 %vm439_vm1, %v22030_v38  ;;  %v4401_v42 = vld [vmem:[#allocation3 + $0x1a2] sm:$0xff]  ;;  %530 = vst.msk [vmem:[#allocation4 + $0x8] sm:$0xff] %vm528_vm5, %v27255_v35  ;;  %533 = vst.msk [vmem:[#allocation4 + $0x18] sm:$0xff] %vm528_vm5, %v27255_v35 }
 0x223   : > { %19246 = vmatprep.mubr.msk.f32.mxu1 %vm439_vm1, %v27245_v27  ;;  %v22361_v24 = vpop.f32.mrf.mxu0  ;;  %534 = vst.msk [vmem:[#allocation4 + $0x20] sm:$0xff] %vm528_vm5, %v27255_v35  ;;  %537 = vst.msk [vmem:[#allocation4 + $0x1b0] sm:$0xff] %vm528_vm5, %v27255_v35 }
 0x224   : > { %27246 = vst [vmem:[#allocation14_spill] sm:$0xff] %v22361_v24  ;;  %v22363_v12 = vpop.f32.mrf.mxu1  ;;  %v22365_v37 = vadd.f32 %v18945_v49, %v2414_v22  ;;  %538 = vst.msk [vmem:[#allocation4 + $0x1b8] sm:$0xff] %vm528_vm5, %v27255_v35 }
 0x225   : > { %27247 = vst [vmem:[#allocation15_spill] sm:$0xff] %v22363_v12  ;;  %v18898_v46 = vpop.f32.mrf.mxu0  ;;  %19197 = vmatmul.mubr.msk.f32.gmra.mxu0 %vm439_vm1, %v22038_v60  ;;  %v27252_v60 = vld [vmem:[#allocation39_spill] sm:$0xff]  ;;  %540 = vst.msk [vmem:[#allocation4 + $0x1c8] sm:$0xff] %vm528_vm5, %v27255_v35 }
 0x226   : > { %v18948_v48 = vpop.f32.mrf.mxu1  ;;  %19247 = vmatmul.mubr.msk.f32.gmra.mxu1 %vm439_vm1, %v27248_v16  ;;  %v2416_v38 = vadd.f32 %v18898_v46, %v22168_v2  ;;  %19199 = vmatprep.mubr.msk.f32.mxu0 %vm439_vm1, %v4400_v13  ;;  %541 = vst.msk [vmem:[#allocation4 + $0x1d0] sm:$0xff] %vm528_vm5, %v27255_v35 }
 0x227   : > { %19249 = vmatprep.mubr.msk.f32.mxu1 %vm439_vm1, %v27249_v57  ;;  %v22375_v36 = vpop.f32.mrf.mxu0  ;;  %544 = vst.msk [vmem:[#allocation4] sm:$0x3] %vm543_vm6, %v27255_v35  ;;  %545 = vst.msk [vmem:[#allocation4 + $0x18] sm:$0x3] %vm543_vm6, %v27255_v35 }
 0x228   : > { %27250 = vst [vmem:[#allocation16_spill] sm:$0xff] %v22375_v36  ;;  %v22377_v1 = vpop.f32.mrf.mxu1  ;;  %v22379_v0 = vadd.f32 %v18948_v48, %v2416_v38  ;;  %546 = vst.msk [vmem:[#allocation4 + $0x30] sm:$0x3] %vm543_vm6, %v27255_v35 }
 0x229   : > { %27251 = vst [vmem:[#allocation17_spill] sm:$0xff] %v22377_v1  ;;  %v18901_v29 = vpop.f32.mrf.mxu0  ;;  %19200 = vmatmul.mubr.msk.f32.gmra.mxu0 %vm439_vm1, %v4401_v42  ;;  %547 = vst.msk [vmem:[#allocation4 + $0x48] sm:$0x3] %vm543_vm6, %v27255_v35 }
 0x22a   : > { %v18951_v26 = vpop.f32.mrf.mxu1  ;;  %19250 = vmatmul.mubr.msk.f32.gmra.mxu1 %vm439_vm1, %v27252_v60  ;;  %v2418_v2 = vadd.f32 %v18901_v29, %v22176_v54  ;;  %548 = vst.msk [vmem:[#allocation4 + $0x60] sm:$0x3] %vm543_vm6, %v27255_v35  ;;  %549 = vst.msk [vmem:[#allocation4 + $0x78] sm:$0x3] %vm543_vm6, %v27255_v35 }
 0x22b   : > { %v22385_v25 = vpop.f32.mrf.mxu0  ;;  %550 = vst.msk [vmem:[#allocation4 + $0x90] sm:$0x3] %vm543_vm6, %v27255_v35  ;;  %551 = vst.msk [vmem:[#allocation4 + $0xa8] sm:$0x3] %vm543_vm6, %v27255_v35 }
 0x22c   : > { %27253 = vst [vmem:[#allocation18_spill] sm:$0xff] %v22385_v25  ;;  %v22387_v17 = vpop.f32.mrf.mxu1  ;;  %v22389_v44 = vadd.f32 %v18951_v26, %v2418_v2  ;;  %552 = vst.msk [vmem:[#allocation4 + $0xc0] sm:$0x3] %vm543_vm6, %v27255_v35  ;;  %v5294_v26 = vld [vmem:[#allocation4 + $0x8] sm:$0xff] }
 0x22d   : > { %27254 = vst [vmem:[#allocation19_spill] sm:$0xff] %v22387_v17  ;;  %v18956_v54 = vpop.f32.mrf.mxu0  ;;  %553 = vst.msk [vmem:[#allocation4 + $0xd8] sm:$0x3] %vm543_vm6, %v27255_v35 }
 0x22e   : > { %v19006_v21 = vpop.f32.mrf.mxu1  ;;  %554 = vst.msk [vmem:[#allocation4 + $0xf0] sm:$0x3] %vm543_vm6, %v27255_v35  ;;  %555 = vst.msk [vmem:[#allocation4 + $0x108] sm:$0x3] %vm543_vm6, %v27255_v35  ;;  %v3168_v10 = vadd.f32 %v18956_v54, %v22192_v5  ;;  %v5326_v16 = vld [vmem:[#allocation4 + $0x1] sm:$0xff] }
 0x22f   : > { %556 = vst.msk [vmem:[#allocation4 + $0x120] sm:$0x3] %vm543_vm6, %v27255_v35  ;;  %557 = vst.msk [vmem:[#allocation4 + $0x138] sm:$0x3] %vm543_vm6, %v27255_v35  ;;  %v22484_v41 = vpop.f32.mrf.mxu0  ;;  %v5293_v38 = vld [vmem:[#allocation4] sm:$0xff]  ;;  %19254 = vmatprep.mubr.msk.f32.mxu0 %vm528_vm5, %v5326_v16 }
 0x230   : > { %558 = vst.msk [vmem:[#allocation4 + $0x150] sm:$0x3] %vm543_vm6, %v27255_v35  ;;  %559 = vst.msk [vmem:[#allocation4 + $0x168] sm:$0x3] %vm543_vm6, %v27255_v35  ;;  %v22486_v49 = vpop.f32.mrf.mxu1  ;;  %v22496_v5 = vadd.f32 %v19006_v21, %v3168_v10  ;;  %19304 = vmatprep.mubr.msk.f32.mxu1 %vm528_vm5, %v5293_v38  ;;  %v16608_v54 = vld [vmem:[%s26929_s9 + $0x6] sm:$0x3] }
 0x231   : > { %560 = vst.msk [vmem:[#allocation4 + $0x180] sm:$0x3] %vm543_vm6, %v27255_v35  ;;  %561 = vst.msk [vmem:[#allocation4 + $0x198] sm:$0x3] %vm543_vm6, %v27255_v35  ;;  %v18959_v18 = vpop.f32.mrf.mxu0  ;;  %19305 = vmatmul.mubr.msk.f32.vlgmr.msra.gmra.mxu1 %vm528_vm5, %v5294_v26  ;;  %v5328_v21 = vld [vmem:[#allocation4 + $0x19] sm:$0xff]  ;;  %19402 = vmatprep.subr.msk.mxu1 %vm5456_vm4, %v16608_v54 }
 0x232   : > { %562 = vst.msk [vmem:[#allocation4 + $0x1b0] sm:$0x3] %vm543_vm6, %v27255_v35  ;;  %563 = vst.msk [vmem:[#allocation4 + $0x1c8] sm:$0x3] %vm543_vm6, %v27255_v35  ;;  %v19009_v22 = vpop.f32.mrf.mxu1  ;;  %v3170_v27 = vadd.f32 %v18959_v18, %v22203_v32  ;;  %v5295_v10 = vld [vmem:[#allocation4 + $0x18] sm:$0xff]  ;;  %19403 = vmatpush3.msk.msra.mxu1 %vm5456_vm4, %v16608_v54 }
 0x233   : > { %566 = vst.msk [vmem:[#allocation4 + $0x42] sm:$0x3] %vm543_vm6, %v27255_v35  ;;  %567 = vst.msk [vmem:[#allocation4 + $0x5a] sm:$0x3] %vm543_vm6, %v27255_v35  ;;  %v22499_v13 = vpop.f32.mrf.mxu0  ;;  %19307 = vmatprep.mubr.msk.f32.mxu1 %vm528_vm5, %v5295_v10  ;;  %v16574_v38 = vld [vmem:[%s26929_s9 + $0x4] sm:$0x3] }
 0x234   : > { %568 = vst.msk [vmem:[#allocation4 + $0x72] sm:$0x3] %vm543_vm6, %v27255_v35  ;;  %569 = vst.msk [vmem:[#allocation4 + $0x8a] sm:$0x3] %vm543_vm6, %v27255_v35  ;;  %v22501_v46 = vpop.f32.mrf.mxu1  ;;  %v22503_v48 = vadd.f32 %v19009_v22, %v3170_v27  ;;  %v5296_v27 = vld [vmem:[#allocation4 + $0x20] sm:$0xff]  ;;  %19352 = vmatprep.subr.msk.mxu0 %vm5456_vm4, %v16574_v38 }
 0x235   : > { %570 = vst.msk [vmem:[#allocation4 + $0xa2] sm:$0x3] %vm543_vm6, %v27255_v35  ;;  %571 = vst.msk [vmem:[#allocation4 + $0xba] sm:$0x3] %vm543_vm6, %v27255_v35  ;;  %v18962_v42 = vpop.f32.mrf.mxu0  ;;  %19308 = vmatmul.mubr.msk.f32.gmra.mxu1 %vm528_vm5, %v5296_v27 }
 0x236   : > { %572 = vst.msk [vmem:[#allocation4 + $0xd2] sm:$0x3] %vm543_vm6, %v27255_v35  ;;  %573 = vst.msk [vmem:[#allocation4 + $0xea] sm:$0x3] %vm543_vm6, %v27255_v35  ;;  %v19012_v57 = vpop.f32.mrf.mxu1  ;;  %v3172_v60 = vadd.f32 %v18962_v42, %v22219_v56 }
 0x237   : > { %574 = vst.msk [vmem:[#allocation4 + $0x102] sm:$0x3] %vm543_vm6, %v27255_v35  ;;  %575 = vst.msk [vmem:[#allocation4 + $0x11a] sm:$0x3] %vm543_vm6, %v27255_v35  ;;  %v22510_v32 = vpop.f32.mrf.mxu0 }
 0x238   : > { %576 = vst.msk [vmem:[#allocation4 + $0x132] sm:$0x3] %vm543_vm6, %v27255_v35  ;;  %577 = vst.msk [vmem:[#allocation4 + $0x14a] sm:$0x3] %vm543_vm6, %v27255_v35  ;;  %v22512_v2 = vpop.f32.mrf.mxu1 }
 0x239   : > { %578 = vst.msk [vmem:[#allocation4 + $0x162] sm:$0x3] %vm543_vm6, %v27255_v35  ;;  %579 = vst.msk [vmem:[#allocation4 + $0x17a] sm:$0x3] %vm543_vm6, %v27255_v35  ;;  %v18965_v18 = vpop.f32.mrf.mxu0 }
 0x23a   : > { %580 = vst.msk [vmem:[#allocation4 + $0x192] sm:$0x3] %vm543_vm6, %v27255_v35  ;;  %581 = vst.msk [vmem:[#allocation4 + $0x1aa] sm:$0x3] %vm543_vm6, %v27255_v35  ;;  %v19015_v22 = vpop.f32.mrf.mxu1  ;;  %v3174_v16 = vadd.f32 %v18965_v18, %v22236_v19 }
 0x23b   : > { %532 = vst.msk [vmem:[#allocation4 + $0x10] sm:$0xf] %vm531_vm7, %v27255_v35  ;;  %535 = vst.msk [vmem:[#allocation4 + $0x28] sm:$0xf] %vm531_vm7, %v27255_v35  ;;  %v22527_v42 = vpop.f32.mrf.mxu0 }
 0x23c   : > { %539 = vst.msk [vmem:[#allocation4 + $0x1c0] sm:$0xf] %vm531_vm7, %v27255_v35  ;;  %542 = vst.msk [vmem:[#allocation4 + $0x1d8] sm:$0xf] %vm531_vm7, %v27255_v35 }
 0x23d   : > { %564 = vst.msk [vmem:[#allocation4 + $0x12] sm:$0x3] %vm543_vm6, %v27255_v35  ;;  %565 = vst.msk [vmem:[#allocation4 + $0x2a] sm:$0x3] %vm543_vm6, %v27255_v35  ;;  %v18968_v19 = vpop.f32.mrf.mxu0 }
 0x23e   : > { %582 = vst.msk [vmem:[#allocation4 + $0x1c2] sm:$0x3] %vm543_vm6, %v27255_v35  ;;  %583 = vst.msk [vmem:[#allocation4 + $0x1da] sm:$0x3] %vm543_vm6, %v27255_v35  ;;  %v22514_v35 = vadd.f32 %v19012_v57, %v3172_v60  ;;  %v22529_v57 = vpop.f32.mrf.mxu1  ;;  %v3176_v60 = vadd.f32 %v18968_v19, %v22249_v39 }
 0x23f   : > { %v22538_v54 = vpop.f32.mrf.mxu0 }
 0x240   : > { %v19018_v26 = vpop.f32.mrf.mxu1 }
 0x241   : > { %v22542_v10 = vadd.f32 %v19018_v26, %v3176_v60  ;;  %v18971_v18 = vpop.f32.mrf.mxu0 }
 0x242   : > { %v5327_v29 = vld [vmem:[#allocation4 + $0x9] sm:$0xff]  ;;  %v5329_v56 = vld [vmem:[#allocation4 + $0x21] sm:$0xff] }
 0x243   : > { %19255 = vmatmul.mubr.msk.f32.vlgmr.msra.gmra.mxu0 %vm528_vm5, %v5327_v29  ;;  %v22533_v29 = vadd.f32 %v19015_v22, %v3174_v16  ;;  %v22545_v22 = vpop.f32.mrf.mxu0 }
 0x244   : > { %19257 = vmatprep.mubr.msk.f32.mxu0 %vm528_vm5, %v5328_v21  ;;  %19353 = vmatpush3.msk.msra.mxu0 %vm5456_vm4, %v16574_v38  ;;  %v22540_v21 = vpop.f32.mrf.mxu1 }
 0x245   : > { %v18974_v38 = vpop.f32.mrf.mxu0  ;;  %19452 = vmatprep.subr.msk.mxu0 %vm5456_vm4, %v16642_v34 }
 0x246   : > { %v19021_v17 = vpop.f32.mrf.mxu1  ;;  %v3180_v39 = vadd.f32 %v18974_v38, %v22273_v15 }
 0x247   : > { %19258 = vmatmul.mubr.msk.f32.gmra.mxu0 %vm528_vm5, %v5329_v56  ;;  %v3178_v56 = vadd.f32 %v18971_v18, %v22261_v30  ;;  %v22552_v19 = vpop.f32.mrf.mxu0 }
 0x248   : > { %v22547_v16 = vpop.f32.mrf.mxu1 }
 0x249   : > { %v22549_v27 = vadd.f32 %v19021_v17, %v3178_v56  ;;  %v18977_v60 = vpop.f32.mrf.mxu0 }
 0x24a   : > { %v19024_v25 = vpop.f32.mrf.mxu1  ;;  %v3182_v30 = vadd.f32 %v18977_v60, %v22285_v20 }
 0x24b   : > { %v22556_v26 = vadd.f32 %v19024_v25, %v3180_v39  ;;  %v22559_v18 = vpop.f32.mrf.mxu0 }
 0x24c   : > { %v22554_v62 = vpop.f32.mrf.mxu1  ;;  %27256 = vst [vmem:[#allocation20_spill] sm:$0xff] %v22559_v18 }
 0x24d   : > { %v18980_v56 = vpop.f32.mrf.mxu0 }
 0x24e   : > { %v19027_v1 = vpop.f32.mrf.mxu1  ;;  %v3184_v15 = vadd.f32 %v18980_v56, %v22297_v51 }
 0x24f   : > { %v22563_v17 = vadd.f32 %v19027_v1, %v3182_v30  ;;  %v22566_v38 = vpop.f32.mrf.mxu0 }
 0x250   : > { %v22561_v12 = vpop.f32.mrf.mxu1  ;;  %27258 = vst [vmem:[#allocation22_spill] sm:$0xff] %v22566_v38 }
 0x251   : > { %27257 = vst [vmem:[#allocation21_spill] sm:$0xff] %v22561_v12  ;;  %v18983_v39 = vpop.f32.mrf.mxu0 }
 0x252   : > { %v19030_v36 = vpop.f32.mrf.mxu1  ;;  %v3186_v20 = vadd.f32 %v18983_v39, %v22309_v11 }
 0x253   : > { %v22570_v25 = vadd.f32 %v19030_v36, %v3184_v15  ;;  %v22573_v60 = vpop.f32.mrf.mxu0 }
 0x254   : > { %v22568_v7 = vpop.f32.mrf.mxu1  ;;  %27260 = vst [vmem:[#allocation24_spill] sm:$0xff] %v22573_v60 }
 0x255   : > { %27259 = vst [vmem:[#allocation23_spill] sm:$0xff] %v22568_v7  ;;  %v18986_v30 = vpop.f32.mrf.mxu0 }
 0x256   : > { %v19033_v24 = vpop.f32.mrf.mxu1  ;;  %v3188_v51 = vadd.f32 %v18986_v30, %v22325_v45 }
 0x257   : > { %v22577_v1 = vadd.f32 %v19033_v24, %v3186_v20  ;;  %v22580_v56 = vpop.f32.mrf.mxu0 }
 0x258   : > { %v22575_v31 = vpop.f32.mrf.mxu1  ;;  %27262 = vst [vmem:[#allocation26_spill] sm:$0xff] %v22580_v56 }
 0x259   : > { %27261 = vst [vmem:[#allocation25_spill] sm:$0xff] %v22575_v31  ;;  %v18989_v15 = vpop.f32.mrf.mxu0 }
 0x25a   : > { %v19036_v4 = vpop.f32.mrf.mxu1  ;;  %v3190_v11 = vadd.f32 %v18989_v15, %v22338_v53 }
 0x25b   : > { %v22584_v36 = vadd.f32 %v19036_v4, %v3188_v51  ;;  %v22587_v39 = vpop.f32.mrf.mxu0 }
 0x25c   : > { %v22582_v8 = vpop.f32.mrf.mxu1  ;;  %27264 = vst [vmem:[#allocation28_spill] sm:$0xff] %v22587_v39 }
 0x25d   : > { %27263 = vst [vmem:[#allocation27_spill] sm:$0xff] %v22582_v8  ;;  %v18992_v20 = vpop.f32.mrf.mxu0 }
 0x25e   : > { %v19039_v3 = vpop.f32.mrf.mxu1  ;;  %v3192_v45 = vadd.f32 %v18992_v20, %v22351_v50 }
 0x25f   : > { %v22591_v24 = vadd.f32 %v19039_v3, %v3190_v11  ;;  %v22594_v30 = vpop.f32.mrf.mxu0 }
 0x260   : > { %v22589_v9 = vpop.f32.mrf.mxu1  ;;  %27266 = vst [vmem:[#allocation30_spill] sm:$0xff] %v22594_v30 }
 0x261   : > { %27265 = vst [vmem:[#allocation29_spill] sm:$0xff] %v22589_v9  ;;  %v18995_v51 = vpop.f32.mrf.mxu0 }
 0x262   : > { %v19042_v31 = vpop.f32.mrf.mxu1  ;;  %v3194_v53 = vadd.f32 %v18995_v51, %v22365_v37 }
 0x263   : > { %v22598_v4 = vadd.f32 %v19042_v31, %v3192_v45  ;;  %v22601_v15 = vpop.f32.mrf.mxu0 }
 0x264   : > { %v22596_v56 = vpop.f32.mrf.mxu1  ;;  %27268 = vst [vmem:[#allocation32_spill] sm:$0xff] %v22601_v15 }
 0x265   : > { %27267 = vst [vmem:[#allocation31_spill] sm:$0xff] %v22596_v56  ;;  %v18998_v11 = vpop.f32.mrf.mxu0 }
 0x266   : > { %v19045_v8 = vpop.f32.mrf.mxu1  ;;  %v3196_v50 = vadd.f32 %v18998_v11, %v22379_v0 }
 0x267   : > { %v22605_v3 = vadd.f32 %v19045_v8, %v3194_v53  ;;  %v22608_v20 = vpop.f32.mrf.mxu0 }
 0x268   : > { %v22603_v39 = vpop.f32.mrf.mxu1  ;;  %27270 = vst [vmem:[#allocation34_spill] sm:$0xff] %v22608_v20 }
 0x269   : > { %27269 = vst [vmem:[#allocation33_spill] sm:$0xff] %v22603_v39  ;;  %v19001_v45 = vpop.f32.mrf.mxu0 }
 0x26a   : > { %v19048_v9 = vpop.f32.mrf.mxu1  ;;  %v3198_v37 = vadd.f32 %v19001_v45, %v22389_v44 }
 0x26b   : > { %v22612_v31 = vadd.f32 %v19048_v9, %v3196_v50  ;;  %v22615_v51 = vpop.f32.mrf.mxu0 }
 0x26c   : > { %v22610_v30 = vpop.f32.mrf.mxu1  ;;  %27272 = vst [vmem:[#allocation36_spill] sm:$0xff] %v22615_v51 }
 0x26d   : > { %27271 = vst [vmem:[#allocation35_spill] sm:$0xff] %v22610_v30  ;;  %v22621_v53 = vpop.f32.mrf.mxu0 }
 0x26e   : > { %v19051_v56 = vpop.f32.mrf.mxu1 }
 0x26f   : > { %v22619_v8 = vadd.f32 %v19051_v56, %v3198_v37  ;;  %v22625_v0 = vpop.f32.mrf.mxu0  ;;  %v16676_v56 = vld [vmem:[%s26929_s9 + $0xa] sm:$0x3] }
 0x270   : > { %v22617_v15 = vpop.f32.mrf.mxu1  ;;  %19502 = vmatprep.subr.msk.mxu1 %vm5456_vm4, %v16676_v56 }
 0x271   : > { %27273 = vst [vmem:[#allocation37_spill] sm:$0xff] %v22617_v15  ;;  %v22629_v9 = vpop.f32.mrf.mxu0 }
 0x272   : > { %v22623_v39 = vpop.f32.mrf.mxu1 }
 0x273   : > { %v22633_v30 = vpop.f32.mrf.mxu0 }
 0x274   : > { %v22627_v11 = vpop.f32.mrf.mxu1 }
 0x275   : > { %v19062_v45 = vpop.f32.mrf.mxu0 }
 0x276   : > { %v22631_v50 = vpop.f32.mrf.mxu1  ;;  %v3953_v15 = vadd.f32 %v19062_v45, %v22514_v35 }
 0x277   : > { %v22642_v51 = vpop.f32.mrf.mxu0 }
 0x278   : > { %v22635_v44 = vpop.f32.mrf.mxu1 }
 0x279   : > { %v19065_v60 = vpop.f32.mrf.mxu0 }
 0x27a   : > { %v19112_v37 = vpop.f32.mrf.mxu1  ;;  %v3955_v56 = vadd.f32 %v19065_v60, %v22533_v29 }
 0x27b   : > { %v22649_v55 = vadd.f32 %v19112_v37, %v3953_v15  ;;  %v22653_v7 = vpop.f32.mrf.mxu0 }
 0x27c   : > { %v22644_v20 = vpop.f32.mrf.mxu1 }
 0x27d   : > { %v19068_v45 = vpop.f32.mrf.mxu0 }
 0x27e   : > { %v19115_v63 = vpop.f32.mrf.mxu1  ;;  %v3957_v38 = vadd.f32 %v19068_v45, %v22542_v10 }
 0x27f   : > { %v22657_v35 = vadd.f32 %v19115_v63, %v3955_v56  ;;  %v22660_v33 = vpop.f32.mrf.mxu0 }
 0x280   : > { %v22655_v23 = vpop.f32.mrf.mxu1 }
 0x281   : > { %v19071_v34 = vpop.f32.mrf.mxu0 }
 0x282   : > { %v19118_v12 = vpop.f32.mrf.mxu1  ;;  %v3959_v29 = vadd.f32 %v19071_v34, %v22549_v27 }
 0x283   : > { %v22664_v37 = vadd.f32 %v19118_v12, %v3957_v38  ;;  %v22667_v60 = vpop.f32.mrf.mxu0 }
 0x284   : > { %v22662_v15 = vpop.f32.mrf.mxu1  ;;  %27275 = vst [vmem:[#allocation39_spill] sm:$0xff] %v22667_v60 }
 0x285   : > { %27274 = vst [vmem:[#allocation38_spill] sm:$0xff] %v22664_v37  ;;  %v19074_v56 = vpop.f32.mrf.mxu0 }
 0x286   : > { %v19121_v58 = vpop.f32.mrf.mxu1  ;;  %v3961_v10 = vadd.f32 %v19074_v56, %v22556_v26 }
 0x287   : > { %v22671_v63 = vadd.f32 %v19121_v58, %v3959_v29  ;;  %v22674_v45 = vpop.f32.mrf.mxu0 }
 0x288   : > { %v22669_v40 = vpop.f32.mrf.mxu1  ;;  %27277 = vst [vmem:[#allocation50_spill] sm:$0xff] %v22674_v45 }
 0x289   : > { %27276 = vst [vmem:[#allocation49_spill] sm:$0xff] %v22671_v63  ;;  %v19077_v38 = vpop.f32.mrf.mxu0 }
 0x28a   : > { %v19124_v18 = vpop.f32.mrf.mxu1  ;;  %v3963_v27 = vadd.f32 %v19077_v38, %v22563_v17 }
 0x28b   : > { %v22678_v12 = vadd.f32 %v19124_v18, %v3961_v10  ;;  %v22681_v34 = vpop.f32.mrf.mxu0 }
 0x28c   : > { %v22676_v61 = vpop.f32.mrf.mxu1  ;;  %27279 = vst [vmem:[#allocation52_spill] sm:$0xff] %v22681_v34 }
 0x28d   : > { %27278 = vst [vmem:[#allocation51_spill] sm:$0xff] %v22678_v12  ;;  %v19080_v29 = vpop.f32.mrf.mxu0 }
 0x28e   : > { %v19127_v37 = vpop.f32.mrf.mxu1  ;;  %v3965_v26 = vadd.f32 %v19080_v29, %v22570_v25 }
 0x28f   : > { %v22685_v58 = vadd.f32 %v19127_v37, %v3963_v27  ;;  %v22688_v56 = vpop.f32.mrf.mxu0 }
 0x290   : > { %v22683_v60 = vpop.f32.mrf.mxu1  ;;  %27281 = vst [vmem:[#allocation54_spill] sm:$0xff] %v22688_v56 }
 0x291   : > { %27280 = vst [vmem:[#allocation53_spill] sm:$0xff] %v22685_v58  ;;  %v19083_v10 = vpop.f32.mrf.mxu0 }
 0x292   : > { %v19130_v63 = vpop.f32.mrf.mxu1  ;;  %v3967_v17 = vadd.f32 %v19083_v10, %v22577_v1 }
 0x293   : > { %v22692_v18 = vadd.f32 %v19130_v63, %v3965_v26  ;;  %v22695_v38 = vpop.f32.mrf.mxu0 }
 0x294   : > { %v22690_v45 = vpop.f32.mrf.mxu1  ;;  %27283 = vst [vmem:[#allocation56_spill] sm:$0xff] %v22695_v38 }
 0x295   : > { %27282 = vst [vmem:[#allocation55_spill] sm:$0xff] %v22692_v18  ;;  %v19086_v27 = vpop.f32.mrf.mxu0 }
 0x296   : > { %v19133_v12 = vpop.f32.mrf.mxu1  ;;  %v3969_v25 = vadd.f32 %v19086_v27, %v22584_v36 }
 0x297   : > { %v22699_v37 = vadd.f32 %v19133_v12, %v3967_v17  ;;  %v22702_v29 = vpop.f32.mrf.mxu0 }
 0x298   : > { %v22697_v34 = vpop.f32.mrf.mxu1  ;;  %27285 = vst [vmem:[#allocation58_spill] sm:$0xff] %v22702_v29 }
 0x299   : > { %27284 = vst [vmem:[#allocation57_spill] sm:$0xff] %v22699_v37  ;;  %v19089_v26 = vpop.f32.mrf.mxu0 }
 0x29a   : > { %v19136_v58 = vpop.f32.mrf.mxu1  ;;  %v3971_v1 = vadd.f32 %v19089_v26, %v22591_v24 }
 0x29b   : > { %v22706_v63 = vadd.f32 %v19136_v58, %v3969_v25  ;;  %v22709_v10 = vpop.f32.mrf.mxu0 }
 0x29c   : > { %v22704_v56 = vpop.f32.mrf.mxu1  ;;  %27287 = vst [vmem:[#allocation60_spill] sm:$0xff] %v22709_v10 }
 0x29d   : > { %27286 = vst [vmem:[#allocation59_spill] sm:$0xff] %v22706_v63  ;;  %v19092_v17 = vpop.f32.mrf.mxu0 }
 0x29e   : > { %v19139_v18 = vpop.f32.mrf.mxu1  ;;  %v3973_v36 = vadd.f32 %v19092_v17, %v22598_v4 }
 0x29f   : > { %v22713_v12 = vadd.f32 %v19139_v18, %v3971_v1  ;;  %v22716_v27 = vpop.f32.mrf.mxu0  ;;  %v3167_v18 = vadd.f32 %v22484_v41, %v22197_v28 }
 0x2a0   : > { %v22711_v38 = vpop.f32.mrf.mxu1 }
 0x2a1   : > { %27288 = vst [vmem:[#allocation61_spill] sm:$0xff] %v22713_v12  ;;  %v19095_v25 = vpop.f32.mrf.mxu0 }
 0x2a2   : > { %v19142_v37 = vpop.f32.mrf.mxu1  ;;  %v3975_v24 = vadd.f32 %v19095_v25, %v22605_v3  ;;  %v3557_v3 = vadd.f32 %v22486_v49, %v3167_v18  ;;  %v3949_v25 = vadd.f32 %v22621_v53, %v22496_v5  ;;  %v22757_v5 = vld [vmem:[%s26928_s8] ss:$0 sm:$0xff] }
 0x2a3   : > { %v22720_v58 = vadd.f32 %v19142_v37, %v3973_v36  ;;  %v22723_v26 = vpop.f32.mrf.mxu0  ;;  %v3169_v37 = vadd.f32 %v22499_v13, %v22209_v59  ;;  %v3171_v59 = vadd.f32 %v22510_v32, %v22229_v14  ;;  %v3951_v13 = vadd.f32 %v22629_v9, %v22503_v48  ;;  %v22766_v48 = vld [vmem:[%s26926_s6] ss:$0 sm:$0xff] }
 0x2a4   : > { %v22718_v29 = vpop.f32.mrf.mxu1  ;;  %v4339_v53 = vadd.f32 %v22623_v39, %v3949_v25  ;;  %v3173_v39 = vadd.f32 %v22527_v42, %v22243_v43 }
 0x2a5   : > { %27289 = vst [vmem:[#allocation62_spill] sm:$0xff] %v22720_v58  ;;  %v19098_v4 = vpop.f32.mrf.mxu0 }
 0x2a6   : > { %v19145_v63 = vpop.f32.mrf.mxu1  ;;  %v3977_v12 = vadd.f32 %v19098_v4, %v22612_v31  ;;  %v3561_v4 = vadd.f32 %v22512_v2, %v3171_v59 }
 0x2a7   : > { %v22729_v1 = vadd.f32 %v19145_v63, %v3975_v24  ;;  %v22734_v36 = vpop.f32.mrf.mxu0  ;;  %v3948_v63 = vadd.f32 %v22625_v0, %v3557_v3  ;;  %v3559_v24 = vadd.f32 %v22501_v46, %v3169_v37 }
 0x2a8   : > { %v22725_v10 = vpop.f32.mrf.mxu1 }
 0x2a9   : > { %27290 = vst [vmem:[#allocation63_spill] sm:$0xff] %v22725_v10  ;;  %v19101_v28 = vpop.f32.mrf.mxu0  ;;  %v3950_v46 = vadd.f32 %v22633_v30, %v3559_v24  ;;  %v4338_v32 = vadd.f32 %v22627_v11, %v3948_v63  ;;  %v3175_v11 = vadd.f32 %v22538_v54, %v22255_v47  ;;  %v3952_v24 = vadd.f32 %v22642_v51, %v3561_v4 }
 0x2aa   : > { %v19148_v17 = vpop.f32.mrf.mxu1  ;;  %v3979_v31 = vadd.f32 %v19101_v28, %v22619_v8 }
 0x2ab   : > { %v22741_v10 = vadd.f32 %v19148_v17, %v3977_v12  ;;  %v22750_v49 = vpop.f32.mrf.mxu0  ;;  %v4341_v17 = vadd.f32 %v22631_v50, %v3951_v13  ;;  %v4340_v63 = vadd.f32 %v22635_v44, %v3950_v46  ;;  %v3565_v51 = vadd.f32 %v22540_v21, %v3175_v11 }
 0x2ac   : > { %v22736_v58 = vpop.f32.mrf.mxu1  ;;  %v3179_v11 = vadd.f32 %v22552_v19, %v22279_v52 }
 0x2ad   : > { %v19156_v0 = vpop.f32.mrf.mxu0 }
 0x2ae   : > { %v19151_v41 = vpop.f32.mrf.mxu1  ;;  %v4729_v9 = vadd.f32 %v19156_v0, %v4339_v53 }
 0x2af   : > { %v22760_v8 = vadd.f32 %v19151_v41, %v3979_v31  ;;  %v4569_v30 = vpop.f32.mrf.mxu0 }
 0x2b0   : > { %v22752_v18 = vpop.f32.mrf.mxu1  ;;  %v4728_v25 = vadd.f32 %v4569_v30, %v4338_v32  ;;  %v4768_v41 = vadd.f32 %v22766_v48, %v4729_v9 }
 0x2b1   : > { %v19159_v31 = vpop.f32.mrf.mxu0 }
 0x2b2   : > { %v19206_v14 = vpop.f32.mrf.mxu1  ;;  %v4731_v42 = vadd.f32 %v19159_v31, %v4341_v17  ;;  %v4767_v59 = vadd.f32 %v22766_v48, %v4728_v25  ;;  %v4800_v0 = vmax.f32 %v4768_v41, 0.0 }
 0x2b3   : > { %v5075_v12 = vadd.f32 %v19206_v14, %v22757_v5  ;;  %v4579_v13 = vpop.f32.mrf.mxu0  ;;  %v3563_v14 = vadd.f32 %v22529_v57, %v3173_v39 }
 0x2b4   : > { %v5069_v37 = vpop.f32.mrf.mxu1  ;;  %v4730_v54 = vadd.f32 %v4579_v13, %v4340_v63  ;;  %4865 = vrot.lane.b32.xlu0 %v4800_v0, %s20672_s24  ;;  %v4770_v9 = vadd.f32 %v22766_v48, %v4731_v42 }
 0x2b5   : > { %v5229_v3 = vmax.f32 %v5075_v12, 0.0  ;;  %v5070_v28 = vadd.f32 %v22757_v5, %v5069_v37  ;;  %v19162_v46 = vpop.f32.mrf.mxu0  ;;  %v4342_v12 = vadd.f32 %v22644_v20, %v3952_v24  ;;  %v3954_v4 = vadd.f32 %v22653_v7, %v3563_v14 }
 0x2b6   : > { %v19209_v2 = vpop.f32.mrf.mxu1  ;;  %v4769_v17 = vadd.f32 %v22766_v48, %v4730_v54  ;;  %v4733_v21 = vadd.f32 %v19162_v46, %v22649_v55  ;;  %v4802_v25 = vmax.f32 %v4770_v9, 0.0  ;;  %v27291_v46 = vld [vmem:[#allocation39_spill] sm:$0xff] }
 0x2b7   : > { %5262 = vst.msk [vmem:[#allocation4 + $0x3a] sm:$0xff] %vm528_vm5, %v5229_v3  ;;  %v5228_v43 = vmax.f32 %v5070_v28, 0.0  ;;  %v5085_v50 = vadd.f32 %v19209_v2, %v22757_v5  ;;  %v4589_v30 = vpop.f32.mrf.mxu0  ;;  %v4799_v3 = vmax.f32 %v4767_v59, 0.0  ;;  %v3177_v28 = vadd.f32 %v22545_v22, %v22267_v6 }
 0x2b8   : > { %v5079_v53 = vpop.f32.mrf.mxu1  ;;  %v4732_v7 = vadd.f32 %v4589_v30, %v4342_v12  ;;  %4869 = vrot.lane.b32.xlu1 %v4802_v25, %s20672_s24  ;;  %v4344_v31 = vadd.f32 %v22655_v23, %v3954_v4  ;;  %v3956_v2 = vadd.f32 %v22660_v33, %v3565_v51  ;;  %v4772_v24 = vadd.f32 %v22766_v48, %v4733_v21  ;;  %v27293_v25 = vld [vmem:[#allocation46_spill] sm:$0xff] }
 0x2b9   : > { %5261 = vst.msk [vmem:[#allocation4 + $0x32] sm:$0xff] %vm528_vm5, %v5228_v43  ;;  %v5231_v47 = vmax.f32 %v5085_v50, 0.0  ;;  %v5080_v44 = vadd.f32 %v22757_v5, %v5079_v53  ;;  %4863 = vrot.lane.b32.xlu0 %v4799_v3, %s20672_s24  ;;  %v19165_v55 = vpop.f32.mrf.mxu0  ;;  %v4801_v13 = vmax.f32 %v4769_v17, 0.0  ;;  %v3567_v23 = vadd.f32 %v22547_v16, %v3177_v28  ;;  %v27294_v28 = vld [vmem:[#allocation20_spill] sm:$0xff] }
 0x2ba   : > { %v19212_v32 = vpop.f32.mrf.mxu1  ;;  %v4771_v6 = vadd.f32 %v22766_v48, %v4732_v7  ;;  %v4735_v43 = vadd.f32 %v19165_v55, %v22657_v35  ;;  %v4346_v16 = vadd.f32 %v22662_v15, %v3956_v2  ;;  %v4804_v4 = vmax.f32 %v4772_v24, 0.0 }
 0x2bb   : > { %5264 = vst.msk [vmem:[#allocation4 + $0x52] sm:$0xff] %vm528_vm5, %v5231_v47  ;;  %v5230_v57 = vmax.f32 %v5080_v44, 0.0  ;;  %v5095_v39 = vadd.f32 %v19212_v32, %v22757_v5  ;;  %v4599_v19 = vpop.f32.mrf.mxu0  ;;  %v3569_v47 = vadd.f32 %v22554_v62, %v3179_v11  ;;  %v3958_v32 = vadd.f32 %v27291_v46, %v3567_v23 }
 0x2bc   : > { %v5089_v37 = vpop.f32.mrf.mxu1  ;;  %v4734_v33 = vadd.f32 %v4599_v19, %v4344_v31  ;;  %v4803_v14 = vmax.f32 %v4771_v6, 0.0  ;;  %4867 = vrot.lane.b32.xlu1 %v4801_v13, %s20672_s24  ;;  %v4774_v62 = vadd.f32 %v22766_v48, %v4735_v43  ;;  %v27296_v31 = vld [vmem:[#allocation8_spill] sm:$0xff]  ;;  %v27297_v6 = vld [vmem:[#allocation47_spill] sm:$0xff] }
 0x2bd   : > { %5263 = vst.msk [vmem:[#allocation4 + $0x4a] sm:$0xff] %vm528_vm5, %v5230_v57  ;;  %v5233_v20 = vmax.f32 %v5095_v39, 0.0  ;;  %v5090_v41 = vadd.f32 %v22757_v5, %v5089_v37  ;;  %v19168_v44 = vpop.f32.mrf.mxu0  ;;  %v27292_v57 = vld [vmem:[#allocation38_spill] sm:$0xff] }
 0x2be   : > { %v19215_v63 = vpop.f32.mrf.mxu1  ;;  %v4773_v9 = vadd.f32 %v22766_v48, %v4734_v33  ;;  %4871 = vrot.lane.b32.xlu0 %v4803_v14, %s20672_s24  ;;  %v4737_v39 = vadd.f32 %v19168_v44, %v27292_v57  ;;  %v4806_v23 = vmax.f32 %v4774_v62, 0.0  ;;  %v27302_v62 = vld [vmem:[#allocation9_spill] sm:$0xff] }
 0x2bf   : > { %5266 = vst.msk [vmem:[#allocation4 + $0x6a] sm:$0xff] %vm528_vm5, %v5233_v20  ;;  %v5232_v22 = vmax.f32 %v5090_v41, 0.0  ;;  %v5105_v52 = vadd.f32 %v19215_v63, %v22757_v5  ;;  %v4609_v21 = vpop.f32.mrf.mxu0  ;;  %v3181_v20 = vadd.f32 %v27294_v28, %v27293_v25  ;;  %v27295_v63 = vld [vmem:[#allocation40_spill] sm:$0xff] }
 0x2c0   : > { %v5099_v42 = vpop.f32.mrf.mxu1  ;;  %v5330_v50 = vld [vmem:[#allocation4 + $0x31] sm:$0xff]  ;;  %v5331_v53 = vld [vmem:[#allocation4 + $0x39] sm:$0xff]  ;;  %v4736_v7 = vadd.f32 %v4609_v21, %v4346_v16  ;;  %v4805_v55 = vmax.f32 %v4773_v9, 0.0  ;;  %v2407_v2 = vadd.f32 %v27296_v31, %v27295_v63  ;;  %4873 = vrot.lane.b32.xlu1 %v4804_v4, %s20672_s24  ;;  %v4776_v33 = vadd.f32 %v22766_v48, %v4737_v39  ;;  %v27301_v16 = vld [vmem:[#allocation21_spill] sm:$0xff] }
 0x2c1   : > { %v5297_v59 = vld [vmem:[#allocation4 + $0x30] sm:$0xff]  ;;  %5265 = vst.msk [vmem:[#allocation4 + $0x62] sm:$0xff] %vm528_vm5, %v5232_v22  ;;  %v5100_v0 = vadd.f32 %v22757_v5, %v5099_v42  ;;  %19260 = vmatprep.mubr.msk.f32.mxu0 %vm528_vm5, %v5330_v50  ;;  %v5298_v35 = vld [vmem:[#allocation4 + $0x38] sm:$0xff]  ;;  %v5235_v54 = vmax.f32 %v5105_v52, 0.0  ;;  %v19171_v52 = vpop.f32.mrf.mxu0  ;;  %v4348_v42 = vadd.f32 %v22669_v40, %v3958_v32  ;;  %v3571_v46 = vadd.f32 %v27301_v16, %v3181_v20 }
 0x2c2   : > { %19310 = vmatprep.mubr.msk.f32.mxu1 %vm528_vm5, %v5297_v59  ;;  %v19218_v51 = vpop.f32.mrf.mxu1  ;;  %19261 = vmatmul.mubr.msk.f32.gmra.mxu0 %vm528_vm5, %v5331_v53  ;;  %v27298_v22 = vld [vmem:[#allocation22_spill] sm:$0xff]  ;;  %v4775_v13 = vadd.f32 %v22766_v48, %v4736_v7  ;;  %v2797_v57 = vadd.f32 %v27302_v62, %v2407_v2  ;;  %v27303_v39 = vld [vmem:[#allocation23_spill] sm:$0xff]  ;;  %v4808_v7 = vmax.f32 %v4776_v33, 0.0  ;;  %v27314_v62 = vld [vmem:[#allocation53_spill] sm:$0xff] }
 0x2c3   : > { %v5234_v12 = vmax.f32 %v5100_v0, 0.0  ;;  %19311 = vmatmul.mubr.msk.f32.gmra.mxu1 %vm528_vm5, %v5298_v35  ;;  %5268 = vst.msk [vmem:[#allocation4 + $0x82] sm:$0xff] %vm528_vm5, %v5235_v54  ;;  %v5115_v17 = vadd.f32 %v19218_v51, %v22757_v5  ;;  %v3183_v24 = vadd.f32 %v27298_v22, %v27297_v6  ;;  %v27299_v50 = vld [vmem:[#allocation50_spill] sm:$0xff]  ;;  %4875 = vrot.lane.b32.xlu0 %v4805_v55, %s20672_s24  ;;  %v27300_v0 = vld [vmem:[#allocation49_spill] sm:$0xff]  ;;  %v4619_v54 = vpop.f32.mrf.mxu0 }
 0x2c4   : > { %v5109_v15 = vpop.f32.mrf.mxu1  ;;  %v5332_v30 = vld [vmem:[#allocation4 + $0x49] sm:$0xff]  ;;  %v5333_v3 = vld [vmem:[#allocation4 + $0x51] sm:$0xff]  ;;  %v3960_v59 = vadd.f32 %v27299_v50, %v3569_v47  ;;  %v4739_v35 = vadd.f32 %v19171_v52, %v27300_v0  ;;  %v4738_v32 = vadd.f32 %v4619_v54, %v4348_v42  ;;  %v4807_v4 = vmax.f32 %v4775_v13, 0.0  ;;  %4877 = vrot.lane.b32.xlu1 %v4806_v23, %s20672_s24  ;;  %v27311_v0 = vld [vmem:[#allocation12_spill] sm:$0xff] }
 0x2c5   : > { %v5299_v37 = vld [vmem:[#allocation4 + $0x48] sm:$0xff]  ;;  %5267 = vst.msk [vmem:[#allocation4 + $0x7a] sm:$0xff] %vm528_vm5, %v5234_v12  ;;  %v5110_v41 = vadd.f32 %v22757_v5, %v5109_v15  ;;  %19263 = vmatprep.mubr.msk.f32.mxu0 %vm528_vm5, %v5332_v30  ;;  %v5300_v11 = vld [vmem:[#allocation4 + $0x50] sm:$0xff]  ;;  %v5237_v43 = vmax.f32 %v5115_v17, 0.0  ;;  %v3573_v17 = vadd.f32 %v27303_v39, %v3183_v24  ;;  %v19174_v15 = vpop.f32.mrf.mxu0  ;;  %v27306_v24 = vld [vmem:[#allocation48_spill] sm:$0xff] }
 0x2c6   : > { %19313 = vmatprep.mubr.msk.f32.mxu1 %vm528_vm5, %v5299_v37  ;;  %v19221_v19 = vpop.f32.mrf.mxu1  ;;  %19264 = vmatmul.mubr.msk.f32.gmra.mxu0 %vm528_vm5, %v5333_v3  ;;  %v4350_v37 = vadd.f32 %v22676_v61, %v3960_v59  ;;  %v27304_v3 = vld [vmem:[#allocation52_spill] sm:$0xff]  ;;  %v4777_v28 = vadd.f32 %v22766_v48, %v4738_v32  ;;  %v27308_v13 = vld [vmem:[#allocation41_spill] sm:$0xff]  ;;  %v27310_v33 = vld [vmem:[#allocation42_spill] sm:$0xff] }
 0x2c7   : > { %v5236_v53 = vmax.f32 %v5110_v41, 0.0  ;;  %19314 = vmatmul.mubr.msk.f32.gmra.mxu1 %vm528_vm5, %v5300_v11  ;;  %5270 = vst.msk [vmem:[#allocation4 + $0x9a] sm:$0xff] %vm528_vm5, %v5237_v43  ;;  %v5125_v14 = vadd.f32 %v19221_v19, %v22757_v5  ;;  %v3962_v25 = vadd.f32 %v27304_v3, %v3571_v46  ;;  %4879 = vrot.lane.b32.xlu0 %v4807_v4, %s20672_s24  ;;  %v27305_v11 = vld [vmem:[#allocation51_spill] sm:$0xff]  ;;  %v4629_v31 = vpop.f32.mrf.mxu0  ;;  %v27307_v43 = vld [vmem:[#allocation24_spill] sm:$0xff]  ;;  %v27313_v16 = vld [vmem:[#allocation54_spill] sm:$0xff] }
 0x2c8   : > { %v5119_v40 = vpop.f32.mrf.mxu1  ;;  %v5334_v44 = vld [vmem:[#allocation4 + $0x61] sm:$0xff]  ;;  %v5335_v51 = vld [vmem:[#allocation4 + $0x69] sm:$0xff]  ;;  %v4778_v41 = vadd.f32 %v22766_v48, %v4739_v35  ;;  %v4741_v55 = vadd.f32 %v19174_v15, %v27305_v11  ;;  %v3185_v52 = vadd.f32 %v27307_v43, %v27306_v24  ;;  %v4740_v19 = vadd.f32 %v4629_v31, %v4350_v37  ;;  %4881 = vrot.lane.b32.xlu1 %v4808_v7, %s20672_s24  ;;  %v27318_v31 = vld [vmem:[#allocation27_spill] sm:$0xff] }
 0x2c9   : > { %v5301_v47 = vld [vmem:[#allocation4 + $0x60] sm:$0xff]  ;;  %5269 = vst.msk [vmem:[#allocation4 + $0x92] sm:$0xff] %vm528_vm5, %v5236_v53  ;;  %v5120_v9 = vadd.f32 %v22757_v5, %v5119_v40  ;;  %19266 = vmatprep.mubr.msk.f32.mxu0 %vm528_vm5, %v5334_v44  ;;  %v5302_v12 = vld [vmem:[#allocation4 + $0x68] sm:$0xff]  ;;  %v5239_v21 = vmax.f32 %v5125_v14, 0.0  ;;  %v4809_v59 = vmax.f32 %v4777_v28, 0.0  ;;  %v27309_v53 = vld [vmem:[#allocation10_spill] sm:$0xff]  ;;  %v2411_v35 = vadd.f32 %v27311_v0, %v27310_v33  ;;  %v19177_v44 = vpop.f32.mrf.mxu0 }
 0x2ca   : > { %19316 = vmatprep.mubr.msk.f32.mxu1 %vm528_vm5, %v5301_v47  ;;  %v19224_v30 = vpop.f32.mrf.mxu1  ;;  %19267 = vmatmul.mubr.msk.f32.gmra.mxu0 %vm528_vm5, %v5335_v51  ;;  %v2409_v23 = vadd.f32 %v27309_v53, %v27308_v13  ;;  %v27312_v14 = vld [vmem:[#allocation26_spill] sm:$0xff]  ;;  %v4352_v51 = vadd.f32 %v22683_v60, %v3962_v25  ;;  %v3964_v46 = vadd.f32 %v27313_v16, %v3573_v17  ;;  %v27315_v37 = vld [vmem:[#allocation25_spill] sm:$0xff] }
 0x2cb   : > { %v5238_v20 = vmax.f32 %v5120_v9, 0.0  ;;  %19317 = vmatmul.mubr.msk.f32.gmra.mxu1 %vm528_vm5, %v5302_v12  ;;  %5272 = vst.msk [vmem:[#allocation4 + $0xb2] sm:$0xff] %vm528_vm5, %v5239_v21  ;;  %v5135_v63 = vadd.f32 %v19224_v30, %v22757_v5  ;;  %v3187_v54 = vadd.f32 %v27312_v14, %v2797_v57  ;;  %v4779_v32 = vadd.f32 %v22766_v48, %v4740_v19  ;;  %v4639_v60 = vpop.f32.mrf.mxu0 }
 0x2cc   : > { %v5129_v61 = vpop.f32.mrf.mxu1  ;;  %v5336_v2 = vld [vmem:[#allocation4 + $0x79] sm:$0xff]  ;;  %v5337_v22 = vld [vmem:[#allocation4 + $0x81] sm:$0xff]  ;;  %4883 = vrot.lane.b32.xlu0 %v4809_v59, %s20672_s24  ;;  %v4810_v12 = vmax.f32 %v4778_v41, 0.0  ;;  %v4780_v4 = vadd.f32 %v22766_v48, %v4741_v55  ;;  %v4743_v57 = vadd.f32 %v19177_v44, %v27314_v62  ;;  %v3575_v3 = vadd.f32 %v27315_v37, %v3185_v52 }
 0x2cd   : > { %v22866_v6 = vld [vmem:[#allocation4 + $0x78] sm:$0xff]  ;;  %5271 = vst.msk [vmem:[#allocation4 + $0xaa] sm:$0xff] %vm528_vm5, %v5238_v20  ;;  %v5130_v42 = vadd.f32 %v22757_v5, %v5129_v61  ;;  %19269 = vmatprep.mubr.msk.f32.mxu0 %vm528_vm5, %v5336_v2  ;;  %v22875_v50 = vld [vmem:[#allocation4 + $0x80] sm:$0xff]  ;;  %v5241_v40 = vmax.f32 %v5135_v63, 0.0  ;;  %v4742_v25 = vadd.f32 %v4639_v60, %v4352_v51  ;;  %v4811_v7 = vmax.f32 %v4779_v32, 0.0  ;;  %v27317_v55 = vld [vmem:[#allocation13_spill] sm:$0xff] }
 0x2ce   : > { %19319 = vmatprep.mubr.msk.f32.mxu1 %vm528_vm5, %v22866_v6  ;;  %v19227_v47 = vpop.f32.mrf.mxu1  ;;  %19270 = vmatmul.mubr.msk.f32.gmra.mxu0 %vm528_vm5, %v5337_v22  ;;  %v27316_v41 = vld [vmem:[#allocation11_spill] sm:$0xff]  ;;  %v2801_v63 = vadd.f32 %v27317_v55, %v2411_v35  ;;  %v3577_v61 = vadd.f32 %v27318_v31, %v3187_v54  ;;  %v19180_v22 = vpop.f32.mrf.mxu0  ;;  %v4354_v43 = vadd.f32 %v22690_v45, %v3964_v46  ;;  %v27319_v52 = vld [vmem:[#allocation56_spill] sm:$0xff]  ;;  %v4812_v13 = vmax.f32 %v4780_v4, 0.0  ;;  %v27326_v60 = vld [vmem:[#allocation30_spill] sm:$0xff] }
 0x2cf   : > { %v5240_v9 = vmax.f32 %v5130_v42, 0.0  ;;  %19320 = vmatmul.mubr.msk.f32.gmra.mxu1 %vm528_vm5, %v22875_v50  ;;  %5274 = vst.msk [vmem:[#allocation4 + $0xca] sm:$0xff] %vm528_vm5, %v5241_v40  ;;  %v5145_v39 = vadd.f32 %v19227_v47, %v22757_v5  ;;  %v2799_v11 = vadd.f32 %v27316_v41, %v2409_v23  ;;  %4885 = vrot.lane.b32.xlu1 %v4810_v12, %s20672_s24  ;;  %v27320_v23 = vld [vmem:[#allocation55_spill] sm:$0xff]  ;;  %v27321_v44 = vld [vmem:[#allocation28_spill] sm:$0xff]  ;;  %v27323_v12 = vld [vmem:[#allocation14_spill] sm:$0xff] }
 0x2d0   : > { %v5139_v21 = vpop.f32.mrf.mxu1  ;;  %v5338_v17 = vld [vmem:[#allocation4 + $0x91] sm:$0xff]  ;;  %v5339_v30 = vld [vmem:[#allocation4 + $0x99] sm:$0xff]  ;;  %v3966_v19 = vadd.f32 %v27319_v52, %v3575_v3  ;;  %v4781_v42 = vadd.f32 %v22766_v48, %v4742_v25  ;;  %4887 = vrot.lane.b32.xlu0 %v4811_v7, %s20672_s24  ;;  %v4782_v53 = vadd.f32 %v22766_v48, %v4743_v57  ;;  %v4745_v33 = vadd.f32 %v19180_v22, %v27320_v23  ;;  %v4649_v45 = vpop.f32.mrf.mxu0  ;;  %v27329_v52 = vld [vmem:[#allocation29_spill] sm:$0xff] }
 0x2d1   : > { %v22894_v15 = vld [vmem:[#allocation4 + $0x90] sm:$0xff]  ;;  %5273 = vst.msk [vmem:[#allocation4 + $0xc2] sm:$0xff] %vm528_vm5, %v5240_v9  ;;  %v5140_v28 = vadd.f32 %v22757_v5, %v5139_v21  ;;  %19272 = vmatprep.mubr.msk.f32.mxu0 %vm528_vm5, %v5338_v17  ;;  %v22902_v20 = vld [vmem:[#allocation4 + $0x98] sm:$0xff]  ;;  %v5243_v2 = vmax.f32 %v5145_v39, 0.0  ;;  %v3189_v47 = vadd.f32 %v27321_v44, %v2799_v11  ;;  %v4744_v51 = vadd.f32 %v4649_v45, %v4354_v43  ;;  %v27324_v62 = vld [vmem:[#allocation44_spill] sm:$0xff] }
 0x2d2   : > { %19322 = vmatprep.mubr.msk.f32.mxu1 %vm528_vm5, %v22894_v15  ;;  %v19230_v24 = vpop.f32.mrf.mxu1  ;;  %19273 = vmatmul.mubr.msk.f32.gmra.mxu0 %vm528_vm5, %v5339_v30  ;;  %v4813_v32 = vmax.f32 %v4781_v42, 0.0  ;;  %v27322_v9 = vld [vmem:[#allocation43_spill] sm:$0xff]  ;;  %v27325_v57 = vld [vmem:[#allocation16_spill] sm:$0xff]  ;;  %v3191_v21 = vadd.f32 %v27326_v60, %v2801_v63  ;;  %v19183_v30 = vpop.f32.mrf.mxu0  ;;  %v4356_v3 = vadd.f32 %v22697_v34, %v3966_v19  ;;  %v27327_v25 = vld [vmem:[#allocation58_spill] sm:$0xff]  ;;  %v4814_v11 = vmax.f32 %v4782_v53, 0.0 }
 0x2d3   : > { %v5242_v59 = vmax.f32 %v5140_v28, 0.0  ;;  %19323 = vmatmul.mubr.msk.f32.gmra.mxu1 %vm528_vm5, %v22902_v20  ;;  %5276 = vst.msk [vmem:[#allocation4 + $0xe2] sm:$0xff] %vm528_vm5, %v5243_v2  ;;  %v5155_v0 = vadd.f32 %v19230_v24, %v22757_v5  ;;  %v2413_v4 = vadd.f32 %v27323_v12, %v27322_v9  ;;  %v2415_v39 = vadd.f32 %v27325_v57, %v27324_v62  ;;  %v27328_v63 = vld [vmem:[#allocation57_spill] sm:$0xff]  ;;  %v27330_v23 = vld [vmem:[#allocation15_spill] sm:$0xff] }
 0x2d4   : > { %v5149_v35 = vpop.f32.mrf.mxu1  ;;  %v5340_v14 = vld [vmem:[#allocation4 + $0xa9] sm:$0xff]  ;;  %v5341_v40 = vld [vmem:[#allocation4 + $0xb1] sm:$0xff]  ;;  %4889 = vrot.lane.b32.xlu1 %v4812_v13, %s20672_s24  ;;  %v3968_v28 = vadd.f32 %v27327_v25, %v3577_v61  ;;  %v4783_v7 = vadd.f32 %v22766_v48, %v4744_v51  ;;  %4891 = vrot.lane.b32.xlu0 %v4813_v32, %s20672_s24  ;;  %v4784_v55 = vadd.f32 %v22766_v48, %v4745_v33  ;;  %v4659_v34 = vpop.f32.mrf.mxu0 }
 0x2d5   : > { %v22919_v54 = vld [vmem:[#allocation4 + $0xa8] sm:$0xff]  ;;  %5275 = vst.msk [vmem:[#allocation4 + $0xda] sm:$0xff] %vm528_vm5, %v5242_v59  ;;  %v5150_v16 = vadd.f32 %v22757_v5, %v5149_v35  ;;  %19275 = vmatprep.mubr.msk.f32.mxu0 %vm528_vm5, %v5340_v14  ;;  %v22927_v46 = vld [vmem:[#allocation4 + $0xb0] sm:$0xff]  ;;  %v5245_v17 = vmax.f32 %v5155_v0, 0.0  ;;  %v4747_v31 = vadd.f32 %v19183_v30, %v27328_v63  ;;  %v3579_v19 = vadd.f32 %v27329_v52, %v3189_v47  ;;  %v27332_v35 = vld [vmem:[#allocation31_spill] sm:$0xff] }
 0x2d6   : > { %19325 = vmatprep.mubr.msk.f32.mxu1 %vm528_vm5, %v22919_v54  ;;  %v19233_v37 = vpop.f32.mrf.mxu1  ;;  %19276 = vmatmul.mubr.msk.f32.gmra.mxu0 %vm528_vm5, %v5341_v40  ;;  %v4746_v42 = vadd.f32 %v4659_v34, %v4356_v3  ;;  %v4815_v53 = vmax.f32 %v4783_v7, 0.0  ;;  %v2803_v33 = vadd.f32 %v27330_v23, %v2413_v4  ;;  %v27331_v0 = vld [vmem:[#allocation17_spill] sm:$0xff]  ;;  %v3581_v14 = vadd.f32 %v27332_v35, %v3191_v21  ;;  %v19186_v44 = vpop.f32.mrf.mxu0  ;;  %v27334_v57 = vld [vmem:[#allocation59_spill] sm:$0xff]  ;;  %v27335_v3 = vld [vmem:[#allocation32_spill] sm:$0xff] }
 0x2d7   : > { %v5244_v41 = vmax.f32 %v5150_v16, 0.0  ;;  %19326 = vmatmul.mubr.msk.f32.gmra.mxu1 %vm528_vm5, %v22927_v46  ;;  %5278 = vst.msk [vmem:[#allocation4 + $0xfa] sm:$0xff] %vm528_vm5, %v5245_v17  ;;  %v5165_v2 = vadd.f32 %v19233_v37, %v22757_v5  ;;  %v2805_v45 = vadd.f32 %v27331_v0, %v2415_v39  ;;  %v4358_v51 = vadd.f32 %v22704_v56, %v3968_v28  ;;  %v27333_v16 = vld [vmem:[#allocation60_spill] sm:$0xff]  ;;  %v27337_v63 = vld [vmem:[#allocation18_spill] sm:$0xff] }
 0x2d8   : > { %v5159_v22 = vpop.f32.mrf.mxu1  ;;  %v5342_v61 = vld [vmem:[#allocation4 + $0xc1] sm:$0xff]  ;;  %v5343_v43 = vld [vmem:[#allocation4 + $0xc9] sm:$0xff]  ;;  %4893 = vrot.lane.b32.xlu1 %v4814_v11, %s20672_s24  ;;  %v3970_v32 = vadd.f32 %v27333_v16, %v3579_v19  ;;  %v4785_v9 = vadd.f32 %v22766_v48, %v4746_v42  ;;  %4895 = vrot.lane.b32.xlu0 %v4815_v53, %s20672_s24  ;;  %v4816_v4 = vmax.f32 %v4784_v55, 0.0  ;;  %v4786_v62 = vadd.f32 %v22766_v48, %v4747_v31  ;;  %v4669_v56 = vpop.f32.mrf.mxu0 }
 0x2d9   : > { %v22946_v24 = vld [vmem:[#allocation4 + $0xc0] sm:$0xff]  ;;  %5277 = vst.msk [vmem:[#allocation4 + $0xf2] sm:$0xff] %vm528_vm5, %v5244_v41  ;;  %v5160_v59 = vadd.f32 %v22757_v5, %v5159_v22  ;;  %19278 = vmatprep.mubr.msk.f32.mxu0 %vm528_vm5, %v5342_v61  ;;  %v22954_v13 = vld [vmem:[#allocation4 + $0xc8] sm:$0xff]  ;;  %v5247_v40 = vmax.f32 %v5165_v2, 0.0  ;;  %v4749_v39 = vadd.f32 %v19186_v44, %v27334_v57  ;;  %v3193_v25 = vadd.f32 %v27335_v3, %v2803_v33  ;;  %v27338_v2 = vld [vmem:[#allocation34_spill] sm:$0xff] }
 0x2da   : > { %19328 = vmatprep.mubr.msk.f32.mxu1 %vm528_vm5, %v22946_v24  ;;  %v19236_v47 = vpop.f32.mrf.mxu1  ;;  %19279 = vmatmul.mubr.msk.f32.gmra.mxu0 %vm528_vm5, %v5343_v43  ;;  %v4748_v28 = vadd.f32 %v4669_v56, %v4358_v51  ;;  %v4817_v11 = vmax.f32 %v4785_v9, 0.0  ;;  %v27336_v55 = vld [vmem:[#allocation45_spill] sm:$0xff]  ;;  %v3195_v34 = vadd.f32 %v27338_v2, %v2805_v45  ;;  %v19189_v61 = vpop.f32.mrf.mxu0  ;;  %v4360_v52 = vadd.f32 %v22711_v38, %v3970_v32 }
 0x2db   : > { %v5246_v12 = vmax.f32 %v5160_v59, 0.0  ;;  %19329 = vmatmul.mubr.msk.f32.gmra.mxu1 %vm528_vm5, %v22954_v13  ;;  %5280 = vst.msk [vmem:[#allocation4 + $0x112] sm:$0xff] %vm528_vm5, %v5247_v40  ;;  %v5175_v60 = vadd.f32 %v19236_v47, %v22757_v5  ;;  %v2417_v31 = vadd.f32 %v27337_v63, %v27336_v55  ;;  %v3972_v19 = vadd.f32 %v22716_v27, %v3581_v14  ;;  %v27339_v33 = vld [vmem:[#allocation61_spill] sm:$0xff] }
 0x2dc   : > { %v5169_v21 = vpop.f32.mrf.mxu1  ;;  %v5344_v17 = vld [vmem:[#allocation4 + $0xd9] sm:$0xff]  ;;  %v5345_v37 = vld [vmem:[#allocation4 + $0xe1] sm:$0xff]  ;;  %4897 = vrot.lane.b32.xlu1 %v4816_v4, %s20672_s24  ;;  %v4787_v42 = vadd.f32 %v22766_v48, %v4748_v28  ;;  %4899 = vrot.lane.b32.xlu0 %v4817_v11, %s20672_s24  ;;  %v4818_v53 = vmax.f32 %v4786_v62, 0.0  ;;  %v4788_v23 = vadd.f32 %v22766_v48, %v4749_v39  ;;  %v4751_v0 = vadd.f32 %v19189_v61, %v27339_v33  ;;  %v4679_v38 = vpop.f32.mrf.mxu0 }
 0x2dd   : > { %v22971_v30 = vld [vmem:[#allocation4 + $0xd8] sm:$0xff]  ;;  %5279 = vst.msk [vmem:[#allocation4 + $0x10a] sm:$0xff] %vm528_vm5, %v5246_v12  ;;  %v5170_v7 = vadd.f32 %v22757_v5, %v5169_v21  ;;  %19281 = vmatprep.mubr.msk.f32.mxu0 %vm528_vm5, %v5344_v17  ;;  %v22979_v41 = vld [vmem:[#allocation4 + $0xe0] sm:$0xff]  ;;  %v5249_v22 = vmax.f32 %v5175_v60, 0.0  ;;  %v27340_v44 = vld [vmem:[#allocation33_spill] sm:$0xff]  ;;  %v4750_v51 = vadd.f32 %v4679_v38, %v4360_v52  ;;  %v4362_v21 = vadd.f32 %v22718_v29, %v3972_v19 }
 0x2de   : > { %19331 = vmatprep.mubr.msk.f32.mxu1 %vm528_vm5, %v22971_v30  ;;  %v19239_v43 = vpop.f32.mrf.mxu1  ;;  %19282 = vmatmul.mubr.msk.f32.gmra.mxu0 %vm528_vm5, %v5345_v37  ;;  %v3583_v47 = vadd.f32 %v27340_v44, %v3193_v25  ;;  %v4819_v9 = vmax.f32 %v4787_v42, 0.0  ;;  %v27341_v12 = vld [vmem:[#allocation19_spill] sm:$0xff]  ;;  %v19192_v60 = vpop.f32.mrf.mxu0  ;;  %v4820_v25 = vmax.f32 %v4788_v23, 0.0  ;;  %v4790_v28 = vadd.f32 %v22766_v48, %v4751_v0 }
 0x2df   : > { %v5248_v59 = vmax.f32 %v5170_v7, 0.0  ;;  %19332 = vmatmul.mubr.msk.f32.gmra.mxu1 %vm528_vm5, %v22979_v41  ;;  %5282 = vst.msk [vmem:[#allocation4 + $0x12a] sm:$0xff] %vm528_vm5, %v5249_v22  ;;  %v5185_v45 = vadd.f32 %v19239_v43, %v22757_v5  ;;  %v2807_v4 = vadd.f32 %v27341_v12, %v2417_v31  ;;  %v27342_v62 = vld [vmem:[#allocation35_spill] sm:$0xff]  ;;  %v4789_v37 = vadd.f32 %v22766_v48, %v4750_v51  ;;  %v27343_v7 = vld [vmem:[#allocation62_spill] sm:$0xff]  ;;  %v27346_v12 = vld [vmem:[#allocation37_spill] sm:$0xff] }
 0x2e0   : > { %v5179_v35 = vpop.f32.mrf.mxu1  ;;  %v5346_v27 = vld [vmem:[#allocation4 + $0xf1] sm:$0xff]  ;;  %v5347_v40 = vld [vmem:[#allocation4 + $0xf9] sm:$0xff]  ;;  %v3585_v57 = vadd.f32 %v27342_v62, %v3195_v34  ;;  %4901 = vrot.lane.b32.xlu1 %v4818_v53, %s20672_s24  ;;  %v3974_v17 = vadd.f32 %v22723_v26, %v3583_v47  ;;  %4903 = vrot.lane.b32.xlu0 %v4819_v9, %s20672_s24  ;;  %v4753_v11 = vadd.f32 %v19192_v60, %v27343_v7  ;;  %v4689_v29 = vpop.f32.mrf.mxu0 }
 0x2e1   : > { %v22996_v14 = vld [vmem:[#allocation4 + $0xf0] sm:$0xff]  ;;  %5281 = vst.msk [vmem:[#allocation4 + $0x122] sm:$0xff] %vm528_vm5, %v5248_v59  ;;  %v5180_v16 = vadd.f32 %v22757_v5, %v5179_v35  ;;  %19284 = vmatprep.mubr.msk.f32.mxu0 %vm528_vm5, %v5346_v27  ;;  %v23004_v32 = vld [vmem:[#allocation4 + $0xf8] sm:$0xff]  ;;  %v5251_v39 = vmax.f32 %v5185_v45, 0.0  ;;  %v27344_v34 = vld [vmem:[#allocation36_spill] sm:$0xff]  ;;  %v4752_v61 = vadd.f32 %v4689_v29, %v4362_v21  ;;  %v4821_v19 = vmax.f32 %v4789_v37, 0.0 }
 0x2e2   : > { %19334 = vmatprep.mubr.msk.f32.mxu1 %vm528_vm5, %v22996_v14  ;;  %v19242_v56 = vpop.f32.mrf.mxu1  ;;  %19285 = vmatmul.mubr.msk.f32.gmra.mxu0 %vm528_vm5, %v5347_v40  ;;  %v3197_v22 = vadd.f32 %v27344_v34, %v2807_v4  ;;  %v19195_v59 = vpop.f32.mrf.mxu0  ;;  %v27345_v23 = vld [vmem:[#allocation63_spill] sm:$0xff]  ;;  %v3976_v0 = vadd.f32 %v22734_v36, %v3585_v57  ;;  %v4822_v35 = vmax.f32 %v4790_v28, 0.0  ;;  %v4792_v27 = vadd.f32 %v22766_v48, %v4753_v11 }
 0x2e3   : > { %v5250_v3 = vmax.f32 %v5180_v16, 0.0  ;;  %19335 = vmatmul.mubr.msk.f32.gmra.mxu1 %vm528_vm5, %v23004_v32  ;;  %5284 = vst.msk [vmem:[#allocation4 + $0x142] sm:$0xff] %vm528_vm5, %v5251_v39  ;;  %v5195_v55 = vadd.f32 %v19242_v56, %v22757_v5  ;;  %v4364_v33 = vadd.f32 %v27345_v23, %v3974_v17  ;;  %v4791_v45 = vadd.f32 %v22766_v48, %v4752_v61 }
 0x2e4   : > { %v5189_v63 = vpop.f32.mrf.mxu1  ;;  %v5348_v26 = vld [vmem:[#allocation4 + $0x109] sm:$0xff]  ;;  %v5349_v2 = vld [vmem:[#allocation4 + $0x111] sm:$0xff]  ;;  %4905 = vrot.lane.b32.xlu1 %v4820_v25, %s20672_s24  ;;  %4907 = vrot.lane.b32.xlu0 %v4821_v19, %s20672_s24  ;;  %v4755_v40 = vadd.f32 %v19195_v59, %v22729_v1  ;;  %v4699_v47 = vpop.f32.mrf.mxu0  ;;  %v3587_v4 = vadd.f32 %v27346_v12, %v3197_v22  ;;  %v4366_v17 = vadd.f32 %v22736_v58, %v3976_v0  ;;  %v4824_v28 = vmax.f32 %v4792_v27, 0.0 }
 0x2e5   : > { %v23020_v31 = vld [vmem:[#allocation4 + $0x108] sm:$0xff]  ;;  %5283 = vst.msk [vmem:[#allocation4 + $0x13a] sm:$0xff] %vm528_vm5, %v5250_v3  ;;  %v5190_v43 = vadd.f32 %v22757_v5, %v5189_v63  ;;  %19287 = vmatprep.mubr.msk.f32.mxu0 %vm528_vm5, %v5348_v26  ;;  %v23028_v52 = vld [vmem:[#allocation4 + $0x110] sm:$0xff]  ;;  %v5253_v42 = vmax.f32 %v5195_v55, 0.0  ;;  %v4754_v62 = vadd.f32 %v4699_v47, %v4364_v33  ;;  %v4823_v39 = vmax.f32 %v4791_v45, 0.0 }
 0x2e6   : > { %19337 = vmatprep.mubr.msk.f32.mxu1 %vm528_vm5, %v23020_v31  ;;  %v19245_v53 = vpop.f32.mrf.mxu1  ;;  %19288 = vmatmul.mubr.msk.f32.gmra.mxu0 %vm528_vm5, %v5349_v2  ;;  %v19198_v56 = vpop.f32.mrf.mxu0  ;;  %v3978_v37 = vadd.f32 %v22750_v49, %v3587_v4  ;;  %v4794_v7 = vadd.f32 %v22766_v48, %v4755_v40 }
 0x2e7   : > { %v5252_v38 = vmax.f32 %v5190_v43, 0.0  ;;  %19338 = vmatmul.mubr.msk.f32.gmra.mxu1 %vm528_vm5, %v23028_v52  ;;  %5286 = vst.msk [vmem:[#allocation4 + $0x15a] sm:$0xff] %vm528_vm5, %v5253_v42  ;;  %v5205_v44 = vadd.f32 %v19245_v53, %v22757_v5  ;;  %v4793_v3 = vadd.f32 %v22766_v48, %v4754_v62  ;;  %v4757_v11 = vadd.f32 %v19198_v56, %v22741_v10  ;;  %v6010_v56 = vld [vmem:[#allocation4 + $0xa] sm:$0xff] }
 0x2e8   : > { %v5199_v51 = vpop.f32.mrf.mxu1  ;;  %v5350_v36 = vld [vmem:[#allocation4 + $0x121] sm:$0xff]  ;;  %v5351_v9 = vld [vmem:[#allocation4 + $0x129] sm:$0xff]  ;;  %4909 = vrot.lane.b32.xlu1 %v4822_v35, %s20672_s24  ;;  %4911 = vrot.lane.b32.xlu0 %v4823_v39, %s20672_s24  ;;  %v4709_v55 = vpop.f32.mrf.mxu0  ;;  %v4368_v19 = vadd.f32 %v22752_v18, %v3978_v37  ;;  %v4826_v23 = vmax.f32 %v4794_v7, 0.0 }
 0x2e9   : > { %v23042_v16 = vld [vmem:[#allocation4 + $0x120] sm:$0xff]  ;;  %5285 = vst.msk [vmem:[#allocation4 + $0x152] sm:$0xff] %vm528_vm5, %v5252_v38  ;;  %v5200_v57 = vadd.f32 %v22757_v5, %v5199_v51  ;;  %19290 = vmatprep.mubr.msk.f32.mxu0 %vm528_vm5, %v5350_v36  ;;  %v23050_v1 = vld [vmem:[#allocation4 + $0x128] sm:$0xff]  ;;  %v5255_v60 = vmax.f32 %v5205_v44, 0.0  ;;  %v4756_v2 = vadd.f32 %v4709_v55, %v4366_v17  ;;  %v4825_v22 = vmax.f32 %v4793_v3, 0.0 }
 0x2ea   : > { %19340 = vmatprep.mubr.msk.f32.mxu1 %vm528_vm5, %v23042_v16  ;;  %19291 = vmatmul.mubr.msk.f32.gmra.mxu0 %vm528_vm5, %v5351_v9  ;;  %v19248_v21 = vpop.f32.mrf.mxu1  ;;  %v19201_v61 = vpop.f32.mrf.mxu0  ;;  %v4796_v33 = vadd.f32 %v22766_v48, %v4757_v11  ;;  %v6400_v3 = vld [vmem:[#allocation4 + $0xb] sm:$0xff]  ;;  %v6401_v7 = vld [vmem:[#allocation4 + $0x1b] sm:$0xff]  ;;  %v20598_v11 = vld [vmem:[%s26929_s9 + $0x8] sm:$0x3] }
 0x2eb   : > { %v5254_v25 = vmax.f32 %v5200_v57, 0.0  ;;  %19341 = vmatmul.mubr.msk.f32.gmra.mxu1 %vm528_vm5, %v23050_v1  ;;  %5288 = vst.msk [vmem:[#allocation4 + $0x172] sm:$0xff] %vm528_vm5, %v5255_v60  ;;  %v5215_v63 = vadd.f32 %v19248_v21, %v22757_v5  ;;  %v4795_v42 = vadd.f32 %v22766_v48, %v4756_v2  ;;  %v4759_v59 = vadd.f32 %v19201_v61, %v22760_v8  ;;  %v6399_v57 = vld [vmem:[#allocation4 + $0x3] sm:$0xff] }
 0x2ec   : > { %v5352_v29 = vld [vmem:[#allocation4 + $0x139] sm:$0xff]  ;;  %v5353_v49 = vld [vmem:[#allocation4 + $0x141] sm:$0xff]  ;;  %v5209_v26 = vpop.f32.mrf.mxu1  ;;  %4913 = vrot.lane.b32.xlu1 %v4824_v28, %s20672_s24  ;;  %4915 = vrot.lane.b32.xlu0 %v4825_v22, %s20672_s24  ;;  %v4719_v0 = vpop.f32.mrf.mxu0  ;;  %v4828_v47 = vmax.f32 %v4796_v33, 0.0  ;;  %v23166_v33 = vld [vmem:[#allocation4 + $0x4a] sm:$0xff] }
 0x2ed   : > { %v23063_v58 = vld [vmem:[#allocation4 + $0x138] sm:$0xff]  ;;  %5287 = vst.msk [vmem:[#allocation4 + $0x16a] sm:$0xff] %vm528_vm5, %v5254_v25  ;;  %19293 = vmatprep.mubr.msk.f32.mxu0 %vm528_vm5, %v5352_v29  ;;  %v23070_v34 = vld [vmem:[#allocation4 + $0x140] sm:$0xff]  ;;  %v5210_v10 = vadd.f32 %v22757_v5, %v5209_v26  ;;  %v5257_v43 = vmax.f32 %v5215_v63, 0.0  ;;  %v4798_v18 = vadd.f32 %v22766_v48, %v4759_v59  ;;  %v4758_v27 = vadd.f32 %v4719_v0, %v4368_v19  ;;  %v23134_v29 = vld [vmem:[%s26929_s9 + $0xc] sm:$0x3] }
 0x2ee   : > { %19343 = vmatprep.mubr.msk.f32.mxu1 %vm528_vm5, %v23063_v58  ;;  %19294 = vmatmul.mubr.msk.f32.gmra.mxu0 %vm528_vm5, %v5353_v49  ;;  %v4827_v40 = vmax.f32 %v4795_v42, 0.0  ;;  %v19251_v12 = vpop.f32.mrf.mxu1  ;;  %v23114_v25 = vld [vmem:[#allocation4 + $0x1a] sm:$0xff]  ;;  %v23129_v55 = vld [vmem:[#allocation4 + $0x22] sm:$0xff]  ;;  %v20599_v26 = vld [vmem:[%s26929_s9 + $0xa] sm:$0x3] }
 0x2ef   : > { %19344 = vmatmul.mubr.msk.f32.gmra.mxu1 %vm528_vm5, %v23070_v34  ;;  %v5256_v53 = vmax.f32 %v5210_v10, 0.0  ;;  %5290 = vst.msk [vmem:[#allocation4 + $0x18a] sm:$0xff] %vm528_vm5, %v5257_v43  ;;  %v4797_v44 = vadd.f32 %v22766_v48, %v4758_v27  ;;  %v6009_v48 = vld [vmem:[#allocation4 + $0x2] sm:$0xff]  ;;  %v5225_v39 = vadd.f32 %v19251_v12, %v22757_v5  ;;  %v4830_v37 = vmax.f32 %v4798_v18, 0.0  ;;  %v23154_v43 = vld [vmem:[#allocation4 + $0x32] sm:$0xff]  ;;  %v23162_v42 = vld [vmem:[#allocation4 + $0x3a] sm:$0xff] }
 0x2f0   : > { %v5354_v45 = vld [vmem:[#allocation4 + $0x151] sm:$0xff]  ;;  %v5355_v35 = vld [vmem:[#allocation4 + $0x159] sm:$0xff]  ;;  %4917 = vrot.lane.b32.xlu1 %v4826_v23, %s20672_s24  ;;  %4919 = vrot.lane.b32.xlu0 %v4827_v40, %s20672_s24  ;;  %v5219_v60 = vpop.f32.mrf.mxu1  ;;  %v6402_v2 = vld [vmem:[#allocation4 + $0x23] sm:$0xff] }
 0x2f1   : > { %v23082_v38 = vld [vmem:[#allocation4 + $0x150] sm:$0xff]  ;;  %19296 = vmatprep.mubr.msk.f32.mxu0 %vm528_vm5, %v5354_v45  ;;  %v23089_v8 = vld [vmem:[#allocation4 + $0x158] sm:$0xff]  ;;  %5289 = vst.msk [vmem:[#allocation4 + $0x182] sm:$0xff] %vm528_vm5, %v5256_v53  ;;  %v4829_v62 = vmax.f32 %v4797_v44, 0.0  ;;  %v5259_v21 = vmax.f32 %v5225_v39, 0.0  ;;  %v5220_v17 = vadd.f32 %v22757_v5, %v5219_v60  ;;  %v23178_v27 = vld [vmem:[#allocation4 + $0x62] sm:$0xff] }
 0x2f2   : > { %19346 = vmatprep.mubr.msk.f32.mxu1 %vm528_vm5, %v23082_v38  ;;  %19297 = vmatmul.mubr.msk.f32.gmra.mxu0 %vm528_vm5, %v5355_v35  ;;  %v23122_v5 = vld [vmem:[%s26929_s9 + $0xe] sm:$0x3]  ;;  %v19306_v63 = vpop.f32.mrf.mxu1  ;;  %v6403_v19 = vld [vmem:[#allocation4 + $0x33] sm:$0xff]  ;;  %v6404_v23 = vld [vmem:[#allocation4 + $0x3b] sm:$0xff] }
 0x2f3   : > { %19347 = vmatmul.mubr.msk.f32.gmra.mxu1 %vm528_vm5, %v23089_v8  ;;  %5292 = vst.msk [vmem:[#allocation4 + $0x1a2] sm:$0xff] %vm528_vm5, %v5259_v21  ;;  %v5258_v28 = vmax.f32 %v5220_v17, 0.0  ;;  %v6405_v45 = vld [vmem:[#allocation4 + $0x4b] sm:$0xff]  ;;  %v6406_v18 = vld [vmem:[#allocation4 + $0x53] sm:$0xff]  ;;  %v6407_v40 = vld [vmem:[#allocation4 + $0x63] sm:$0xff] }
 0x2f4   : > { %v5356_v51 = vld [vmem:[#allocation4 + $0x169] sm:$0xff]  ;;  %v5357_v9 = vld [vmem:[#allocation4 + $0x171] sm:$0xff]  ;;  %4921 = vrot.lane.b32.xlu1 %v4828_v47, %s20672_s24  ;;  %4923 = vrot.lane.b32.xlu0 %v4829_v62, %s20672_s24  ;;  %v23150_v61 = vpop.f32.mrf.mxu1  ;;  %v23204_v39 = vld [vmem:[#allocation4 + $0x9a] sm:$0xff] }
 0x2f5   : > { %v23098_v36 = vld [vmem:[#allocation4 + $0x168] sm:$0xff]  ;;  %19299 = vmatprep.mubr.msk.f32.mxu0 %vm528_vm5, %v5356_v51  ;;  %v23103_v4 = vld [vmem:[#allocation4 + $0x170] sm:$0xff]  ;;  %5291 = vst.msk [vmem:[#allocation4 + $0x19a] sm:$0xff] %vm528_vm5, %v5258_v28  ;;  %v23188_v51 = vld [vmem:[#allocation4 + $0x7a] sm:$0xff] }
 0x2f6   : > { %19349 = vmatprep.mubr.msk.f32.mxu1 %vm528_vm5, %v23098_v36  ;;  %19300 = vmatmul.mubr.msk.f32.gmra.mxu0 %vm528_vm5, %v5357_v9  ;;  %v19309_v53 = vpop.f32.mrf.mxu1  ;;  %v23174_v35 = vld [vmem:[#allocation4 + $0x52] sm:$0xff]  ;;  %v23184_v44 = vld [vmem:[#allocation4 + $0x6a] sm:$0xff]  ;;  %v6409_v9 = vld [vmem:[#allocation4 + $0x7b] sm:$0xff] }
 0x2f7   : > { %19350 = vmatmul.mubr.msk.f32.gmra.mxu1 %vm528_vm5, %v23103_v4  ;;  %19354 = vmatprep.mubr.msk.f32.mxu0 %vm528_vm5, %v6009_v48  ;;  %v6408_v47 = vld [vmem:[#allocation4 + $0x6b] sm:$0xff]  ;;  %v23194_v12 = vld [vmem:[#allocation4 + $0x82] sm:$0xff] }
 0x2f8   : > { %19404 = vmatprep.mubr.msk.f32.mxu1 %vm528_vm5, %v6399_v57  ;;  %4925 = vrot.lane.b32.xlu1 %v4830_v37, %s20672_s24  ;;  %v6410_v62 = vld [vmem:[#allocation4 + $0x83] sm:$0xff]  ;;  %v23198_v48 = vld [vmem:[#allocation4 + $0x92] sm:$0xff]  ;;  %v6412_v60 = vld [vmem:[#allocation4 + $0x9b] sm:$0xff] }
 0x2f9   : > { %v6411_v57 = vld [vmem:[#allocation4 + $0x93] sm:$0xff]  ;;  %v6413_v21 = vld [vmem:[#allocation4 + $0xab] sm:$0xff]  ;;  %v6415_v28 = vld [vmem:[#allocation4 + $0xc3] sm:$0xff] }
 0x2fa   : > { %19355 = vmatmul.mubr.msk.f32.vlgmr.msra.gmra.mxu0 %vm528_vm5, %v6010_v56  ;;  %v23208_v56 = vld [vmem:[#allocation4 + $0xaa] sm:$0xff]  ;;  %v23214_v17 = vld [vmem:[#allocation4 + $0xb2] sm:$0xff] }
 0x2fb   : > { %19405 = vmatmul.mubr.msk.f32.vlgmr.msra.gmra.mxu1 %vm528_vm5, %v6400_v3  ;;  %19453 = vmatpush3.msk.msra.mxu0 %vm5456_vm4, %v20598_v11  ;;  %v6414_v37 = vld [vmem:[#allocation4 + $0xb3] sm:$0xff]  ;;  %v23218_v3 = vld [vmem:[#allocation4 + $0xc2] sm:$0xff]  ;;  %v6416_v11 = vld [vmem:[#allocation4 + $0xcb] sm:$0xff] }
 0x2fc   : > { %19503 = vmatpush3.msk.msra.mxu1 %vm5456_vm4, %v20599_v26  ;;  %19357 = vmatprep.mubr.msk.f32.mxu0 %vm528_vm5, %v23114_v25  ;;  %v23234_v26 = vld [vmem:[#allocation4 + $0xe2] sm:$0xff] }
 0x2fd   : > { %19407 = vmatprep.mubr.msk.f32.mxu1 %vm528_vm5, %v6401_v7  ;;  %19602 = vmatprep.subr.msk.mxu1 %vm5456_vm4, %v23122_v5  ;;  %v23224_v7 = vld [vmem:[#allocation4 + $0xca] sm:$0xff] }
 0x2fe   : > { %19358 = vmatmul.mubr.msk.f32.gmra.mxu0 %vm528_vm5, %v23129_v55  ;;  %19552 = vmatprep.subr.msk.mxu0 %vm5456_vm4, %v23134_v29 }
 0x2ff   : > { %19408 = vmatmul.mubr.msk.f32.gmra.mxu1 %vm528_vm5, %v6402_v2  ;;  %19360 = vmatprep.mubr.msk.f32.mxu0 %vm528_vm5, %v23154_v43  ;;  %v6418_v2 = vld [vmem:[#allocation4 + $0xe3] sm:$0xff] }
 0x300   : > { %19410 = vmatprep.mubr.msk.f32.mxu1 %vm528_vm5, %v6403_v19  ;;  %v23238_v19 = vld [vmem:[#allocation4 + $0xf2] sm:$0xff] }
 0x302   : > { %19361 = vmatmul.mubr.msk.f32.gmra.mxu0 %vm528_vm5, %v23162_v42 }
 0x303   : > { %v19256_v49 = vpop.f32.mrf.mxu0  ;;  %19411 = vmatmul.mubr.msk.f32.gmra.mxu1 %vm528_vm5, %v6404_v23  ;;  %19363 = vmatprep.mubr.msk.f32.mxu0 %vm528_vm5, %v23166_v33  ;;  %v6420_v23 = vld [vmem:[#allocation4 + $0xfb] sm:$0xff] }
 0x304   : > { %v23143_v22 = vadd.f32 %v19306_v63, %v19256_v49  ;;  %19413 = vmatprep.mubr.msk.f32.mxu1 %vm528_vm5, %v6405_v45  ;;  %v23228_v49 = vld [vmem:[#allocation4 + $0xda] sm:$0xff]  ;;  %v23248_v45 = vld [vmem:[#allocation4 + $0x10a] sm:$0xff] }
 0x305   : > { %v23148_v10 = vpop.f32.mrf.mxu0  ;;  %v6417_v63 = vld [vmem:[#allocation4 + $0xdb] sm:$0xff] }
 0x306   : > { %27347 = vst [vmem:[#allocation39_spill] sm:$0xff] %v23143_v22  ;;  %19364 = vmatmul.mubr.msk.f32.gmra.mxu0 %vm528_vm5, %v23174_v35  ;;  %v20605_v22 = vld [vmem:[#allocation4 + $0x50] sm:$0xff] }
 0x307   : > { %v19259_v59 = vpop.f32.mrf.mxu0  ;;  %19414 = vmatmul.mubr.msk.f32.gmra.mxu1 %vm528_vm5, %v6406_v18  ;;  %19366 = vmatprep.mubr.msk.f32.mxu0 %vm528_vm5, %v23178_v27  ;;  %v6421_v18 = vld [vmem:[#allocation4 + $0x10b] sm:$0xff] }
 0x308   : > { %v23168_v0 = vadd.f32 %v19309_v53, %v19259_v59  ;;  %19416 = vmatprep.mubr.msk.f32.mxu1 %vm528_vm5, %v6407_v40  ;;  %v6419_v59 = vld [vmem:[#allocation4 + $0xf3] sm:$0xff] }
 0x309   : > { %v23244_v53 = vld [vmem:[#allocation4 + $0xfa] sm:$0xff]  ;;  %v23254_v40 = vld [vmem:[#allocation4 + $0x112] sm:$0xff] }
 0x30a   : > { %27348 = vst [vmem:[#allocation38_spill] sm:$0xff] %v23168_v0  ;;  %19367 = vmatmul.mubr.msk.f32.gmra.mxu0 %vm528_vm5, %v23184_v44  ;;  %v20600_v0 = vld [vmem:[#allocation4 + $0x18] sm:$0xff] }
 0x30b   : > { %19417 = vmatmul.mubr.msk.f32.gmra.mxu1 %vm528_vm5, %v6408_v47  ;;  %19369 = vmatprep.mubr.msk.f32.mxu0 %vm528_vm5, %v23188_v51  ;;  %v6422_v47 = vld [vmem:[#allocation4 + $0x113] sm:$0xff] }
 0x30c   : > { %19419 = vmatprep.mubr.msk.f32.mxu1 %vm528_vm5, %v6409_v9  ;;  %v23258_v9 = vld [vmem:[#allocation4 + $0x122] sm:$0xff] }
 0x30e   : > { %19370 = vmatmul.mubr.msk.f32.gmra.mxu0 %vm528_vm5, %v23194_v12 }
 0x30f   : > { %19420 = vmatmul.mubr.msk.f32.gmra.mxu1 %vm528_vm5, %v6410_v62  ;;  %19372 = vmatprep.mubr.msk.f32.mxu0 %vm528_vm5, %v23198_v48  ;;  %v6423_v62 = vld [vmem:[#allocation4 + $0x123] sm:$0xff] }
 0x310   : > { %19422 = vmatprep.mubr.msk.f32.mxu1 %vm528_vm5, %v6411_v57  ;;  %v23264_v57 = vld [vmem:[#allocation4 + $0x12a] sm:$0xff] }
 0x312   : > { %19373 = vmatmul.mubr.msk.f32.gmra.mxu0 %vm528_vm5, %v23204_v39 }
 0x313   : > { %19423 = vmatmul.mubr.msk.f32.gmra.mxu1 %vm528_vm5, %v6412_v60  ;;  %19375 = vmatprep.mubr.msk.f32.mxu0 %vm528_vm5, %v23208_v56  ;;  %v6424_v60 = vld [vmem:[#allocation4 + $0x12b] sm:$0xff] }
 0x314   : > { %19425 = vmatprep.mubr.msk.f32.mxu1 %vm528_vm5, %v6413_v21  ;;  %v23268_v21 = vld [vmem:[#allocation4 + $0x13a] sm:$0xff] }
 0x316   : > { %19376 = vmatmul.mubr.msk.f32.gmra.mxu0 %vm528_vm5, %v23214_v17 }
 0x317   : > { %19426 = vmatmul.mubr.msk.f32.gmra.mxu1 %vm528_vm5, %v6414_v37  ;;  %19378 = vmatprep.mubr.msk.f32.mxu0 %vm528_vm5, %v23218_v3  ;;  %v6425_v37 = vld [vmem:[#allocation4 + $0x13b] sm:$0xff] }
 0x318   : > { %19428 = vmatprep.mubr.msk.f32.mxu1 %vm528_vm5, %v6415_v28 }
 0x31a   : > { %19379 = vmatmul.mubr.msk.f32.gmra.mxu0 %vm528_vm5, %v23224_v7 }
 0x31b   : > { %19429 = vmatmul.mubr.msk.f32.gmra.mxu1 %vm528_vm5, %v6416_v11  ;;  %19381 = vmatprep.mubr.msk.f32.mxu0 %vm528_vm5, %v23228_v49  ;;  %v23276_v11 = vld [vmem:[#allocation4 + $0x142] sm:$0xff] }
 0x31c   : > { %19431 = vmatprep.mubr.msk.f32.mxu1 %vm528_vm5, %v6417_v63  ;;  %v6426_v63 = vld [vmem:[#allocation4 + $0x143] sm:$0xff] }
 0x31e   : > { %19382 = vmatmul.mubr.msk.f32.gmra.mxu0 %vm528_vm5, %v23234_v26 }
 0x31f   : > { %19432 = vmatmul.mubr.msk.f32.gmra.mxu1 %vm528_vm5, %v6418_v2  ;;  %19384 = vmatprep.mubr.msk.f32.mxu0 %vm528_vm5, %v23238_v19  ;;  %v23280_v2 = vld [vmem:[#allocation4 + $0x152] sm:$0xff] }
 0x320   : > { %19434 = vmatprep.mubr.msk.f32.mxu1 %vm528_vm5, %v6419_v59  ;;  %v6427_v59 = vld [vmem:[#allocation4 + $0x153] sm:$0xff] }
 0x322   : > { %19385 = vmatmul.mubr.msk.f32.gmra.mxu0 %vm528_vm5, %v23244_v53 }
 0x323   : > { %19435 = vmatmul.mubr.msk.f32.gmra.mxu1 %vm528_vm5, %v6420_v23  ;;  %19387 = vmatprep.mubr.msk.f32.mxu0 %vm528_vm5, %v23248_v45 }
 0x324   : > { %19437 = vmatprep.mubr.msk.f32.mxu1 %vm528_vm5, %v6421_v18 }
 0x326   : > { %19388 = vmatmul.mubr.msk.f32.gmra.mxu0 %vm528_vm5, %v23254_v40  ;;  %v4866_v28 = vpop.permute.xlu0 %4865 }
 0x327   : > { %19438 = vmatmul.mubr.msk.f32.gmra.mxu1 %vm528_vm5, %v6422_v47  ;;  %19390 = vmatprep.mubr.msk.f32.mxu0 %vm528_vm5, %v23258_v9  ;;  %4961 = vst.msk [vmem:[%s21298_s23 + $0x8] sm:$0xff] %vm4959_vm8, %v4866_v28  ;;  %v23290_v47 = vld [vmem:[#allocation4 + $0x15a] sm:$0xff] }
 0x328   : > { %19440 = vmatprep.mubr.msk.f32.mxu1 %vm528_vm5, %v6423_v62  ;;  %v6428_v62 = vld [vmem:[#allocation4 + $0x15b] sm:$0xff] }
 0x32a   : > { %19391 = vmatmul.mubr.msk.f32.gmra.mxu0 %vm528_vm5, %v23264_v57  ;;  %v4870_v18 = vpop.permute.xlu1 %4869 }
 0x32b   : > { %19441 = vmatmul.mubr.msk.f32.gmra.mxu1 %vm528_vm5, %v6424_v60  ;;  %19393 = vmatprep.mubr.msk.f32.mxu0 %vm528_vm5, %v23268_v21  ;;  %v4864_v23 = vpop.permute.xlu0 %4863  ;;  %4963 = vst.msk [vmem:[%s21298_s23 + $0x18] sm:$0xff] %vm4959_vm8, %v4870_v18  ;;  %v23294_v60 = vld [vmem:[#allocation4 + $0x16a] sm:$0xff]  ;;  %v6430_v18 = vld [vmem:[#allocation4 + $0x173] sm:$0xff] }
 0x32c   : > { %19443 = vmatprep.mubr.msk.f32.mxu1 %vm528_vm5, %v6425_v37  ;;  %4960 = vst.msk [vmem:[%s21298_s23] sm:$0xff] %vm4959_vm8, %v4864_v23  ;;  %v6429_v37 = vld [vmem:[#allocation4 + $0x16b] sm:$0xff] }
 0x32d   : > { %v23302_v23 = vld [vmem:[#allocation4 + $0x172] sm:$0xff] }
 0x32e   : > { %19394 = vmatmul.mubr.msk.f32.gmra.mxu0 %vm528_vm5, %v23276_v11  ;;  %v4868_v28 = vpop.permute.xlu1 %4867 }
 0x32f   : > { %19444 = vmatmul.mubr.msk.f32.gmra.mxu1 %vm528_vm5, %v6426_v63  ;;  %19396 = vmatprep.mubr.msk.f32.mxu0 %vm528_vm5, %v23280_v2  ;;  %v6789_v63 = vld [vmem:[#allocation4 + $0x4] sm:$0xff]  ;;  %4962 = vst.msk [vmem:[%s21298_s23 + $0x10] sm:$0xff] %vm4959_vm8, %v4868_v28 }
 0x330   : > { %19446 = vmatprep.mubr.msk.f32.mxu1 %vm528_vm5, %v6427_v59  ;;  %v4872_v59 = vpop.permute.xlu0 %4871 }
 0x331   : > { %4964 = vst.msk [vmem:[%s21298_s23 + $0x20] sm:$0xff] %vm4959_vm8, %v4872_v59  ;;  %v23316_v59 = vld [vmem:[#allocation4 + $0x1c] sm:$0xff] }
 0x332   : > { %19397 = vmatmul.mubr.msk.f32.gmra.mxu0 %vm528_vm5, %v23290_v47 }
 0x333   : > { %19447 = vmatmul.mubr.msk.f32.gmra.mxu1 %vm528_vm5, %v6428_v62  ;;  %19399 = vmatprep.mubr.msk.f32.mxu0 %vm528_vm5, %v23294_v60  ;;  %v6790_v62 = vld [vmem:[#allocation4 + $0xc] sm:$0xff] }
 0x334   : > { %19449 = vmatprep.mubr.msk.f32.mxu1 %vm528_vm5, %v6429_v37  ;;  %v4874_v37 = vpop.permute.xlu1 %4873 }
 0x335   : > { %4965 = vst.msk [vmem:[%s21298_s23 + $0x28] sm:$0xff] %vm4959_vm8, %v4874_v37  ;;  %v4876_v28 = vpop.permute.xlu0 %4875  ;;  %v20602_v37 = vld [vmem:[#allocation4 + $0x30] sm:$0xff] }
 0x336   : > { %19400 = vmatmul.mubr.msk.f32.gmra.mxu0 %vm528_vm5, %v23302_v23  ;;  %4966 = vst.msk [vmem:[%s21298_s23 + $0x30] sm:$0xff] %vm4959_vm8, %v4876_v28 }
 0x337   : > { %19450 = vmatmul.mubr.msk.f32.gmra.mxu1 %vm528_vm5, %v6430_v18  ;;  %19454 = vmatprep.mubr.msk.f32.mxu0 %vm528_vm5, %v6789_v63  ;;  %v23321_v63 = vld [vmem:[%s26929_s9 + $0x12] sm:$0x3]  ;;  %v20601_v18 = vld [vmem:[#allocation4 + $0x20] sm:$0xff] }
 0x338   : > { %19504 = vmatprep.mubr.msk.f32.mxu1 %vm528_vm5, %v20600_v0  ;;  %v23326_v0 = vld [vmem:[#allocation4 + $0x24] sm:$0xff]  ;;  %v4878_v28 = vpop.permute.xlu1 %4877 }
 0x339   : > { %27349 = vst [vmem:[#allocation46_spill] sm:$0xff] %v23326_v0  ;;  %4967 = vst.msk [vmem:[%s21298_s23 + $0x38] sm:$0xff] %vm4959_vm8, %v4878_v28 }
 0x33a   : > { %19455 = vmatmul.mubr.msk.f32.vlgmr.msra.gmra.mxu0 %vm528_vm5, %v6790_v62  ;;  %v23331_v62 = vld [vmem:[%s26929_s9 + $0x10] sm:$0x3] }
 0x33b   : > { %19505 = vmatmul.mubr.msk.f32.vlgmr.msra.gmra.mxu1 %vm528_vm5, %v20601_v18  ;;  %19553 = vmatpush3.msk.msra.mxu0 %vm5456_vm4, %v23134_v29  ;;  %v4880_v29 = vpop.permute.xlu0 %4879  ;;  %v20603_v18 = vld [vmem:[#allocation4 + $0x38] sm:$0xff] }
 0x33c   : > { %19603 = vmatpush3.msk.msra.mxu1 %vm5456_vm4, %v23122_v5  ;;  %19507 = vmatprep.mubr.msk.f32.mxu1 %vm528_vm5, %v20602_v37  ;;  %4968 = vst.msk [vmem:[%s21298_s23 + $0x40] sm:$0xff] %vm4959_vm8, %v4880_v29  ;;  %v23346_v5 = vld [vmem:[#allocation4 + $0x34] sm:$0xff]  ;;  %v20604_v37 = vld [vmem:[#allocation4 + $0x48] sm:$0xff]  ;;  %v4882_v28 = vpop.permute.xlu1 %4881 }
 0x33d   : > { %19457 = vmatprep.mubr.msk.f32.mxu0 %vm528_vm5, %v23316_v59  ;;  %19702 = vmatprep.subr.msk.mxu1 %vm5456_vm4, %v23321_v63  ;;  %27350 = vst [vmem:[#allocation20_spill] sm:$0xff] %v23346_v5  ;;  %4969 = vst.msk [vmem:[%s21298_s23 + $0x48] sm:$0xff] %vm4959_vm8, %v4882_v28 }
 0x33e   : > { %19458 = vmatmul.mubr.msk.f32.gmra.mxu0 %vm528_vm5, %v23326_v0  ;;  %19652 = vmatprep.subr.msk.mxu0 %vm5456_vm4, %v23331_v62  ;;  %v23356_v0 = vld [vmem:[#allocation4 + $0x3c] sm:$0xff] }
 0x33f   : > { %19508 = vmatmul.mubr.msk.f32.gmra.mxu1 %vm528_vm5, %v20603_v18  ;;  %19460 = vmatprep.mubr.msk.f32.mxu0 %vm528_vm5, %v23346_v5  ;;  %v4884_v29 = vpop.permute.xlu0 %4883  ;;  %27351 = vst [vmem:[#allocation40_spill] sm:$0xff] %v23356_v0  ;;  %v23362_v18 = vld [vmem:[#allocation4 + $0x4c] sm:$0xff]  ;;  %v23370_v5 = vld [vmem:[#allocation4 + $0x54] sm:$0xff] }
 0x340   : > { %19510 = vmatprep.mubr.msk.f32.mxu1 %vm528_vm5, %v20604_v37  ;;  %4970 = vst.msk [vmem:[%s21298_s23 + $0x50] sm:$0xff] %vm4959_vm8, %v4884_v29  ;;  %v20606_v37 = vld [vmem:[#allocation4 + $0x60] sm:$0xff] }
 0x341   : > { %v4886_v28 = vpop.permute.xlu1 %4885 }
 0x342   : > { %19461 = vmatmul.mubr.msk.f32.gmra.mxu0 %vm528_vm5, %v23356_v0  ;;  %4971 = vst.msk [vmem:[%s21298_s23 + $0x58] sm:$0xff] %vm4959_vm8, %v4886_v28  ;;  %v20607_v0 = vld [vmem:[#allocation4 + $0x68] sm:$0xff] }
 0x343   : > { %19511 = vmatmul.mubr.msk.f32.gmra.mxu1 %vm528_vm5, %v20605_v22  ;;  %19463 = vmatprep.mubr.msk.f32.mxu0 %vm528_vm5, %v23362_v18  ;;  %v4888_v29 = vpop.permute.xlu0 %4887  ;;  %v23376_v22 = vld [vmem:[#allocation4 + $0x64] sm:$0xff] }
 0x344   : > { %19513 = vmatprep.mubr.msk.f32.mxu1 %vm528_vm5, %v20606_v37  ;;  %4972 = vst.msk [vmem:[%s21298_s23 + $0x60] sm:$0xff] %vm4959_vm8, %v4888_v29  ;;  %v23385_v29 = vld [vmem:[#allocation4 + $0x6c] sm:$0xff] }
 0x346   : > { %19464 = vmatmul.mubr.msk.f32.gmra.mxu0 %vm528_vm5, %v23370_v5  ;;  %v4890_v37 = vpop.permute.xlu1 %4889 }
 0x347   : > { %19514 = vmatmul.mubr.msk.f32.gmra.mxu1 %vm528_vm5, %v20607_v0  ;;  %19466 = vmatprep.mubr.msk.f32.mxu0 %vm528_vm5, %v23376_v22  ;;  %4973 = vst.msk [vmem:[%s21298_s23 + $0x68] sm:$0xff] %vm4959_vm8, %v4890_v37  ;;  %v4892_v28 = vpop.permute.xlu0 %4891  ;;  %v23391_v0 = vld [vmem:[#allocation4 + $0x7c] sm:$0xff] }
 0x348   : > { %19516 = vmatprep.mubr.msk.f32.mxu1 %vm528_vm5, %v22866_v6  ;;  %4974 = vst.msk [vmem:[%s21298_s23 + $0x70] sm:$0xff] %vm4959_vm8, %v4892_v28  ;;  %v23401_v28 = vld [vmem:[#allocation4 + $0x84] sm:$0xff] }
 0x34a   : > { %19467 = vmatmul.mubr.msk.f32.gmra.mxu0 %vm528_vm5, %v23385_v29  ;;  %v4894_v6 = vpop.permute.xlu1 %4893 }
 0x34b   : > { %19517 = vmatmul.mubr.msk.f32.gmra.mxu1 %vm528_vm5, %v22875_v50  ;;  %19469 = vmatprep.mubr.msk.f32.mxu0 %vm528_vm5, %v23391_v0  ;;  %4975 = vst.msk [vmem:[%s21298_s23 + $0x78] sm:$0xff] %vm4959_vm8, %v4894_v6  ;;  %v4896_v37 = vpop.permute.xlu0 %4895  ;;  %v23407_v50 = vld [vmem:[#allocation4 + $0x94] sm:$0xff] }
 0x34c   : > { %19519 = vmatprep.mubr.msk.f32.mxu1 %vm528_vm5, %v22894_v15  ;;  %4976 = vst.msk [vmem:[%s21298_s23 + $0x80] sm:$0xff] %vm4959_vm8, %v4896_v37  ;;  %v23417_v37 = vld [vmem:[#allocation4 + $0x9c] sm:$0xff] }
 0x34e   : > { %19470 = vmatmul.mubr.msk.f32.gmra.mxu0 %vm528_vm5, %v23401_v28  ;;  %v4898_v15 = vpop.permute.xlu1 %4897 }
 0x34f   : > { %19520 = vmatmul.mubr.msk.f32.gmra.mxu1 %vm528_vm5, %v22902_v20  ;;  %19472 = vmatprep.mubr.msk.f32.mxu0 %vm528_vm5, %v23407_v50  ;;  %4977 = vst.msk [vmem:[%s21298_s23 + $0x88] sm:$0xff] %vm4959_vm8, %v4898_v15  ;;  %v4900_v6 = vpop.permute.xlu0 %4899  ;;  %v23423_v20 = vld [vmem:[#allocation4 + $0xac] sm:$0xff] }
 0x350   : > { %19522 = vmatprep.mubr.msk.f32.mxu1 %vm528_vm5, %v22919_v54  ;;  %4978 = vst.msk [vmem:[%s21298_s23 + $0x90] sm:$0xff] %vm4959_vm8, %v4900_v6  ;;  %v23433_v6 = vld [vmem:[#allocation4 + $0xb4] sm:$0xff] }
 0x352   : > { %19473 = vmatmul.mubr.msk.f32.gmra.mxu0 %vm528_vm5, %v23417_v37  ;;  %v4902_v54 = vpop.permute.xlu1 %4901 }
 0x353   : > { %19523 = vmatmul.mubr.msk.f32.gmra.mxu1 %vm528_vm5, %v22927_v46  ;;  %19475 = vmatprep.mubr.msk.f32.mxu0 %vm528_vm5, %v23423_v20  ;;  %4979 = vst.msk [vmem:[%s21298_s23 + $0x98] sm:$0xff] %vm4959_vm8, %v4902_v54  ;;  %v4904_v15 = vpop.permute.xlu0 %4903  ;;  %v23439_v46 = vld [vmem:[#allocation4 + $0xc4] sm:$0xff] }
 0x354   : > { %19525 = vmatprep.mubr.msk.f32.mxu1 %vm528_vm5, %v22946_v24  ;;  %4980 = vst.msk [vmem:[%s21298_s23 + $0xa0] sm:$0xff] %vm4959_vm8, %v4904_v15  ;;  %v23449_v15 = vld [vmem:[#allocation4 + $0xcc] sm:$0xff] }
 0x356   : > { %19476 = vmatmul.mubr.msk.f32.gmra.mxu0 %vm528_vm5, %v23433_v6  ;;  %v4906_v24 = vpop.permute.xlu1 %4905 }
 0x357   : > { %19526 = vmatmul.mubr.msk.f32.gmra.mxu1 %vm528_vm5, %v22954_v13  ;;  %19478 = vmatprep.mubr.msk.f32.mxu0 %vm528_vm5, %v23439_v46  ;;  %4981 = vst.msk [vmem:[%s21298_s23 + $0xa8] sm:$0xff] %vm4959_vm8, %v4906_v24  ;;  %v4908_v54 = vpop.permute.xlu0 %4907  ;;  %v23455_v13 = vld [vmem:[#allocation4 + $0xdc] sm:$0xff] }
 0x358   : > { %19528 = vmatprep.mubr.msk.f32.mxu1 %vm528_vm5, %v22971_v30  ;;  %4982 = vst.msk [vmem:[%s21298_s23 + $0xb0] sm:$0xff] %vm4959_vm8, %v4908_v54  ;;  %v23465_v54 = vld [vmem:[#allocation4 + $0xe4] sm:$0xff] }
 0x35a   : > { %19479 = vmatmul.mubr.msk.f32.gmra.mxu0 %vm528_vm5, %v23449_v15  ;;  %v4910_v30 = vpop.permute.xlu1 %4909 }
 0x35b   : > { %19529 = vmatmul.mubr.msk.f32.gmra.mxu1 %vm528_vm5, %v22979_v41  ;;  %19481 = vmatprep.mubr.msk.f32.mxu0 %vm528_vm5, %v23455_v13  ;;  %4983 = vst.msk [vmem:[%s21298_s23 + $0xb8] sm:$0xff] %vm4959_vm8, %v4910_v30  ;;  %v4912_v24 = vpop.permute.xlu0 %4911  ;;  %v23471_v41 = vld [vmem:[#allocation4 + $0xf4] sm:$0xff] }
 0x35c   : > { %19531 = vmatprep.mubr.msk.f32.mxu1 %vm528_vm5, %v22996_v14  ;;  %4984 = vst.msk [vmem:[%s21298_s23 + $0xc0] sm:$0xff] %vm4959_vm8, %v4912_v24  ;;  %v23481_v24 = vld [vmem:[#allocation4 + $0xfc] sm:$0xff] }
 0x35e   : > { %19482 = vmatmul.mubr.msk.f32.gmra.mxu0 %vm528_vm5, %v23465_v54  ;;  %v4914_v14 = vpop.permute.xlu1 %4913 }
 0x35f   : > { %19532 = vmatmul.mubr.msk.f32.gmra.mxu1 %vm528_vm5, %v23004_v32  ;;  %19484 = vmatprep.mubr.msk.f32.mxu0 %vm528_vm5, %v23471_v41  ;;  %4985 = vst.msk [vmem:[%s21298_s23 + $0xc8] sm:$0xff] %vm4959_vm8, %v4914_v14  ;;  %v4916_v30 = vpop.permute.xlu0 %4915  ;;  %v23487_v32 = vld [vmem:[#allocation4 + $0x10c] sm:$0xff] }
 0x360   : > { %19534 = vmatprep.mubr.msk.f32.mxu1 %vm528_vm5, %v23020_v31  ;;  %4986 = vst.msk [vmem:[%s21298_s23 + $0xd0] sm:$0xff] %vm4959_vm8, %v4916_v30  ;;  %v23497_v30 = vld [vmem:[#allocation4 + $0x114] sm:$0xff] }
 0x361   : > { %27352 = vst [vmem:[#allocation8_spill] sm:$0xff] %v23497_v30 }
 0x362   : > { %19485 = vmatmul.mubr.msk.f32.gmra.mxu0 %vm528_vm5, %v23481_v24  ;;  %v4918_v31 = vpop.permute.xlu1 %4917 }
 0x363   : > { %19535 = vmatmul.mubr.msk.f32.gmra.mxu1 %vm528_vm5, %v23028_v52  ;;  %19487 = vmatprep.mubr.msk.f32.mxu0 %vm528_vm5, %v23487_v32  ;;  %4987 = vst.msk [vmem:[%s21298_s23 + $0xd8] sm:$0xff] %vm4959_vm8, %v4918_v31  ;;  %v4920_v14 = vpop.permute.xlu0 %4919  ;;  %v23503_v52 = vld [vmem:[#allocation4 + $0x124] sm:$0xff] }
 0x364   : > { %19537 = vmatprep.mubr.msk.f32.mxu1 %vm528_vm5, %v23042_v16  ;;  %4988 = vst.msk [vmem:[%s21298_s23 + $0xe0] sm:$0xff] %vm4959_vm8, %v4920_v14  ;;  %v23513_v14 = vld [vmem:[#allocation4 + $0x12c] sm:$0xff] }
 0x366   : > { %19488 = vmatmul.mubr.msk.f32.gmra.mxu0 %vm528_vm5, %v23497_v30  ;;  %v4922_v16 = vpop.permute.xlu1 %4921  ;;  %v23519_v30 = vld [vmem:[#allocation4 + $0x13c] sm:$0xff] }
 0x367   : > { %19538 = vmatmul.mubr.msk.f32.gmra.mxu1 %vm528_vm5, %v23050_v1  ;;  %19490 = vmatprep.mubr.msk.f32.mxu0 %vm528_vm5, %v23503_v52  ;;  %4989 = vst.msk [vmem:[%s21298_s23 + $0xe8] sm:$0xff] %vm4959_vm8, %v4922_v16  ;;  %v4924_v31 = vpop.permute.xlu0 %4923  ;;  %v23533_v16 = vld [vmem:[#allocation4 + $0x154] sm:$0xff] }
 0x368   : > { %19540 = vmatprep.mubr.msk.f32.mxu1 %vm528_vm5, %v23063_v58  ;;  %4990 = vst.msk [vmem:[%s21298_s23 + $0xf0] sm:$0xff] %vm4959_vm8, %v4924_v31  ;;  %v23529_v58 = vld [vmem:[#allocation4 + $0x144] sm:$0xff]  ;;  %v23545_v31 = vld [vmem:[#allocation4 + $0x16c] sm:$0xff] }
 0x369   : > { %27354 = vst [vmem:[#allocation22_spill] sm:$0xff] %v23545_v31 }
 0x36a   : > { %19491 = vmatmul.mubr.msk.f32.gmra.mxu0 %vm528_vm5, %v23513_v14  ;;  %v4926_v1 = vpop.permute.xlu1 %4925 }
 0x36b   : > { %19541 = vmatmul.mubr.msk.f32.gmra.mxu1 %vm528_vm5, %v23070_v34  ;;  %19493 = vmatprep.mubr.msk.f32.mxu0 %vm528_vm5, %v23519_v30  ;;  %4991 = vst.msk [vmem:[%s21298_s23 + $0xf8] sm:$0xff] %vm4959_vm8, %v4926_v1  ;;  %v23541_v34 = vld [vmem:[#allocation4 + $0x15c] sm:$0xff]  ;;  %v23552_v1 = vld [vmem:[#allocation4 + $0x174] sm:$0xff] }
 0x36c   : > { %19543 = vmatprep.mubr.msk.f32.mxu1 %vm528_vm5, %v23082_v38  ;;  %27353 = vst [vmem:[#allocation47_spill] sm:$0xff] %v23541_v34  ;;  %v7210_v38 = vld [vmem:[#allocation4 + $0x180] sm:$0xff]  ;;  %27355 = vst [vmem:[#allocation50_spill] sm:$0xff] %v23552_v1 }
 0x36e   : > { %19494 = vmatmul.mubr.msk.f32.gmra.mxu0 %vm528_vm5, %v23529_v58 }
 0x36f   : > { %19544 = vmatmul.mubr.msk.f32.gmra.mxu1 %vm528_vm5, %v23089_v8  ;;  %19496 = vmatprep.mubr.msk.f32.mxu0 %vm528_vm5, %v23533_v16  ;;  %v7570_v8 = vld [vmem:[#allocation4 + $0x19] sm:$0xff] }
 0x370   : > { %19546 = vmatprep.mubr.msk.f32.mxu1 %vm528_vm5, %v23098_v36  ;;  %v7211_v36 = vld [vmem:[#allocation4 + $0x188] sm:$0xff] }
 0x372   : > { %19497 = vmatmul.mubr.msk.f32.gmra.mxu0 %vm528_vm5, %v23541_v34  ;;  %v7571_v34 = vld [vmem:[#allocation4 + $0x21] sm:$0xff] }
 0x373   : > { %19547 = vmatmul.mubr.msk.f32.gmra.mxu1 %vm528_vm5, %v23103_v4  ;;  %19499 = vmatprep.mubr.msk.f32.mxu0 %vm528_vm5, %v23545_v31  ;;  %v23561_v4 = vld [vmem:[#allocation4 + $0x31] sm:$0xff]  ;;  %v23623_v31 = vld [vmem:[#allocation4 + $0x79] sm:$0xff] }
 0x374   : > { %19549 = vmatprep.mubr.msk.f32.mxu1 %vm528_vm5, %v7210_v38  ;;  %27356 = vst [vmem:[#allocation49_spill] sm:$0xff] %v23561_v4  ;;  %v23566_v38 = vld [vmem:[%s26929_s9 + $0x16] sm:$0x3]  ;;  %27362 = vst [vmem:[#allocation48_spill] sm:$0xff] %v23623_v31 }
 0x376   : > { %19500 = vmatmul.mubr.msk.f32.gmra.mxu0 %vm528_vm5, %v23552_v1 }
 0x377   : > { %19550 = vmatmul.mubr.msk.f32.gmra.mxu1 %vm528_vm5, %v7211_v36  ;;  %19554 = vmatprep.mubr.msk.f32.mxu0 %vm528_vm5, %v7570_v8  ;;  %v23575_v8 = vld [vmem:[%s26929_s9 + $0x14] sm:$0x3]  ;;  %v23607_v36 = vld [vmem:[#allocation4 + $0x61] sm:$0xff] }
 0x378   : > { %19604 = vmatprep.mubr.msk.f32.mxu1 %vm528_vm5, %v23114_v25  ;;  %v23583_v25 = vld [vmem:[#allocation4 + $0x39] sm:$0xff]  ;;  %27360 = vst [vmem:[#allocation52_spill] sm:$0xff] %v23607_v36 }
 0x379   : > { %27357 = vst [vmem:[#allocation21_spill] sm:$0xff] %v23583_v25 }
 0x37a   : > { %19555 = vmatmul.mubr.msk.f32.vlgmr.msra.gmra.mxu0 %vm528_vm5, %v7571_v34 }
 0x37b   : > { %19605 = vmatmul.mubr.msk.f32.vlgmr.msra.gmra.mxu1 %vm528_vm5, %v23129_v55  ;;  %19557 = vmatprep.mubr.msk.f32.mxu0 %vm528_vm5, %v23561_v4  ;;  %v23589_v55 = vld [vmem:[#allocation4 + $0x49] sm:$0xff] }
 0x37c   : > { %19703 = vmatpush3.msk.msra.mxu1 %vm5456_vm4, %v23321_v63  ;;  %19607 = vmatprep.mubr.msk.f32.mxu1 %vm528_vm5, %v23154_v43  ;;  %27358 = vst [vmem:[#allocation9_spill] sm:$0xff] %v23589_v55  ;;  %v23597_v43 = vpop.f32.mrf.mxu0  ;;  %v23601_v63 = vpop.f32.mrf.mxu1  ;;  %v23617_v4 = vld [vmem:[#allocation4 + $0x69] sm:$0xff] }
 0x37d   : > { %19653 = vmatpush3.msk.msra.mxu0 %vm5456_vm4, %v23331_v62  ;;  %19802 = vmatprep.subr.msk.mxu1 %vm5456_vm4, %v23566_v38  ;;  %v23603_v62 = vld [vmem:[#allocation4 + $0x51] sm:$0xff]  ;;  %27361 = vst [vmem:[#allocation51_spill] sm:$0xff] %v23617_v4 }
 0x37e   : > { %19558 = vmatmul.mubr.msk.f32.gmra.mxu0 %vm528_vm5, %v23583_v25  ;;  %19752 = vmatprep.subr.msk.mxu0 %vm5456_vm4, %v23575_v8  ;;  %27359 = vst [vmem:[#allocation23_spill] sm:$0xff] %v23603_v62 }
 0x37f   : > { %19608 = vmatmul.mubr.msk.f32.gmra.mxu1 %vm528_vm5, %v23162_v42  ;;  %19560 = vmatprep.mubr.msk.f32.mxu0 %vm528_vm5, %v23589_v55 }
 0x380   : > { %19610 = vmatprep.mubr.msk.f32.mxu1 %vm528_vm5, %v23166_v33 }
 0x382   : > { %v19262_v34 = vpop.f32.mrf.mxu0  ;;  %19561 = vmatmul.mubr.msk.f32.gmra.mxu0 %vm528_vm5, %v23603_v62 }
 0x383   : > { %v19312_v25 = vpop.f32.mrf.mxu1  ;;  %19611 = vmatmul.mubr.msk.f32.gmra.mxu1 %vm528_vm5, %v23174_v35  ;;  %19563 = vmatprep.mubr.msk.f32.mxu0 %vm528_vm5, %v23607_v36  ;;  %v23639_v36 = vld [vmem:[#allocation4 + $0x91] sm:$0xff] }
 0x384   : > { %v23613_v42 = vadd.f32 %v19312_v25, %v19262_v34  ;;  %19613 = vmatprep.mubr.msk.f32.mxu1 %vm528_vm5, %v23178_v27  ;;  %v5546_v33 = vpop.f32.mrf.mxu0  ;;  %v23633_v34 = vld [vmem:[#allocation4 + $0x81] sm:$0xff]  ;;  %27364 = vst [vmem:[#allocation41_spill] sm:$0xff] %v23639_v36 }
 0x385   : > { %v5870_v55 = vpop.f32.mrf.mxu1  ;;  %27363 = vst [vmem:[#allocation24_spill] sm:$0xff] %v23633_v34 }
 0x386   : > { %v23619_v1 = vadd.f32 %v5870_v55, %v5546_v33  ;;  %v19265_v62 = vpop.f32.mrf.mxu0  ;;  %19564 = vmatmul.mubr.msk.f32.gmra.mxu0 %vm528_vm5, %v23617_v4 }
 0x387   : > { %v19315_v35 = vpop.f32.mrf.mxu1  ;;  %19614 = vmatmul.mubr.msk.f32.gmra.mxu1 %vm528_vm5, %v23184_v44  ;;  %19566 = vmatprep.mubr.msk.f32.mxu0 %vm528_vm5, %v23623_v31  ;;  %v23655_v31 = vld [vmem:[#allocation4 + $0xa9] sm:$0xff] }
 0x388   : > { %v23629_v27 = vadd.f32 %v19315_v35, %v19265_v62  ;;  %19616 = vmatprep.mubr.msk.f32.mxu1 %vm528_vm5, %v23188_v51  ;;  %v5556_v25 = vpop.f32.mrf.mxu0  ;;  %27366 = vst [vmem:[#allocation42_spill] sm:$0xff] %v23655_v31 }
 0x389   : > { %v5880_v55 = vpop.f32.mrf.mxu1 }
 0x38a   : > { %v23635_v33 = vadd.f32 %v5880_v55, %v5556_v25  ;;  %v19268_v4 = vpop.f32.mrf.mxu0  ;;  %19567 = vmatmul.mubr.msk.f32.gmra.mxu0 %vm528_vm5, %v23633_v34  ;;  %v23649_v25 = vld [vmem:[#allocation4 + $0x99] sm:$0xff] }
 0x38b   : > { %v19318_v44 = vpop.f32.mrf.mxu1  ;;  %19617 = vmatmul.mubr.msk.f32.gmra.mxu1 %vm528_vm5, %v23194_v12  ;;  %19569 = vmatprep.mubr.msk.f32.mxu0 %vm528_vm5, %v23639_v36  ;;  %27365 = vst [vmem:[#allocation10_spill] sm:$0xff] %v23649_v25  ;;  %v23671_v36 = vld [vmem:[#allocation4 + $0xc1] sm:$0xff] }
 0x38c   : > { %v23645_v51 = vadd.f32 %v19318_v44, %v19268_v4  ;;  %19619 = vmatprep.mubr.msk.f32.mxu1 %vm528_vm5, %v23198_v48  ;;  %v5566_v62 = vpop.f32.mrf.mxu0  ;;  %27368 = vst [vmem:[#allocation26_spill] sm:$0xff] %v23671_v36 }
 0x38d   : > { %v5890_v35 = vpop.f32.mrf.mxu1 }
 0x38e   : > { %v23651_v55 = vadd.f32 %v5890_v35, %v5566_v62  ;;  %v19271_v34 = vpop.f32.mrf.mxu0  ;;  %19570 = vmatmul.mubr.msk.f32.gmra.mxu0 %vm528_vm5, %v23649_v25  ;;  %v23665_v62 = vld [vmem:[#allocation4 + $0xb1] sm:$0xff] }
 0x38f   : > { %v19321_v12 = vpop.f32.mrf.mxu1  ;;  %19620 = vmatmul.mubr.msk.f32.gmra.mxu1 %vm528_vm5, %v23204_v39  ;;  %19572 = vmatprep.mubr.msk.f32.mxu0 %vm528_vm5, %v23655_v31  ;;  %27367 = vst [vmem:[#allocation12_spill] sm:$0xff] %v23665_v62  ;;  %v23687_v31 = vld [vmem:[#allocation4 + $0xd9] sm:$0xff] }
 0x390   : > { %v23661_v48 = vadd.f32 %v19321_v12, %v19271_v34  ;;  %19622 = vmatprep.mubr.msk.f32.mxu1 %vm528_vm5, %v23208_v56  ;;  %v5576_v4 = vpop.f32.mrf.mxu0  ;;  %27370 = vst [vmem:[#allocation53_spill] sm:$0xff] %v23687_v31 }
 0x391   : > { %v5900_v44 = vpop.f32.mrf.mxu1 }
 0x392   : > { %v23667_v35 = vadd.f32 %v5900_v44, %v5576_v4  ;;  %v19274_v25 = vpop.f32.mrf.mxu0  ;;  %19573 = vmatmul.mubr.msk.f32.gmra.mxu0 %vm528_vm5, %v23665_v62  ;;  %v23681_v4 = vld [vmem:[#allocation4 + $0xc9] sm:$0xff] }
 0x393   : > { %v19324_v39 = vpop.f32.mrf.mxu1  ;;  %19623 = vmatmul.mubr.msk.f32.gmra.mxu1 %vm528_vm5, %v23214_v17  ;;  %19575 = vmatprep.mubr.msk.f32.mxu0 %vm528_vm5, %v23671_v36  ;;  %27369 = vst [vmem:[#allocation54_spill] sm:$0xff] %v23681_v4  ;;  %v23703_v36 = vld [vmem:[#allocation4 + $0xf1] sm:$0xff] }
 0x394   : > { %v23677_v56 = vadd.f32 %v19324_v39, %v19274_v25  ;;  %19625 = vmatprep.mubr.msk.f32.mxu1 %vm528_vm5, %v23218_v3  ;;  %v5586_v34 = vpop.f32.mrf.mxu0  ;;  %27372 = vst [vmem:[#allocation11_spill] sm:$0xff] %v23703_v36 }
 0x395   : > { %v5910_v12 = vpop.f32.mrf.mxu1 }
 0x396   : > { %v23683_v44 = vadd.f32 %v5910_v12, %v5586_v34  ;;  %v19277_v62 = vpop.f32.mrf.mxu0  ;;  %19576 = vmatmul.mubr.msk.f32.gmra.mxu0 %vm528_vm5, %v23681_v4  ;;  %v23697_v34 = vld [vmem:[#allocation4 + $0xe1] sm:$0xff] }
 0x397   : > { %v19327_v17 = vpop.f32.mrf.mxu1  ;;  %19626 = vmatmul.mubr.msk.f32.gmra.mxu1 %vm528_vm5, %v23224_v7  ;;  %19578 = vmatprep.mubr.msk.f32.mxu0 %vm528_vm5, %v23687_v31  ;;  %27371 = vst [vmem:[#allocation25_spill] sm:$0xff] %v23697_v34  ;;  %v23719_v31 = vld [vmem:[#allocation4 + $0x109] sm:$0xff] }
 0x398   : > { %v23693_v3 = vadd.f32 %v19327_v17, %v19277_v62  ;;  %19628 = vmatprep.mubr.msk.f32.mxu1 %vm528_vm5, %v23228_v49  ;;  %v5596_v25 = vpop.f32.mrf.mxu0  ;;  %27374 = vst [vmem:[#allocation27_spill] sm:$0xff] %v23719_v31 }
 0x399   : > { %v5920_v39 = vpop.f32.mrf.mxu1 }
 0x39a   : > { %v23699_v12 = vadd.f32 %v5920_v39, %v5596_v25  ;;  %v19280_v4 = vpop.f32.mrf.mxu0  ;;  %19579 = vmatmul.mubr.msk.f32.gmra.mxu0 %vm528_vm5, %v23697_v34  ;;  %v23713_v25 = vld [vmem:[#allocation4 + $0xf9] sm:$0xff] }
 0x39b   : > { %v19330_v7 = vpop.f32.mrf.mxu1  ;;  %19629 = vmatmul.mubr.msk.f32.gmra.mxu1 %vm528_vm5, %v23234_v26  ;;  %19581 = vmatprep.mubr.msk.f32.mxu0 %vm528_vm5, %v23703_v36  ;;  %27373 = vst [vmem:[#allocation13_spill] sm:$0xff] %v23713_v25  ;;  %v23735_v36 = vld [vmem:[#allocation4 + $0x121] sm:$0xff] }
 0x39c   : > { %v23709_v49 = vadd.f32 %v19330_v7, %v19280_v4  ;;  %19631 = vmatprep.mubr.msk.f32.mxu1 %vm528_vm5, %v23238_v19  ;;  %v5606_v62 = vpop.f32.mrf.mxu0  ;;  %27376 = vst [vmem:[#allocation55_spill] sm:$0xff] %v23735_v36 }
 0x39d   : > { %v5930_v17 = vpop.f32.mrf.mxu1 }
 0x39e   : > { %v23715_v39 = vadd.f32 %v5930_v17, %v5606_v62  ;;  %v19283_v34 = vpop.f32.mrf.mxu0  ;;  %19582 = vmatmul.mubr.msk.f32.gmra.mxu0 %vm528_vm5, %v23713_v25  ;;  %v23729_v62 = vld [vmem:[#allocation4 + $0x111] sm:$0xff] }
 0x39f   : > { %v19333_v26 = vpop.f32.mrf.mxu1  ;;  %19632 = vmatmul.mubr.msk.f32.gmra.mxu1 %vm528_vm5, %v23244_v53  ;;  %19584 = vmatprep.mubr.msk.f32.mxu0 %vm528_vm5, %v23719_v31  ;;  %27375 = vst [vmem:[#allocation56_spill] sm:$0xff] %v23729_v62  ;;  %v23751_v31 = vld [vmem:[#allocation4 + $0x139] sm:$0xff] }
 0x3a0   : > { %v23725_v19 = vadd.f32 %v19333_v26, %v19283_v34  ;;  %19634 = vmatprep.mubr.msk.f32.mxu1 %vm528_vm5, %v23248_v45  ;;  %v5616_v4 = vpop.f32.mrf.mxu0  ;;  %27378 = vst [vmem:[#allocation43_spill] sm:$0xff] %v23751_v31 }
 0x3a1   : > { %v5940_v7 = vpop.f32.mrf.mxu1 }
 0x3a2   : > { %v23731_v17 = vadd.f32 %v5940_v7, %v5616_v4  ;;  %v19286_v25 = vpop.f32.mrf.mxu0  ;;  %19585 = vmatmul.mubr.msk.f32.gmra.mxu0 %vm528_vm5, %v23729_v62  ;;  %v23745_v4 = vld [vmem:[#allocation4 + $0x129] sm:$0xff] }
 0x3a3   : > { %v19336_v53 = vpop.f32.mrf.mxu1  ;;  %19635 = vmatmul.mubr.msk.f32.gmra.mxu1 %vm528_vm5, %v23254_v40  ;;  %19587 = vmatprep.mubr.msk.f32.mxu0 %vm528_vm5, %v23735_v36  ;;  %27377 = vst [vmem:[#allocation28_spill] sm:$0xff] %v23745_v4  ;;  %v23767_v36 = vld [vmem:[#allocation4 + $0x151] sm:$0xff] }
 0x3a4   : > { %v23741_v45 = vadd.f32 %v19336_v53, %v19286_v25  ;;  %19637 = vmatprep.mubr.msk.f32.mxu1 %vm528_vm5, %v23258_v9  ;;  %v5626_v34 = vpop.f32.mrf.mxu0  ;;  %27380 = vst [vmem:[#allocation44_spill] sm:$0xff] %v23767_v36 }
 0x3a5   : > { %v5950_v26 = vpop.f32.mrf.mxu1 }
 0x3a6   : > { %v23747_v7 = vadd.f32 %v5950_v26, %v5626_v34  ;;  %v19289_v62 = vpop.f32.mrf.mxu0  ;;  %19588 = vmatmul.mubr.msk.f32.gmra.mxu0 %vm528_vm5, %v23745_v4  ;;  %v23761_v34 = vld [vmem:[#allocation4 + $0x141] sm:$0xff] }
 0x3a7   : > { %v19339_v40 = vpop.f32.mrf.mxu1  ;;  %19638 = vmatmul.mubr.msk.f32.gmra.mxu1 %vm528_vm5, %v23264_v57  ;;  %19590 = vmatprep.mubr.msk.f32.mxu0 %vm528_vm5, %v23751_v31  ;;  %27379 = vst [vmem:[#allocation14_spill] sm:$0xff] %v23761_v34  ;;  %v23783_v31 = vld [vmem:[#allocation4 + $0x169] sm:$0xff] }
 0x3a8   : > { %v23757_v9 = vadd.f32 %v19339_v40, %v19289_v62  ;;  %19640 = vmatprep.mubr.msk.f32.mxu1 %vm528_vm5, %v23268_v21  ;;  %v5636_v25 = vpop.f32.mrf.mxu0  ;;  %27382 = vst [vmem:[#allocation30_spill] sm:$0xff] %v23783_v31 }
 0x3a9   : > { %v5960_v53 = vpop.f32.mrf.mxu1 }
 0x3aa   : > { %v23763_v26 = vadd.f32 %v5960_v53, %v5636_v25  ;;  %v19292_v4 = vpop.f32.mrf.mxu0  ;;  %19591 = vmatmul.mubr.msk.f32.gmra.mxu0 %vm528_vm5, %v23761_v34  ;;  %v23777_v25 = vld [vmem:[#allocation4 + $0x159] sm:$0xff] }
 0x3ab   : > { %v19342_v57 = vpop.f32.mrf.mxu1  ;;  %19641 = vmatmul.mubr.msk.f32.gmra.mxu1 %vm528_vm5, %v23276_v11  ;;  %19593 = vmatprep.mubr.msk.f32.mxu0 %vm528_vm5, %v23767_v36  ;;  %27381 = vst [vmem:[#allocation16_spill] sm:$0xff] %v23777_v25  ;;  %v23799_v36 = vld [vmem:[#allocation4 + $0x181] sm:$0xff] }
 0x3ac   : > { %v23773_v21 = vadd.f32 %v19342_v57, %v19292_v4  ;;  %19643 = vmatprep.mubr.msk.f32.mxu1 %vm528_vm5, %v23280_v2  ;;  %v5646_v62 = vpop.f32.mrf.mxu0  ;;  %27386 = vst [vmem:[#allocation15_spill] sm:$0xff] %v23799_v36 }
 0x3ad   : > { %v5970_v40 = vpop.f32.mrf.mxu1 }
 0x3ae   : > { %v23779_v53 = vadd.f32 %v5970_v40, %v5646_v62  ;;  %v19295_v34 = vpop.f32.mrf.mxu0  ;;  %19594 = vmatmul.mubr.msk.f32.gmra.mxu0 %vm528_vm5, %v23777_v25  ;;  %v23793_v62 = vld [vmem:[#allocation4 + $0x171] sm:$0xff] }
 0x3af   : > { %v19345_v11 = vpop.f32.mrf.mxu1  ;;  %19644 = vmatmul.mubr.msk.f32.gmra.mxu1 %vm528_vm5, %v23290_v47  ;;  %19596 = vmatprep.mubr.msk.f32.mxu0 %vm528_vm5, %v23783_v31  ;;  %27384 = vst [vmem:[#allocation57_spill] sm:$0xff] %v23793_v62  ;;  %v23808_v31 = vld [vmem:[#allocation4 + $0x189] sm:$0xff] }
 0x3b0   : > { %v23789_v2 = vadd.f32 %v19345_v11, %v19295_v34  ;;  %19646 = vmatprep.mubr.msk.f32.mxu1 %vm528_vm5, %v23294_v60  ;;  %v5656_v4 = vpop.f32.mrf.mxu0  ;;  %v7990_v60 = vld [vmem:[#allocation4 + $0x182] sm:$0xff]  ;;  %27387 = vst [vmem:[#allocation17_spill] sm:$0xff] %v23808_v31 }
 0x3b1   : > { %v5980_v57 = vpop.f32.mrf.mxu1 }
 0x3b2   : > { %27383 = vst [vmem:[#allocation58_spill] sm:$0xff] %v23789_v2  ;;  %v23795_v40 = vadd.f32 %v5980_v57, %v5656_v4  ;;  %v19298_v25 = vpop.f32.mrf.mxu0  ;;  %19597 = vmatmul.mubr.msk.f32.gmra.mxu0 %vm528_vm5, %v23793_v62  ;;  %v8350_v4 = vld [vmem:[#allocation4 + $0x1b] sm:$0xff] }
 0x3b3   : > { %v19348_v47 = vpop.f32.mrf.mxu1  ;;  %19647 = vmatmul.mubr.msk.f32.gmra.mxu1 %vm528_vm5, %v23302_v23  ;;  %19599 = vmatprep.mubr.msk.f32.mxu0 %vm528_vm5, %v23799_v36  ;;  %v7991_v23 = vld [vmem:[#allocation4 + $0x18a] sm:$0xff] }
 0x3b4   : > { %27385 = vst [vmem:[#allocation29_spill] sm:$0xff] %v23795_v40  ;;  %v23805_v34 = vadd.f32 %v19348_v47, %v19298_v25  ;;  %19649 = vmatprep.mubr.msk.f32.mxu1 %vm528_vm5, %v7990_v60  ;;  %v5666_v11 = vpop.f32.mrf.mxu0  ;;  %v8351_v25 = vld [vmem:[#allocation4 + $0x23] sm:$0xff] }
 0x3b5   : > { %v5990_v57 = vpop.f32.mrf.mxu1 }
 0x3b6   : > { %v23810_v62 = vadd.f32 %v5990_v57, %v5666_v11  ;;  %v19301_v40 = vpop.f32.mrf.mxu0  ;;  %19600 = vmatmul.mubr.msk.f32.gmra.mxu0 %vm528_vm5, %v23808_v31  ;;  %v23823_v31 = vld [vmem:[#allocation4 + $0x33] sm:$0xff] }
 0x3b7   : > { %v19351_v2 = vpop.f32.mrf.mxu1  ;;  %19650 = vmatmul.mubr.msk.f32.gmra.mxu1 %vm528_vm5, %v7991_v23  ;;  %19654 = vmatprep.mubr.msk.f32.mxu0 %vm528_vm5, %v8350_v4  ;;  %27389 = vst [vmem:[#allocation60_spill] sm:$0xff] %v23823_v31  ;;  %v23828_v23 = vld [vmem:[%s26929_s9 + $0x1a] sm:$0x3] }
 0x3b8   : > { %v23816_v47 = vadd.f32 %v19351_v2, %v19301_v40  ;;  %v5676_v60 = vpop.f32.mrf.mxu0  ;;  %19704 = vmatprep.mubr.msk.f32.mxu1 %vm528_vm5, %v23316_v59  ;;  %27390 = vst [vmem:[#allocation59_spill] sm:$0xff] %v23828_v23  ;;  %v5851_v2 = vadd.f32 %v23150_v61, %v23148_v10  ;;  %v27391_v40 = vld [vmem:[#allocation39_spill] sm:$0xff]  ;;  %v27392_v59 = vld [vmem:[#allocation46_spill] sm:$0xff] }
 0x3b9   : > { %v6000_v36 = vpop.f32.mrf.mxu1 }
 0x3ba   : > { %27388 = vst [vmem:[#allocation31_spill] sm:$0xff] %v23816_v47  ;;  %v23820_v11 = vadd.f32 %v6000_v36, %v5676_v60  ;;  %v19356_v57 = vpop.f32.mrf.mxu0  ;;  %19655 = vmatmul.mubr.msk.f32.vlgmr.msra.gmra.mxu0 %vm528_vm5, %v8351_v25  ;;  %v23840_v36 = vld [vmem:[%s26929_s9 + $0x18] sm:$0x3]  ;;  %v27394_v25 = vld [vmem:[#allocation20_spill] sm:$0xff] }
 0x3bb   : > { %v6368_v4 = vadd.f32 %v19356_v57, %v27391_v40  ;;  %v19406_v47 = vpop.f32.mrf.mxu1  ;;  %19705 = vmatmul.mubr.msk.f32.vlgmr.msra.gmra.mxu1 %vm528_vm5, %v27392_v59  ;;  %19657 = vmatprep.mubr.msk.f32.mxu0 %vm528_vm5, %v23823_v31  ;;  %27393 = vst [vmem:[#allocation32_spill] sm:$0xff] %v23840_v36  ;;  %v23850_v40 = vld [vmem:[#allocation4 + $0x3b] sm:$0xff] }
 0x3bc   : > { %19803 = vmatpush3.msk.msra.mxu1 %vm5456_vm4, %v23566_v38  ;;  %19707 = vmatprep.mubr.msk.f32.mxu1 %vm528_vm5, %v27394_v25  ;;  %v6208_v10 = vpop.f32.mrf.mxu0  ;;  %27395 = vst [vmem:[#allocation45_spill] sm:$0xff] %v23850_v40  ;;  %v23856_v38 = vld [vmem:[#allocation4 + $0x4b] sm:$0xff] }
 0x3bd   : > { %v23846_v61 = vadd.f32 %v19406_v47, %v6368_v4  ;;  %v6367_v60 = vadd.f32 %v6208_v10, %v5851_v2  ;;  %v6598_v57 = vpop.f32.mrf.mxu1  ;;  %19753 = vmatpush3.msk.msra.mxu0 %vm5456_vm4, %v23575_v8  ;;  %19902 = vmatprep.subr.msk.mxu1 %vm5456_vm4, %v23828_v23  ;;  %v5861_v47 = vadd.f32 %v23601_v63, %v23597_v43  ;;  %v27396_v8 = vld [vmem:[#allocation38_spill] sm:$0xff]  ;;  %v27397_v10 = vld [vmem:[#allocation40_spill] sm:$0xff] }
 0x3be   : > { %v19359_v59 = vpop.f32.mrf.mxu0  ;;  %19658 = vmatmul.mubr.msk.f32.gmra.mxu0 %vm528_vm5, %v23850_v40  ;;  %19852 = vmatprep.subr.msk.mxu0 %vm5456_vm4, %v23840_v36  ;;  %v23873_v43 = vld [vmem:[#allocation4 + $0x53] sm:$0xff] }
 0x3bf   : > { %v23862_v2 = vadd.f32 %v6598_v57, %v6367_v60  ;;  %v6370_v4 = vadd.f32 %v19359_v59, %v27396_v8  ;;  %v19409_v25 = vpop.f32.mrf.mxu1  ;;  %19708 = vmatmul.mubr.msk.f32.gmra.mxu1 %vm528_vm5, %v27397_v10  ;;  %19660 = vmatprep.mubr.msk.f32.mxu0 %vm528_vm5, %v23856_v38  ;;  %v23877_v60 = vld [vmem:[#allocation4 + $0x63] sm:$0xff] }
 0x3c0   : > { %19710 = vmatprep.mubr.msk.f32.mxu1 %vm528_vm5, %v23362_v18  ;;  %v6218_v40 = vpop.f32.mrf.mxu0 }
 0x3c1   : > { %v23871_v31 = vadd.f32 %v19409_v25, %v6370_v4  ;;  %v6369_v36 = vadd.f32 %v6218_v40, %v5861_v47  ;;  %v6608_v23 = vpop.f32.mrf.mxu1 }
 0x3c2   : > { %v19362_v63 = vpop.f32.mrf.mxu0  ;;  %19661 = vmatmul.mubr.msk.f32.gmra.mxu0 %vm528_vm5, %v23873_v43 }
 0x3c3   : > { %v23879_v57 = vadd.f32 %v6608_v23, %v6369_v36  ;;  %v6372_v59 = vadd.f32 %v19362_v63, %v23613_v42  ;;  %v19412_v8 = vpop.f32.mrf.mxu1  ;;  %19711 = vmatmul.mubr.msk.f32.gmra.mxu1 %vm528_vm5, %v23370_v5  ;;  %19663 = vmatprep.mubr.msk.f32.mxu0 %vm528_vm5, %v23877_v60  ;;  %v23891_v23 = vld [vmem:[#allocation4 + $0x6b] sm:$0xff]  ;;  %v23895_v42 = vld [vmem:[#allocation4 + $0x7b] sm:$0xff] }
 0x3c4   : > { %19713 = vmatprep.mubr.msk.f32.mxu1 %vm528_vm5, %v23376_v22  ;;  %v6228_v18 = vpop.f32.mrf.mxu0 }
 0x3c5   : > { %v23888_v40 = vadd.f32 %v19412_v8, %v6372_v59  ;;  %v6371_v47 = vadd.f32 %v6228_v18, %v23619_v1  ;;  %v6618_v4 = vpop.f32.mrf.mxu1  ;;  %v23909_v8 = vld [vmem:[#allocation4 + $0x83] sm:$0xff] }
 0x3c6   : > { %v19365_v36 = vpop.f32.mrf.mxu0  ;;  %19664 = vmatmul.mubr.msk.f32.gmra.mxu0 %vm528_vm5, %v23891_v23 }
 0x3c7   : > { %v23897_v5 = vadd.f32 %v6618_v4, %v6371_v47  ;;  %v6374_v25 = vadd.f32 %v19365_v36, %v23629_v27  ;;  %v19415_v10 = vpop.f32.mrf.mxu1  ;;  %19714 = vmatmul.mubr.msk.f32.gmra.mxu1 %vm528_vm5, %v23385_v29  ;;  %19666 = vmatprep.mubr.msk.f32.mxu0 %vm528_vm5, %v23895_v42  ;;  %v23913_v27 = vld [vmem:[#allocation4 + $0x93] sm:$0xff] }
 0x3c8   : > { %19716 = vmatprep.mubr.msk.f32.mxu1 %vm528_vm5, %v23391_v0  ;;  %v6238_v22 = vpop.f32.mrf.mxu0 }
 0x3c9   : > { %v23906_v1 = vadd.f32 %v19415_v10, %v6374_v25  ;;  %v6373_v63 = vadd.f32 %v6238_v22, %v23635_v33  ;;  %v6628_v59 = vpop.f32.mrf.mxu1  ;;  %v23927_v10 = vld [vmem:[#allocation4 + $0x9b] sm:$0xff] }
 0x3ca   : > { %v19368_v18 = vpop.f32.mrf.mxu0  ;;  %19667 = vmatmul.mubr.msk.f32.gmra.mxu0 %vm528_vm5, %v23909_v8 }
 0x3cb   : > { %v23915_v29 = vadd.f32 %v6628_v59, %v6373_v63  ;;  %v6376_v47 = vadd.f32 %v19368_v18, %v23645_v51  ;;  %v19418_v4 = vpop.f32.mrf.mxu1  ;;  %19717 = vmatmul.mubr.msk.f32.gmra.mxu1 %vm528_vm5, %v23401_v28  ;;  %19669 = vmatprep.mubr.msk.f32.mxu0 %vm528_vm5, %v23913_v27  ;;  %v23931_v51 = vld [vmem:[#allocation4 + $0xab] sm:$0xff] }
 0x3cc   : > { %19719 = vmatprep.mubr.msk.f32.mxu1 %vm528_vm5, %v23407_v50  ;;  %v6248_v0 = vpop.f32.mrf.mxu0 }
 0x3cd   : > { %v23924_v33 = vadd.f32 %v19418_v4, %v6376_v47  ;;  %v6375_v36 = vadd.f32 %v6248_v0, %v23651_v55  ;;  %v6638_v25 = vpop.f32.mrf.mxu1  ;;  %v23945_v4 = vld [vmem:[#allocation4 + $0xb3] sm:$0xff] }
 0x3ce   : > { %v19371_v22 = vpop.f32.mrf.mxu0  ;;  %19670 = vmatmul.mubr.msk.f32.gmra.mxu0 %vm528_vm5, %v23927_v10 }
 0x3cf   : > { %v23933_v28 = vadd.f32 %v6638_v25, %v6375_v36  ;;  %v6378_v63 = vadd.f32 %v19371_v22, %v23661_v48  ;;  %v19421_v59 = vpop.f32.mrf.mxu1  ;;  %19720 = vmatmul.mubr.msk.f32.gmra.mxu1 %vm528_vm5, %v23417_v37  ;;  %19672 = vmatprep.mubr.msk.f32.mxu0 %vm528_vm5, %v23931_v51  ;;  %v23949_v48 = vld [vmem:[#allocation4 + $0xc3] sm:$0xff] }
 0x3d0   : > { %19722 = vmatprep.mubr.msk.f32.mxu1 %vm528_vm5, %v23423_v20  ;;  %v6258_v50 = vpop.f32.mrf.mxu0 }
 0x3d1   : > { %v23942_v55 = vadd.f32 %v19421_v59, %v6378_v63  ;;  %v6377_v18 = vadd.f32 %v6258_v50, %v23667_v35  ;;  %v6648_v47 = vpop.f32.mrf.mxu1  ;;  %v23963_v59 = vld [vmem:[#allocation4 + $0xcb] sm:$0xff] }
 0x3d2   : > { %v19374_v0 = vpop.f32.mrf.mxu0  ;;  %19673 = vmatmul.mubr.msk.f32.gmra.mxu0 %vm528_vm5, %v23945_v4 }
 0x3d3   : > { %v23951_v37 = vadd.f32 %v6648_v47, %v6377_v18  ;;  %v6380_v36 = vadd.f32 %v19374_v0, %v23677_v56  ;;  %v19424_v25 = vpop.f32.mrf.mxu1  ;;  %19723 = vmatmul.mubr.msk.f32.gmra.mxu1 %vm528_vm5, %v23433_v6  ;;  %19675 = vmatprep.mubr.msk.f32.mxu0 %vm528_vm5, %v23949_v48  ;;  %v23967_v56 = vld [vmem:[#allocation4 + $0xdb] sm:$0xff] }
 0x3d4   : > { %19725 = vmatprep.mubr.msk.f32.mxu1 %vm528_vm5, %v23439_v46  ;;  %v6268_v20 = vpop.f32.mrf.mxu0 }
 0x3d5   : > { %v23960_v35 = vadd.f32 %v19424_v25, %v6380_v36  ;;  %v6379_v22 = vadd.f32 %v6268_v20, %v23683_v44  ;;  %v6658_v63 = vpop.f32.mrf.mxu1  ;;  %v23981_v25 = vld [vmem:[#allocation4 + $0xe3] sm:$0xff] }
 0x3d6   : > { %v19377_v50 = vpop.f32.mrf.mxu0  ;;  %19676 = vmatmul.mubr.msk.f32.gmra.mxu0 %vm528_vm5, %v23963_v59 }
 0x3d7   : > { %v23969_v6 = vadd.f32 %v6658_v63, %v6379_v22  ;;  %v6382_v18 = vadd.f32 %v19377_v50, %v23693_v3  ;;  %v19427_v47 = vpop.f32.mrf.mxu1  ;;  %19726 = vmatmul.mubr.msk.f32.gmra.mxu1 %vm528_vm5, %v23449_v15  ;;  %19678 = vmatprep.mubr.msk.f32.mxu0 %vm528_vm5, %v23967_v56  ;;  %v23985_v3 = vld [vmem:[#allocation4 + $0xf3] sm:$0xff] }
 0x3d8   : > { %19728 = vmatprep.mubr.msk.f32.mxu1 %vm528_vm5, %v23455_v13  ;;  %v6278_v46 = vpop.f32.mrf.mxu0 }
 0x3d9   : > { %v23978_v44 = vadd.f32 %v19427_v47, %v6382_v18  ;;  %v6381_v0 = vadd.f32 %v6278_v46, %v23699_v12  ;;  %v6668_v36 = vpop.f32.mrf.mxu1  ;;  %v23999_v47 = vld [vmem:[#allocation4 + $0xfb] sm:$0xff] }
 0x3da   : > { %v19380_v20 = vpop.f32.mrf.mxu0  ;;  %19679 = vmatmul.mubr.msk.f32.gmra.mxu0 %vm528_vm5, %v23981_v25 }
 0x3db   : > { %v23987_v15 = vadd.f32 %v6668_v36, %v6381_v0  ;;  %v6384_v22 = vadd.f32 %v19380_v20, %v23709_v49  ;;  %v19430_v63 = vpop.f32.mrf.mxu1  ;;  %19729 = vmatmul.mubr.msk.f32.gmra.mxu1 %vm528_vm5, %v23465_v54  ;;  %19681 = vmatprep.mubr.msk.f32.mxu0 %vm528_vm5, %v23985_v3  ;;  %v24003_v49 = vld [vmem:[#allocation4 + $0x10b] sm:$0xff] }
 0x3dc   : > { %19731 = vmatprep.mubr.msk.f32.mxu1 %vm528_vm5, %v23471_v41  ;;  %v6288_v13 = vpop.f32.mrf.mxu0 }
 0x3dd   : > { %v23996_v12 = vadd.f32 %v19430_v63, %v6384_v22  ;;  %v6383_v50 = vadd.f32 %v6288_v13, %v23715_v39  ;;  %v6678_v18 = vpop.f32.mrf.mxu1  ;;  %v24017_v63 = vld [vmem:[#allocation4 + $0x113] sm:$0xff] }
 0x3de   : > { %v19383_v46 = vpop.f32.mrf.mxu0  ;;  %19682 = vmatmul.mubr.msk.f32.gmra.mxu0 %vm528_vm5, %v23999_v47 }
 0x3df   : > { %v24005_v54 = vadd.f32 %v6678_v18, %v6383_v50  ;;  %v6386_v0 = vadd.f32 %v19383_v46, %v23725_v19  ;;  %v19433_v36 = vpop.f32.mrf.mxu1  ;;  %19732 = vmatmul.mubr.msk.f32.gmra.mxu1 %vm528_vm5, %v23481_v24  ;;  %19684 = vmatprep.mubr.msk.f32.mxu0 %vm528_vm5, %v24003_v49  ;;  %v24021_v19 = vld [vmem:[#allocation4 + $0x123] sm:$0xff] }
 0x3e0   : > { %19734 = vmatprep.mubr.msk.f32.mxu1 %vm528_vm5, %v23487_v32  ;;  %v6298_v41 = vpop.f32.mrf.mxu0  ;;  %27398 = vst [vmem:[#allocation18_spill] sm:$0xff] %v24021_v19  ;;  %v27399_v32 = vld [vmem:[#allocation8_spill] sm:$0xff] }
 0x3e1   : > { %v24014_v39 = vadd.f32 %v19433_v36, %v6386_v0  ;;  %v6385_v20 = vadd.f32 %v6298_v41, %v23731_v17  ;;  %v6688_v22 = vpop.f32.mrf.mxu1  ;;  %v24035_v41 = vld [vmem:[#allocation4 + $0x12b] sm:$0xff] }
 0x3e2   : > { %v19386_v13 = vpop.f32.mrf.mxu0  ;;  %19685 = vmatmul.mubr.msk.f32.gmra.mxu0 %vm528_vm5, %v24017_v63  ;;  %27400 = vst [vmem:[#allocation34_spill] sm:$0xff] %v24035_v41 }
 0x3e3   : > { %v24023_v24 = vadd.f32 %v6688_v22, %v6385_v20  ;;  %v6388_v50 = vadd.f32 %v19386_v13, %v23741_v45  ;;  %v19436_v18 = vpop.f32.mrf.mxu1  ;;  %19735 = vmatmul.mubr.msk.f32.gmra.mxu1 %vm528_vm5, %v27399_v32  ;;  %19687 = vmatprep.mubr.msk.f32.mxu0 %vm528_vm5, %v24021_v19  ;;  %v24039_v45 = vld [vmem:[#allocation4 + $0x13b] sm:$0xff] }
 0x3e4   : > { %19737 = vmatprep.mubr.msk.f32.mxu1 %vm528_vm5, %v23503_v52  ;;  %v6308_v17 = vpop.f32.mrf.mxu0  ;;  %27401 = vst [vmem:[#allocation61_spill] sm:$0xff] %v24039_v45 }
 0x3e5   : > { %v24032_v46 = vadd.f32 %v19436_v18, %v6388_v50  ;;  %v6387_v0 = vadd.f32 %v6308_v17, %v23747_v7  ;;  %v6698_v36 = vpop.f32.mrf.mxu1  ;;  %v24053_v17 = vld [vmem:[#allocation4 + $0x143] sm:$0xff] }
 0x3e6   : > { %v19389_v20 = vpop.f32.mrf.mxu0  ;;  %19688 = vmatmul.mubr.msk.f32.gmra.mxu0 %vm528_vm5, %v24035_v41  ;;  %27402 = vst [vmem:[#allocation33_spill] sm:$0xff] %v24053_v17 }
 0x3e7   : > { %v24041_v22 = vadd.f32 %v6698_v36, %v6387_v0  ;;  %v6390_v13 = vadd.f32 %v19389_v20, %v23757_v9  ;;  %v19439_v32 = vpop.f32.mrf.mxu1  ;;  %19738 = vmatmul.mubr.msk.f32.gmra.mxu1 %vm528_vm5, %v23513_v14  ;;  %19690 = vmatprep.mubr.msk.f32.mxu0 %vm528_vm5, %v24039_v45  ;;  %v24057_v9 = vld [vmem:[#allocation4 + $0x153] sm:$0xff] }
 0x3e8   : > { %19740 = vmatprep.mubr.msk.f32.mxu1 %vm528_vm5, %v23519_v30  ;;  %v6318_v52 = vpop.f32.mrf.mxu0  ;;  %27403 = vst [vmem:[#allocation19_spill] sm:$0xff] %v24057_v9 }
 0x3e9   : > { %v24050_v7 = vadd.f32 %v19439_v32, %v6390_v13  ;;  %v6389_v50 = vadd.f32 %v6318_v52, %v23763_v26  ;;  %v6708_v18 = vpop.f32.mrf.mxu1  ;;  %v24071_v52 = vld [vmem:[#allocation4 + $0x15b] sm:$0xff] }
 0x3ea   : > { %v19392_v0 = vpop.f32.mrf.mxu0  ;;  %19691 = vmatmul.mubr.msk.f32.gmra.mxu0 %vm528_vm5, %v24053_v17  ;;  %27404 = vst [vmem:[#allocation35_spill] sm:$0xff] %v24071_v52 }
 0x3eb   : > { %v24059_v14 = vadd.f32 %v6708_v18, %v6389_v50  ;;  %v6392_v36 = vadd.f32 %v19392_v0, %v23773_v21  ;;  %v19442_v20 = vpop.f32.mrf.mxu1  ;;  %19741 = vmatmul.mubr.msk.f32.gmra.mxu1 %vm528_vm5, %v23529_v58  ;;  %19693 = vmatprep.mubr.msk.f32.mxu0 %vm528_vm5, %v24057_v9  ;;  %v24075_v21 = vld [vmem:[#allocation4 + $0x16b] sm:$0xff] }
 0x3ec   : > { %19743 = vmatprep.mubr.msk.f32.mxu1 %vm528_vm5, %v23533_v16  ;;  %v6328_v30 = vpop.f32.mrf.mxu0  ;;  %27405 = vst [vmem:[#allocation62_spill] sm:$0xff] %v24075_v21  ;;  %v27406_v18 = vld [vmem:[#allocation58_spill] sm:$0xff]  ;;  %v27407_v16 = vld [vmem:[#allocation47_spill] sm:$0xff] }
 0x3ed   : > { %v24068_v26 = vadd.f32 %v19442_v20, %v6392_v36  ;;  %v6391_v13 = vadd.f32 %v6328_v30, %v23779_v53  ;;  %v6718_v32 = vpop.f32.mrf.mxu1  ;;  %v27408_v53 = vld [vmem:[#allocation22_spill] sm:$0xff]  ;;  %v27409_v30 = vld [vmem:[#allocation29_spill] sm:$0xff] }
 0x3ee   : > { %v19395_v50 = vpop.f32.mrf.mxu0  ;;  %19694 = vmatmul.mubr.msk.f32.gmra.mxu0 %vm528_vm5, %v24071_v52 }
 0x3ef   : > { %v24077_v58 = vadd.f32 %v6718_v32, %v6391_v13  ;;  %v6394_v0 = vadd.f32 %v19395_v50, %v27406_v18  ;;  %v19445_v9 = vpop.f32.mrf.mxu1  ;;  %19744 = vmatmul.mubr.msk.f32.gmra.mxu1 %vm528_vm5, %v27407_v16  ;;  %19696 = vmatprep.mubr.msk.f32.mxu0 %vm528_vm5, %v24075_v21  ;;  %v24089_v13 = vld [vmem:[#allocation4 + $0x173] sm:$0xff]  ;;  %v24093_v50 = vld [vmem:[#allocation4 + $0x183] sm:$0xff] }
 0x3f0   : > { %19746 = vmatprep.mubr.msk.f32.mxu1 %vm528_vm5, %v27408_v53  ;;  %v6338_v36 = vpop.f32.mrf.mxu0  ;;  %27410 = vst [vmem:[#allocation36_spill] sm:$0xff] %v24089_v13  ;;  %27411 = vst [vmem:[#allocation63_spill] sm:$0xff] %v24093_v50  ;;  %v27412_v53 = vld [vmem:[#allocation50_spill] sm:$0xff] }
 0x3f1   : > { %v24086_v20 = vadd.f32 %v19445_v9, %v6394_v0  ;;  %v6393_v52 = vadd.f32 %v6338_v36, %v27409_v30  ;;  %v6728_v17 = vpop.f32.mrf.mxu1  ;;  %v8770_v9 = vld [vmem:[#allocation4 + $0x184] sm:$0xff] }
 0x3f2   : > { %v19398_v32 = vpop.f32.mrf.mxu0  ;;  %19697 = vmatmul.mubr.msk.f32.gmra.mxu0 %vm528_vm5, %v24089_v13 }
 0x3f3   : > { %v24095_v18 = vadd.f32 %v6728_v17, %v6393_v52  ;;  %v6396_v16 = vadd.f32 %v19398_v32, %v23805_v34  ;;  %v19448_v21 = vpop.f32.mrf.mxu1  ;;  %19747 = vmatmul.mubr.msk.f32.gmra.mxu1 %vm528_vm5, %v27412_v53  ;;  %19699 = vmatprep.mubr.msk.f32.mxu0 %vm528_vm5, %v24093_v50  ;;  %v24106_v17 = vld [vmem:[#allocation4 + $0x18b] sm:$0xff]  ;;  %v27414_v50 = vld [vmem:[#allocation31_spill] sm:$0xff] }
 0x3f4   : > { %19749 = vmatprep.mubr.msk.f32.mxu1 %vm528_vm5, %v8770_v9  ;;  %v6348_v0 = vpop.f32.mrf.mxu0  ;;  %27413 = vst [vmem:[#allocation37_spill] sm:$0xff] %v24106_v17  ;;  %v8771_v34 = vld [vmem:[#allocation4 + $0x18c] sm:$0xff] }
 0x3f5   : > { %v24103_v36 = vadd.f32 %v19448_v21, %v6396_v16  ;;  %v6395_v30 = vadd.f32 %v6348_v0, %v23810_v62  ;;  %v6738_v13 = vpop.f32.mrf.mxu1  ;;  %v9130_v32 = vld [vmem:[#allocation4 + $0x30] sm:$0xff]  ;;  %v27415_v21 = vld [vmem:[#allocation49_spill] sm:$0xff] }
 0x3f6   : > { %v19401_v52 = vpop.f32.mrf.mxu0  ;;  %19700 = vmatmul.mubr.msk.f32.gmra.mxu0 %vm528_vm5, %v24106_v17  ;;  %v9131_v17 = vld [vmem:[#allocation4 + $0x38] sm:$0xff] }
 0x3f7   : > { %v24110_v53 = vadd.f32 %v6738_v13, %v6395_v30  ;;  %v6398_v45 = vadd.f32 %v19401_v52, %v27414_v50  ;;  %v19451_v41 = vpop.f32.mrf.mxu1  ;;  %19750 = vmatmul.mubr.msk.f32.gmra.mxu1 %vm528_vm5, %v8771_v34  ;;  %19754 = vmatprep.mubr.msk.f32.mxu0 %vm528_vm5, %v9130_v32  ;;  %v24121_v13 = vld [vmem:[#allocation4 + $0x48] sm:$0xff]  ;;  %v24126_v50 = vld [vmem:[%s26929_s9 + $0x1e] sm:$0x3] }
 0x3f8   : > { %19804 = vmatprep.mubr.msk.f32.mxu1 %vm528_vm5, %v27415_v21  ;;  %v6358_v62 = vpop.f32.mrf.mxu0  ;;  %27416 = vst [vmem:[#allocation39_spill] sm:$0xff] %v24121_v13  ;;  %v27419_v34 = vld [vmem:[#allocation9_spill] sm:$0xff] }
 0x3f9   : > { %v24117_v16 = vadd.f32 %v19451_v41, %v6398_v45  ;;  %v6397_v9 = vadd.f32 %v6358_v62, %v23820_v11  ;;  %v6748_v0 = vpop.f32.mrf.mxu1  ;;  %v27417_v45 = vld [vmem:[#allocation21_spill] sm:$0xff]  ;;  %v24138_v11 = vld [vmem:[%s26929_s9 + $0x1c] sm:$0x3]  ;;  %v27420_v62 = vld [vmem:[#allocation32_spill] sm:$0xff] }
 0x3fa   : > { %v19456_v19 = vpop.f32.mrf.mxu0  ;;  %19755 = vmatmul.mubr.msk.f32.vlgmr.msra.gmra.mxu0 %vm528_vm5, %v9131_v17  ;;  %v27418_v17 = vld [vmem:[#allocation59_spill] sm:$0xff] }
 0x3fb   : > { %v24128_v30 = vadd.f32 %v6748_v0, %v6397_v9  ;;  %v7148_v52 = vadd.f32 %v19456_v19, %v23846_v61  ;;  %v19506_v41 = vpop.f32.mrf.mxu1  ;;  %19805 = vmatmul.mubr.msk.f32.vlgmr.msra.gmra.mxu1 %vm528_vm5, %v27417_v45  ;;  %19757 = vmatprep.mubr.msk.f32.mxu0 %vm528_vm5, %v24121_v13  ;;  %v24149_v9 = vld [vmem:[#allocation4 + $0x50] sm:$0xff]  ;;  %v24155_v45 = vld [vmem:[#allocation4 + $0x60] sm:$0xff] }
 0x3fc   : > { %19903 = vmatpush3.msk.msra.mxu1 %vm5456_vm4, %v27418_v17  ;;  %19807 = vmatprep.mubr.msk.f32.mxu1 %vm528_vm5, %v27419_v34  ;;  %v6988_v32 = vpop.f32.mrf.mxu0  ;;  %27421 = vst [vmem:[#allocation46_spill] sm:$0xff] %v24149_v9  ;;  %27422 = vst [vmem:[#allocation20_spill] sm:$0xff] %v24155_v45  ;;  %v27423_v17 = vld [vmem:[#allocation23_spill] sm:$0xff]  ;;  %v27424_v34 = vld [vmem:[#allocation52_spill] sm:$0xff] }
 0x3fd   : > { %v24144_v61 = vadd.f32 %v19506_v41, %v7148_v52  ;;  %v7147_v19 = vadd.f32 %v6988_v32, %v23862_v2  ;;  %v7379_v21 = vpop.f32.mrf.mxu1  ;;  %19853 = vmatpush3.msk.msra.mxu0 %vm5456_vm4, %v27420_v62  ;;  %20002 = vmatprep.subr.msk.mxu1 %vm5456_vm4, %v24126_v50 }
 0x3fe   : > { %v19459_v0 = vpop.f32.mrf.mxu0  ;;  %19758 = vmatmul.mubr.msk.f32.gmra.mxu0 %vm528_vm5, %v24149_v9  ;;  %19952 = vmatprep.subr.msk.mxu0 %vm5456_vm4, %v24138_v11 }
 0x3ff   : > { %v24159_v52 = vadd.f32 %v7379_v21, %v7147_v19  ;;  %v7150_v2 = vadd.f32 %v19459_v0, %v23871_v31  ;;  %v19509_v41 = vpop.f32.mrf.mxu1  ;;  %19808 = vmatmul.mubr.msk.f32.gmra.mxu1 %vm528_vm5, %v27423_v17  ;;  %19760 = vmatprep.mubr.msk.f32.mxu0 %vm528_vm5, %v24155_v45  ;;  %v24171_v19 = vld [vmem:[#allocation4 + $0x68] sm:$0xff]  ;;  %v24175_v31 = vld [vmem:[#allocation4 + $0x78] sm:$0xff] }
 0x400   : > { %19810 = vmatprep.mubr.msk.f32.mxu1 %vm528_vm5, %v27424_v34  ;;  %v6998_v32 = vpop.f32.mrf.mxu0  ;;  %27425 = vst [vmem:[#allocation38_spill] sm:$0xff] %v24171_v19  ;;  %27426 = vst [vmem:[#allocation40_spill] sm:$0xff] %v24175_v31  ;;  %v27427_v34 = vld [vmem:[#allocation51_spill] sm:$0xff] }
 0x401   : > { %v24168_v62 = vadd.f32 %v19509_v41, %v7150_v2  ;;  %v7149_v9 = vadd.f32 %v6998_v32, %v23879_v57  ;;  %v7389_v13 = vpop.f32.mrf.mxu1  ;;  %v27428_v57 = vld [vmem:[#allocation48_spill] sm:$0xff] }
 0x402   : > { %v19462_v21 = vpop.f32.mrf.mxu0  ;;  %19761 = vmatmul.mubr.msk.f32.gmra.mxu0 %vm528_vm5, %v24171_v19 }
 0x403   : > { %v24177_v0 = vadd.f32 %v7389_v13, %v7149_v9  ;;  %v7152_v17 = vadd.f32 %v19462_v21, %v23888_v40  ;;  %v19512_v45 = vpop.f32.mrf.mxu1  ;;  %19811 = vmatmul.mubr.msk.f32.gmra.mxu1 %vm528_vm5, %v27427_v34  ;;  %19763 = vmatprep.mubr.msk.f32.mxu0 %vm528_vm5, %v24175_v31  ;;  %v24189_v13 = vld [vmem:[#allocation4 + $0x80] sm:$0xff]  ;;  %v24193_v40 = vld [vmem:[#allocation4 + $0x90] sm:$0xff] }
 0x404   : > { %19813 = vmatprep.mubr.msk.f32.mxu1 %vm528_vm5, %v27428_v57  ;;  %v7008_v2 = vpop.f32.mrf.mxu0  ;;  %27429 = vst [vmem:[#allocation8_spill] sm:$0xff] %v24189_v13  ;;  %27430 = vst [vmem:[#allocation58_spill] sm:$0xff] %v24193_v40  ;;  %v27431_v57 = vld [vmem:[#allocation24_spill] sm:$0xff] }
 0x405   : > { %v24186_v41 = vadd.f32 %v19512_v45, %v7152_v17  ;;  %v7151_v32 = vadd.f32 %v7008_v2, %v23897_v5  ;;  %v7399_v19 = vpop.f32.mrf.mxu1  ;;  %v27432_v5 = vld [vmem:[#allocation41_spill] sm:$0xff] }
 0x406   : > { %v19465_v9 = vpop.f32.mrf.mxu0  ;;  %19764 = vmatmul.mubr.msk.f32.gmra.mxu0 %vm528_vm5, %v24189_v13 }
 0x407   : > { %v24195_v21 = vadd.f32 %v7399_v19, %v7151_v32  ;;  %v7154_v34 = vadd.f32 %v19465_v9, %v23906_v1  ;;  %v19515_v31 = vpop.f32.mrf.mxu1  ;;  %19814 = vmatmul.mubr.msk.f32.gmra.mxu1 %vm528_vm5, %v27431_v57  ;;  %19766 = vmatprep.mubr.msk.f32.mxu0 %vm528_vm5, %v24193_v40  ;;  %v24207_v19 = vld [vmem:[#allocation4 + $0x98] sm:$0xff]  ;;  %v24211_v1 = vld [vmem:[#allocation4 + $0xa8] sm:$0xff] }
 0x408   : > { %19816 = vmatprep.mubr.msk.f32.mxu1 %vm528_vm5, %v27432_v5  ;;  %v7018_v45 = vpop.f32.mrf.mxu0  ;;  %27433 = vst [vmem:[#allocation47_spill] sm:$0xff] %v24207_v19  ;;  %27434 = vst [vmem:[#allocation22_spill] sm:$0xff] %v24211_v1  ;;  %v27435_v5 = vld [vmem:[#allocation10_spill] sm:$0xff] }
 0x409   : > { %v24204_v17 = vadd.f32 %v19515_v31, %v7154_v34  ;;  %v7153_v2 = vadd.f32 %v7018_v45, %v23915_v29  ;;  %v7409_v13 = vpop.f32.mrf.mxu1  ;;  %v27436_v29 = vld [vmem:[#allocation42_spill] sm:$0xff] }
 0x40a   : > { %v19468_v32 = vpop.f32.mrf.mxu0  ;;  %19767 = vmatmul.mubr.msk.f32.gmra.mxu0 %vm528_vm5, %v24207_v19 }
 0x40b   : > { %v24213_v9 = vadd.f32 %v7409_v13, %v7153_v2  ;;  %v7156_v57 = vadd.f32 %v19468_v32, %v23924_v33  ;;  %v19518_v40 = vpop.f32.mrf.mxu1  ;;  %19817 = vmatmul.mubr.msk.f32.gmra.mxu1 %vm528_vm5, %v27435_v5  ;;  %19769 = vmatprep.mubr.msk.f32.mxu0 %vm528_vm5, %v24211_v1  ;;  %v24225_v13 = vld [vmem:[#allocation4 + $0xb0] sm:$0xff]  ;;  %v24229_v33 = vld [vmem:[#allocation4 + $0xc0] sm:$0xff] }
 0x40c   : > { %19819 = vmatprep.mubr.msk.f32.mxu1 %vm528_vm5, %v27436_v29  ;;  %v7028_v31 = vpop.f32.mrf.mxu0  ;;  %27437 = vst [vmem:[#allocation29_spill] sm:$0xff] %v24225_v13  ;;  %27438 = vst [vmem:[#allocation50_spill] sm:$0xff] %v24229_v33  ;;  %v27439_v29 = vld [vmem:[#allocation12_spill] sm:$0xff] }
 0x40d   : > { %v24222_v34 = vadd.f32 %v19518_v40, %v7156_v57  ;;  %v7155_v45 = vadd.f32 %v7028_v31, %v23933_v28  ;;  %v7419_v19 = vpop.f32.mrf.mxu1  ;;  %v27440_v28 = vld [vmem:[#allocation26_spill] sm:$0xff] }
 0x40e   : > { %v19471_v2 = vpop.f32.mrf.mxu0  ;;  %19770 = vmatmul.mubr.msk.f32.gmra.mxu0 %vm528_vm5, %v24225_v13 }
 0x40f   : > { %v24231_v32 = vadd.f32 %v7419_v19, %v7155_v45  ;;  %v7158_v5 = vadd.f32 %v19471_v2, %v23942_v55  ;;  %v19521_v1 = vpop.f32.mrf.mxu1  ;;  %19820 = vmatmul.mubr.msk.f32.gmra.mxu1 %vm528_vm5, %v27439_v29  ;;  %19772 = vmatprep.mubr.msk.f32.mxu0 %vm528_vm5, %v24229_v33  ;;  %v24243_v19 = vld [vmem:[#allocation4 + $0xc8] sm:$0xff]  ;;  %v24247_v55 = vld [vmem:[#allocation4 + $0xd8] sm:$0xff] }
 0x410   : > { %19822 = vmatprep.mubr.msk.f32.mxu1 %vm528_vm5, %v27440_v28  ;;  %v7038_v40 = vpop.f32.mrf.mxu0  ;;  %27441 = vst [vmem:[#allocation31_spill] sm:$0xff] %v24243_v19  ;;  %27442 = vst [vmem:[#allocation49_spill] sm:$0xff] %v24247_v55  ;;  %v27443_v28 = vld [vmem:[#allocation54_spill] sm:$0xff] }
 0x411   : > { %v24240_v57 = vadd.f32 %v19521_v1, %v7158_v5  ;;  %v7157_v31 = vadd.f32 %v7038_v40, %v23951_v37  ;;  %v7429_v13 = vpop.f32.mrf.mxu1  ;;  %v27444_v37 = vld [vmem:[#allocation53_spill] sm:$0xff] }
 0x412   : > { %v19474_v45 = vpop.f32.mrf.mxu0  ;;  %19773 = vmatmul.mubr.msk.f32.gmra.mxu0 %vm528_vm5, %v24243_v19 }
 0x413   : > { %v24249_v2 = vadd.f32 %v7429_v13, %v7157_v31  ;;  %v7160_v29 = vadd.f32 %v19474_v45, %v23960_v35  ;;  %v19524_v33 = vpop.f32.mrf.mxu1  ;;  %19823 = vmatmul.mubr.msk.f32.gmra.mxu1 %vm528_vm5, %v27443_v28  ;;  %19775 = vmatprep.mubr.msk.f32.mxu0 %vm528_vm5, %v24247_v55  ;;  %v24261_v13 = vld [vmem:[#allocation4 + $0xe0] sm:$0xff]  ;;  %v24265_v35 = vld [vmem:[#allocation4 + $0xf0] sm:$0xff] }
 0x414   : > { %19825 = vmatprep.mubr.msk.f32.mxu1 %vm528_vm5, %v27444_v37  ;;  %v7048_v1 = vpop.f32.mrf.mxu0  ;;  %27445 = vst [vmem:[#allocation21_spill] sm:$0xff] %v24261_v13  ;;  %27446 = vst [vmem:[#allocation59_spill] sm:$0xff] %v24265_v35  ;;  %v27447_v37 = vld [vmem:[#allocation25_spill] sm:$0xff] }
 0x415   : > { %v24258_v5 = vadd.f32 %v19524_v33, %v7160_v29  ;;  %v7159_v40 = vadd.f32 %v7048_v1, %v23969_v6  ;;  %v7439_v19 = vpop.f32.mrf.mxu1  ;;  %v27448_v6 = vld [vmem:[#allocation11_spill] sm:$0xff] }
 0x416   : > { %v19477_v31 = vpop.f32.mrf.mxu0  ;;  %19776 = vmatmul.mubr.msk.f32.gmra.mxu0 %vm528_vm5, %v24261_v13 }
 0x417   : > { %v24267_v45 = vadd.f32 %v7439_v19, %v7159_v40  ;;  %v7162_v28 = vadd.f32 %v19477_v31, %v23978_v44  ;;  %v19527_v55 = vpop.f32.mrf.mxu1  ;;  %19826 = vmatmul.mubr.msk.f32.gmra.mxu1 %vm528_vm5, %v27447_v37  ;;  %19778 = vmatprep.mubr.msk.f32.mxu0 %vm528_vm5, %v24265_v35  ;;  %v24279_v19 = vld [vmem:[#allocation4 + $0xf8] sm:$0xff]  ;;  %v24283_v44 = vld [vmem:[#allocation4 + $0x108] sm:$0xff] }
 0x418   : > { %19828 = vmatprep.mubr.msk.f32.mxu1 %vm528_vm5, %v27448_v6  ;;  %v7058_v33 = vpop.f32.mrf.mxu0  ;;  %27449 = vst [vmem:[#allocation9_spill] sm:$0xff] %v24279_v19  ;;  %27450 = vst [vmem:[#allocation32_spill] sm:$0xff] %v24283_v44  ;;  %v27451_v6 = vld [vmem:[#allocation13_spill] sm:$0xff] }
 0x419   : > { %v24276_v29 = vadd.f32 %v19527_v55, %v7162_v28  ;;  %v7161_v1 = vadd.f32 %v7058_v33, %v23987_v15  ;;  %v7449_v13 = vpop.f32.mrf.mxu1  ;;  %v27452_v15 = vld [vmem:[#allocation27_spill] sm:$0xff] }
 0x41a   : > { %v19480_v40 = vpop.f32.mrf.mxu0  ;;  %19779 = vmatmul.mubr.msk.f32.gmra.mxu0 %vm528_vm5, %v24279_v19 }
 0x41b   : > { %v24285_v31 = vadd.f32 %v7449_v13, %v7161_v1  ;;  %v7164_v37 = vadd.f32 %v19480_v40, %v23996_v12  ;;  %v19530_v35 = vpop.f32.mrf.mxu1  ;;  %19829 = vmatmul.mubr.msk.f32.gmra.mxu1 %vm528_vm5, %v27451_v6  ;;  %19781 = vmatprep.mubr.msk.f32.mxu0 %vm528_vm5, %v24283_v44  ;;  %v24297_v13 = vld [vmem:[#allocation4 + $0x110] sm:$0xff]  ;;  %v24301_v12 = vld [vmem:[#allocation4 + $0x120] sm:$0xff] }
 0x41c   : > { %19831 = vmatprep.mubr.msk.f32.mxu1 %vm528_vm5, %v27452_v15  ;;  %v7068_v55 = vpop.f32.mrf.mxu0  ;;  %27453 = vst [vmem:[#allocation23_spill] sm:$0xff] %v24297_v13  ;;  %27454 = vst [vmem:[#allocation52_spill] sm:$0xff] %v24301_v12  ;;  %v27455_v15 = vld [vmem:[#allocation56_spill] sm:$0xff] }
 0x41d   : > { %v24294_v28 = vadd.f32 %v19530_v35, %v7164_v37  ;;  %v7163_v33 = vadd.f32 %v7068_v55, %v24005_v54  ;;  %v7459_v19 = vpop.f32.mrf.mxu1  ;;  %v27456_v54 = vld [vmem:[#allocation55_spill] sm:$0xff] }
 0x41e   : > { %v19483_v1 = vpop.f32.mrf.mxu0  ;;  %19782 = vmatmul.mubr.msk.f32.gmra.mxu0 %vm528_vm5, %v24297_v13 }
 0x41f   : > { %v24303_v40 = vadd.f32 %v7459_v19, %v7163_v33  ;;  %v7166_v6 = vadd.f32 %v19483_v1, %v24014_v39  ;;  %v19533_v44 = vpop.f32.mrf.mxu1  ;;  %19832 = vmatmul.mubr.msk.f32.gmra.mxu1 %vm528_vm5, %v27455_v15  ;;  %19784 = vmatprep.mubr.msk.f32.mxu0 %vm528_vm5, %v24301_v12  ;;  %v24315_v19 = vld [vmem:[#allocation4 + $0x128] sm:$0xff]  ;;  %v24319_v39 = vld [vmem:[#allocation4 + $0x138] sm:$0xff] }
 0x420   : > { %19834 = vmatprep.mubr.msk.f32.mxu1 %vm528_vm5, %v27456_v54  ;;  %v7078_v35 = vpop.f32.mrf.mxu0  ;;  %27457 = vst [vmem:[#allocation51_spill] sm:$0xff] %v24315_v19  ;;  %27458 = vst [vmem:[#allocation48_spill] sm:$0xff] %v24319_v39  ;;  %v27459_v54 = vld [vmem:[#allocation28_spill] sm:$0xff] }
 0x421   : > { %v24312_v37 = vadd.f32 %v19533_v44, %v7166_v6  ;;  %v7165_v55 = vadd.f32 %v7078_v35, %v24023_v24  ;;  %v7469_v13 = vpop.f32.mrf.mxu1  ;;  %v27460_v24 = vld [vmem:[#allocation43_spill] sm:$0xff] }
 0x422   : > { %v19486_v33 = vpop.f32.mrf.mxu0  ;;  %19785 = vmatmul.mubr.msk.f32.gmra.mxu0 %vm528_vm5, %v24315_v19 }
 0x423   : > { %v24321_v1 = vadd.f32 %v7469_v13, %v7165_v55  ;;  %v7168_v15 = vadd.f32 %v19486_v33, %v24032_v46  ;;  %v19536_v12 = vpop.f32.mrf.mxu1  ;;  %19835 = vmatmul.mubr.msk.f32.gmra.mxu1 %vm528_vm5, %v27459_v54  ;;  %19787 = vmatprep.mubr.msk.f32.mxu0 %vm528_vm5, %v24319_v39  ;;  %v24333_v13 = vld [vmem:[#allocation4 + $0x140] sm:$0xff]  ;;  %v24337_v46 = vld [vmem:[#allocation4 + $0x150] sm:$0xff] }
 0x424   : > { %19837 = vmatprep.mubr.msk.f32.mxu1 %vm528_vm5, %v27460_v24  ;;  %v7088_v44 = vpop.f32.mrf.mxu0  ;;  %27461 = vst [vmem:[#allocation24_spill] sm:$0xff] %v24333_v13  ;;  %27462 = vst [vmem:[#allocation41_spill] sm:$0xff] %v24337_v46  ;;  %v27463_v24 = vld [vmem:[#allocation14_spill] sm:$0xff] }
 0x425   : > { %v24330_v6 = vadd.f32 %v19536_v12, %v7168_v15  ;;  %v7167_v35 = vadd.f32 %v7088_v44, %v24041_v22  ;;  %v7479_v19 = vpop.f32.mrf.mxu1  ;;  %v27464_v22 = vld [vmem:[#allocation44_spill] sm:$0xff] }
 0x426   : > { %v19489_v55 = vpop.f32.mrf.mxu0  ;;  %19788 = vmatmul.mubr.msk.f32.gmra.mxu0 %vm528_vm5, %v24333_v13 }
 0x427   : > { %v24339_v33 = vadd.f32 %v7479_v19, %v7167_v35  ;;  %v7170_v54 = vadd.f32 %v19489_v55, %v24050_v7  ;;  %v19539_v39 = vpop.f32.mrf.mxu1  ;;  %19838 = vmatmul.mubr.msk.f32.gmra.mxu1 %vm528_vm5, %v27463_v24  ;;  %19790 = vmatprep.mubr.msk.f32.mxu0 %vm528_vm5, %v24337_v46  ;;  %v24351_v19 = vld [vmem:[#allocation4 + $0x158] sm:$0xff]  ;;  %v24355_v7 = vld [vmem:[#allocation4 + $0x168] sm:$0xff] }
 0x428   : > { %19840 = vmatprep.mubr.msk.f32.mxu1 %vm528_vm5, %v27464_v22  ;;  %v7098_v12 = vpop.f32.mrf.mxu0  ;;  %27465 = vst [vmem:[#allocation10_spill] sm:$0xff] %v24351_v19  ;;  %27466 = vst [vmem:[#allocation42_spill] sm:$0xff] %v24355_v7  ;;  %v27467_v22 = vld [vmem:[#allocation16_spill] sm:$0xff] }
 0x429   : > { %v24348_v15 = vadd.f32 %v19539_v39, %v7170_v54  ;;  %v7169_v44 = vadd.f32 %v7098_v12, %v24059_v14  ;;  %v7489_v13 = vpop.f32.mrf.mxu1  ;;  %v27468_v14 = vld [vmem:[#allocation30_spill] sm:$0xff] }
 0x42a   : > { %v19492_v35 = vpop.f32.mrf.mxu0  ;;  %19791 = vmatmul.mubr.msk.f32.gmra.mxu0 %vm528_vm5, %v24351_v19 }
 0x42b   : > { %v24357_v55 = vadd.f32 %v7489_v13, %v7169_v44  ;;  %v7172_v24 = vadd.f32 %v19492_v35, %v24068_v26  ;;  %v19542_v46 = vpop.f32.mrf.mxu1  ;;  %19841 = vmatmul.mubr.msk.f32.gmra.mxu1 %vm528_vm5, %v27467_v22  ;;  %19793 = vmatprep.mubr.msk.f32.mxu0 %vm528_vm5, %v24355_v7  ;;  %v24369_v13 = vld [vmem:[#allocation4 + $0x170] sm:$0xff]  ;;  %v24373_v26 = vld [vmem:[#allocation4 + $0x180] sm:$0xff] }
 0x42c   : > { %19843 = vmatprep.mubr.msk.f32.mxu1 %vm528_vm5, %v27468_v14  ;;  %v7108_v39 = vpop.f32.mrf.mxu0  ;;  %27469 = vst [vmem:[#allocation12_spill] sm:$0xff] %v24369_v13  ;;  %27470 = vst [vmem:[#allocation26_spill] sm:$0xff] %v24373_v26  ;;  %v27471_v14 = vld [vmem:[#allocation57_spill] sm:$0xff] }
 0x42d   : > { %v24366_v54 = vadd.f32 %v19542_v46, %v7172_v24  ;;  %v7171_v12 = vadd.f32 %v7108_v39, %v24077_v58  ;;  %v7499_v19 = vpop.f32.mrf.mxu1  ;;  %v27472_v58 = vld [vmem:[#allocation15_spill] sm:$0xff] }
 0x42e   : > { %v19495_v44 = vpop.f32.mrf.mxu0  ;;  %19794 = vmatmul.mubr.msk.f32.gmra.mxu0 %vm528_vm5, %v24369_v13 }
 0x42f   : > { %v24375_v35 = vadd.f32 %v7499_v19, %v7171_v12  ;;  %v7174_v22 = vadd.f32 %v19495_v44, %v24086_v20  ;;  %v19545_v7 = vpop.f32.mrf.mxu1  ;;  %19844 = vmatmul.mubr.msk.f32.gmra.mxu1 %vm528_vm5, %v27471_v14  ;;  %19796 = vmatprep.mubr.msk.f32.mxu0 %vm528_vm5, %v24373_v26  ;;  %v24387_v19 = vld [vmem:[#allocation4 + $0x188] sm:$0xff]  ;;  %v24391_v20 = vld [vmem:[#allocation4 + $0x198] sm:$0xff] }
 0x430   : > { %19846 = vmatprep.mubr.msk.f32.mxu1 %vm528_vm5, %v27472_v58  ;;  %v7118_v46 = vpop.f32.mrf.mxu0  ;;  %27473 = vst [vmem:[#allocation54_spill] sm:$0xff] %v24387_v19  ;;  %27474 = vst [vmem:[#allocation53_spill] sm:$0xff] %v24391_v20  ;;  %v27476_v58 = vld [vmem:[#allocation17_spill] sm:$0xff] }
 0x431   : > { %v24384_v24 = vadd.f32 %v19545_v7, %v7174_v22  ;;  %v7173_v39 = vadd.f32 %v7118_v46, %v24095_v18  ;;  %v7509_v13 = vpop.f32.mrf.mxu1  ;;  %v9550_v18 = vld [vmem:[#allocation4 + $0x199] sm:$0xff] }
 0x432   : > { %v19498_v12 = vpop.f32.mrf.mxu0  ;;  %19797 = vmatmul.mubr.msk.f32.gmra.mxu0 %vm528_vm5, %v24387_v19 }
 0x433   : > { %v24393_v44 = vadd.f32 %v7509_v13, %v7173_v39  ;;  %v7176_v14 = vadd.f32 %v19498_v12, %v24103_v36  ;;  %v19548_v26 = vpop.f32.mrf.mxu1  ;;  %19847 = vmatmul.mubr.msk.f32.gmra.mxu1 %vm528_vm5, %v27476_v58  ;;  %19799 = vmatprep.mubr.msk.f32.mxu0 %vm528_vm5, %v24391_v20  ;;  %v24404_v13 = vld [vmem:[#allocation4 + $0x1a0] sm:$0xff]  ;;  %v9910_v12 = vld [vmem:[#allocation4 + $0x32] sm:$0xff] }
 0x434   : > { %19849 = vmatprep.mubr.msk.f32.mxu1 %vm528_vm5, %v9550_v18  ;;  %v7128_v7 = vpop.f32.mrf.mxu0  ;;  %27478 = vst [vmem:[#allocation13_spill] sm:$0xff] %v24404_v13  ;;  %v9551_v36 = vld [vmem:[#allocation4 + $0x1a1] sm:$0xff] }
 0x435   : > { %27475 = vst [vmem:[#allocation25_spill] sm:$0xff] %v24393_v44  ;;  %v24401_v22 = vadd.f32 %v19548_v26, %v7176_v14  ;;  %v7175_v46 = vadd.f32 %v7128_v7, %v24110_v53  ;;  %v7519_v19 = vpop.f32.mrf.mxu1  ;;  %v27479_v26 = vld [vmem:[#allocation60_spill] sm:$0xff] }
 0x436   : > { %v19501_v39 = vpop.f32.mrf.mxu0  ;;  %19800 = vmatmul.mubr.msk.f32.gmra.mxu0 %vm528_vm5, %v24404_v13  ;;  %v9911_v13 = vld [vmem:[#allocation4 + $0x3a] sm:$0xff] }
 0x437   : > { %27477 = vst [vmem:[#allocation11_spill] sm:$0xff] %v24401_v22  ;;  %v24408_v58 = vadd.f32 %v7519_v19, %v7175_v46  ;;  %v7178_v20 = vadd.f32 %v19501_v39, %v24117_v16  ;;  %v19551_v44 = vpop.f32.mrf.mxu1  ;;  %19850 = vmatmul.mubr.msk.f32.gmra.mxu1 %vm528_vm5, %v9551_v36  ;;  %19854 = vmatprep.mubr.msk.f32.mxu0 %vm528_vm5, %v9910_v12  ;;  %v24419_v19 = vld [vmem:[#allocation4 + $0x4a] sm:$0xff]  ;;  %v24424_v16 = vld [vmem:[%s26929_s9 + $0x22] sm:$0x3]  ;;  %v24447_v12 = vld [vmem:[#allocation4 + $0x52] sm:$0xff] }
 0x438   : > { %19904 = vmatprep.mubr.msk.f32.mxu1 %vm528_vm5, %v27479_v26  ;;  %v7138_v53 = vpop.f32.mrf.mxu0 }
 0x439   : > { %v24415_v14 = vadd.f32 %v19551_v44, %v7178_v20  ;;  %v7177_v18 = vadd.f32 %v7138_v53, %v24128_v30  ;;  %v7529_v7 = vpop.f32.mrf.mxu1  ;;  %v27480_v44 = vld [vmem:[#allocation45_spill] sm:$0xff]  ;;  %v24436_v30 = vld [vmem:[%s26929_s9 + $0x20] sm:$0x3] }
 0x43a   : > { %v19556_v22 = vpop.f32.mrf.mxu0  ;;  %19855 = vmatmul.mubr.msk.f32.vlgmr.msra.gmra.mxu0 %vm528_vm5, %v9911_v13 }
 0x43b   : > { %v24426_v46 = vadd.f32 %v7529_v7, %v7177_v18  ;;  %v7929_v39 = vadd.f32 %v19556_v22, %v24144_v61  ;;  %v19606_v20 = vpop.f32.mrf.mxu1  ;;  %19905 = vmatmul.mubr.msk.f32.vlgmr.msra.gmra.mxu1 %vm528_vm5, %v27480_v44  ;;  %19857 = vmatprep.mubr.msk.f32.mxu0 %vm528_vm5, %v24419_v19 }
 0x43c   : > { %20003 = vmatpush3.msk.msra.mxu1 %vm5456_vm4, %v24126_v50  ;;  %19907 = vmatprep.mubr.msk.f32.mxu1 %vm528_vm5, %v23856_v38  ;;  %v7769_v13 = vpop.f32.mrf.mxu0  ;;  %v24453_v50 = vld [vmem:[#allocation4 + $0x62] sm:$0xff] }
 0x43d   : > { %v24442_v61 = vadd.f32 %v19606_v20, %v7929_v39  ;;  %v7928_v22 = vadd.f32 %v7769_v13, %v24159_v52  ;;  %v8159_v36 = vpop.f32.mrf.mxu1  ;;  %19953 = vmatpush3.msk.msra.mxu0 %vm5456_vm4, %v24138_v11  ;;  %20102 = vmatprep.subr.msk.mxu1 %vm5456_vm4, %v24424_v16  ;;  %v24469_v20 = vld [vmem:[#allocation4 + $0x6a] sm:$0xff] }
 0x43e   : > { %v19559_v26 = vpop.f32.mrf.mxu0  ;;  %19858 = vmatmul.mubr.msk.f32.gmra.mxu0 %vm528_vm5, %v24447_v12  ;;  %20052 = vmatprep.subr.msk.mxu0 %vm5456_vm4, %v24436_v30 }
 0x43f   : > { %v24457_v38 = vadd.f32 %v8159_v36, %v7928_v22  ;;  %v7931_v52 = vadd.f32 %v19559_v26, %v24168_v62  ;;  %v19609_v53 = vpop.f32.mrf.mxu1  ;;  %19908 = vmatmul.mubr.msk.f32.gmra.mxu1 %vm528_vm5, %v23873_v43  ;;  %19860 = vmatprep.mubr.msk.f32.mxu0 %vm528_vm5, %v24453_v50  ;;  %v24473_v62 = vld [vmem:[#allocation4 + $0x7a] sm:$0xff] }
 0x440   : > { %19910 = vmatprep.mubr.msk.f32.mxu1 %vm528_vm5, %v23877_v60  ;;  %v7779_v11 = vpop.f32.mrf.mxu0 }
 0x441   : > { %v24466_v18 = vadd.f32 %v19609_v53, %v7931_v52  ;;  %v7930_v7 = vadd.f32 %v7779_v11, %v24177_v0  ;;  %v8169_v39 = vpop.f32.mrf.mxu1  ;;  %v24487_v52 = vld [vmem:[#allocation4 + $0x82] sm:$0xff] }
 0x442   : > { %v19562_v44 = vpop.f32.mrf.mxu0  ;;  %19861 = vmatmul.mubr.msk.f32.gmra.mxu0 %vm528_vm5, %v24469_v20 }
 0x443   : > { %v24475_v43 = vadd.f32 %v8169_v39, %v7930_v7  ;;  %v7933_v13 = vadd.f32 %v19562_v44, %v24186_v41  ;;  %v19612_v22 = vpop.f32.mrf.mxu1  ;;  %19911 = vmatmul.mubr.msk.f32.gmra.mxu1 %vm528_vm5, %v23891_v23  ;;  %19863 = vmatprep.mubr.msk.f32.mxu0 %vm528_vm5, %v24473_v62  ;;  %v24491_v41 = vld [vmem:[#allocation4 + $0x92] sm:$0xff] }
 0x444   : > { %19913 = vmatprep.mubr.msk.f32.mxu1 %vm528_vm5, %v23895_v42  ;;  %v7789_v60 = vpop.f32.mrf.mxu0 }
 0x445   : > { %v24484_v0 = vadd.f32 %v19612_v22, %v7933_v13  ;;  %v7932_v36 = vadd.f32 %v7789_v60, %v24195_v21  ;;  %v8179_v26 = vpop.f32.mrf.mxu1  ;;  %v24505_v13 = vld [vmem:[#allocation4 + $0x9a] sm:$0xff] }
 0x446   : > { %v19565_v53 = vpop.f32.mrf.mxu0  ;;  %19864 = vmatmul.mubr.msk.f32.gmra.mxu0 %vm528_vm5, %v24487_v52 }
 0x447   : > { %v24493_v23 = vadd.f32 %v8179_v26, %v7932_v36  ;;  %v7935_v11 = vadd.f32 %v19565_v53, %v24204_v17  ;;  %v19615_v7 = vpop.f32.mrf.mxu1  ;;  %19914 = vmatmul.mubr.msk.f32.gmra.mxu1 %vm528_vm5, %v23909_v8  ;;  %19866 = vmatprep.mubr.msk.f32.mxu0 %vm528_vm5, %v24491_v41  ;;  %v24509_v17 = vld [vmem:[#allocation4 + $0xaa] sm:$0xff] }
 0x448   : > { %19916 = vmatprep.mubr.msk.f32.mxu1 %vm528_vm5, %v23913_v27  ;;  %v7799_v42 = vpop.f32.mrf.mxu0 }
 0x449   : > { %v24502_v21 = vadd.f32 %v19615_v7, %v7935_v11  ;;  %v7934_v39 = vadd.f32 %v7799_v42, %v24213_v9  ;;  %v8189_v44 = vpop.f32.mrf.mxu1  ;;  %v24523_v11 = vld [vmem:[#allocation4 + $0xb2] sm:$0xff] }
 0x44a   : > { %v19568_v22 = vpop.f32.mrf.mxu0  ;;  %19867 = vmatmul.mubr.msk.f32.gmra.mxu0 %vm528_vm5, %v24505_v13 }
 0x44b   : > { %v24511_v8 = vadd.f32 %v8189_v44, %v7934_v39  ;;  %v7937_v60 = vadd.f32 %v19568_v22, %v24222_v34  ;;  %v19618_v36 = vpop.f32.mrf.mxu1  ;;  %19917 = vmatmul.mubr.msk.f32.gmra.mxu1 %vm528_vm5, %v23927_v10  ;;  %19869 = vmatprep.mubr.msk.f32.mxu0 %vm528_vm5, %v24509_v17  ;;  %v24527_v34 = vld [vmem:[#allocation4 + $0xc2] sm:$0xff] }
 0x44c   : > { %19919 = vmatprep.mubr.msk.f32.mxu1 %vm528_vm5, %v23931_v51  ;;  %v7809_v27 = vpop.f32.mrf.mxu0 }
 0x44d   : > { %v24520_v9 = vadd.f32 %v19618_v36, %v7937_v60  ;;  %v7936_v26 = vadd.f32 %v7809_v27, %v24231_v32  ;;  %v8199_v53 = vpop.f32.mrf.mxu1  ;;  %v24541_v60 = vld [vmem:[#allocation4 + $0xca] sm:$0xff] }
 0x44e   : > { %v19571_v7 = vpop.f32.mrf.mxu0  ;;  %19870 = vmatmul.mubr.msk.f32.gmra.mxu0 %vm528_vm5, %v24523_v11 }
 0x44f   : > { %v24529_v10 = vadd.f32 %v8199_v53, %v7936_v26  ;;  %v7939_v42 = vadd.f32 %v19571_v7, %v24240_v57  ;;  %v19621_v39 = vpop.f32.mrf.mxu1  ;;  %19920 = vmatmul.mubr.msk.f32.gmra.mxu1 %vm528_vm5, %v23945_v4  ;;  %19872 = vmatprep.mubr.msk.f32.mxu0 %vm528_vm5, %v24527_v34  ;;  %v24545_v57 = vld [vmem:[#allocation4 + $0xda] sm:$0xff] }
 0x450   : > { %19922 = vmatprep.mubr.msk.f32.mxu1 %vm528_vm5, %v23949_v48  ;;  %v7819_v51 = vpop.f32.mrf.mxu0 }
 0x451   : > { %v24538_v32 = vadd.f32 %v19621_v39, %v7939_v42  ;;  %v7938_v44 = vadd.f32 %v7819_v51, %v24249_v2  ;;  %v8209_v22 = vpop.f32.mrf.mxu1  ;;  %v24559_v42 = vld [vmem:[#allocation4 + $0xe2] sm:$0xff] }
 0x452   : > { %v19574_v36 = vpop.f32.mrf.mxu0  ;;  %19873 = vmatmul.mubr.msk.f32.gmra.mxu0 %vm528_vm5, %v24541_v60 }
 0x453   : > { %v24547_v4 = vadd.f32 %v8209_v22, %v7938_v44  ;;  %v7941_v27 = vadd.f32 %v19574_v36, %v24258_v5  ;;  %v19624_v26 = vpop.f32.mrf.mxu1  ;;  %19923 = vmatmul.mubr.msk.f32.gmra.mxu1 %vm528_vm5, %v23963_v59  ;;  %19875 = vmatprep.mubr.msk.f32.mxu0 %vm528_vm5, %v24545_v57  ;;  %v24563_v5 = vld [vmem:[#allocation4 + $0xf2] sm:$0xff] }
 0x454   : > { %19925 = vmatprep.mubr.msk.f32.mxu1 %vm528_vm5, %v23967_v56  ;;  %v7829_v48 = vpop.f32.mrf.mxu0 }
 0x455   : > { %v24556_v2 = vadd.f32 %v19624_v26, %v7941_v27  ;;  %v7940_v53 = vadd.f32 %v7829_v48, %v24267_v45  ;;  %v8219_v7 = vpop.f32.mrf.mxu1  ;;  %v24577_v27 = vld [vmem:[#allocation4 + $0xfa] sm:$0xff] }
 0x456   : > { %v19577_v39 = vpop.f32.mrf.mxu0  ;;  %19876 = vmatmul.mubr.msk.f32.gmra.mxu0 %vm528_vm5, %v24559_v42 }
 0x457   : > { %v24565_v59 = vadd.f32 %v8219_v7, %v7940_v53  ;;  %v7943_v51 = vadd.f32 %v19577_v39, %v24276_v29  ;;  %v19627_v44 = vpop.f32.mrf.mxu1  ;;  %19926 = vmatmul.mubr.msk.f32.gmra.mxu1 %vm528_vm5, %v23981_v25  ;;  %19878 = vmatprep.mubr.msk.f32.mxu0 %vm528_vm5, %v24563_v5  ;;  %v24581_v29 = vld [vmem:[#allocation4 + $0x10a] sm:$0xff] }
 0x458   : > { %19928 = vmatprep.mubr.msk.f32.mxu1 %vm528_vm5, %v23985_v3  ;;  %v7839_v56 = vpop.f32.mrf.mxu0  ;;  %27481 = vst [vmem:[#allocation27_spill] sm:$0xff] %v24581_v29 }
 0x459   : > { %v24574_v45 = vadd.f32 %v19627_v44, %v7943_v51  ;;  %v7942_v22 = vadd.f32 %v7839_v56, %v24285_v31  ;;  %v8229_v36 = vpop.f32.mrf.mxu1  ;;  %v24595_v51 = vld [vmem:[#allocation4 + $0x112] sm:$0xff] }
 0x45a   : > { %v19580_v26 = vpop.f32.mrf.mxu0  ;;  %19879 = vmatmul.mubr.msk.f32.gmra.mxu0 %vm528_vm5, %v24577_v27  ;;  %27482 = vst [vmem:[#allocation56_spill] sm:$0xff] %v24595_v51 }
 0x45b   : > { %v24583_v25 = vadd.f32 %v8229_v36, %v7942_v22  ;;  %v7945_v48 = vadd.f32 %v19580_v26, %v24294_v28  ;;  %v19630_v53 = vpop.f32.mrf.mxu1  ;;  %19929 = vmatmul.mubr.msk.f32.gmra.mxu1 %vm528_vm5, %v23999_v47  ;;  %19881 = vmatprep.mubr.msk.f32.mxu0 %vm528_vm5, %v24581_v29  ;;  %v24599_v28 = vld [vmem:[#allocation4 + $0x122] sm:$0xff] }
 0x45c   : > { %19931 = vmatprep.mubr.msk.f32.mxu1 %vm528_vm5, %v24003_v49  ;;  %v7849_v3 = vpop.f32.mrf.mxu0  ;;  %27483 = vst [vmem:[#allocation55_spill] sm:$0xff] %v24599_v28  ;;  %v27484_v49 = vld [vmem:[#allocation18_spill] sm:$0xff] }
 0x45d   : > { %v24592_v31 = vadd.f32 %v19630_v53, %v7945_v48  ;;  %v7944_v7 = vadd.f32 %v7849_v3, %v24303_v40  ;;  %v8239_v39 = vpop.f32.mrf.mxu1  ;;  %v24613_v53 = vld [vmem:[#allocation4 + $0x12a] sm:$0xff] }
 0x45e   : > { %v19583_v44 = vpop.f32.mrf.mxu0  ;;  %19882 = vmatmul.mubr.msk.f32.gmra.mxu0 %vm528_vm5, %v24595_v51  ;;  %27485 = vst [vmem:[#allocation28_spill] sm:$0xff] %v24613_v53 }
 0x45f   : > { %v24601_v47 = vadd.f32 %v8239_v39, %v7944_v7  ;;  %v7947_v56 = vadd.f32 %v19583_v44, %v24312_v37  ;;  %v19633_v22 = vpop.f32.mrf.mxu1  ;;  %19932 = vmatmul.mubr.msk.f32.gmra.mxu1 %vm528_vm5, %v24017_v63  ;;  %19884 = vmatprep.mubr.msk.f32.mxu0 %vm528_vm5, %v24599_v28  ;;  %v24617_v37 = vld [vmem:[#allocation4 + $0x13a] sm:$0xff]  ;;  %v27487_v44 = vld [vmem:[#allocation34_spill] sm:$0xff] }
 0x460   : > { %19934 = vmatprep.mubr.msk.f32.mxu1 %vm528_vm5, %v27484_v49  ;;  %v7859_v40 = vpop.f32.mrf.mxu0  ;;  %27486 = vst [vmem:[#allocation43_spill] sm:$0xff] %v24617_v37 }
 0x461   : > { %v24610_v36 = vadd.f32 %v19633_v22, %v7947_v56  ;;  %v7946_v26 = vadd.f32 %v7859_v40, %v24321_v1  ;;  %v8249_v48 = vpop.f32.mrf.mxu1  ;;  %v27488_v1 = vld [vmem:[#allocation61_spill] sm:$0xff] }
 0x462   : > { %v19586_v3 = vpop.f32.mrf.mxu0  ;;  %19885 = vmatmul.mubr.msk.f32.gmra.mxu0 %vm528_vm5, %v24613_v53 }
 0x463   : > { %v24619_v63 = vadd.f32 %v8249_v48, %v7946_v26  ;;  %v7949_v7 = vadd.f32 %v19586_v3, %v24330_v6  ;;  %v19636_v39 = vpop.f32.mrf.mxu1  ;;  %19935 = vmatmul.mubr.msk.f32.gmra.mxu1 %vm528_vm5, %v27487_v44  ;;  %19887 = vmatprep.mubr.msk.f32.mxu0 %vm528_vm5, %v24617_v37  ;;  %v24631_v26 = vld [vmem:[#allocation4 + $0x142] sm:$0xff]  ;;  %v24635_v6 = vld [vmem:[#allocation4 + $0x152] sm:$0xff] }
 0x464   : > { %19937 = vmatprep.mubr.msk.f32.mxu1 %vm528_vm5, %v27488_v1  ;;  %v7869_v56 = vpop.f32.mrf.mxu0  ;;  %27489 = vst [vmem:[#allocation14_spill] sm:$0xff] %v24631_v26  ;;  %27490 = vst [vmem:[#allocation44_spill] sm:$0xff] %v24635_v6  ;;  %v27491_v1 = vld [vmem:[#allocation33_spill] sm:$0xff] }
 0x465   : > { %v24628_v22 = vadd.f32 %v19636_v39, %v7949_v7  ;;  %v7948_v49 = vadd.f32 %v7869_v56, %v24339_v33  ;;  %v8259_v40 = vpop.f32.mrf.mxu1  ;;  %v27492_v33 = vld [vmem:[#allocation19_spill] sm:$0xff] }
 0x466   : > { %v19589_v48 = vpop.f32.mrf.mxu0  ;;  %19888 = vmatmul.mubr.msk.f32.gmra.mxu0 %vm528_vm5, %v24631_v26 }
 0x467   : > { %v24637_v3 = vadd.f32 %v8259_v40, %v7948_v49  ;;  %v7951_v44 = vadd.f32 %v19589_v48, %v24348_v15  ;;  %v19639_v37 = vpop.f32.mrf.mxu1  ;;  %19938 = vmatmul.mubr.msk.f32.gmra.mxu1 %vm528_vm5, %v27491_v1  ;;  %19890 = vmatprep.mubr.msk.f32.mxu0 %vm528_vm5, %v24635_v6  ;;  %v24649_v49 = vld [vmem:[#allocation4 + $0x15a] sm:$0xff]  ;;  %v24653_v15 = vld [vmem:[#allocation4 + $0x16a] sm:$0xff] }
 0x468   : > { %19940 = vmatprep.mubr.msk.f32.mxu1 %vm528_vm5, %v27492_v33  ;;  %v7879_v7 = vpop.f32.mrf.mxu0  ;;  %27493 = vst [vmem:[#allocation16_spill] sm:$0xff] %v24649_v49  ;;  %27494 = vst [vmem:[#allocation30_spill] sm:$0xff] %v24653_v15  ;;  %v27495_v33 = vld [vmem:[#allocation35_spill] sm:$0xff] }
 0x469   : > { %v24646_v39 = vadd.f32 %v19639_v37, %v7951_v44  ;;  %v7950_v56 = vadd.f32 %v7879_v7, %v24357_v55  ;;  %v8269_v26 = vpop.f32.mrf.mxu1  ;;  %v27496_v55 = vld [vmem:[#allocation62_spill] sm:$0xff] }
 0x46a   : > { %v19592_v40 = vpop.f32.mrf.mxu0  ;;  %19891 = vmatmul.mubr.msk.f32.gmra.mxu0 %vm528_vm5, %v24649_v49 }
 0x46b   : > { %v24655_v48 = vadd.f32 %v8269_v26, %v7950_v56  ;;  %v7953_v1 = vadd.f32 %v19592_v40, %v24366_v54  ;;  %v19642_v6 = vpop.f32.mrf.mxu1  ;;  %19941 = vmatmul.mubr.msk.f32.gmra.mxu1 %vm528_vm5, %v27495_v33  ;;  %19893 = vmatprep.mubr.msk.f32.mxu0 %vm528_vm5, %v24653_v15  ;;  %v24667_v26 = vld [vmem:[#allocation4 + $0x172] sm:$0xff]  ;;  %v24671_v54 = vld [vmem:[#allocation4 + $0x182] sm:$0xff] }
 0x46c   : > { %19943 = vmatprep.mubr.msk.f32.mxu1 %vm528_vm5, %v27496_v55  ;;  %v7889_v37 = vpop.f32.mrf.mxu0  ;;  %27497 = vst [vmem:[#allocation57_spill] sm:$0xff] %v24667_v26  ;;  %27498 = vst [vmem:[#allocation15_spill] sm:$0xff] %v24671_v54  ;;  %v27499_v55 = vld [vmem:[#allocation36_spill] sm:$0xff] }
 0x46d   : > { %v24664_v44 = vadd.f32 %v19642_v6, %v7953_v1  ;;  %v7952_v7 = vadd.f32 %v7889_v37, %v24375_v35  ;;  %v8279_v49 = vpop.f32.mrf.mxu1  ;;  %v27500_v35 = vld [vmem:[#allocation63_spill] sm:$0xff]  ;;  %v27501_v37 = vld [vmem:[#allocation25_spill] sm:$0xff] }
 0x46e   : > { %v19595_v56 = vpop.f32.mrf.mxu0  ;;  %19894 = vmatmul.mubr.msk.f32.gmra.mxu0 %vm528_vm5, %v24667_v26 }
 0x46f   : > { %v24673_v40 = vadd.f32 %v8279_v49, %v7952_v7  ;;  %v7955_v33 = vadd.f32 %v19595_v56, %v24384_v24  ;;  %v19645_v15 = vpop.f32.mrf.mxu1  ;;  %19944 = vmatmul.mubr.msk.f32.gmra.mxu1 %vm528_vm5, %v27499_v55  ;;  %19896 = vmatprep.mubr.msk.f32.mxu0 %vm528_vm5, %v24671_v54  ;;  %v24685_v49 = vld [vmem:[#allocation4 + $0x18a] sm:$0xff]  ;;  %v24689_v24 = vld [vmem:[#allocation4 + $0x19a] sm:$0xff] }
 0x470   : > { %19946 = vmatprep.mubr.msk.f32.mxu1 %vm528_vm5, %v27500_v35  ;;  %v7899_v6 = vpop.f32.mrf.mxu0  ;;  %27502 = vst [vmem:[#allocation17_spill] sm:$0xff] %v24685_v49  ;;  %27503 = vst [vmem:[#allocation60_spill] sm:$0xff] %v24689_v24  ;;  %v27504_v55 = vld [vmem:[#allocation11_spill] sm:$0xff]  ;;  %v27505_v35 = vld [vmem:[#allocation37_spill] sm:$0xff] }
 0x471   : > { %v24682_v1 = vadd.f32 %v19645_v15, %v7955_v33  ;;  %v7954_v26 = vadd.f32 %v7899_v6, %v27501_v37  ;;  %v8289_v53 = vpop.f32.mrf.mxu1  ;;  %v10330_v15 = vld [vmem:[#allocation4 + $0x19b] sm:$0xff] }
 0x472   : > { %v19598_v7 = vpop.f32.mrf.mxu0  ;;  %19897 = vmatmul.mubr.msk.f32.gmra.mxu0 %vm528_vm5, %v24685_v49 }
 0x473   : > { %v24691_v56 = vadd.f32 %v8289_v53, %v7954_v26  ;;  %v7957_v54 = vadd.f32 %v19598_v7, %v27504_v55  ;;  %v19648_v28 = vpop.f32.mrf.mxu1  ;;  %19947 = vmatmul.mubr.msk.f32.gmra.mxu1 %vm528_vm5, %v27505_v35  ;;  %19899 = vmatprep.mubr.msk.f32.mxu0 %vm528_vm5, %v24689_v24  ;;  %v24702_v53 = vld [vmem:[#allocation4 + $0x1a2] sm:$0xff]  ;;  %v10690_v55 = vld [vmem:[#allocation4 + $0x34] sm:$0xff] }
 0x474   : > { %19949 = vmatprep.mubr.msk.f32.mxu1 %vm528_vm5, %v10330_v15  ;;  %v7909_v33 = vpop.f32.mrf.mxu0  ;;  %27506 = vst [vmem:[#allocation45_spill] sm:$0xff] %v24702_v53  ;;  %v10331_v7 = vld [vmem:[#allocation4 + $0x1a3] sm:$0xff] }
 0x475   : > { %v24699_v6 = vadd.f32 %v19648_v28, %v7957_v54  ;;  %v7956_v37 = vadd.f32 %v7909_v33, %v24408_v58  ;;  %v8299_v49 = vpop.f32.mrf.mxu1  ;;  %v27507_v28 = vld [vmem:[#allocation39_spill] sm:$0xff] }
 0x476   : > { %v19601_v26 = vpop.f32.mrf.mxu0  ;;  %19900 = vmatmul.mubr.msk.f32.gmra.mxu0 %vm528_vm5, %v24702_v53  ;;  %v10691_v53 = vld [vmem:[#allocation4 + $0x3c] sm:$0xff] }
 0x477   : > { %v24706_v35 = vadd.f32 %v8299_v49, %v7956_v37  ;;  %v7959_v24 = vadd.f32 %v19601_v26, %v24415_v14  ;;  %v19651_v51 = vpop.f32.mrf.mxu1  ;;  %19950 = vmatmul.mubr.msk.f32.gmra.mxu1 %vm528_vm5, %v10331_v7  ;;  %19954 = vmatprep.mubr.msk.f32.mxu0 %vm528_vm5, %v10690_v55  ;;  %v24717_v49 = vld [vmem:[#allocation4 + $0x4c] sm:$0xff]  ;;  %v24722_v14 = vld [vmem:[%s26929_s9 + $0x26] sm:$0x3] }
 0x478   : > { %20004 = vmatprep.mubr.msk.f32.mxu1 %vm528_vm5, %v27507_v28  ;;  %v7919_v58 = vpop.f32.mrf.mxu0  ;;  %v24745_v28 = vld [vmem:[#allocation4 + $0x54] sm:$0xff] }
 0x479   : > { %v24713_v54 = vadd.f32 %v19651_v51, %v7959_v24  ;;  %v7958_v15 = vadd.f32 %v7919_v58, %v24426_v46  ;;  %v8309_v33 = vpop.f32.mrf.mxu1  ;;  %v27508_v24 = vld [vmem:[#allocation46_spill] sm:$0xff]  ;;  %v24734_v46 = vld [vmem:[%s26929_s9 + $0x24] sm:$0x3]  ;;  %27510 = vst [vmem:[#allocation18_spill] sm:$0xff] %v24745_v28 }
 0x47a   : > { %v19656_v29 = vpop.f32.mrf.mxu0  ;;  %19955 = vmatmul.mubr.msk.f32.vlgmr.msra.gmra.mxu0 %vm528_vm5, %v10691_v53  ;;  %v27509_v53 = vld [vmem:[#allocation20_spill] sm:$0xff] }
 0x47b   : > { %v24724_v37 = vadd.f32 %v8309_v33, %v7958_v15  ;;  %v8709_v26 = vadd.f32 %v19656_v29, %v24442_v61  ;;  %v19706_v51 = vpop.f32.mrf.mxu1  ;;  %20005 = vmatmul.mubr.msk.f32.vlgmr.msra.gmra.mxu1 %vm528_vm5, %v27508_v24  ;;  %19957 = vmatprep.mubr.msk.f32.mxu0 %vm528_vm5, %v24717_v49 }
 0x47c   : > { %20103 = vmatpush3.msk.msra.mxu1 %vm5456_vm4, %v24424_v16  ;;  %20007 = vmatprep.mubr.msk.f32.mxu1 %vm528_vm5, %v27509_v53  ;;  %v8549_v7 = vpop.f32.mrf.mxu0  ;;  %v24751_v16 = vld [vmem:[#allocation4 + $0x64] sm:$0xff] }
 0x47d   : > { %v24740_v61 = vadd.f32 %v19706_v51, %v8709_v26  ;;  %v8708_v29 = vadd.f32 %v8549_v7, %v24457_v38  ;;  %v8939_v55 = vpop.f32.mrf.mxu1  ;;  %20053 = vmatpush3.msk.msra.mxu0 %vm5456_vm4, %v24436_v30  ;;  %20202 = vmatprep.subr.msk.mxu1 %vm5456_vm4, %v24722_v14  ;;  %27511 = vst [vmem:[#allocation34_spill] sm:$0xff] %v24751_v16  ;;  %v27512_v30 = vld [vmem:[#allocation38_spill] sm:$0xff]  ;;  %v27513_v26 = vld [vmem:[#allocation40_spill] sm:$0xff] }
 0x47e   : > { %v19659_v58 = vpop.f32.mrf.mxu0  ;;  %19958 = vmatmul.mubr.msk.f32.gmra.mxu0 %vm528_vm5, %v24745_v28  ;;  %20152 = vmatprep.subr.msk.mxu0 %vm5456_vm4, %v24734_v46  ;;  %v27564_v28 = vld [vmem:[#allocation13_spill] sm:$0xff] }
 0x47f   : > { %v24755_v15 = vadd.f32 %v8939_v55, %v8708_v29  ;;  %v8711_v38 = vadd.f32 %v19659_v58, %v24466_v18  ;;  %v19709_v33 = vpop.f32.mrf.mxu1  ;;  %20008 = vmatmul.mubr.msk.f32.gmra.mxu1 %vm528_vm5, %v27512_v30  ;;  %19960 = vmatprep.mubr.msk.f32.mxu0 %vm528_vm5, %v24751_v16  ;;  %v24767_v29 = vld [vmem:[#allocation4 + $0x6c] sm:$0xff]  ;;  %v24771_v18 = vld [vmem:[#allocation4 + $0x7c] sm:$0xff] }
 0x480   : > { %20010 = vmatprep.mubr.msk.f32.mxu1 %vm528_vm5, %v27513_v26  ;;  %v8559_v51 = vpop.f32.mrf.mxu0  ;;  %27514 = vst [vmem:[#allocation61_spill] sm:$0xff] %v24767_v29  ;;  %27515 = vst [vmem:[#allocation33_spill] sm:$0xff] %v24771_v18  ;;  %v27516_v26 = vld [vmem:[#allocation8_spill] sm:$0xff] }
 0x481   : > { %v24764_v24 = vadd.f32 %v19709_v33, %v8711_v38  ;;  %v8710_v53 = vadd.f32 %v8559_v51, %v24475_v43  ;;  %v8949_v7 = vpop.f32.mrf.mxu1  ;;  %v27517_v43 = vld [vmem:[#allocation58_spill] sm:$0xff] }
 0x482   : > { %v19662_v55 = vpop.f32.mrf.mxu0  ;;  %19961 = vmatmul.mubr.msk.f32.gmra.mxu0 %vm528_vm5, %v24767_v29 }
 0x483   : > { %v24773_v58 = vadd.f32 %v8949_v7, %v8710_v53  ;;  %v8713_v30 = vadd.f32 %v19662_v55, %v24484_v0  ;;  %v19712_v16 = vpop.f32.mrf.mxu1  ;;  %20011 = vmatmul.mubr.msk.f32.gmra.mxu1 %vm528_vm5, %v27516_v26  ;;  %19963 = vmatprep.mubr.msk.f32.mxu0 %vm528_vm5, %v24771_v18  ;;  %v24785_v53 = vld [vmem:[#allocation4 + $0x84] sm:$0xff]  ;;  %v24789_v0 = vld [vmem:[#allocation4 + $0x94] sm:$0xff] }
 0x484   : > { %20013 = vmatprep.mubr.msk.f32.mxu1 %vm528_vm5, %v27517_v43  ;;  %v8569_v38 = vpop.f32.mrf.mxu0  ;;  %27518 = vst [vmem:[#allocation19_spill] sm:$0xff] %v24785_v53  ;;  %27519 = vst [vmem:[#allocation35_spill] sm:$0xff] %v24789_v0  ;;  %v27520_v43 = vld [vmem:[#allocation47_spill] sm:$0xff] }
 0x485   : > { %v24782_v33 = vadd.f32 %v19712_v16, %v8713_v30  ;;  %v8712_v51 = vadd.f32 %v8569_v38, %v24493_v23  ;;  %v8959_v29 = vpop.f32.mrf.mxu1  ;;  %v27521_v23 = vld [vmem:[#allocation22_spill] sm:$0xff] }
 0x486   : > { %v19665_v7 = vpop.f32.mrf.mxu0  ;;  %19964 = vmatmul.mubr.msk.f32.gmra.mxu0 %vm528_vm5, %v24785_v53 }
 0x487   : > { %v24791_v55 = vadd.f32 %v8959_v29, %v8712_v51  ;;  %v8715_v26 = vadd.f32 %v19665_v7, %v24502_v21  ;;  %v19715_v18 = vpop.f32.mrf.mxu1  ;;  %20014 = vmatmul.mubr.msk.f32.gmra.mxu1 %vm528_vm5, %v27520_v43  ;;  %19966 = vmatprep.mubr.msk.f32.mxu0 %vm528_vm5, %v24789_v0  ;;  %v24803_v29 = vld [vmem:[#allocation4 + $0x9c] sm:$0xff]  ;;  %v24807_v21 = vld [vmem:[#allocation4 + $0xac] sm:$0xff] }
 0x488   : > { %20016 = vmatprep.mubr.msk.f32.mxu1 %vm528_vm5, %v27521_v23  ;;  %v8579_v16 = vpop.f32.mrf.mxu0  ;;  %27522 = vst [vmem:[#allocation62_spill] sm:$0xff] %v24803_v29  ;;  %27523 = vst [vmem:[#allocation36_spill] sm:$0xff] %v24807_v21  ;;  %v27524_v23 = vld [vmem:[#allocation29_spill] sm:$0xff] }
 0x489   : > { %v24800_v30 = vadd.f32 %v19715_v18, %v8715_v26  ;;  %v8714_v38 = vadd.f32 %v8579_v16, %v24511_v8  ;;  %v8969_v53 = vpop.f32.mrf.mxu1  ;;  %v27525_v8 = vld [vmem:[#allocation50_spill] sm:$0xff] }
 0x48a   : > { %v19668_v51 = vpop.f32.mrf.mxu0  ;;  %19967 = vmatmul.mubr.msk.f32.gmra.mxu0 %vm528_vm5, %v24803_v29 }
 0x48b   : > { %v24809_v7 = vadd.f32 %v8969_v53, %v8714_v38  ;;  %v8717_v43 = vadd.f32 %v19668_v51, %v24520_v9  ;;  %v19718_v0 = vpop.f32.mrf.mxu1  ;;  %20017 = vmatmul.mubr.msk.f32.gmra.mxu1 %vm528_vm5, %v27524_v23  ;;  %19969 = vmatprep.mubr.msk.f32.mxu0 %vm528_vm5, %v24807_v21  ;;  %v24821_v53 = vld [vmem:[#allocation4 + $0xb4] sm:$0xff]  ;;  %v24825_v9 = vld [vmem:[#allocation4 + $0xc4] sm:$0xff] }
 0x48c   : > { %20019 = vmatprep.mubr.msk.f32.mxu1 %vm528_vm5, %v27525_v8  ;;  %v8589_v18 = vpop.f32.mrf.mxu0  ;;  %27526 = vst [vmem:[#allocation63_spill] sm:$0xff] %v24821_v53  ;;  %27527 = vst [vmem:[#allocation25_spill] sm:$0xff] %v24825_v9  ;;  %v27528_v8 = vld [vmem:[#allocation31_spill] sm:$0xff] }
 0x48d   : > { %v24818_v26 = vadd.f32 %v19718_v0, %v8717_v43  ;;  %v8716_v16 = vadd.f32 %v8589_v18, %v24529_v10  ;;  %v8979_v29 = vpop.f32.mrf.mxu1  ;;  %v27529_v10 = vld [vmem:[#allocation49_spill] sm:$0xff] }
 0x48e   : > { %v19671_v38 = vpop.f32.mrf.mxu0  ;;  %19970 = vmatmul.mubr.msk.f32.gmra.mxu0 %vm528_vm5, %v24821_v53 }
 0x48f   : > { %v24827_v51 = vadd.f32 %v8979_v29, %v8716_v16  ;;  %v8719_v23 = vadd.f32 %v19671_v38, %v24538_v32  ;;  %v19721_v21 = vpop.f32.mrf.mxu1  ;;  %20020 = vmatmul.mubr.msk.f32.gmra.mxu1 %vm528_vm5, %v27528_v8  ;;  %19972 = vmatprep.mubr.msk.f32.mxu0 %vm528_vm5, %v24825_v9  ;;  %v24839_v29 = vld [vmem:[#allocation4 + $0xcc] sm:$0xff]  ;;  %v24843_v32 = vld [vmem:[#allocation4 + $0xdc] sm:$0xff] }
 0x490   : > { %20022 = vmatprep.mubr.msk.f32.mxu1 %vm528_vm5, %v27529_v10  ;;  %v8599_v0 = vpop.f32.mrf.mxu0  ;;  %27530 = vst [vmem:[#allocation11_spill] sm:$0xff] %v24839_v29  ;;  %27531 = vst [vmem:[#allocation37_spill] sm:$0xff] %v24843_v32  ;;  %v27532_v10 = vld [vmem:[#allocation21_spill] sm:$0xff] }
 0x491   : > { %v24836_v43 = vadd.f32 %v19721_v21, %v8719_v23  ;;  %v8718_v18 = vadd.f32 %v8599_v0, %v24547_v4  ;;  %v8989_v53 = vpop.f32.mrf.mxu1  ;;  %v27533_v4 = vld [vmem:[#allocation59_spill] sm:$0xff] }
 0x492   : > { %v19674_v16 = vpop.f32.mrf.mxu0  ;;  %19973 = vmatmul.mubr.msk.f32.gmra.mxu0 %vm528_vm5, %v24839_v29 }
 0x493   : > { %v24845_v38 = vadd.f32 %v8989_v53, %v8718_v18  ;;  %v8721_v8 = vadd.f32 %v19674_v16, %v24556_v2  ;;  %v19724_v9 = vpop.f32.mrf.mxu1  ;;  %20023 = vmatmul.mubr.msk.f32.gmra.mxu1 %vm528_vm5, %v27532_v10  ;;  %19975 = vmatprep.mubr.msk.f32.mxu0 %vm528_vm5, %v24843_v32  ;;  %v24857_v53 = vld [vmem:[#allocation4 + $0xe4] sm:$0xff]  ;;  %v24861_v2 = vld [vmem:[#allocation4 + $0xf4] sm:$0xff] }
 0x494   : > { %20025 = vmatprep.mubr.msk.f32.mxu1 %vm528_vm5, %v27533_v4  ;;  %v8609_v21 = vpop.f32.mrf.mxu0  ;;  %27534 = vst [vmem:[#allocation39_spill] sm:$0xff] %v24857_v53  ;;  %27535 = vst [vmem:[#allocation46_spill] sm:$0xff] %v24861_v2  ;;  %v27536_v4 = vld [vmem:[#allocation9_spill] sm:$0xff] }
 0x495   : > { %v24854_v23 = vadd.f32 %v19724_v9, %v8721_v8  ;;  %v8720_v0 = vadd.f32 %v8609_v21, %v24565_v59  ;;  %v8999_v29 = vpop.f32.mrf.mxu1  ;;  %v27537_v59 = vld [vmem:[#allocation32_spill] sm:$0xff] }
 0x496   : > { %v19677_v18 = vpop.f32.mrf.mxu0  ;;  %19976 = vmatmul.mubr.msk.f32.gmra.mxu0 %vm528_vm5, %v24857_v53 }
 0x497   : > { %v24863_v16 = vadd.f32 %v8999_v29, %v8720_v0  ;;  %v8723_v10 = vadd.f32 %v19677_v18, %v24574_v45  ;;  %v19727_v32 = vpop.f32.mrf.mxu1  ;;  %20026 = vmatmul.mubr.msk.f32.gmra.mxu1 %vm528_vm5, %v27536_v4  ;;  %19978 = vmatprep.mubr.msk.f32.mxu0 %vm528_vm5, %v24861_v2  ;;  %v24875_v29 = vld [vmem:[#allocation4 + $0xfc] sm:$0xff]  ;;  %v24879_v45 = vld [vmem:[#allocation4 + $0x10c] sm:$0xff] }
 0x498   : > { %20028 = vmatprep.mubr.msk.f32.mxu1 %vm528_vm5, %v27537_v59  ;;  %v8619_v9 = vpop.f32.mrf.mxu0  ;;  %27538 = vst [vmem:[#allocation20_spill] sm:$0xff] %v24875_v29  ;;  %27539 = vst [vmem:[#allocation38_spill] sm:$0xff] %v24879_v45  ;;  %v27540_v59 = vld [vmem:[#allocation23_spill] sm:$0xff] }
 0x499   : > { %v24872_v8 = vadd.f32 %v19727_v32, %v8723_v10  ;;  %v8722_v21 = vadd.f32 %v8619_v9, %v24583_v25  ;;  %v9009_v53 = vpop.f32.mrf.mxu1  ;;  %v27541_v25 = vld [vmem:[#allocation52_spill] sm:$0xff] }
 0x49a   : > { %v19680_v0 = vpop.f32.mrf.mxu0  ;;  %19979 = vmatmul.mubr.msk.f32.gmra.mxu0 %vm528_vm5, %v24875_v29 }
 0x49b   : > { %v24881_v18 = vadd.f32 %v9009_v53, %v8722_v21  ;;  %v8725_v4 = vadd.f32 %v19680_v0, %v24592_v31  ;;  %v19730_v2 = vpop.f32.mrf.mxu1  ;;  %20029 = vmatmul.mubr.msk.f32.gmra.mxu1 %vm528_vm5, %v27540_v59  ;;  %19981 = vmatprep.mubr.msk.f32.mxu0 %vm528_vm5, %v24879_v45  ;;  %v24893_v53 = vld [vmem:[#allocation4 + $0x114] sm:$0xff]  ;;  %v24897_v31 = vld [vmem:[#allocation4 + $0x124] sm:$0xff] }
 0x49c   : > { %20031 = vmatprep.mubr.msk.f32.mxu1 %vm528_vm5, %v27541_v25  ;;  %v8629_v32 = vpop.f32.mrf.mxu0  ;;  %27542 = vst [vmem:[#allocation40_spill] sm:$0xff] %v24893_v53  ;;  %27543 = vst [vmem:[#allocation8_spill] sm:$0xff] %v24897_v31  ;;  %v27544_v25 = vld [vmem:[#allocation51_spill] sm:$0xff] }
 0x49d   : > { %v24890_v10 = vadd.f32 %v19730_v2, %v8725_v4  ;;  %v8724_v9 = vadd.f32 %v8629_v32, %v24601_v47  ;;  %v9019_v29 = vpop.f32.mrf.mxu1  ;;  %v27545_v47 = vld [vmem:[#allocation48_spill] sm:$0xff] }
 0x49e   : > { %v19683_v21 = vpop.f32.mrf.mxu0  ;;  %19982 = vmatmul.mubr.msk.f32.gmra.mxu0 %vm528_vm5, %v24893_v53 }
 0x49f   : > { %v24899_v0 = vadd.f32 %v9019_v29, %v8724_v9  ;;  %v8727_v59 = vadd.f32 %v19683_v21, %v24610_v36  ;;  %v19733_v45 = vpop.f32.mrf.mxu1  ;;  %20032 = vmatmul.mubr.msk.f32.gmra.mxu1 %vm528_vm5, %v27544_v25  ;;  %19984 = vmatprep.mubr.msk.f32.mxu0 %vm528_vm5, %v24897_v31  ;;  %v24911_v29 = vld [vmem:[#allocation4 + $0x12c] sm:$0xff]  ;;  %v24915_v36 = vld [vmem:[#allocation4 + $0x13c] sm:$0xff] }
 0x4a0   : > { %20034 = vmatprep.mubr.msk.f32.mxu1 %vm528_vm5, %v27545_v47  ;;  %v8639_v2 = vpop.f32.mrf.mxu0  ;;  %27546 = vst [vmem:[#allocation58_spill] sm:$0xff] %v24911_v29  ;;  %27547 = vst [vmem:[#allocation47_spill] sm:$0xff] %v24915_v36  ;;  %v27548_v47 = vld [vmem:[#allocation24_spill] sm:$0xff] }
 0x4a1   : > { %v24908_v4 = vadd.f32 %v19733_v45, %v8727_v59  ;;  %v8726_v32 = vadd.f32 %v8639_v2, %v24619_v63  ;;  %v9029_v53 = vpop.f32.mrf.mxu1  ;;  %v27549_v63 = vld [vmem:[#allocation41_spill] sm:$0xff] }
 0x4a2   : > { %v19686_v9 = vpop.f32.mrf.mxu0  ;;  %19985 = vmatmul.mubr.msk.f32.gmra.mxu0 %vm528_vm5, %v24911_v29 }
 0x4a3   : > { %v24917_v21 = vadd.f32 %v9029_v53, %v8726_v32  ;;  %v8729_v25 = vadd.f32 %v19686_v9, %v24628_v22  ;;  %v19736_v31 = vpop.f32.mrf.mxu1  ;;  %20035 = vmatmul.mubr.msk.f32.gmra.mxu1 %vm528_vm5, %v27548_v47  ;;  %19987 = vmatprep.mubr.msk.f32.mxu0 %vm528_vm5, %v24915_v36  ;;  %v24929_v53 = vld [vmem:[#allocation4 + $0x144] sm:$0xff]  ;;  %v24933_v22 = vld [vmem:[#allocation4 + $0x154] sm:$0xff] }
 0x4a4   : > { %20037 = vmatprep.mubr.msk.f32.mxu1 %vm528_vm5, %v27549_v63  ;;  %v8649_v45 = vpop.f32.mrf.mxu0  ;;  %27550 = vst [vmem:[#allocation22_spill] sm:$0xff] %v24929_v53  ;;  %27551 = vst [vmem:[#allocation29_spill] sm:$0xff] %v24933_v22  ;;  %v27552_v63 = vld [vmem:[#allocation10_spill] sm:$0xff] }
 0x4a5   : > { %v24926_v59 = vadd.f32 %v19736_v31, %v8729_v25  ;;  %v8728_v2 = vadd.f32 %v8649_v45, %v24637_v3  ;;  %v9039_v29 = vpop.f32.mrf.mxu1  ;;  %v27553_v3 = vld [vmem:[#allocation42_spill] sm:$0xff] }
 0x4a6   : > { %v19689_v32 = vpop.f32.mrf.mxu0  ;;  %19988 = vmatmul.mubr.msk.f32.gmra.mxu0 %vm528_vm5, %v24929_v53 }
 0x4a7   : > { %v24935_v9 = vadd.f32 %v9039_v29, %v8728_v2  ;;  %v8731_v47 = vadd.f32 %v19689_v32, %v24646_v39  ;;  %v19739_v36 = vpop.f32.mrf.mxu1  ;;  %20038 = vmatmul.mubr.msk.f32.gmra.mxu1 %vm528_vm5, %v27552_v63  ;;  %19990 = vmatprep.mubr.msk.f32.mxu0 %vm528_vm5, %v24933_v22  ;;  %v24947_v29 = vld [vmem:[#allocation4 + $0x15c] sm:$0xff]  ;;  %v24951_v39 = vld [vmem:[#allocation4 + $0x16c] sm:$0xff] }
 0x4a8   : > { %20040 = vmatprep.mubr.msk.f32.mxu1 %vm528_vm5, %v27553_v3  ;;  %v8659_v31 = vpop.f32.mrf.mxu0  ;;  %27554 = vst [vmem:[#allocation50_spill] sm:$0xff] %v24947_v29  ;;  %27555 = vst [vmem:[#allocation31_spill] sm:$0xff] %v24951_v39  ;;  %v27556_v3 = vld [vmem:[#allocation12_spill] sm:$0xff] }
 0x4a9   : > { %v24944_v25 = vadd.f32 %v19739_v36, %v8731_v47  ;;  %v8730_v45 = vadd.f32 %v8659_v31, %v24655_v48  ;;  %v9049_v53 = vpop.f32.mrf.mxu1  ;;  %v27557_v48 = vld [vmem:[#allocation26_spill] sm:$0xff] }
 0x4aa   : > { %v19692_v2 = vpop.f32.mrf.mxu0  ;;  %19991 = vmatmul.mubr.msk.f32.gmra.mxu0 %vm528_vm5, %v24947_v29 }
 0x4ab   : > { %v24953_v32 = vadd.f32 %v9049_v53, %v8730_v45  ;;  %v8733_v63 = vadd.f32 %v19692_v2, %v24664_v44  ;;  %v19742_v22 = vpop.f32.mrf.mxu1  ;;  %20041 = vmatmul.mubr.msk.f32.gmra.mxu1 %vm528_vm5, %v27556_v3  ;;  %19993 = vmatprep.mubr.msk.f32.mxu0 %vm528_vm5, %v24951_v39  ;;  %v24965_v53 = vld [vmem:[#allocation4 + $0x174] sm:$0xff]  ;;  %v24969_v44 = vld [vmem:[#allocation4 + $0x184] sm:$0xff] }
 0x4ac   : > { %20043 = vmatprep.mubr.msk.f32.mxu1 %vm528_vm5, %v27557_v48  ;;  %v8669_v36 = vpop.f32.mrf.mxu0  ;;  %27558 = vst [vmem:[#allocation49_spill] sm:$0xff] %v24965_v53  ;;  %27559 = vst [vmem:[#allocation21_spill] sm:$0xff] %v24969_v44  ;;  %v27560_v48 = vld [vmem:[#allocation54_spill] sm:$0xff] }
 0x4ad   : > { %v24962_v47 = vadd.f32 %v19742_v22, %v8733_v63  ;;  %v8732_v31 = vadd.f32 %v8669_v36, %v24673_v40  ;;  %v9059_v29 = vpop.f32.mrf.mxu1  ;;  %v27561_v40 = vld [vmem:[#allocation53_spill] sm:$0xff] }
 0x4ae   : > { %v19695_v45 = vpop.f32.mrf.mxu0  ;;  %19994 = vmatmul.mubr.msk.f32.gmra.mxu0 %vm528_vm5, %v24965_v53 }
 0x4af   : > { %v24971_v2 = vadd.f32 %v9059_v29, %v8732_v31  ;;  %v8735_v3 = vadd.f32 %v19695_v45, %v24682_v1  ;;  %v19745_v39 = vpop.f32.mrf.mxu1  ;;  %20044 = vmatmul.mubr.msk.f32.gmra.mxu1 %vm528_vm5, %v27560_v48  ;;  %19996 = vmatprep.mubr.msk.f32.mxu0 %vm528_vm5, %v24969_v44  ;;  %v24983_v29 = vld [vmem:[#allocation4 + $0x18c] sm:$0xff]  ;;  %v24987_v45 = vld [vmem:[#allocation4 + $0x19c] sm:$0xff] }
 0x4b0   : > { %20046 = vmatprep.mubr.msk.f32.mxu1 %vm528_vm5, %v27561_v40  ;;  %v8679_v22 = vpop.f32.mrf.mxu0  ;;  %27562 = vst [vmem:[#allocation59_spill] sm:$0xff] %v24983_v29  ;;  %v11111_v31 = vld [vmem:[#allocation4 + $0x1b0] sm:$0xff]  ;;  %27563 = vst [vmem:[#allocation9_spill] sm:$0xff] %v24987_v45 }
 0x4b1   : > { %v24980_v63 = vadd.f32 %v19745_v39, %v8735_v3  ;;  %v8734_v36 = vadd.f32 %v8679_v22, %v24691_v56  ;;  %v9069_v53 = vpop.f32.mrf.mxu1  ;;  %v11112_v39 = vld [vmem:[#allocation4 + $0x1b8] sm:$0xff] }
 0x4b2   : > { %v19698_v1 = vpop.f32.mrf.mxu0  ;;  %19997 = vmatmul.mubr.msk.f32.gmra.mxu0 %vm528_vm5, %v24983_v29 }
 0x4b3   : > { %v24989_v48 = vadd.f32 %v9069_v53, %v8734_v36  ;;  %v8737_v44 = vadd.f32 %v19698_v1, %v24699_v6  ;;  %v19748_v40 = vpop.f32.mrf.mxu1  ;;  %20047 = vmatmul.mubr.msk.f32.gmra.mxu1 %vm528_vm5, %v27564_v28  ;;  %19999 = vmatprep.mubr.msk.f32.mxu0 %vm528_vm5, %v24987_v45  ;;  %v25000_v53 = vld [vmem:[#allocation4 + $0x1a4] sm:$0xff] }
 0x4b4   : > { %v8689_v56 = vpop.f32.mrf.mxu0  ;;  %20049 = vmatprep.mubr.msk.f32.mxu1 %vm528_vm5, %v11111_v31  ;;  %27565 = vst [vmem:[#allocation32_spill] sm:$0xff] %v25000_v53  ;;  %v11471_v6 = vld [vmem:[#allocation4 + $0x49] sm:$0xff] }
 0x4b5   : > { %v24997_v3 = vadd.f32 %v19748_v40, %v8737_v44  ;;  %v8736_v22 = vadd.f32 %v8689_v56, %v24706_v35  ;;  %v9079_v29 = vpop.f32.mrf.mxu1  ;;  %v11472_v56 = vld [vmem:[#allocation4 + $0x51] sm:$0xff] }
 0x4b6   : > { %v19701_v36 = vpop.f32.mrf.mxu0  ;;  %20000 = vmatmul.mubr.msk.f32.gmra.mxu0 %vm528_vm5, %v25000_v53 }
 0x4b7   : > { %v25004_v28 = vadd.f32 %v9079_v29, %v8736_v22  ;;  %v8739_v1 = vadd.f32 %v19701_v36, %v24713_v54  ;;  %v19751_v45 = vpop.f32.mrf.mxu1  ;;  %20050 = vmatmul.mubr.msk.f32.gmra.mxu1 %vm528_vm5, %v11112_v39  ;;  %20054 = vmatprep.mubr.msk.f32.mxu0 %vm528_vm5, %v11471_v6  ;;  %v25015_v29 = vld [vmem:[#allocation4 + $0x61] sm:$0xff]  ;;  %v25020_v54 = vld [vmem:[%s26929_s9 + $0x2a] sm:$0x3] }
 0x4b8   : > { %20104 = vmatprep.mubr.msk.f32.mxu1 %vm528_vm5, %v24419_v19  ;;  %v8699_v35 = vpop.f32.mrf.mxu0  ;;  %v25043_v36 = vld [vmem:[#allocation4 + $0x69] sm:$0xff] }
 0x4b9   : > { %v25011_v44 = vadd.f32 %v19751_v45, %v8739_v1  ;;  %v8738_v31 = vadd.f32 %v8699_v35, %v24724_v37  ;;  %v9089_v40 = vpop.f32.mrf.mxu1  ;;  %v25032_v37 = vld [vmem:[%s26929_s9 + $0x28] sm:$0x3] }
 0x4ba   : > { %v19756_v53 = vpop.f32.mrf.mxu0  ;;  %20055 = vmatmul.mubr.msk.f32.vlgmr.msra.gmra.mxu0 %vm528_vm5, %v11472_v56  ;;  %v25065_v56 = vld [vmem:[#allocation4 + $0x81] sm:$0xff] }
 0x4bb   : > { %v25022_v39 = vadd.f32 %v9089_v40, %v8738_v31  ;;  %v9489_v19 = vadd.f32 %v19756_v53, %v24740_v61  ;;  %v19806_v45 = vpop.f32.mrf.mxu1  ;;  %20105 = vmatmul.mubr.msk.f32.vlgmr.msra.gmra.mxu1 %vm528_vm5, %v24447_v12  ;;  %20057 = vmatprep.mubr.msk.f32.mxu0 %vm528_vm5, %v25015_v29 }
 0x4bc   : > { %20203 = vmatpush3.msk.msra.mxu1 %vm5456_vm4, %v24722_v14  ;;  %20107 = vmatprep.mubr.msk.f32.mxu1 %vm528_vm5, %v24453_v50  ;;  %v9329_v22 = vpop.f32.mrf.mxu0  ;;  %v25049_v14 = vld [vmem:[#allocation4 + $0x79] sm:$0xff] }
 0x4bd   : > { %v25038_v61 = vadd.f32 %v19806_v45, %v9489_v19  ;;  %v9488_v53 = vadd.f32 %v9329_v22, %v24755_v15  ;;  %v9719_v12 = vpop.f32.mrf.mxu1  ;;  %20153 = vmatpush3.msk.msra.mxu0 %vm5456_vm4, %v24734_v46  ;;  %20302 = vmatprep.subr.msk.mxu1 %vm5456_vm4, %v25020_v54 }
 0x4be   : > { %v19759_v6 = vpop.f32.mrf.mxu0  ;;  %20058 = vmatmul.mubr.msk.f32.gmra.mxu0 %vm528_vm5, %v25043_v36  ;;  %20252 = vmatprep.subr.msk.mxu0 %vm5456_vm4, %v25032_v37 }
 0x4bf   : > { %v25053_v50 = vadd.f32 %v9719_v12, %v9488_v53  ;;  %v9491_v15 = vadd.f32 %v19759_v6, %v24764_v24  ;;  %v19809_v1 = vpop.f32.mrf.mxu1  ;;  %20108 = vmatmul.mubr.msk.f32.gmra.mxu1 %vm528_vm5, %v24469_v20  ;;  %20060 = vmatprep.mubr.msk.f32.mxu0 %vm528_vm5, %v25049_v14  ;;  %v25069_v24 = vld [vmem:[#allocation4 + $0x91] sm:$0xff]  ;;  %v25083_v6 = vld [vmem:[#allocation4 + $0x99] sm:$0xff] }
 0x4c0   : > { %20110 = vmatprep.mubr.msk.f32.mxu1 %vm528_vm5, %v24473_v62  ;;  %v9339_v46 = vpop.f32.mrf.mxu0 }
 0x4c1   : > { %v25062_v35 = vadd.f32 %v19809_v1, %v9491_v15  ;;  %v9490_v31 = vadd.f32 %v9339_v46, %v24773_v58  ;;  %v9729_v40 = vpop.f32.mrf.mxu1 }
 0x4c2   : > { %v19762_v19 = vpop.f32.mrf.mxu0  ;;  %20061 = vmatmul.mubr.msk.f32.gmra.mxu0 %vm528_vm5, %v25065_v56 }
 0x4c3   : > { %v25071_v20 = vadd.f32 %v9729_v40, %v9490_v31  ;;  %v9493_v45 = vadd.f32 %v19762_v19, %v24782_v33  ;;  %v19812_v22 = vpop.f32.mrf.mxu1  ;;  %20111 = vmatmul.mubr.msk.f32.gmra.mxu1 %vm528_vm5, %v24487_v52  ;;  %20063 = vmatprep.mubr.msk.f32.mxu0 %vm528_vm5, %v25069_v24  ;;  %v25087_v33 = vld [vmem:[#allocation4 + $0xa9] sm:$0xff]  ;;  %v25101_v19 = vld [vmem:[#allocation4 + $0xb1] sm:$0xff] }
 0x4c4   : > { %20113 = vmatprep.mubr.msk.f32.mxu1 %vm528_vm5, %v24491_v41  ;;  %v9349_v62 = vpop.f32.mrf.mxu0 }
 0x4c5   : > { %v25080_v58 = vadd.f32 %v19812_v22, %v9493_v45  ;;  %v9492_v53 = vadd.f32 %v9349_v62, %v24791_v55  ;;  %v9739_v12 = vpop.f32.mrf.mxu1 }
 0x4c6   : > { %v19765_v15 = vpop.f32.mrf.mxu0  ;;  %20064 = vmatmul.mubr.msk.f32.gmra.mxu0 %vm528_vm5, %v25083_v6 }
 0x4c7   : > { %v25089_v52 = vadd.f32 %v9739_v12, %v9492_v53  ;;  %v9495_v1 = vadd.f32 %v19765_v15, %v24800_v30  ;;  %v19815_v46 = vpop.f32.mrf.mxu1  ;;  %20114 = vmatmul.mubr.msk.f32.gmra.mxu1 %vm528_vm5, %v24505_v13  ;;  %20066 = vmatprep.mubr.msk.f32.mxu0 %vm528_vm5, %v25087_v33  ;;  %v25105_v30 = vld [vmem:[#allocation4 + $0xc1] sm:$0xff]  ;;  %v25119_v15 = vld [vmem:[#allocation4 + $0xc9] sm:$0xff] }
 0x4c8   : > { %20116 = vmatprep.mubr.msk.f32.mxu1 %vm528_vm5, %v24509_v17  ;;  %v9359_v41 = vpop.f32.mrf.mxu0 }
 0x4c9   : > { %v25098_v55 = vadd.f32 %v19815_v46, %v9495_v1  ;;  %v9494_v31 = vadd.f32 %v9359_v41, %v24809_v7  ;;  %v9749_v40 = vpop.f32.mrf.mxu1 }
 0x4ca   : > { %v19768_v45 = vpop.f32.mrf.mxu0  ;;  %20067 = vmatmul.mubr.msk.f32.gmra.mxu0 %vm528_vm5, %v25101_v19 }
 0x4cb   : > { %v25107_v13 = vadd.f32 %v9749_v40, %v9494_v31  ;;  %v9497_v22 = vadd.f32 %v19768_v45, %v24818_v26  ;;  %v19818_v62 = vpop.f32.mrf.mxu1  ;;  %20117 = vmatmul.mubr.msk.f32.gmra.mxu1 %vm528_vm5, %v24523_v11  ;;  %20069 = vmatprep.mubr.msk.f32.mxu0 %vm528_vm5, %v25105_v30  ;;  %v25123_v26 = vld [vmem:[#allocation4 + $0xd9] sm:$0xff]  ;;  %v25137_v45 = vld [vmem:[#allocation4 + $0xe1] sm:$0xff] }
 0x4cc   : > { %20119 = vmatprep.mubr.msk.f32.mxu1 %vm528_vm5, %v24527_v34  ;;  %v9369_v17 = vpop.f32.mrf.mxu0 }
 0x4cd   : > { %v25116_v7 = vadd.f32 %v19818_v62, %v9497_v22  ;;  %v9496_v53 = vadd.f32 %v9369_v17, %v24827_v51  ;;  %v9759_v12 = vpop.f32.mrf.mxu1 }
 0x4ce   : > { %v19771_v1 = vpop.f32.mrf.mxu0  ;;  %20070 = vmatmul.mubr.msk.f32.gmra.mxu0 %vm528_vm5, %v25119_v15 }
 0x4cf   : > { %v25125_v11 = vadd.f32 %v9759_v12, %v9496_v53  ;;  %v9499_v46 = vadd.f32 %v19771_v1, %v24836_v43  ;;  %v19821_v41 = vpop.f32.mrf.mxu1  ;;  %20120 = vmatmul.mubr.msk.f32.gmra.mxu1 %vm528_vm5, %v24541_v60  ;;  %20072 = vmatprep.mubr.msk.f32.mxu0 %vm528_vm5, %v25123_v26  ;;  %v25141_v43 = vld [vmem:[#allocation4 + $0xf1] sm:$0xff]  ;;  %v25155_v1 = vld [vmem:[#allocation4 + $0xf9] sm:$0xff] }
 0x4d0   : > { %20122 = vmatprep.mubr.msk.f32.mxu1 %vm528_vm5, %v24545_v57  ;;  %v9379_v34 = vpop.f32.mrf.mxu0 }
 0x4d1   : > { %v25134_v51 = vadd.f32 %v19821_v41, %v9499_v46  ;;  %v9498_v31 = vadd.f32 %v9379_v34, %v24845_v38  ;;  %v9769_v40 = vpop.f32.mrf.mxu1 }
 0x4d2   : > { %v19774_v22 = vpop.f32.mrf.mxu0  ;;  %20073 = vmatmul.mubr.msk.f32.gmra.mxu0 %vm528_vm5, %v25137_v45 }
 0x4d3   : > { %v25143_v60 = vadd.f32 %v9769_v40, %v9498_v31  ;;  %v9501_v62 = vadd.f32 %v19774_v22, %v24854_v23  ;;  %v19824_v17 = vpop.f32.mrf.mxu1  ;;  %20123 = vmatmul.mubr.msk.f32.gmra.mxu1 %vm528_vm5, %v24559_v42  ;;  %20075 = vmatprep.mubr.msk.f32.mxu0 %vm528_vm5, %v25141_v43  ;;  %v25159_v23 = vld [vmem:[#allocation4 + $0x109] sm:$0xff] }
 0x4d4   : > { %20125 = vmatprep.mubr.msk.f32.mxu1 %vm528_vm5, %v24563_v5  ;;  %v9389_v57 = vpop.f32.mrf.mxu0  ;;  %v27566_v5 = vld [vmem:[#allocation27_spill] sm:$0xff] }
 0x4d5   : > { %v25152_v38 = vadd.f32 %v19824_v17, %v9501_v62  ;;  %v9500_v53 = vadd.f32 %v9389_v57, %v24863_v16  ;;  %v9779_v12 = vpop.f32.mrf.mxu1  ;;  %v25173_v62 = vld [vmem:[#allocation4 + $0x111] sm:$0xff] }
 0x4d6   : > { %v19777_v46 = vpop.f32.mrf.mxu0  ;;  %20076 = vmatmul.mubr.msk.f32.gmra.mxu0 %vm528_vm5, %v25155_v1 }
 0x4d7   : > { %v25161_v42 = vadd.f32 %v9779_v12, %v9500_v53  ;;  %v9503_v41 = vadd.f32 %v19777_v46, %v24872_v8  ;;  %v19827_v34 = vpop.f32.mrf.mxu1  ;;  %20126 = vmatmul.mubr.msk.f32.gmra.mxu1 %vm528_vm5, %v24577_v27  ;;  %20078 = vmatprep.mubr.msk.f32.mxu0 %vm528_vm5, %v25159_v23  ;;  %v25177_v8 = vld [vmem:[#allocation4 + $0x121] sm:$0xff] }
 0x4d8   : > { %20128 = vmatprep.mubr.msk.f32.mxu1 %vm528_vm5, %v27566_v5  ;;  %v9399_v16 = vpop.f32.mrf.mxu0  ;;  %27567 = vst [vmem:[#allocation23_spill] sm:$0xff] %v25177_v8  ;;  %v27568_v12 = vld [vmem:[#allocation56_spill] sm:$0xff] }
 0x4d9   : > { %v25170_v31 = vadd.f32 %v19827_v34, %v9503_v41  ;;  %v9502_v40 = vadd.f32 %v9399_v16, %v24881_v18  ;;  %v9789_v22 = vpop.f32.mrf.mxu1  ;;  %v27569_v18 = vld [vmem:[#allocation55_spill] sm:$0xff]  ;;  %v25191_v16 = vld [vmem:[#allocation4 + $0x129] sm:$0xff] }
 0x4da   : > { %v19780_v17 = vpop.f32.mrf.mxu0  ;;  %20079 = vmatmul.mubr.msk.f32.gmra.mxu0 %vm528_vm5, %v25173_v62  ;;  %27570 = vst [vmem:[#allocation52_spill] sm:$0xff] %v25191_v16 }
 0x4db   : > { %v25179_v27 = vadd.f32 %v9789_v22, %v9502_v40  ;;  %v9505_v57 = vadd.f32 %v19780_v17, %v24890_v10  ;;  %v19830_v53 = vpop.f32.mrf.mxu1  ;;  %20129 = vmatmul.mubr.msk.f32.gmra.mxu1 %vm528_vm5, %v27568_v12  ;;  %20081 = vmatprep.mubr.msk.f32.mxu0 %vm528_vm5, %v25177_v8  ;;  %v25195_v10 = vld [vmem:[#allocation4 + $0x139] sm:$0xff]  ;;  %v27592_v8 = vld [vmem:[#allocation45_spill] sm:$0xff] }
 0x4dc   : > { %20131 = vmatprep.mubr.msk.f32.mxu1 %vm528_vm5, %v27569_v18  ;;  %v9409_v46 = vpop.f32.mrf.mxu0  ;;  %27571 = vst [vmem:[#allocation51_spill] sm:$0xff] %v25195_v10  ;;  %v27572_v18 = vld [vmem:[#allocation28_spill] sm:$0xff] }
 0x4dd   : > { %v25188_v41 = vadd.f32 %v19830_v53, %v9505_v57  ;;  %v9504_v34 = vadd.f32 %v9409_v46, %v24899_v0  ;;  %v9799_v5 = vpop.f32.mrf.mxu1  ;;  %v27573_v0 = vld [vmem:[#allocation43_spill] sm:$0xff] }
 0x4de   : > { %v19783_v40 = vpop.f32.mrf.mxu0  ;;  %20082 = vmatmul.mubr.msk.f32.gmra.mxu0 %vm528_vm5, %v25191_v16 }
 0x4df   : > { %v25197_v22 = vadd.f32 %v9799_v5, %v9504_v34  ;;  %v9507_v17 = vadd.f32 %v19783_v40, %v24908_v4  ;;  %v19833_v12 = vpop.f32.mrf.mxu1  ;;  %20132 = vmatmul.mubr.msk.f32.gmra.mxu1 %vm528_vm5, %v27572_v18  ;;  %20084 = vmatprep.mubr.msk.f32.mxu0 %vm528_vm5, %v25195_v10  ;;  %v25209_v34 = vld [vmem:[#allocation4 + $0x141] sm:$0xff]  ;;  %v25213_v4 = vld [vmem:[#allocation4 + $0x151] sm:$0xff] }
 0x4e0   : > { %20134 = vmatprep.mubr.msk.f32.mxu1 %vm528_vm5, %v27573_v0  ;;  %v9419_v57 = vpop.f32.mrf.mxu0  ;;  %27574 = vst [vmem:[#allocation48_spill] sm:$0xff] %v25209_v34  ;;  %27575 = vst [vmem:[#allocation24_spill] sm:$0xff] %v25213_v4  ;;  %v27576_v0 = vld [vmem:[#allocation14_spill] sm:$0xff] }
 0x4e1   : > { %v25206_v53 = vadd.f32 %v19833_v12, %v9507_v17  ;;  %v9506_v46 = vadd.f32 %v9419_v57, %v24917_v21  ;;  %v9809_v16 = vpop.f32.mrf.mxu1  ;;  %v27577_v21 = vld [vmem:[#allocation44_spill] sm:$0xff] }
 0x4e2   : > { %v19786_v5 = vpop.f32.mrf.mxu0  ;;  %20085 = vmatmul.mubr.msk.f32.gmra.mxu0 %vm528_vm5, %v25209_v34 }
 0x4e3   : > { %v25215_v40 = vadd.f32 %v9809_v16, %v9506_v46  ;;  %v9509_v18 = vadd.f32 %v19786_v5, %v24926_v59  ;;  %v19836_v10 = vpop.f32.mrf.mxu1  ;;  %20135 = vmatmul.mubr.msk.f32.gmra.mxu1 %vm528_vm5, %v27576_v0  ;;  %20087 = vmatprep.mubr.msk.f32.mxu0 %vm528_vm5, %v25213_v4  ;;  %v25227_v16 = vld [vmem:[#allocation4 + $0x159] sm:$0xff]  ;;  %v25231_v59 = vld [vmem:[#allocation4 + $0x169] sm:$0xff] }
 0x4e4   : > { %20137 = vmatprep.mubr.msk.f32.mxu1 %vm528_vm5, %v27577_v21  ;;  %v9429_v17 = vpop.f32.mrf.mxu0  ;;  %27578 = vst [vmem:[#allocation41_spill] sm:$0xff] %v25227_v16  ;;  %27579 = vst [vmem:[#allocation10_spill] sm:$0xff] %v25231_v59  ;;  %v27580_v21 = vld [vmem:[#allocation16_spill] sm:$0xff] }
 0x4e5   : > { %v25224_v12 = vadd.f32 %v19836_v10, %v9509_v18  ;;  %v9508_v57 = vadd.f32 %v9429_v17, %v24935_v9  ;;  %v9819_v34 = vpop.f32.mrf.mxu1  ;;  %v27581_v9 = vld [vmem:[#allocation30_spill] sm:$0xff] }
 0x4e6   : > { %v19789_v46 = vpop.f32.mrf.mxu0  ;;  %20088 = vmatmul.mubr.msk.f32.gmra.mxu0 %vm528_vm5, %v25227_v16 }
 0x4e7   : > { %v25233_v5 = vadd.f32 %v9819_v34, %v9508_v57  ;;  %v9511_v0 = vadd.f32 %v19789_v46, %v24944_v25  ;;  %v19839_v4 = vpop.f32.mrf.mxu1  ;;  %20138 = vmatmul.mubr.msk.f32.gmra.mxu1 %vm528_vm5, %v27580_v21  ;;  %20090 = vmatprep.mubr.msk.f32.mxu0 %vm528_vm5, %v25231_v59  ;;  %v25245_v34 = vld [vmem:[#allocation4 + $0x171] sm:$0xff]  ;;  %v25249_v25 = vld [vmem:[#allocation4 + $0x181] sm:$0xff] }
 0x4e8   : > { %20140 = vmatprep.mubr.msk.f32.mxu1 %vm528_vm5, %v27581_v9  ;;  %v9439_v10 = vpop.f32.mrf.mxu0  ;;  %27582 = vst [vmem:[#allocation42_spill] sm:$0xff] %v25245_v34  ;;  %27583 = vst [vmem:[#allocation12_spill] sm:$0xff] %v25249_v25  ;;  %v27584_v9 = vld [vmem:[#allocation57_spill] sm:$0xff] }
 0x4e9   : > { %v25242_v18 = vadd.f32 %v19839_v4, %v9511_v0  ;;  %v9510_v17 = vadd.f32 %v9439_v10, %v24953_v32  ;;  %v9829_v16 = vpop.f32.mrf.mxu1  ;;  %v27585_v32 = vld [vmem:[#allocation15_spill] sm:$0xff] }
 0x4ea   : > { %v19792_v57 = vpop.f32.mrf.mxu0  ;;  %20091 = vmatmul.mubr.msk.f32.gmra.mxu0 %vm528_vm5, %v25245_v34 }
 0x4eb   : > { %v25251_v46 = vadd.f32 %v9829_v16, %v9510_v17  ;;  %v9513_v21 = vadd.f32 %v19792_v57, %v24962_v47  ;;  %v19842_v59 = vpop.f32.mrf.mxu1  ;;  %20141 = vmatmul.mubr.msk.f32.gmra.mxu1 %vm528_vm5, %v27584_v9  ;;  %20093 = vmatprep.mubr.msk.f32.mxu0 %vm528_vm5, %v25249_v25  ;;  %v25263_v16 = vld [vmem:[#allocation4 + $0x189] sm:$0xff]  ;;  %v25267_v47 = vld [vmem:[#allocation4 + $0x199] sm:$0xff] }
 0x4ec   : > { %20143 = vmatprep.mubr.msk.f32.mxu1 %vm528_vm5, %v27585_v32  ;;  %v9449_v4 = vpop.f32.mrf.mxu0  ;;  %27586 = vst [vmem:[#allocation26_spill] sm:$0xff] %v25263_v16  ;;  %27587 = vst [vmem:[#allocation54_spill] sm:$0xff] %v25267_v47  ;;  %v27588_v32 = vld [vmem:[#allocation17_spill] sm:$0xff] }
 0x4ed   : > { %v25260_v0 = vadd.f32 %v19842_v59, %v9513_v21  ;;  %v9512_v10 = vadd.f32 %v9449_v4, %v24971_v2  ;;  %v9839_v34 = vpop.f32.mrf.mxu1  ;;  %v27589_v2 = vld [vmem:[#allocation60_spill] sm:$0xff]  ;;  %v25278_v21 = vld [vmem:[#allocation4 + $0x1b1] sm:$0xff] }
 0x4ee   : > { %v19795_v17 = vpop.f32.mrf.mxu0  ;;  %20094 = vmatmul.mubr.msk.f32.gmra.mxu0 %vm528_vm5, %v25263_v16  ;;  %27590 = vst [vmem:[#allocation53_spill] sm:$0xff] %v25278_v21  ;;  %v25283_v16 = vld [vmem:[#allocation4 + $0x1a1] sm:$0xff] }
 0x4ef   : > { %v25269_v57 = vadd.f32 %v9839_v34, %v9512_v10  ;;  %v9515_v9 = vadd.f32 %v19795_v17, %v24980_v63  ;;  %v19845_v25 = vpop.f32.mrf.mxu1  ;;  %20144 = vmatmul.mubr.msk.f32.gmra.mxu1 %vm528_vm5, %v27588_v32  ;;  %20096 = vmatprep.mubr.msk.f32.mxu0 %vm528_vm5, %v25267_v47  ;;  %27591 = vst [vmem:[#allocation13_spill] sm:$0xff] %v25283_v16  ;;  %v11891_v63 = vld [vmem:[#allocation4 + $0x1b2] sm:$0xff] }
 0x4f0   : > { %20146 = vmatprep.mubr.msk.f32.mxu1 %vm528_vm5, %v27589_v2  ;;  %v9459_v59 = vpop.f32.mrf.mxu0 }
 0x4f1   : > { %v25280_v4 = vadd.f32 %v19845_v25, %v9515_v9  ;;  %v9514_v34 = vadd.f32 %v9459_v59, %v24989_v48  ;;  %v9849_v10 = vpop.f32.mrf.mxu1  ;;  %v25294_v48 = vld [vmem:[#allocation4 + $0x1b9] sm:$0xff] }
 0x4f2   : > { %v19798_v17 = vpop.f32.mrf.mxu0  ;;  %20097 = vmatmul.mubr.msk.f32.gmra.mxu0 %vm528_vm5, %v25283_v16  ;;  %27593 = vst [vmem:[#allocation27_spill] sm:$0xff] %v25294_v48  ;;  %v11892_v9 = vld [vmem:[#allocation4 + $0x1ba] sm:$0xff] }
 0x4f3   : > { %v25287_v32 = vadd.f32 %v9849_v10, %v9514_v34  ;;  %v9517_v47 = vadd.f32 %v19798_v17, %v24997_v3  ;;  %v19848_v2 = vpop.f32.mrf.mxu1  ;;  %20147 = vmatmul.mubr.msk.f32.gmra.mxu1 %vm528_vm5, %v27592_v8  ;;  %20099 = vmatprep.mubr.msk.f32.mxu0 %vm528_vm5, %v25278_v21  ;;  %v12251_v3 = vld [vmem:[#allocation4 + $0x4b] sm:$0xff] }
 0x4f4   : > { %v9469_v25 = vpop.f32.mrf.mxu0  ;;  %20149 = vmatprep.mubr.msk.f32.mxu1 %vm528_vm5, %v11891_v63 }
 0x4f5   : > { %v25297_v59 = vadd.f32 %v19848_v2, %v9517_v47  ;;  %v9516_v34 = vadd.f32 %v9469_v25, %v25004_v28  ;;  %v9859_v10 = vpop.f32.mrf.mxu1  ;;  %v12252_v25 = vld [vmem:[#allocation4 + $0x53] sm:$0xff] }
 0x4f6   : > { %v19801_v16 = vpop.f32.mrf.mxu0  ;;  %20100 = vmatmul.mubr.msk.f32.gmra.mxu0 %vm528_vm5, %v25294_v48 }
 0x4f7   : > { %v25302_v8 = vadd.f32 %v9859_v10, %v9516_v34  ;;  %v9519_v17 = vadd.f32 %v19801_v16, %v25011_v44  ;;  %v19851_v21 = vpop.f32.mrf.mxu1  ;;  %20150 = vmatmul.mubr.msk.f32.gmra.mxu1 %vm528_vm5, %v11892_v9  ;;  %20154 = vmatprep.mubr.msk.f32.mxu0 %vm528_vm5, %v12251_v3  ;;  %v25313_v34 = vld [vmem:[#allocation4 + $0x63] sm:$0xff]  ;;  %v25318_v44 = vld [vmem:[%s26929_s9 + $0x2e] sm:$0x3]  ;;  %v27594_v9 = vld [vmem:[#allocation18_spill] sm:$0xff] }
 0x4f8   : > { %20204 = vmatprep.mubr.msk.f32.mxu1 %vm528_vm5, %v24717_v49  ;;  %v9479_v47 = vpop.f32.mrf.mxu0  ;;  %v27595_v10 = vld [vmem:[#allocation34_spill] sm:$0xff] }
 0x4f9   : > { %v25309_v28 = vadd.f32 %v19851_v21, %v9519_v17  ;;  %v9518_v63 = vadd.f32 %v9479_v47, %v25022_v39  ;;  %v9869_v2 = vpop.f32.mrf.mxu1  ;;  %v25330_v39 = vld [vmem:[%s26929_s9 + $0x2c] sm:$0x3] }
 0x4fa   : > { %v19856_v48 = vpop.f32.mrf.mxu0  ;;  %20155 = vmatmul.mubr.msk.f32.vlgmr.msra.gmra.mxu0 %vm528_vm5, %v12252_v25  ;;  %v25341_v47 = vld [vmem:[#allocation4 + $0x6b] sm:$0xff] }
 0x4fb   : > { %v25320_v16 = vadd.f32 %v9869_v2, %v9518_v63  ;;  %v10269_v49 = vadd.f32 %v19856_v48, %v25038_v61  ;;  %v19906_v21 = vpop.f32.mrf.mxu1  ;;  %20205 = vmatmul.mubr.msk.f32.vlgmr.msra.gmra.mxu1 %vm528_vm5, %v27594_v9  ;;  %20157 = vmatprep.mubr.msk.f32.mxu0 %vm528_vm5, %v25313_v34  ;;  %27596 = vst [vmem:[#allocation56_spill] sm:$0xff] %v25341_v47 }
 0x4fc   : > { %20303 = vmatpush3.msk.msra.mxu1 %vm5456_vm4, %v25020_v54  ;;  %20207 = vmatprep.mubr.msk.f32.mxu1 %vm528_vm5, %v27595_v10  ;;  %v10109_v3 = vpop.f32.mrf.mxu0  ;;  %v25347_v54 = vld [vmem:[#allocation4 + $0x7b] sm:$0xff] }
 0x4fd   : > { %v25336_v61 = vadd.f32 %v19906_v21, %v10269_v49  ;;  %v10268_v48 = vadd.f32 %v10109_v3, %v25053_v50  ;;  %v10499_v17 = vpop.f32.mrf.mxu1  ;;  %20253 = vmatpush3.msk.msra.mxu0 %vm5456_vm4, %v25032_v37  ;;  %20402 = vmatprep.subr.msk.mxu1 %vm5456_vm4, %v25318_v44  ;;  %27597 = vst [vmem:[#allocation55_spill] sm:$0xff] %v25347_v54  ;;  %v27598_v37 = vld [vmem:[#allocation61_spill] sm:$0xff] }
 0x4fe   : > { %v19859_v63 = vpop.f32.mrf.mxu0  ;;  %20158 = vmatmul.mubr.msk.f32.gmra.mxu0 %vm528_vm5, %v25341_v47  ;;  %20352 = vmatprep.subr.msk.mxu0 %vm5456_vm4, %v25330_v39  ;;  %v27599_v49 = vld [vmem:[#allocation33_spill] sm:$0xff]  ;;  %v27650_v47 = vld [vmem:[#allocation32_spill] sm:$0xff] }
 0x4ff   : > { %v25351_v2 = vadd.f32 %v10499_v17, %v10268_v48  ;;  %v10271_v50 = vadd.f32 %v19859_v63, %v25062_v35  ;;  %v19909_v25 = vpop.f32.mrf.mxu1  ;;  %20208 = vmatmul.mubr.msk.f32.gmra.mxu1 %vm528_vm5, %v27598_v37  ;;  %20160 = vmatprep.mubr.msk.f32.mxu0 %vm528_vm5, %v25347_v54  ;;  %v25363_v48 = vld [vmem:[#allocation4 + $0x83] sm:$0xff]  ;;  %v25367_v35 = vld [vmem:[#allocation4 + $0x93] sm:$0xff] }
 0x500   : > { %20210 = vmatprep.mubr.msk.f32.mxu1 %vm528_vm5, %v27599_v49  ;;  %v10119_v21 = vpop.f32.mrf.mxu0  ;;  %27600 = vst [vmem:[#allocation28_spill] sm:$0xff] %v25363_v48  ;;  %27601 = vst [vmem:[#allocation43_spill] sm:$0xff] %v25367_v35  ;;  %v27602_v49 = vld [vmem:[#allocation19_spill] sm:$0xff] }
 0x501   : > { %v25360_v9 = vadd.f32 %v19909_v25, %v10271_v50  ;;  %v10270_v10 = vadd.f32 %v10119_v21, %v25071_v20  ;;  %v10509_v3 = vpop.f32.mrf.mxu1  ;;  %v27603_v20 = vld [vmem:[#allocation35_spill] sm:$0xff] }
 0x502   : > { %v19862_v17 = vpop.f32.mrf.mxu0  ;;  %20161 = vmatmul.mubr.msk.f32.gmra.mxu0 %vm528_vm5, %v25363_v48 }
 0x503   : > { %v25369_v63 = vadd.f32 %v10509_v3, %v10270_v10  ;;  %v10273_v37 = vadd.f32 %v19862_v17, %v25080_v58  ;;  %v19912_v54 = vpop.f32.mrf.mxu1  ;;  %20211 = vmatmul.mubr.msk.f32.gmra.mxu1 %vm528_vm5, %v27602_v49  ;;  %20163 = vmatprep.mubr.msk.f32.mxu0 %vm528_vm5, %v25367_v35  ;;  %v25381_v10 = vld [vmem:[#allocation4 + $0x9b] sm:$0xff]  ;;  %v25385_v58 = vld [vmem:[#allocation4 + $0xab] sm:$0xff] }
 0x504   : > { %20213 = vmatprep.mubr.msk.f32.mxu1 %vm528_vm5, %v27603_v20  ;;  %v10129_v50 = vpop.f32.mrf.mxu0  ;;  %27604 = vst [vmem:[#allocation14_spill] sm:$0xff] %v25381_v10  ;;  %27605 = vst [vmem:[#allocation44_spill] sm:$0xff] %v25385_v58  ;;  %v27606_v20 = vld [vmem:[#allocation62_spill] sm:$0xff] }
 0x505   : > { %v25378_v25 = vadd.f32 %v19912_v54, %v10273_v37  ;;  %v10272_v21 = vadd.f32 %v10129_v50, %v25089_v52  ;;  %v10519_v48 = vpop.f32.mrf.mxu1  ;;  %v27607_v52 = vld [vmem:[#allocation36_spill] sm:$0xff] }
 0x506   : > { %v19865_v3 = vpop.f32.mrf.mxu0  ;;  %20164 = vmatmul.mubr.msk.f32.gmra.mxu0 %vm528_vm5, %v25381_v10 }
 0x507   : > { %v25387_v17 = vadd.f32 %v10519_v48, %v10272_v21  ;;  %v10275_v49 = vadd.f32 %v19865_v3, %v25098_v55  ;;  %v19915_v35 = vpop.f32.mrf.mxu1  ;;  %20214 = vmatmul.mubr.msk.f32.gmra.mxu1 %vm528_vm5, %v27606_v20  ;;  %20166 = vmatprep.mubr.msk.f32.mxu0 %vm528_vm5, %v25385_v58  ;;  %v25399_v48 = vld [vmem:[#allocation4 + $0xb3] sm:$0xff]  ;;  %v25403_v55 = vld [vmem:[#allocation4 + $0xc3] sm:$0xff] }
 0x508   : > { %20216 = vmatprep.mubr.msk.f32.mxu1 %vm528_vm5, %v27607_v52  ;;  %v10139_v54 = vpop.f32.mrf.mxu0  ;;  %27608 = vst [vmem:[#allocation16_spill] sm:$0xff] %v25399_v48  ;;  %27609 = vst [vmem:[#allocation30_spill] sm:$0xff] %v25403_v55  ;;  %v27610_v52 = vld [vmem:[#allocation63_spill] sm:$0xff] }
 0x509   : > { %v25396_v37 = vadd.f32 %v19915_v35, %v10275_v49  ;;  %v10274_v50 = vadd.f32 %v10139_v54, %v25107_v13  ;;  %v10529_v10 = vpop.f32.mrf.mxu1  ;;  %v27611_v13 = vld [vmem:[#allocation25_spill] sm:$0xff] }
 0x50a   : > { %v19868_v21 = vpop.f32.mrf.mxu0  ;;  %20167 = vmatmul.mubr.msk.f32.gmra.mxu0 %vm528_vm5, %v25399_v48 }
 0x50b   : > { %v25405_v3 = vadd.f32 %v10529_v10, %v10274_v50  ;;  %v10277_v20 = vadd.f32 %v19868_v21, %v25116_v7  ;;  %v19918_v58 = vpop.f32.mrf.mxu1  ;;  %20217 = vmatmul.mubr.msk.f32.gmra.mxu1 %vm528_vm5, %v27610_v52  ;;  %20169 = vmatprep.mubr.msk.f32.mxu0 %vm528_vm5, %v25403_v55  ;;  %v25417_v10 = vld [vmem:[#allocation4 + $0xcb] sm:$0xff]  ;;  %v25421_v7 = vld [vmem:[#allocation4 + $0xdb] sm:$0xff] }
 0x50c   : > { %20219 = vmatprep.mubr.msk.f32.mxu1 %vm528_vm5, %v27611_v13  ;;  %v10149_v35 = vpop.f32.mrf.mxu0  ;;  %27612 = vst [vmem:[#allocation57_spill] sm:$0xff] %v25417_v10  ;;  %27613 = vst [vmem:[#allocation15_spill] sm:$0xff] %v25421_v7  ;;  %v27614_v13 = vld [vmem:[#allocation11_spill] sm:$0xff] }
 0x50d   : > { %v25414_v49 = vadd.f32 %v19918_v58, %v10277_v20  ;;  %v10276_v54 = vadd.f32 %v10149_v35, %v25125_v11  ;;  %v10539_v48 = vpop.f32.mrf.mxu1  ;;  %v27615_v11 = vld [vmem:[#allocation37_spill] sm:$0xff] }
 0x50e   : > { %v19871_v50 = vpop.f32.mrf.mxu0  ;;  %20170 = vmatmul.mubr.msk.f32.gmra.mxu0 %vm528_vm5, %v25417_v10 }
 0x50f   : > { %v25423_v21 = vadd.f32 %v10539_v48, %v10276_v54  ;;  %v10279_v52 = vadd.f32 %v19871_v50, %v25134_v51  ;;  %v19921_v55 = vpop.f32.mrf.mxu1  ;;  %20220 = vmatmul.mubr.msk.f32.gmra.mxu1 %vm528_vm5, %v27614_v13  ;;  %20172 = vmatprep.mubr.msk.f32.mxu0 %vm528_vm5, %v25421_v7  ;;  %v25435_v48 = vld [vmem:[#allocation4 + $0xe3] sm:$0xff]  ;;  %v25439_v51 = vld [vmem:[#allocation4 + $0xf3] sm:$0xff] }
 0x510   : > { %20222 = vmatprep.mubr.msk.f32.mxu1 %vm528_vm5, %v27615_v11  ;;  %v10159_v58 = vpop.f32.mrf.mxu0  ;;  %27616 = vst [vmem:[#allocation17_spill] sm:$0xff] %v25435_v48  ;;  %27617 = vst [vmem:[#allocation60_spill] sm:$0xff] %v25439_v51  ;;  %v27618_v11 = vld [vmem:[#allocation39_spill] sm:$0xff] }
 0x511   : > { %v25432_v20 = vadd.f32 %v19921_v55, %v10279_v52  ;;  %v10278_v35 = vadd.f32 %v10159_v58, %v25143_v60  ;;  %v10549_v10 = vpop.f32.mrf.mxu1  ;;  %v27619_v60 = vld [vmem:[#allocation46_spill] sm:$0xff] }
 0x512   : > { %v19874_v54 = vpop.f32.mrf.mxu0  ;;  %20173 = vmatmul.mubr.msk.f32.gmra.mxu0 %vm528_vm5, %v25435_v48 }
 0x513   : > { %v25441_v50 = vadd.f32 %v10549_v10, %v10278_v35  ;;  %v10281_v13 = vadd.f32 %v19874_v54, %v25152_v38  ;;  %v19924_v7 = vpop.f32.mrf.mxu1  ;;  %20223 = vmatmul.mubr.msk.f32.gmra.mxu1 %vm528_vm5, %v27618_v11  ;;  %20175 = vmatprep.mubr.msk.f32.mxu0 %vm528_vm5, %v25439_v51  ;;  %v25453_v10 = vld [vmem:[#allocation4 + $0xfb] sm:$0xff]  ;;  %v25457_v38 = vld [vmem:[#allocation4 + $0x10b] sm:$0xff] }
 0x514   : > { %20225 = vmatprep.mubr.msk.f32.mxu1 %vm528_vm5, %v27619_v60  ;;  %v10169_v55 = vpop.f32.mrf.mxu0  ;;  %27620 = vst [vmem:[#allocation45_spill] sm:$0xff] %v25453_v10  ;;  %27621 = vst [vmem:[#allocation18_spill] sm:$0xff] %v25457_v38  ;;  %v27622_v60 = vld [vmem:[#allocation20_spill] sm:$0xff] }
 0x515   : > { %v25450_v52 = vadd.f32 %v19924_v7, %v10281_v13  ;;  %v10280_v58 = vadd.f32 %v10169_v55, %v25161_v42  ;;  %v10559_v48 = vpop.f32.mrf.mxu1  ;;  %v27623_v42 = vld [vmem:[#allocation38_spill] sm:$0xff] }
 0x516   : > { %v19877_v35 = vpop.f32.mrf.mxu0  ;;  %20176 = vmatmul.mubr.msk.f32.gmra.mxu0 %vm528_vm5, %v25453_v10 }
 0x517   : > { %v25459_v54 = vadd.f32 %v10559_v48, %v10280_v58  ;;  %v10283_v11 = vadd.f32 %v19877_v35, %v25170_v31  ;;  %v19927_v51 = vpop.f32.mrf.mxu1  ;;  %20226 = vmatmul.mubr.msk.f32.gmra.mxu1 %vm528_vm5, %v27622_v60  ;;  %20178 = vmatprep.mubr.msk.f32.mxu0 %vm528_vm5, %v25457_v38  ;;  %v25471_v48 = vld [vmem:[#allocation4 + $0x113] sm:$0xff]  ;;  %v25475_v31 = vld [vmem:[#allocation4 + $0x123] sm:$0xff] }
 0x518   : > { %20228 = vmatprep.mubr.msk.f32.mxu1 %vm528_vm5, %v27623_v42  ;;  %v10179_v7 = vpop.f32.mrf.mxu0  ;;  %27624 = vst [vmem:[#allocation34_spill] sm:$0xff] %v25471_v48  ;;  %27625 = vst [vmem:[#allocation61_spill] sm:$0xff] %v25475_v31  ;;  %v27626_v42 = vld [vmem:[#allocation40_spill] sm:$0xff] }
 0x519   : > { %v25468_v13 = vadd.f32 %v19927_v51, %v10283_v11  ;;  %v10282_v55 = vadd.f32 %v10179_v7, %v25179_v27  ;;  %v10569_v10 = vpop.f32.mrf.mxu1  ;;  %v27627_v27 = vld [vmem:[#allocation8_spill] sm:$0xff] }
 0x51a   : > { %v19880_v58 = vpop.f32.mrf.mxu0  ;;  %20179 = vmatmul.mubr.msk.f32.gmra.mxu0 %vm528_vm5, %v25471_v48 }
 0x51b   : > { %v25477_v35 = vadd.f32 %v10569_v10, %v10282_v55  ;;  %v10285_v60 = vadd.f32 %v19880_v58, %v25188_v41  ;;  %v19930_v38 = vpop.f32.mrf.mxu1  ;;  %20229 = vmatmul.mubr.msk.f32.gmra.mxu1 %vm528_vm5, %v27626_v42  ;;  %20181 = vmatprep.mubr.msk.f32.mxu0 %vm528_vm5, %v25475_v31  ;;  %v25489_v10 = vld [vmem:[#allocation4 + $0x12b] sm:$0xff]  ;;  %v25493_v41 = vld [vmem:[#allocation4 + $0x13b] sm:$0xff] }
 0x51c   : > { %20231 = vmatprep.mubr.msk.f32.mxu1 %vm528_vm5, %v27627_v27  ;;  %v10189_v51 = vpop.f32.mrf.mxu0  ;;  %27628 = vst [vmem:[#allocation33_spill] sm:$0xff] %v25489_v10  ;;  %27629 = vst [vmem:[#allocation19_spill] sm:$0xff] %v25493_v41  ;;  %v27630_v27 = vld [vmem:[#allocation58_spill] sm:$0xff] }
 0x51d   : > { %v25486_v11 = vadd.f32 %v19930_v38, %v10285_v60  ;;  %v10284_v7 = vadd.f32 %v10189_v51, %v25197_v22  ;;  %v10579_v48 = vpop.f32.mrf.mxu1  ;;  %v27631_v22 = vld [vmem:[#allocation47_spill] sm:$0xff] }
 0x51e   : > { %v19883_v55 = vpop.f32.mrf.mxu0  ;;  %20182 = vmatmul.mubr.msk.f32.gmra.mxu0 %vm528_vm5, %v25489_v10 }
 0x51f   : > { %v25495_v58 = vadd.f32 %v10579_v48, %v10284_v7  ;;  %v10287_v42 = vadd.f32 %v19883_v55, %v25206_v53  ;;  %v19933_v31 = vpop.f32.mrf.mxu1  ;;  %20232 = vmatmul.mubr.msk.f32.gmra.mxu1 %vm528_vm5, %v27630_v27  ;;  %20184 = vmatprep.mubr.msk.f32.mxu0 %vm528_vm5, %v25493_v41  ;;  %v25507_v48 = vld [vmem:[#allocation4 + $0x143] sm:$0xff]  ;;  %v25511_v53 = vld [vmem:[#allocation4 + $0x153] sm:$0xff] }
 0x520   : > { %20234 = vmatprep.mubr.msk.f32.mxu1 %vm528_vm5, %v27631_v22  ;;  %v10199_v38 = vpop.f32.mrf.mxu0  ;;  %27632 = vst [vmem:[#allocation35_spill] sm:$0xff] %v25507_v48  ;;  %27633 = vst [vmem:[#allocation62_spill] sm:$0xff] %v25511_v53  ;;  %v27634_v22 = vld [vmem:[#allocation22_spill] sm:$0xff] }
 0x521   : > { %v25504_v60 = vadd.f32 %v19933_v31, %v10287_v42  ;;  %v10286_v51 = vadd.f32 %v10199_v38, %v25215_v40  ;;  %v10589_v10 = vpop.f32.mrf.mxu1  ;;  %v27635_v40 = vld [vmem:[#allocation29_spill] sm:$0xff] }
 0x522   : > { %v19886_v7 = vpop.f32.mrf.mxu0  ;;  %20185 = vmatmul.mubr.msk.f32.gmra.mxu0 %vm528_vm5, %v25507_v48 }
 0x523   : > { %v25513_v55 = vadd.f32 %v10589_v10, %v10286_v51  ;;  %v10289_v27 = vadd.f32 %v19886_v7, %v25224_v12  ;;  %v19936_v41 = vpop.f32.mrf.mxu1  ;;  %20235 = vmatmul.mubr.msk.f32.gmra.mxu1 %vm528_vm5, %v27634_v22  ;;  %20187 = vmatprep.mubr.msk.f32.mxu0 %vm528_vm5, %v25511_v53  ;;  %v25525_v10 = vld [vmem:[#allocation4 + $0x15b] sm:$0xff]  ;;  %v25529_v12 = vld [vmem:[#allocation4 + $0x16b] sm:$0xff] }
 0x524   : > { %20237 = vmatprep.mubr.msk.f32.mxu1 %vm528_vm5, %v27635_v40  ;;  %v10209_v31 = vpop.f32.mrf.mxu0  ;;  %27636 = vst [vmem:[#allocation36_spill] sm:$0xff] %v25525_v10  ;;  %27637 = vst [vmem:[#allocation63_spill] sm:$0xff] %v25529_v12  ;;  %v27638_v40 = vld [vmem:[#allocation50_spill] sm:$0xff] }
 0x525   : > { %v25522_v42 = vadd.f32 %v19936_v41, %v10289_v27  ;;  %v10288_v38 = vadd.f32 %v10209_v31, %v25233_v5  ;;  %v10599_v48 = vpop.f32.mrf.mxu1  ;;  %v27639_v5 = vld [vmem:[#allocation31_spill] sm:$0xff] }
 0x526   : > { %v19889_v51 = vpop.f32.mrf.mxu0  ;;  %20188 = vmatmul.mubr.msk.f32.gmra.mxu0 %vm528_vm5, %v25525_v10 }
 0x527   : > { %v25531_v7 = vadd.f32 %v10599_v48, %v10288_v38  ;;  %v10291_v22 = vadd.f32 %v19889_v51, %v25242_v18  ;;  %v19939_v53 = vpop.f32.mrf.mxu1  ;;  %20238 = vmatmul.mubr.msk.f32.gmra.mxu1 %vm528_vm5, %v27638_v40  ;;  %20190 = vmatprep.mubr.msk.f32.mxu0 %vm528_vm5, %v25529_v12  ;;  %v25543_v48 = vld [vmem:[#allocation4 + $0x173] sm:$0xff]  ;;  %v25547_v18 = vld [vmem:[#allocation4 + $0x183] sm:$0xff] }
 0x528   : > { %20240 = vmatprep.mubr.msk.f32.mxu1 %vm528_vm5, %v27639_v5  ;;  %v10219_v41 = vpop.f32.mrf.mxu0  ;;  %27640 = vst [vmem:[#allocation25_spill] sm:$0xff] %v25543_v48  ;;  %27641 = vst [vmem:[#allocation11_spill] sm:$0xff] %v25547_v18  ;;  %v27642_v5 = vld [vmem:[#allocation49_spill] sm:$0xff] }
 0x529   : > { %v25540_v27 = vadd.f32 %v19939_v53, %v10291_v22  ;;  %v10290_v31 = vadd.f32 %v10219_v41, %v25251_v46  ;;  %v10609_v10 = vpop.f32.mrf.mxu1  ;;  %v27643_v46 = vld [vmem:[#allocation21_spill] sm:$0xff] }
 0x52a   : > { %v19892_v38 = vpop.f32.mrf.mxu0  ;;  %20191 = vmatmul.mubr.msk.f32.gmra.mxu0 %vm528_vm5, %v25543_v48 }
 0x52b   : > { %v25549_v51 = vadd.f32 %v10609_v10, %v10290_v31  ;;  %v10293_v40 = vadd.f32 %v19892_v38, %v25260_v0  ;;  %v19942_v12 = vpop.f32.mrf.mxu1  ;;  %20241 = vmatmul.mubr.msk.f32.gmra.mxu1 %vm528_vm5, %v27642_v5  ;;  %20193 = vmatprep.mubr.msk.f32.mxu0 %vm528_vm5, %v25547_v18  ;;  %v25561_v10 = vld [vmem:[#allocation4 + $0x18b] sm:$0xff]  ;;  %v25565_v0 = vld [vmem:[#allocation4 + $0x19b] sm:$0xff] }
 0x52c   : > { %20243 = vmatprep.mubr.msk.f32.mxu1 %vm528_vm5, %v27643_v46  ;;  %v10229_v53 = vpop.f32.mrf.mxu0  ;;  %27644 = vst [vmem:[#allocation37_spill] sm:$0xff] %v25561_v10  ;;  %27645 = vst [vmem:[#allocation39_spill] sm:$0xff] %v25565_v0  ;;  %v27646_v46 = vld [vmem:[#allocation59_spill] sm:$0xff] }
 0x52d   : > { %v25558_v22 = vadd.f32 %v19942_v12, %v10293_v40  ;;  %v10292_v41 = vadd.f32 %v10229_v53, %v25269_v57  ;;  %v10619_v48 = vpop.f32.mrf.mxu1  ;;  %v27647_v57 = vld [vmem:[#allocation9_spill] sm:$0xff]  ;;  %v25576_v40 = vld [vmem:[#allocation4 + $0x1b3] sm:$0xff] }
 0x52e   : > { %v19895_v31 = vpop.f32.mrf.mxu0  ;;  %20194 = vmatmul.mubr.msk.f32.gmra.mxu0 %vm528_vm5, %v25561_v10  ;;  %27648 = vst [vmem:[#allocation46_spill] sm:$0xff] %v25576_v40  ;;  %v25581_v10 = vld [vmem:[#allocation4 + $0x1a3] sm:$0xff] }
 0x52f   : > { %v25567_v38 = vadd.f32 %v10619_v48, %v10292_v41  ;;  %v10295_v5 = vadd.f32 %v19895_v31, %v25280_v4  ;;  %v19945_v18 = vpop.f32.mrf.mxu1  ;;  %20244 = vmatmul.mubr.msk.f32.gmra.mxu1 %vm528_vm5, %v27646_v46  ;;  %20196 = vmatprep.mubr.msk.f32.mxu0 %vm528_vm5, %v25565_v0  ;;  %27649 = vst [vmem:[#allocation20_spill] sm:$0xff] %v25581_v10  ;;  %v12671_v4 = vld [vmem:[#allocation4 + $0x1b4] sm:$0xff] }
 0x530   : > { %20246 = vmatprep.mubr.msk.f32.mxu1 %vm528_vm5, %v27647_v57  ;;  %v10239_v12 = vpop.f32.mrf.mxu0 }
 0x531   : > { %v25578_v53 = vadd.f32 %v19945_v18, %v10295_v5  ;;  %v10294_v48 = vadd.f32 %v10239_v12, %v25287_v32  ;;  %v10629_v41 = vpop.f32.mrf.mxu1  ;;  %v25592_v32 = vld [vmem:[#allocation4 + $0x1bb] sm:$0xff] }
 0x532   : > { %v19898_v31 = vpop.f32.mrf.mxu0  ;;  %20197 = vmatmul.mubr.msk.f32.gmra.mxu0 %vm528_vm5, %v25581_v10  ;;  %27651 = vst [vmem:[#allocation38_spill] sm:$0xff] %v25592_v32  ;;  %v12672_v5 = vld [vmem:[#allocation4 + $0x1bc] sm:$0xff] }
 0x533   : > { %v25585_v46 = vadd.f32 %v10629_v41, %v10294_v48  ;;  %v10297_v0 = vadd.f32 %v19898_v31, %v25297_v59  ;;  %v19948_v57 = vpop.f32.mrf.mxu1  ;;  %20247 = vmatmul.mubr.msk.f32.gmra.mxu1 %vm528_vm5, %v27650_v47  ;;  %20199 = vmatprep.mubr.msk.f32.mxu0 %vm528_vm5, %v25576_v40  ;;  %v13032_v59 = vld [vmem:[#allocation4 + $0x60] sm:$0xff] }
 0x534   : > { %v10249_v18 = vpop.f32.mrf.mxu0  ;;  %20249 = vmatprep.mubr.msk.f32.mxu1 %vm528_vm5, %v12671_v4 }
 0x535   : > { %v25595_v12 = vadd.f32 %v19948_v57, %v10297_v0  ;;  %v10296_v48 = vadd.f32 %v10249_v18, %v25302_v8  ;;  %v10639_v41 = vpop.f32.mrf.mxu1  ;;  %v13033_v18 = vld [vmem:[#allocation4 + $0x68] sm:$0xff] }
 0x536   : > { %v19901_v10 = vpop.f32.mrf.mxu0  ;;  %20200 = vmatmul.mubr.msk.f32.gmra.mxu0 %vm528_vm5, %v25592_v32 }
 0x537   : > { %v25600_v47 = vadd.f32 %v10639_v41, %v10296_v48  ;;  %v10299_v31 = vadd.f32 %v19901_v10, %v25309_v28  ;;  %v19951_v40 = vpop.f32.mrf.mxu1  ;;  %20250 = vmatmul.mubr.msk.f32.gmra.mxu1 %vm528_vm5, %v12672_v5  ;;  %20254 = vmatprep.mubr.msk.f32.mxu0 %vm528_vm5, %v13032_v59  ;;  %v13034_v48 = vld [vmem:[#allocation4 + $0x78] sm:$0xff]  ;;  %v25614_v28 = vld [vmem:[%s26931_s11] sm:$0xf] }
 0x538   : > { %20304 = vmatprep.mubr.msk.f32.mxu1 %vm528_vm5, %v25015_v29  ;;  %v10259_v0 = vpop.f32.mrf.mxu0 }
 0x539   : > { %v25607_v8 = vadd.f32 %v19951_v40, %v10299_v31  ;;  %v10298_v4 = vadd.f32 %v10259_v0, %v25320_v16  ;;  %v10649_v57 = vpop.f32.mrf.mxu1  ;;  %v25625_v16 = vld [vmem:[%s26929_s9 + $0x30] sm:$0x3] }
 0x53a   : > { %v19956_v32 = vpop.f32.mrf.mxu0  ;;  %20255 = vmatmul.mubr.msk.f32.vlgmr.msra.gmra.mxu0 %vm528_vm5, %v13033_v18  ;;  %v13037_v18 = vld [vmem:[#allocation4 + $0x98] sm:$0xff] }
 0x53b   : > { %v25616_v10 = vadd.f32 %v10649_v57, %v10298_v4  ;;  %v11049_v29 = vadd.f32 %v19956_v32, %v25336_v61  ;;  %v20006_v5 = vpop.f32.mrf.mxu1  ;;  %20305 = vmatmul.mubr.msk.f32.vlgmr.msra.gmra.mxu1 %vm528_vm5, %v25043_v36  ;;  %20257 = vmatprep.mubr.msk.f32.mxu0 %vm528_vm5, %v13034_v48  ;;  %v13035_v36 = vld [vmem:[#allocation4 + $0x80] sm:$0xff] }
 0x53c   : > { %20403 = vmatpush3.msk.msra.mxu1 %vm5456_vm4, %v25318_v44  ;;  %20307 = vmatprep.mubr.msk.f32.mxu1 %vm528_vm5, %v25049_v14  ;;  %v10889_v40 = vpop.f32.mrf.mxu0  ;;  %v13036_v44 = vld [vmem:[#allocation4 + $0x90] sm:$0xff] }
 0x53d   : > { %v25631_v41 = vadd.f32 %v20006_v5, %v11049_v29  ;;  %v11048_v61 = vadd.f32 %v10889_v40, %v25351_v2  ;;  %v11280_v32 = vpop.f32.mrf.mxu1  ;;  %20353 = vmatpush3.msk.msra.mxu0 %vm5456_vm4, %v25330_v39  ;;  %20502 = vmatprep.subr.msk.mxu1 %vm720_vm0, %v25614_v28 }
 0x53e   : > { %v19959_v59 = vpop.f32.mrf.mxu0  ;;  %20258 = vmatmul.mubr.msk.f32.gmra.mxu0 %vm528_vm5, %v13035_v36  ;;  %20452 = vmatprep.subr.msk.mxu0 %vm5456_vm4, %v25625_v16 }
 0x53f   : > { %v25641_v14 = vadd.f32 %v11280_v32, %v11048_v61  ;;  %v11051_v31 = vadd.f32 %v19959_v59, %v25360_v9  ;;  %v20009_v2 = vpop.f32.mrf.mxu1  ;;  %20308 = vmatmul.mubr.msk.f32.gmra.mxu1 %vm528_vm5, %v25065_v56  ;;  %20260 = vmatprep.mubr.msk.f32.mxu0 %vm528_vm5, %v13036_v44  ;;  %v13038_v9 = vld [vmem:[#allocation4 + $0xa8] sm:$0xff]  ;;  %v13039_v32 = vld [vmem:[#allocation4 + $0xb0] sm:$0xff] }
 0x540   : > { %20310 = vmatprep.mubr.msk.f32.mxu1 %vm528_vm5, %v25069_v24  ;;  %v10899_v39 = vpop.f32.mrf.mxu0 }
 0x541   : > { %v25649_v0 = vadd.f32 %v20009_v2, %v11051_v31  ;;  %v11050_v4 = vadd.f32 %v10899_v39, %v25369_v63  ;;  %v11290_v57 = vpop.f32.mrf.mxu1  ;;  %v13041_v39 = vld [vmem:[#allocation4 + $0xc8] sm:$0xff] }
 0x542   : > { %v19962_v48 = vpop.f32.mrf.mxu0  ;;  %20261 = vmatmul.mubr.msk.f32.gmra.mxu0 %vm528_vm5, %v13037_v18 }
 0x543   : > { %v25653_v29 = vadd.f32 %v11290_v57, %v11050_v4  ;;  %v11053_v56 = vadd.f32 %v19962_v48, %v25378_v25  ;;  %v20012_v5 = vpop.f32.mrf.mxu1  ;;  %20311 = vmatmul.mubr.msk.f32.gmra.mxu1 %vm528_vm5, %v25083_v6  ;;  %20263 = vmatprep.mubr.msk.f32.mxu0 %vm528_vm5, %v13038_v9  ;;  %v13040_v25 = vld [vmem:[#allocation4 + $0xc0] sm:$0xff] }
 0x544   : > { %20313 = vmatprep.mubr.msk.f32.mxu1 %vm528_vm5, %v25087_v33  ;;  %v10909_v24 = vpop.f32.mrf.mxu0 }
 0x545   : > { %v25661_v63 = vadd.f32 %v20012_v5, %v11053_v56  ;;  %v11052_v40 = vadd.f32 %v10909_v24, %v25387_v17  ;;  %v11300_v61 = vpop.f32.mrf.mxu1  ;;  %v13043_v56 = vld [vmem:[#allocation4 + $0xe0] sm:$0xff] }
 0x546   : > { %v19965_v36 = vpop.f32.mrf.mxu0  ;;  %20264 = vmatmul.mubr.msk.f32.gmra.mxu0 %vm528_vm5, %v13039_v32 }
 0x547   : > { %v25665_v59 = vadd.f32 %v11300_v61, %v11052_v40  ;;  %v11055_v6 = vadd.f32 %v19965_v36, %v25396_v37  ;;  %v20015_v44 = vpop.f32.mrf.mxu1  ;;  %20314 = vmatmul.mubr.msk.f32.gmra.mxu1 %vm528_vm5, %v25101_v19  ;;  %20266 = vmatprep.mubr.msk.f32.mxu0 %vm528_vm5, %v13040_v25  ;;  %v13042_v37 = vld [vmem:[#allocation4 + $0xd8] sm:$0xff] }
 0x548   : > { %20316 = vmatprep.mubr.msk.f32.mxu1 %vm528_vm5, %v25105_v30  ;;  %v10919_v33 = vpop.f32.mrf.mxu0  ;;  %v13045_v36 = vld [vmem:[#allocation4 + $0xf8] sm:$0xff] }
 0x549   : > { %v25673_v17 = vadd.f32 %v20015_v44, %v11055_v6  ;;  %v11054_v31 = vadd.f32 %v10919_v33, %v25405_v3  ;;  %v11310_v2 = vpop.f32.mrf.mxu1 }
 0x54a   : > { %v19968_v4 = vpop.f32.mrf.mxu0  ;;  %20267 = vmatmul.mubr.msk.f32.gmra.mxu0 %vm528_vm5, %v13041_v39 }
 0x54b   : > { %v25677_v57 = vadd.f32 %v11310_v2, %v11054_v31  ;;  %v11057_v19 = vadd.f32 %v19968_v4, %v25414_v49  ;;  %v20018_v18 = vpop.f32.mrf.mxu1  ;;  %20317 = vmatmul.mubr.msk.f32.gmra.mxu1 %vm528_vm5, %v25119_v15  ;;  %20269 = vmatprep.mubr.msk.f32.mxu0 %vm528_vm5, %v13042_v37  ;;  %v13044_v49 = vld [vmem:[#allocation4 + $0xf0] sm:$0xff] }
 0x54c   : > { %20319 = vmatprep.mubr.msk.f32.mxu1 %vm528_vm5, %v25123_v26  ;;  %v10929_v30 = vpop.f32.mrf.mxu0  ;;  %v13047_v2 = vld [vmem:[#allocation4 + $0x110] sm:$0xff] }
 0x54d   : > { %v25685_v3 = vadd.f32 %v20018_v18, %v11057_v19  ;;  %v11056_v48 = vadd.f32 %v10929_v30, %v25423_v21  ;;  %v11320_v9 = vpop.f32.mrf.mxu1 }
 0x54e   : > { %v19971_v5 = vpop.f32.mrf.mxu0  ;;  %20270 = vmatmul.mubr.msk.f32.gmra.mxu0 %vm528_vm5, %v13043_v56 }
 0x54f   : > { %v25689_v24 = vadd.f32 %v11320_v9, %v11056_v48  ;;  %v11059_v15 = vadd.f32 %v19971_v5, %v25432_v20  ;;  %v20021_v40 = vpop.f32.mrf.mxu1  ;;  %20320 = vmatmul.mubr.msk.f32.gmra.mxu1 %vm528_vm5, %v25137_v45  ;;  %20272 = vmatprep.mubr.msk.f32.mxu0 %vm528_vm5, %v13044_v49  ;;  %v13046_v20 = vld [vmem:[#allocation4 + $0x108] sm:$0xff]  ;;  %v27653_v49 = vld [vmem:[#allocation52_spill] sm:$0xff] }
 0x550   : > { %20322 = vmatprep.mubr.msk.f32.mxu1 %vm528_vm5, %v25141_v43  ;;  %v10939_v26 = vpop.f32.mrf.mxu0  ;;  %v13049_v48 = vld [vmem:[#allocation4 + $0x128] sm:$0xff] }
 0x551   : > { %v25697_v21 = vadd.f32 %v20021_v40, %v11059_v15  ;;  %v11058_v61 = vadd.f32 %v10939_v26, %v25441_v50  ;;  %v11330_v32 = vpop.f32.mrf.mxu1  ;;  %v27654_v15 = vld [vmem:[#allocation51_spill] sm:$0xff] }
 0x552   : > { %v19974_v25 = vpop.f32.mrf.mxu0  ;;  %20273 = vmatmul.mubr.msk.f32.gmra.mxu0 %vm528_vm5, %v13045_v36 }
 0x553   : > { %v25701_v6 = vadd.f32 %v11330_v32, %v11058_v61  ;;  %v11061_v45 = vadd.f32 %v19974_v25, %v25450_v52  ;;  %v20024_v44 = vpop.f32.mrf.mxu1  ;;  %20323 = vmatmul.mubr.msk.f32.gmra.mxu1 %vm528_vm5, %v25155_v1  ;;  %20275 = vmatprep.mubr.msk.f32.mxu0 %vm528_vm5, %v13046_v20  ;;  %v13048_v52 = vld [vmem:[#allocation4 + $0x120] sm:$0xff] }
 0x554   : > { %20325 = vmatprep.mubr.msk.f32.mxu1 %vm528_vm5, %v25159_v23  ;;  %v10949_v43 = vpop.f32.mrf.mxu0  ;;  %v27652_v23 = vld [vmem:[#allocation23_spill] sm:$0xff]  ;;  %v13051_v32 = vld [vmem:[#allocation4 + $0x140] sm:$0xff] }
 0x555   : > { %v25709_v50 = vadd.f32 %v20024_v44, %v11061_v45  ;;  %v11060_v33 = vadd.f32 %v10949_v43, %v25459_v54  ;;  %v11340_v31 = vpop.f32.mrf.mxu1  ;;  %v27655_v44 = vld [vmem:[#allocation48_spill] sm:$0xff] }
 0x556   : > { %v19977_v39 = vpop.f32.mrf.mxu0  ;;  %20276 = vmatmul.mubr.msk.f32.gmra.mxu0 %vm528_vm5, %v13047_v2  ;;  %v27656_v43 = vld [vmem:[#allocation24_spill] sm:$0xff] }
 0x557   : > { %v25713_v4 = vadd.f32 %v11340_v31, %v11060_v33  ;;  %v11063_v1 = vadd.f32 %v19977_v39, %v25468_v13  ;;  %v20027_v37 = vpop.f32.mrf.mxu1  ;;  %20326 = vmatmul.mubr.msk.f32.gmra.mxu1 %vm528_vm5, %v25173_v62  ;;  %20278 = vmatprep.mubr.msk.f32.mxu0 %vm528_vm5, %v13048_v52  ;;  %v13050_v13 = vld [vmem:[#allocation4 + $0x138] sm:$0xff] }
 0x558   : > { %20328 = vmatprep.mubr.msk.f32.mxu1 %vm528_vm5, %v27652_v23  ;;  %v10959_v54 = vpop.f32.mrf.mxu0  ;;  %v13053_v39 = vld [vmem:[#allocation4 + $0x158] sm:$0xff] }
 0x559   : > { %v25721_v19 = vadd.f32 %v20027_v37, %v11063_v1  ;;  %v11062_v18 = vadd.f32 %v10959_v54, %v25477_v35  ;;  %v11350_v30 = vpop.f32.mrf.mxu1  ;;  %v27657_v54 = vld [vmem:[#allocation41_spill] sm:$0xff] }
 0x55a   : > { %v19980_v9 = vpop.f32.mrf.mxu0  ;;  %20279 = vmatmul.mubr.msk.f32.gmra.mxu0 %vm528_vm5, %v13049_v48 }
 0x55b   : > { %v25725_v56 = vadd.f32 %v11350_v30, %v11062_v18  ;;  %v11065_v62 = vadd.f32 %v19980_v9, %v25486_v11  ;;  %v20030_v5 = vpop.f32.mrf.mxu1  ;;  %20329 = vmatmul.mubr.msk.f32.gmra.mxu1 %vm528_vm5, %v27653_v49  ;;  %20281 = vmatprep.mubr.msk.f32.mxu0 %vm528_vm5, %v13050_v13  ;;  %v13052_v11 = vld [vmem:[#allocation4 + $0x150] sm:$0xff] }
 0x55c   : > { %20331 = vmatprep.mubr.msk.f32.mxu1 %vm528_vm5, %v27654_v15  ;;  %v10969_v35 = vpop.f32.mrf.mxu0  ;;  %v27658_v18 = vld [vmem:[#allocation10_spill] sm:$0xff] }
 0x55d   : > { %v25733_v40 = vadd.f32 %v20030_v5, %v11065_v62  ;;  %v11064_v26 = vadd.f32 %v10969_v35, %v25495_v58  ;;  %v11360_v61 = vpop.f32.mrf.mxu1  ;;  %v13055_v13 = vld [vmem:[#allocation4 + $0x170] sm:$0xff] }
 0x55e   : > { %v19983_v36 = vpop.f32.mrf.mxu0  ;;  %20282 = vmatmul.mubr.msk.f32.gmra.mxu0 %vm528_vm5, %v13051_v32  ;;  %v27659_v35 = vld [vmem:[#allocation42_spill] sm:$0xff] }
 0x55f   : > { %v25737_v25 = vadd.f32 %v11360_v61, %v11064_v26  ;;  %v11067_v20 = vadd.f32 %v19983_v36, %v25504_v60  ;;  %v20033_v45 = vpop.f32.mrf.mxu1  ;;  %20332 = vmatmul.mubr.msk.f32.gmra.mxu1 %vm528_vm5, %v27655_v44  ;;  %20284 = vmatprep.mubr.msk.f32.mxu0 %vm528_vm5, %v13052_v11  ;;  %v13054_v60 = vld [vmem:[#allocation4 + $0x168] sm:$0xff]  ;;  %v27660_v26 = vld [vmem:[#allocation12_spill] sm:$0xff] }
 0x560   : > { %20334 = vmatprep.mubr.msk.f32.mxu1 %vm528_vm5, %v27656_v43  ;;  %v10979_v58 = vpop.f32.mrf.mxu0  ;;  %v13057_v11 = vld [vmem:[#allocation4 + $0x188] sm:$0xff] }
 0x561   : > { %v25745_v33 = vadd.f32 %v20033_v45, %v11067_v20  ;;  %v11066_v31 = vadd.f32 %v10979_v58, %v25513_v55  ;;  %v11370_v2 = vpop.f32.mrf.mxu1  ;;  %v27661_v58 = vld [vmem:[#allocation26_spill] sm:$0xff] }
 0x562   : > { %v19986_v52 = vpop.f32.mrf.mxu0  ;;  %20285 = vmatmul.mubr.msk.f32.gmra.mxu0 %vm528_vm5, %v13053_v39 }
 0x563   : > { %v25749_v1 = vadd.f32 %v11370_v2, %v11066_v31  ;;  %v11069_v37 = vadd.f32 %v19986_v52, %v25522_v42  ;;  %v20036_v23 = vpop.f32.mrf.mxu1  ;;  %20335 = vmatmul.mubr.msk.f32.gmra.mxu1 %vm528_vm5, %v27657_v54  ;;  %20287 = vmatprep.mubr.msk.f32.mxu0 %vm528_vm5, %v13054_v60  ;;  %v13056_v42 = vld [vmem:[#allocation4 + $0x180] sm:$0xff]  ;;  %v27662_v31 = vld [vmem:[#allocation54_spill] sm:$0xff] }
 0x564   : > { %20337 = vmatprep.mubr.msk.f32.mxu1 %vm528_vm5, %v27658_v18  ;;  %v10989_v55 = vpop.f32.mrf.mxu0  ;;  %v13060_v2 = vld [vmem:[#allocation4 + $0x1b0] sm:$0xff] }
 0x565   : > { %v25757_v30 = vadd.f32 %v20036_v23, %v11069_v37  ;;  %v11068_v48 = vadd.f32 %v10989_v55, %v25531_v7  ;;  %v11380_v9 = vpop.f32.mrf.mxu1  ;;  %v13059_v37 = vld [vmem:[#allocation4 + $0x1a0] sm:$0xff]  ;;  %v27663_v55 = vld [vmem:[#allocation13_spill] sm:$0xff] }
 0x566   : > { %v19989_v62 = vpop.f32.mrf.mxu0  ;;  %20288 = vmatmul.mubr.msk.f32.gmra.mxu0 %vm528_vm5, %v13055_v13  ;;  %v27664_v13 = vld [vmem:[#allocation53_spill] sm:$0xff] }
 0x567   : > { %v25761_v5 = vadd.f32 %v11380_v9, %v11068_v48  ;;  %v11071_v49 = vadd.f32 %v19989_v62, %v25540_v27  ;;  %v20039_v15 = vpop.f32.mrf.mxu1  ;;  %20338 = vmatmul.mubr.msk.f32.gmra.mxu1 %vm528_vm5, %v27659_v35  ;;  %20290 = vmatprep.mubr.msk.f32.mxu0 %vm528_vm5, %v13056_v42  ;;  %v13058_v27 = vld [vmem:[#allocation4 + $0x198] sm:$0xff] }
 0x568   : > { %20340 = vmatprep.mubr.msk.f32.mxu1 %vm528_vm5, %v27660_v26  ;;  %v10999_v7 = vpop.f32.mrf.mxu0  ;;  %v13061_v48 = vld [vmem:[#allocation4 + $0x1b8] sm:$0xff] }
 0x569   : > { %v25769_v61 = vadd.f32 %v20039_v15, %v11071_v49  ;;  %v11070_v32 = vadd.f32 %v10999_v7, %v25549_v51  ;;  %v11390_v36 = vpop.f32.mrf.mxu1  ;;  %v13452_v15 = vld [vmem:[#allocation4 + $0x1c9] sm:$0xff] }
 0x56a   : > { %v19992_v20 = vpop.f32.mrf.mxu0  ;;  %20291 = vmatmul.mubr.msk.f32.gmra.mxu0 %vm528_vm5, %v13057_v11 }
 0x56b   : > { %v25773_v45 = vadd.f32 %v11390_v36, %v11070_v32  ;;  %v11073_v44 = vadd.f32 %v19992_v20, %v25558_v22  ;;  %v20042_v43 = vpop.f32.mrf.mxu1  ;;  %20341 = vmatmul.mubr.msk.f32.gmra.mxu1 %vm528_vm5, %v27661_v58  ;;  %20293 = vmatprep.mubr.msk.f32.mxu0 %vm528_vm5, %v13058_v27  ;;  %v27665_v32 = vld [vmem:[#allocation27_spill] sm:$0xff]  ;;  %v13063_v36 = vld [vmem:[#allocation4 + $0x1d0] sm:$0xff] }
 0x56c   : > { %20343 = vmatprep.mubr.msk.f32.mxu1 %vm528_vm5, %v27662_v31  ;;  %v11009_v51 = vpop.f32.mrf.mxu0 }
 0x56d   : > { %v25781_v39 = vadd.f32 %v20042_v43, %v11073_v44  ;;  %v11072_v52 = vadd.f32 %v11009_v51, %v25567_v38  ;;  %v11400_v60 = vpop.f32.mrf.mxu1  ;;  %v13062_v38 = vld [vmem:[#allocation4 + $0x1c8] sm:$0xff] }
 0x56e   : > { %v19995_v23 = vpop.f32.mrf.mxu0  ;;  %20294 = vmatmul.mubr.msk.f32.gmra.mxu0 %vm528_vm5, %v13059_v37  ;;  %v13813_v37 = vld [vmem:[#allocation4 + $0x6a] sm:$0xff] }
 0x56f   : > { %v25785_v22 = vadd.f32 %v11400_v60, %v11072_v52  ;;  %v11075_v54 = vadd.f32 %v19995_v23, %v25578_v53  ;;  %v20045_v18 = vpop.f32.mrf.mxu1  ;;  %20344 = vmatmul.mubr.msk.f32.gmra.mxu1 %vm528_vm5, %v27663_v55  ;;  %20296 = vmatprep.mubr.msk.f32.mxu0 %vm528_vm5, %v13060_v2 }
 0x570   : > { %v11019_v9 = vpop.f32.mrf.mxu0  ;;  %20346 = vmatprep.mubr.msk.f32.mxu1 %vm528_vm5, %v27664_v13 }
 0x571   : > { %v25793_v62 = vadd.f32 %v20045_v18, %v11075_v54  ;;  %v11074_v42 = vadd.f32 %v11019_v9, %v25585_v46  ;;  %v11410_v49 = vpop.f32.mrf.mxu1  ;;  %v13453_v46 = vld [vmem:[#allocation4 + $0x1d1] sm:$0xff]  ;;  %v13814_v54 = vld [vmem:[#allocation4 + $0x7a] sm:$0xff] }
 0x572   : > { %v19998_v35 = vpop.f32.mrf.mxu0  ;;  %20297 = vmatmul.mubr.msk.f32.gmra.mxu0 %vm528_vm5, %v13061_v48  ;;  %v27666_v48 = vld [vmem:[#allocation56_spill] sm:$0xff] }
 0x573   : > { %v25797_v53 = vadd.f32 %v11410_v49, %v11074_v42  ;;  %v11077_v26 = vadd.f32 %v19998_v35, %v25595_v12  ;;  %v20048_v7 = vpop.f32.mrf.mxu1  ;;  %20347 = vmatmul.mubr.msk.f32.gmra.mxu1 %vm528_vm5, %v27665_v32  ;;  %20299 = vmatprep.mubr.msk.f32.mxu0 %vm528_vm5, %v13062_v38  ;;  %v13812_v12 = vld [vmem:[#allocation4 + $0x62] sm:$0xff]  ;;  %v13816_v49 = vld [vmem:[#allocation4 + $0x92] sm:$0xff] }
 0x574   : > { %v11029_v11 = vpop.f32.mrf.mxu0  ;;  %20349 = vmatprep.mubr.msk.f32.mxu1 %vm528_vm5, %v13452_v15 }
 0x575   : > { %v25804_v20 = vadd.f32 %v20048_v7, %v11077_v26  ;;  %v11076_v27 = vadd.f32 %v11029_v11, %v25600_v47  ;;  %v11420_v44 = vpop.f32.mrf.mxu1  ;;  %v27668_v26 = vld [vmem:[#allocation28_spill] sm:$0xff] }
 0x576   : > { %v20001_v43 = vpop.f32.mrf.mxu0  ;;  %20300 = vmatmul.mubr.msk.f32.gmra.mxu0 %vm528_vm5, %v13063_v36  ;;  %v13817_v11 = vld [vmem:[#allocation4 + $0x9a] sm:$0xff] }
 0x577   : > { %v25808_v58 = vadd.f32 %v11420_v44, %v11076_v27  ;;  %v11079_v31 = vadd.f32 %v20001_v43, %v25607_v8  ;;  %v20051_v51 = vpop.f32.mrf.mxu1  ;;  %20350 = vmatmul.mubr.msk.f32.gmra.mxu1 %vm528_vm5, %v13453_v46  ;;  %20354 = vmatprep.mubr.msk.f32.mxu0 %vm528_vm5, %v13812_v12  ;;  %v27670_v12 = vld [vmem:[#allocation14_spill] sm:$0xff] }
 0x578   : > { %20404 = vmatprep.mubr.msk.f32.mxu1 %vm528_vm5, %v25313_v34  ;;  %v11039_v2 = vpop.f32.mrf.mxu0  ;;  %v27667_v34 = vld [vmem:[#allocation55_spill] sm:$0xff] }
 0x579   : > { %v25815_v52 = vadd.f32 %v20051_v51, %v11079_v31  ;;  %v11078_v47 = vadd.f32 %v11039_v2, %v25616_v10  ;;  %v11430_v60 = vpop.f32.mrf.mxu1  ;;  %v27671_v31 = vld [vmem:[#allocation44_spill] sm:$0xff] }
 0x57a   : > { %v20056_v23 = vpop.f32.mrf.mxu0  ;;  %20355 = vmatmul.mubr.msk.f32.vlgmr.msra.gmra.mxu0 %vm528_vm5, %v13813_v37 }
 0x57b   : > { %v25819_v8 = vadd.f32 %v11430_v60, %v11078_v47  ;;  %v11830_v18 = vadd.f32 %v20056_v23, %v25631_v41  ;;  %v20106_v55 = vpop.f32.mrf.mxu1  ;;  %20405 = vmatmul.mubr.msk.f32.vlgmr.msra.gmra.mxu1 %vm528_vm5, %v27666_v48  ;;  %20357 = vmatprep.mubr.msk.f32.mxu0 %vm528_vm5, %v13814_v54  ;;  %v13815_v41 = vld [vmem:[#allocation4 + $0x82] sm:$0xff]  ;;  %v13819_v60 = vld [vmem:[#allocation4 + $0xb2] sm:$0xff] }
 0x57c   : > { %20503 = vmatpush3.msk.msra.mxu1 %vm720_vm0, %v25614_v28  ;;  %20407 = vmatprep.mubr.msk.f32.mxu1 %vm528_vm5, %v27667_v34  ;;  %v11670_v10 = vpop.f32.mrf.mxu0  ;;  %v27673_v48 = vld [vmem:[#allocation30_spill] sm:$0xff] }
 0x57d   : > { %v25829_v9 = vadd.f32 %v20106_v55, %v11830_v18  ;;  %v11829_v13 = vadd.f32 %v11670_v10, %v25641_v14  ;;  %v12060_v38 = vpop.f32.mrf.mxu1  ;;  %20453 = vmatpush3.msk.msra.mxu0 %vm5456_vm4, %v25625_v16  ;;  %v27669_v14 = vld [vmem:[#allocation43_spill] sm:$0xff]  ;;  %v27672_v55 = vld [vmem:[#allocation16_spill] sm:$0xff] }
 0x57e   : > { %v20059_v42 = vpop.f32.mrf.mxu0  ;;  %20358 = vmatmul.mubr.msk.f32.gmra.mxu0 %vm528_vm5, %v13815_v41 }
 0x57f   : > { %v25835_v15 = vadd.f32 %v12060_v38, %v11829_v13  ;;  %v11832_v28 = vadd.f32 %v20059_v42, %v25649_v0  ;;  %v20109_v35 = vpop.f32.mrf.mxu1  ;;  %20408 = vmatmul.mubr.msk.f32.gmra.mxu1 %vm528_vm5, %v27668_v26  ;;  %20360 = vmatprep.mubr.msk.f32.mxu0 %vm528_vm5, %v13816_v49  ;;  %v13818_v0 = vld [vmem:[#allocation4 + $0xaa] sm:$0xff]  ;;  %v27675_v26 = vld [vmem:[#allocation15_spill] sm:$0xff] }
 0x580   : > { %20410 = vmatprep.mubr.msk.f32.mxu1 %vm528_vm5, %v27669_v14  ;;  %v11680_v7 = vpop.f32.mrf.mxu0  ;;  %v13821_v38 = vld [vmem:[#allocation4 + $0xca] sm:$0xff] }
 0x581   : > { %v25843_v16 = vadd.f32 %v20109_v35, %v11832_v28  ;;  %v11831_v32 = vadd.f32 %v11680_v7, %v25653_v29  ;;  %v12070_v36 = vpop.f32.mrf.mxu1  ;;  %v27674_v35 = vld [vmem:[#allocation57_spill] sm:$0xff] }
 0x582   : > { %v20062_v46 = vpop.f32.mrf.mxu0  ;;  %20361 = vmatmul.mubr.msk.f32.gmra.mxu0 %vm528_vm5, %v13817_v11 }
 0x583   : > { %v25847_v27 = vadd.f32 %v12070_v36, %v11831_v32  ;;  %v11834_v44 = vadd.f32 %v20062_v46, %v25661_v63  ;;  %v20112_v43 = vpop.f32.mrf.mxu1  ;;  %20411 = vmatmul.mubr.msk.f32.gmra.mxu1 %vm528_vm5, %v27670_v12  ;;  %20363 = vmatprep.mubr.msk.f32.mxu0 %vm528_vm5, %v13818_v0  ;;  %v13820_v63 = vld [vmem:[#allocation4 + $0xc2] sm:$0xff] }
 0x584   : > { %20413 = vmatprep.mubr.msk.f32.mxu1 %vm528_vm5, %v27671_v31  ;;  %v11690_v29 = vpop.f32.mrf.mxu0  ;;  %v13823_v36 = vld [vmem:[#allocation4 + $0xe2] sm:$0xff] }
 0x585   : > { %v25855_v51 = vadd.f32 %v20112_v43, %v11834_v44  ;;  %v11833_v2 = vadd.f32 %v11690_v29, %v25665_v59  ;;  %v12080_v47 = vpop.f32.mrf.mxu1  ;;  %v27676_v43 = vld [vmem:[#allocation17_spill] sm:$0xff]  ;;  %v27677_v12 = vld [vmem:[#allocation60_spill] sm:$0xff] }
 0x586   : > { %v20065_v37 = vpop.f32.mrf.mxu0  ;;  %20364 = vmatmul.mubr.msk.f32.gmra.mxu0 %vm528_vm5, %v13819_v60 }
 0x587   : > { %v25859_v23 = vadd.f32 %v12080_v47, %v11833_v2  ;;  %v11836_v54 = vadd.f32 %v20065_v37, %v25673_v17  ;;  %v20115_v18 = vpop.f32.mrf.mxu1  ;;  %20414 = vmatmul.mubr.msk.f32.gmra.mxu1 %vm528_vm5, %v27672_v55  ;;  %20366 = vmatprep.mubr.msk.f32.mxu0 %vm528_vm5, %v13820_v63  ;;  %v13822_v17 = vld [vmem:[#allocation4 + $0xda] sm:$0xff]  ;;  %v27679_v55 = vld [vmem:[#allocation18_spill] sm:$0xff] }
 0x588   : > { %20416 = vmatprep.mubr.msk.f32.mxu1 %vm528_vm5, %v27673_v48  ;;  %v11700_v59 = vpop.f32.mrf.mxu0  ;;  %v13825_v47 = vld [vmem:[#allocation4 + $0xfa] sm:$0xff] }
 0x589   : > { %v25867_v34 = vadd.f32 %v20115_v18, %v11836_v54  ;;  %v11835_v10 = vadd.f32 %v11700_v59, %v25677_v57  ;;  %v12090_v13 = vpop.f32.mrf.mxu1  ;;  %v27678_v18 = vld [vmem:[#allocation45_spill] sm:$0xff] }
 0x58a   : > { %v20068_v41 = vpop.f32.mrf.mxu0  ;;  %20367 = vmatmul.mubr.msk.f32.gmra.mxu0 %vm528_vm5, %v13821_v38 }
 0x58b   : > { %v25871_v42 = vadd.f32 %v12090_v13, %v11835_v10  ;;  %v11838_v49 = vadd.f32 %v20068_v41, %v25685_v3  ;;  %v20118_v28 = vpop.f32.mrf.mxu1  ;;  %20417 = vmatmul.mubr.msk.f32.gmra.mxu1 %vm528_vm5, %v27674_v35  ;;  %20369 = vmatprep.mubr.msk.f32.mxu0 %vm528_vm5, %v13822_v17  ;;  %v13824_v3 = vld [vmem:[#allocation4 + $0xf2] sm:$0xff]  ;;  %v27681_v35 = vld [vmem:[#allocation61_spill] sm:$0xff] }
 0x58c   : > { %20419 = vmatprep.mubr.msk.f32.mxu1 %vm528_vm5, %v27675_v26  ;;  %v11710_v57 = vpop.f32.mrf.mxu0  ;;  %v13827_v13 = vld [vmem:[#allocation4 + $0x112] sm:$0xff] }
 0x58d   : > { %v25879_v14 = vadd.f32 %v20118_v28, %v11838_v49  ;;  %v11837_v7 = vadd.f32 %v11710_v57, %v25689_v24  ;;  %v12100_v32 = vpop.f32.mrf.mxu1  ;;  %v27680_v28 = vld [vmem:[#allocation34_spill] sm:$0xff] }
 0x58e   : > { %v20071_v11 = vpop.f32.mrf.mxu0  ;;  %20370 = vmatmul.mubr.msk.f32.gmra.mxu0 %vm528_vm5, %v13823_v36 }
 0x58f   : > { %v25883_v46 = vadd.f32 %v12100_v32, %v11837_v7  ;;  %v11840_v0 = vadd.f32 %v20071_v11, %v25697_v21  ;;  %v20121_v44 = vpop.f32.mrf.mxu1  ;;  %20420 = vmatmul.mubr.msk.f32.gmra.mxu1 %vm528_vm5, %v27676_v43  ;;  %20372 = vmatprep.mubr.msk.f32.mxu0 %vm528_vm5, %v13824_v3  ;;  %v13826_v21 = vld [vmem:[#allocation4 + $0x10a] sm:$0xff]  ;;  %v27683_v43 = vld [vmem:[#allocation19_spill] sm:$0xff] }
 0x590   : > { %20422 = vmatprep.mubr.msk.f32.mxu1 %vm528_vm5, %v27677_v12  ;;  %v11720_v24 = vpop.f32.mrf.mxu0  ;;  %v13829_v32 = vld [vmem:[#allocation4 + $0x12a] sm:$0xff] }
 0x591   : > { %v25891_v31 = vadd.f32 %v20121_v44, %v11840_v0  ;;  %v11839_v29 = vadd.f32 %v11720_v24, %v25701_v6  ;;  %v12110_v2 = vpop.f32.mrf.mxu1  ;;  %v27682_v44 = vld [vmem:[#allocation33_spill] sm:$0xff] }
 0x592   : > { %v20074_v60 = vpop.f32.mrf.mxu0  ;;  %20373 = vmatmul.mubr.msk.f32.gmra.mxu0 %vm528_vm5, %v13825_v47 }
 0x593   : > { %v25895_v37 = vadd.f32 %v12110_v2, %v11839_v29  ;;  %v11842_v63 = vadd.f32 %v20074_v60, %v25709_v50  ;;  %v20124_v54 = vpop.f32.mrf.mxu1  ;;  %20423 = vmatmul.mubr.msk.f32.gmra.mxu1 %vm528_vm5, %v27678_v18  ;;  %20375 = vmatprep.mubr.msk.f32.mxu0 %vm528_vm5, %v13826_v21  ;;  %v13828_v50 = vld [vmem:[#allocation4 + $0x122] sm:$0xff]  ;;  %v27685_v18 = vld [vmem:[#allocation62_spill] sm:$0xff] }
 0x594   : > { %20425 = vmatprep.mubr.msk.f32.mxu1 %vm528_vm5, %v27679_v55  ;;  %v11730_v6 = vpop.f32.mrf.mxu0  ;;  %v13831_v2 = vld [vmem:[#allocation4 + $0x142] sm:$0xff] }
 0x595   : > { %v25903_v48 = vadd.f32 %v20124_v54, %v11842_v63  ;;  %v11841_v59 = vadd.f32 %v11730_v6, %v25713_v4  ;;  %v12120_v10 = vpop.f32.mrf.mxu1  ;;  %v27684_v54 = vld [vmem:[#allocation35_spill] sm:$0xff] }
 0x596   : > { %v20077_v38 = vpop.f32.mrf.mxu0  ;;  %20376 = vmatmul.mubr.msk.f32.gmra.mxu0 %vm528_vm5, %v13827_v13 }
 0x597   : > { %v25907_v41 = vadd.f32 %v12120_v10, %v11841_v59  ;;  %v11844_v17 = vadd.f32 %v20077_v38, %v25721_v19  ;;  %v20127_v49 = vpop.f32.mrf.mxu1  ;;  %20426 = vmatmul.mubr.msk.f32.gmra.mxu1 %vm528_vm5, %v27680_v28  ;;  %20378 = vmatprep.mubr.msk.f32.mxu0 %vm528_vm5, %v13828_v50  ;;  %v13830_v19 = vld [vmem:[#allocation4 + $0x13a] sm:$0xff] }
 0x598   : > { %20428 = vmatprep.mubr.msk.f32.mxu1 %vm528_vm5, %v27681_v35  ;;  %v11740_v4 = vpop.f32.mrf.mxu0  ;;  %v13833_v10 = vld [vmem:[#allocation4 + $0x15a] sm:$0xff]  ;;  %v13835_v35 = vld [vmem:[#allocation4 + $0x172] sm:$0xff] }
 0x599   : > { %v25915_v26 = vadd.f32 %v20127_v49, %v11844_v17  ;;  %v11843_v57 = vadd.f32 %v11740_v4, %v25725_v56  ;;  %v12130_v7 = vpop.f32.mrf.mxu1  ;;  %v27686_v49 = vld [vmem:[#allocation36_spill] sm:$0xff]  ;;  %v27687_v28 = vld [vmem:[#allocation63_spill] sm:$0xff] }
 0x59a   : > { %v20080_v36 = vpop.f32.mrf.mxu0  ;;  %20379 = vmatmul.mubr.msk.f32.gmra.mxu0 %vm528_vm5, %v13829_v32  ;;  %v15247_v4 = vld [vmem:[#allocation2] sm:$0xff] }
 0x59b   : > { %v25919_v11 = vadd.f32 %v12130_v7, %v11843_v57  ;;  %v11846_v3 = vadd.f32 %v20080_v36, %v25733_v40  ;;  %v20130_v0 = vpop.f32.mrf.mxu1  ;;  %20429 = vmatmul.mubr.msk.f32.gmra.mxu1 %vm528_vm5, %v27682_v44  ;;  %20381 = vmatprep.mubr.msk.f32.mxu0 %vm528_vm5, %v13830_v19  ;;  %v13832_v40 = vld [vmem:[#allocation4 + $0x152] sm:$0xff]  ;;  %v15283_v19 = vld [vmem:[#allocation2 + $0x1] sm:$0xff] }
 0x59c   : > { %20431 = vmatprep.mubr.msk.f32.mxu1 %vm528_vm5, %v27683_v43  ;;  %v11750_v56 = vpop.f32.mrf.mxu0  ;;  %v15249_v36 = vld [vmem:[#allocation2 + $0x18] sm:$0xff] }
 0x59d   : > { %v25927_v12 = vadd.f32 %v20130_v0, %v11846_v3  ;;  %v11845_v24 = vadd.f32 %v11750_v56, %v25737_v25  ;;  %v12140_v29 = vpop.f32.mrf.mxu1  ;;  %v13836_v0 = vld [vmem:[#allocation4 + $0x182] sm:$0xff] }
 0x59e   : > { %v20083_v47 = vpop.f32.mrf.mxu0  ;;  %20382 = vmatmul.mubr.msk.f32.gmra.mxu0 %vm528_vm5, %v13831_v2  ;;  %v15284_v2 = vld [vmem:[#allocation2 + $0x9] sm:$0xff] }
 0x59f   : > { %v25931_v60 = vadd.f32 %v12140_v29, %v11845_v24  ;;  %v11848_v21 = vadd.f32 %v20083_v47, %v25745_v33  ;;  %v20133_v63 = vpop.f32.mrf.mxu1  ;;  %20432 = vmatmul.mubr.msk.f32.gmra.mxu1 %vm528_vm5, %v27684_v54  ;;  %20384 = vmatprep.mubr.msk.f32.mxu0 %vm528_vm5, %v13832_v40  ;;  %v13834_v33 = vld [vmem:[#allocation4 + $0x16a] sm:$0xff]  ;;  %v27689_v47 = vld [vmem:[#allocation11_spill] sm:$0xff] }
 0x5a0   : > { %20434 = vmatprep.mubr.msk.f32.mxu1 %vm528_vm5, %v27685_v18  ;;  %v11760_v25 = vpop.f32.mrf.mxu0  ;;  %v27688_v24 = vld [vmem:[#allocation25_spill] sm:$0xff]  ;;  %v15250_v18 = vld [vmem:[#allocation2 + $0x20] sm:$0xff] }
 0x5a1   : > { %v25939_v55 = vadd.f32 %v20133_v63, %v11848_v21  ;;  %v11847_v6 = vadd.f32 %v11760_v25, %v25749_v1  ;;  %v12150_v59 = vpop.f32.mrf.mxu1  ;;  %v13837_v29 = vld [vmem:[#allocation4 + $0x18a] sm:$0xff]  ;;  %v15319_v63 = vmax.f32 %v15247_v4, %v15283_v19  ;;  %v15286_v25 = vld [vmem:[#allocation2 + $0x21] sm:$0xff]  ;;  %v27691_v19 = vld [vmem:[#allocation39_spill] sm:$0xff] }
 0x5a2   : > { %v20086_v13 = vpop.f32.mrf.mxu0  ;;  %20385 = vmatmul.mubr.msk.f32.gmra.mxu0 %vm528_vm5, %v13833_v10  ;;  %v15251_v21 = vld [vmem:[#allocation2 + $0x30] sm:$0xff]  ;;  %v27690_v4 = vld [vmem:[#allocation37_spill] sm:$0xff] }
 0x5a3   : > { %v25943_v38 = vadd.f32 %v12150_v59, %v11847_v6  ;;  %v11850_v50 = vadd.f32 %v20086_v13, %v25757_v30  ;;  %v20136_v17 = vpop.f32.mrf.mxu1  ;;  %20435 = vmatmul.mubr.msk.f32.gmra.mxu1 %vm528_vm5, %v27686_v49  ;;  %20387 = vmatprep.mubr.msk.f32.mxu0 %vm528_vm5, %v13834_v33  ;;  %v15285_v30 = vld [vmem:[#allocation2 + $0x19] sm:$0xff]  ;;  %v15287_v10 = vld [vmem:[#allocation2 + $0x31] sm:$0xff]  ;;  %v15355_v13 = vld [vmem:[#allocation2 + $0x2] sm:$0xff] }
 0x5a4   : > { %20437 = vmatprep.mubr.msk.f32.mxu1 %vm528_vm5, %v27687_v28  ;;  %v11770_v1 = vpop.f32.mrf.mxu0  ;;  %v15321_v54 = vmax.f32 %v15249_v36, %v15285_v30  ;;  %v15357_v33 = vld [vmem:[#allocation2 + $0x1a] sm:$0xff]  ;;  %v15356_v36 = vld [vmem:[#allocation2 + $0xa] sm:$0xff] }
 0x5a5   : > { %v25951_v57 = vadd.f32 %v20136_v17, %v11850_v50  ;;  %v11849_v7 = vadd.f32 %v11770_v1, %v25761_v5  ;;  %v12160_v32 = vpop.f32.mrf.mxu1  ;;  %v15248_v5 = vld [vmem:[#allocation2 + $0x8] sm:$0xff]  ;;  %v13838_v17 = vld [vmem:[#allocation4 + $0x19a] sm:$0xff] }
 0x5a6   : > { %v20089_v3 = vpop.f32.mrf.mxu0  ;;  %20388 = vmatmul.mubr.msk.f32.gmra.mxu0 %vm528_vm5, %v13835_v35  ;;  %v15320_v49 = vmax.f32 %v15248_v5, %v15284_v2 }
 0x5a7   : > { %v25955_v44 = vadd.f32 %v12160_v32, %v11849_v7  ;;  %v11852_v43 = vadd.f32 %v20089_v3, %v25769_v61  ;;  %v20139_v56 = vpop.f32.mrf.mxu1  ;;  %20438 = vmatmul.mubr.msk.f32.gmra.mxu1 %vm528_vm5, %v27688_v24  ;;  %20390 = vmatprep.mubr.msk.f32.mxu0 %vm528_vm5, %v13836_v0  ;;  %v15288_v7 = vld [vmem:[#allocation2 + $0x39] sm:$0xff]  ;;  %v15322_v32 = vmax.f32 %v15250_v18, %v15286_v25  ;;  %v13839_v3 = vld [vmem:[#allocation4 + $0x1a2] sm:$0xff] }
 0x5a8   : > { %20440 = vmatprep.mubr.msk.f32.mxu1 %vm528_vm5, %v27689_v47  ;;  %v11780_v40 = vpop.f32.mrf.mxu0  ;;  %v13840_v0 = vld [vmem:[#allocation4 + $0x1b2] sm:$0xff]  ;;  %v25975_v24 = vmax.f32 %v15321_v54, %v15357_v33  ;;  %v15289_v18 = vld [vmem:[#allocation2 + $0x49] sm:$0xff]  ;;  %v27692_v54 = vld [vmem:[#allocation20_spill] sm:$0xff] }
 0x5a9   : > { %v25963_v6 = vadd.f32 %v20139_v56, %v11852_v43  ;;  %v11851_v61 = vadd.f32 %v11780_v40, %v25773_v45  ;;  %v12170_v59 = vpop.f32.mrf.mxu1  ;;  %v15252_v45 = vld [vmem:[#allocation2 + $0x38] sm:$0xff]  ;;  %v15323_v43 = vmax.f32 %v15251_v21, %v15287_v10  ;;  %v15391_v56 = vmax.f32 %v15319_v63, %v15355_v13  ;;  %v15253_v40 = vld [vmem:[#allocation2 + $0x48] sm:$0xff]  ;;  %v15254_v13 = vld [vmem:[#allocation2 + $0x50] sm:$0xff] }
 0x5aa   : > { %v20092_v50 = vpop.f32.mrf.mxu0  ;;  %20391 = vmatmul.mubr.msk.f32.gmra.mxu0 %vm528_vm5, %v13837_v29  ;;  %v15359_v47 = vld [vmem:[#allocation2 + $0x32] sm:$0xff] }
 0x5ab   : > { %v25967_v28 = vadd.f32 %v12170_v59, %v11851_v61  ;;  %v11854_v1 = vadd.f32 %v20092_v50, %v25781_v39  ;;  %v20142_v35 = vpop.f32.mrf.mxu1  ;;  %20441 = vmatmul.mubr.msk.f32.gmra.mxu1 %vm528_vm5, %v27690_v4  ;;  %20393 = vmatprep.mubr.msk.f32.mxu0 %vm528_vm5, %v13838_v17  ;;  %v15358_v39 = vld [vmem:[#allocation2 + $0x22] sm:$0xff]  ;;  %v13841_v61 = vld [vmem:[#allocation4 + $0x1ba] sm:$0xff]  ;;  %v15324_v59 = vmax.f32 %v15252_v45, %v15288_v7  ;;  %v15290_v33 = vld [vmem:[#allocation2 + $0x51] sm:$0xff] }
 0x5ac   : > { %20443 = vmatprep.mubr.msk.f32.mxu1 %vm528_vm5, %v27691_v19  ;;  %v11790_v30 = vpop.f32.mrf.mxu0  ;;  %v15392_v50 = vmax.f32 %v15320_v49, %v15356_v36  ;;  %v25987_v10 = vmax.f32 %v15322_v32, %v15358_v39  ;;  %v13842_v49 = vld [vmem:[#allocation4 + $0x1ca] sm:$0xff]  ;;  %v25991_v45 = vmax.f32 %v15323_v43, %v15359_v47  ;;  %v15325_v7 = vmax.f32 %v15253_v40, %v15289_v18  ;;  %v15362_v18 = vld [vmem:[#allocation2 + $0x52] sm:$0xff] }
 0x5ad   : > { %v25977_v29 = vadd.f32 %v20142_v35, %v11854_v1  ;;  %v11853_v5 = vadd.f32 %v11790_v30, %v25785_v22  ;;  %v12180_v2 = vpop.f32.mrf.mxu1  ;;  %v15360_v22 = vld [vmem:[#allocation2 + $0x3a] sm:$0xff]  ;;  %v27693_v35 = vld [vmem:[#allocation46_spill] sm:$0xff] }
 0x5ae   : > { %v20095_v25 = vpop.f32.mrf.mxu0  ;;  %20394 = vmatmul.mubr.msk.f32.gmra.mxu0 %vm528_vm5, %v13839_v3  ;;  %v14232_v4 = vld [vmem:[#allocation4 + $0x1cb] sm:$0xff]  ;;  %v15255_v3 = vld [vmem:[#allocation2 + $0x60] sm:$0xff] }
 0x5af   : > { %v25981_v17 = vadd.f32 %v12180_v2, %v11853_v5  ;;  %v11856_v21 = vadd.f32 %v20095_v25, %v25793_v62  ;;  %v20145_v63 = vpop.f32.mrf.mxu1  ;;  %20444 = vmatmul.mubr.msk.f32.gmra.mxu1 %vm528_vm5, %v27692_v54  ;;  %20396 = vmatprep.mubr.msk.f32.mxu0 %vm528_vm5, %v13840_v0  ;;  %v15427_v62 = vmax.f32 %v15391_v56, %v25975_v24  ;;  %v15361_v32 = vld [vmem:[#allocation2 + $0x4a] sm:$0xff]  ;;  %v15291_v0 = vld [vmem:[#allocation2 + $0x61] sm:$0xff]  ;;  %v13843_v5 = vld [vmem:[#allocation4 + $0x1d2] sm:$0xff] }
 0x5b0   : > { %v11800_v1 = vpop.f32.mrf.mxu0  ;;  %20446 = vmatprep.mubr.msk.f32.mxu1 %vm528_vm5, %v27693_v35  ;;  %v25998_v2 = vmax.f32 %v15324_v59, %v15360_v22  ;;  %v15326_v25 = vmax.f32 %v15254_v13, %v15290_v33  ;;  %v27694_v40 = vld [vmem:[#allocation38_spill] sm:$0xff]  ;;  %v26009_v22 = vmax.f32 %v15325_v7, %v15361_v32  ;;  %v15327_v13 = vmax.f32 %v15255_v3, %v15291_v0  ;;  %v15363_v35 = vld [vmem:[#allocation2 + $0x62] sm:$0xff] }
 0x5b1   : > { %v25994_v36 = vadd.f32 %v20145_v63, %v11856_v21  ;;  %v11855_v19 = vadd.f32 %v11800_v1, %v25797_v53  ;;  %v12190_v30 = vpop.f32.mrf.mxu1  ;;  %v15428_v53 = vmax.f32 %v15392_v50, %v25987_v10  ;;  %v15256_v21 = vld [vmem:[#allocation2 + $0x68] sm:$0xff]  ;;  %v14233_v59 = vld [vmem:[#allocation4 + $0x1d3] sm:$0xff]  ;;  %v15459_v54 = vmax.f32 %v15427_v62, %v25991_v45 }
 0x5b2   : > { %v20098_v39 = vpop.f32.mrf.mxu0  ;;  %20397 = vmatmul.mubr.msk.f32.gmra.mxu0 %vm528_vm5, %v13841_v61  ;;  %v15292_v63 = vld [vmem:[#allocation2 + $0x69] sm:$0xff]  ;;  %v15430_v62 = vmax.f32 %v25987_v10, %v25998_v2  ;;  %v26029_v10 = vmax.f32 %v15327_v13, %v15363_v35 }
 0x5b3   : > { %v26000_v43 = vadd.f32 %v12190_v30, %v11855_v19  ;;  %v11858_v56 = vadd.f32 %v20098_v39, %v25804_v20  ;;  %v20148_v47 = vpop.f32.mrf.mxu1  ;;  %20447 = vmatmul.mubr.msk.f32.gmra.mxu1 %vm528_vm5, %v27694_v40  ;;  %20399 = vmatprep.mubr.msk.f32.mxu0 %vm528_vm5, %v13842_v49  ;;  %v15429_v20 = vmax.f32 %v25975_v24, %v25991_v45  ;;  %v15257_v49 = vld [vmem:[#allocation2 + $0x78] sm:$0xff]  ;;  %v15364_v0 = vld [vmem:[#allocation2 + $0x6a] sm:$0xff]  ;;  %v15258_v40 = vld [vmem:[#allocation2 + $0x80] sm:$0xff] }
 0x5b4   : > { %v11810_v61 = vpop.f32.mrf.mxu0  ;;  %20449 = vmatprep.mubr.msk.f32.mxu1 %vm528_vm5, %v14232_v4  ;;  %v15293_v19 = vld [vmem:[#allocation2 + $0x79] sm:$0xff]  ;;  %v14592_v4 = vld [vmem:[#allocation4 + $0x64] sm:$0xff]  ;;  %v26017_v39 = vmax.f32 %v15326_v25, %v15362_v18  ;;  %v15328_v7 = vmax.f32 %v15256_v21, %v15292_v63  ;;  %v14593_v25 = vld [vmem:[#allocation4 + $0x6c] sm:$0xff] }
 0x5b5   : > { %v26013_v33 = vadd.f32 %v20148_v47, %v11858_v56  ;;  %v11857_v1 = vadd.f32 %v11810_v61, %v25808_v58  ;;  %v12200_v50 = vpop.f32.mrf.mxu1  ;;  %v15460_v58 = vmax.f32 %v15428_v53, %v25998_v2  ;;  %v15461_v56 = vmax.f32 %v15429_v20, %v26009_v22  ;;  %v15294_v18 = vld [vmem:[#allocation2 + $0x81] sm:$0xff] }
 0x5b6   : > { %v20101_v30 = vpop.f32.mrf.mxu0  ;;  %20400 = vmatmul.mubr.msk.f32.gmra.mxu0 %vm528_vm5, %v13843_v5  ;;  %v15431_v47 = vmax.f32 %v25991_v45, %v26009_v22  ;;  %v15365_v61 = vld [vmem:[#allocation2 + $0x7a] sm:$0xff]  ;;  %v15462_v13 = vmax.f32 %v15430_v62, %v26017_v39  ;;  %v15432_v45 = vmax.f32 %v25998_v2, %v26017_v39  ;;  %v15433_v2 = vmax.f32 %v26009_v22, %v26029_v10 }
 0x5b7   : > { %v26021_v24 = vadd.f32 %v12200_v50, %v11857_v1  ;;  %v11860_v32 = vadd.f32 %v20101_v30, %v25815_v52  ;;  %v20151_v3 = vpop.f32.mrf.mxu1  ;;  %20450 = vmatmul.mubr.msk.f32.gmra.mxu1 %vm528_vm5, %v14233_v59  ;;  %20454 = vmatprep.mubr.msk.f32.mxu0 %vm528_vm5, %v14592_v4  ;;  %v15329_v52 = vmax.f32 %v15257_v49, %v15293_v19  ;;  %v15259_v59 = vld [vmem:[#allocation2 + $0x90] sm:$0xff]  ;;  %v14594_v20 = vld [vmem:[#allocation4 + $0x7c] sm:$0xff] }
 0x5b8   : > { %v11820_v5 = vpop.f32.mrf.mxu0  ;;  %20504 = vmatprep.mubr.msk.f32.mxu1 %vm439_vm1, %v15459_v54  ;;  %v15295_v1 = vld [vmem:[#allocation2 + $0x91] sm:$0xff]  ;;  %v26038_v50 = vmax.f32 %v15328_v7, %v15364_v0  ;;  %v15330_v19 = vmax.f32 %v15258_v40, %v15294_v18  ;;  %v15296_v4 = vld [vmem:[#allocation2 + $0x99] sm:$0xff]  ;;  %v15463_v62 = vmax.f32 %v15431_v47, %v26029_v10  ;;  %v15261_v18 = vld [vmem:[#allocation2 + $0xa8] sm:$0xff] }
 0x5b9   : > { %v26033_v21 = vadd.f32 %v20151_v3, %v11860_v32  ;;  %v11859_v63 = vadd.f32 %v11820_v5, %v25819_v8  ;;  %v12210_v53 = vpop.f32.mrf.mxu1  ;;  %v15260_v30 = vld [vmem:[#allocation2 + $0x98] sm:$0xff]  ;;  %v14595_v3 = vld [vmem:[#allocation4 + $0x84] sm:$0xff]  ;;  %v26049_v7 = vmax.f32 %v15329_v52, %v15365_v61  ;;  %v15331_v0 = vmax.f32 %v15259_v59, %v15295_v1 }
 0x5ba   : > { %v20156_v54 = vpop.f32.mrf.mxu0  ;;  %20455 = vmatmul.mubr.msk.f32.vlgmr.msra.gmra.mxu0 %vm528_vm5, %v14593_v25  ;;  %v15367_v40 = vld [vmem:[#allocation2 + $0x92] sm:$0xff]  ;;  %v15464_v47 = vmax.f32 %v15432_v45, %v26038_v50  ;;  %v15434_v52 = vmax.f32 %v26017_v39, %v26038_v50  ;;  %v15332_v22 = vmax.f32 %v15260_v30, %v15296_v4  ;;  %v14597_v45 = vld [vmem:[#allocation4 + $0x9c] sm:$0xff] }
 0x5bb   : > { %v26042_v35 = vadd.f32 %v12210_v53, %v11859_v63  ;;  %v12610_v49 = vadd.f32 %v20156_v54, %v25829_v9  ;;  %v20206_v8 = vpop.f32.mrf.mxu1  ;;  %20505 = vmatmul.mubr.msk.f32.vlgmr.msra.gmra.mxu1 %vm439_vm1, %v15460_v58  ;;  %20457 = vmatprep.mubr.msk.f32.mxu0 %vm528_vm5, %v14594_v20  ;;  %v15366_v9 = vld [vmem:[#allocation2 + $0x82] sm:$0xff]  ;;  %v15368_v54 = vld [vmem:[#allocation2 + $0x9a] sm:$0xff]  ;;  %v15262_v20 = vld [vmem:[#allocation2 + $0xb0] sm:$0xff]  ;;  %v15465_v39 = vmax.f32 %v15433_v2, %v26049_v7 }
 0x5bc   : > { %v12450_v32 = vpop.f32.mrf.mxu0  ;;  %20507 = vmatprep.mubr.msk.f32.mxu1 %vm439_vm1, %v15461_v56  ;;  %v15297_v63 = vld [vmem:[#allocation2 + $0xa9] sm:$0xff]  ;;  %v14596_v56 = vld [vmem:[#allocation4 + $0x94] sm:$0xff]  ;;  %v26069_v30 = vmax.f32 %v15331_v0, %v15367_v40 }
 0x5bd   : > { %v26053_v5 = vadd.f32 %v20206_v8, %v12610_v49  ;;  %v12609_v58 = vadd.f32 %v12450_v32, %v25835_v15  ;;  %v12840_v25 = vpop.f32.mrf.mxu1  ;;  %v26065_v15 = vmax.f32 %v15330_v19, %v15366_v9  ;;  %v15298_v49 = vld [vmem:[#allocation2 + $0xb1] sm:$0xff]  ;;  %v15333_v4 = vmax.f32 %v15261_v18, %v15297_v63  ;;  %v15263_v9 = vld [vmem:[#allocation2 + $0xc0] sm:$0xff] }
 0x5be   : > { %v20159_v53 = vpop.f32.mrf.mxu0  ;;  %20458 = vmatmul.mubr.msk.f32.gmra.mxu0 %vm528_vm5, %v14595_v3  ;;  %v15369_v3 = vld [vmem:[#allocation2 + $0xaa] sm:$0xff]  ;;  %v15334_v0 = vmax.f32 %v15262_v20, %v15298_v49  ;;  %v15370_v63 = vld [vmem:[#allocation2 + $0xb2] sm:$0xff] }
 0x5bf   : > { %v26060_v61 = vadd.f32 %v12840_v25, %v12609_v58  ;;  %v12612_v59 = vadd.f32 %v20159_v53, %v25843_v16  ;;  %v20209_v1 = vpop.f32.mrf.mxu1  ;;  %20460 = vmatprep.mubr.msk.f32.mxu0 %vm528_vm5, %v14596_v56  ;;  %20508 = vmatmul.mubr.msk.f32.gmra.mxu1 %vm439_vm1, %v15462_v13  ;;  %v15435_v16 = vmax.f32 %v26029_v10, %v26049_v7  ;;  %v15299_v58 = vld [vmem:[#allocation2 + $0xc1] sm:$0xff]  ;;  %v15300_v20 = vld [vmem:[#allocation2 + $0xc9] sm:$0xff] }
 0x5c0   : > { %v12460_v8 = vpop.f32.mrf.mxu0  ;;  %20510 = vmatprep.mubr.msk.f32.mxu1 %vm439_vm1, %v15463_v62  ;;  %v14598_v62 = vld [vmem:[#allocation4 + $0xac] sm:$0xff]  ;;  %v26077_v53 = vmax.f32 %v15332_v22, %v15368_v54  ;;  %v15436_v2 = vmax.f32 %v26038_v50, %v26065_v15  ;;  %v26089_v50 = vmax.f32 %v15333_v4, %v15369_v3  ;;  %v26098_v4 = vmax.f32 %v15334_v0, %v15370_v63 }
 0x5c1   : > { %v26073_v32 = vadd.f32 %v20209_v1, %v12612_v59  ;;  %v12611_v13 = vadd.f32 %v12460_v8, %v25847_v27  ;;  %v12850_v19 = vpop.f32.mrf.mxu1  ;;  %v15466_v27 = vmax.f32 %v15434_v52, %v26065_v15  ;;  %v14599_v59 = vld [vmem:[#allocation4 + $0xb4] sm:$0xff]  ;;  %v15467_v22 = vmax.f32 %v15435_v16, %v26069_v30  ;;  %v15264_v54 = vld [vmem:[#allocation2 + $0xc8] sm:$0xff] }
 0x5c2   : > { %v20162_v25 = vpop.f32.mrf.mxu0  ;;  %20461 = vmatmul.mubr.msk.f32.gmra.mxu0 %vm528_vm5, %v14597_v45  ;;  %v15437_v1 = vmax.f32 %v26049_v7, %v26069_v30  ;;  %v15371_v8 = vld [vmem:[#allocation2 + $0xc2] sm:$0xff]  ;;  %v15265_v45 = vld [vmem:[#allocation2 + $0xd8] sm:$0xff]  ;;  %v15468_v16 = vmax.f32 %v15436_v2, %v26077_v53  ;;  %v15438_v7 = vmax.f32 %v26065_v15, %v26077_v53  ;;  %v15439_v15 = vmax.f32 %v26069_v30, %v26089_v50 }
 0x5c3   : > { %v26081_v10 = vadd.f32 %v12850_v19, %v12611_v13  ;;  %v12614_v40 = vadd.f32 %v20162_v25, %v25855_v51  ;;  %v20212_v18 = vpop.f32.mrf.mxu1  ;;  %20463 = vmatprep.mubr.msk.f32.mxu0 %vm528_vm5, %v14598_v62  ;;  %20511 = vmatmul.mubr.msk.f32.gmra.mxu1 %vm439_vm1, %v15464_v47  ;;  %v15335_v51 = vmax.f32 %v15263_v9, %v15299_v58  ;;  %v15301_v13 = vld [vmem:[#allocation2 + $0xd9] sm:$0xff]  ;;  %v15302_v62 = vld [vmem:[#allocation2 + $0xe1] sm:$0xff] }
 0x5c4   : > { %v12470_v56 = vpop.f32.mrf.mxu0  ;;  %20513 = vmatprep.mubr.msk.f32.mxu1 %vm439_vm1, %v15465_v39  ;;  %v14600_v39 = vld [vmem:[#allocation4 + $0xc4] sm:$0xff]  ;;  %v15336_v58 = vmax.f32 %v15264_v54, %v15300_v20  ;;  %v15469_v2 = vmax.f32 %v15437_v1, %v26089_v50  ;;  %v15337_v63 = vmax.f32 %v15265_v45, %v15301_v13  ;;  %v15373_v54 = vld [vmem:[#allocation2 + $0xda] sm:$0xff]  ;;  %v15267_v20 = vld [vmem:[#allocation2 + $0xf0] sm:$0xff]  ;;  %v15470_v1 = vmax.f32 %v15438_v7, %v26098_v4 }
 0x5c5   : > { %v26093_v49 = vadd.f32 %v20212_v18, %v12614_v40  ;;  %v12613_v47 = vadd.f32 %v12470_v56, %v25859_v23  ;;  %v12860_v52 = vpop.f32.mrf.mxu1  ;;  %v15266_v25 = vld [vmem:[#allocation2 + $0xe0] sm:$0xff]  ;;  %v14601_v18 = vld [vmem:[#allocation4 + $0xcc] sm:$0xff]  ;;  %v26109_v0 = vmax.f32 %v15335_v51, %v15371_v8  ;;  %v15440_v51 = vmax.f32 %v26077_v53, %v26098_v4 }
 0x5c6   : > { %v20165_v19 = vpop.f32.mrf.mxu0  ;;  %20464 = vmatmul.mubr.msk.f32.gmra.mxu0 %vm528_vm5, %v14599_v59  ;;  %v15338_v30 = vmax.f32 %v15266_v25, %v15302_v62  ;;  %v14603_v7 = vld [vmem:[#allocation4 + $0xe4] sm:$0xff]  ;;  %v26129_v25 = vmax.f32 %v15337_v63, %v15373_v54 }
 0x5c7   : > { %v26102_v3 = vadd.f32 %v12860_v52, %v12613_v47  ;;  %v12616_v9 = vadd.f32 %v20165_v19, %v25867_v34  ;;  %v20215_v23 = vpop.f32.mrf.mxu1  ;;  %20466 = vmatprep.mubr.msk.f32.mxu0 %vm528_vm5, %v14600_v39  ;;  %20514 = vmatmul.mubr.msk.f32.gmra.mxu1 %vm439_vm1, %v15466_v27  ;;  %v15372_v34 = vld [vmem:[#allocation2 + $0xca] sm:$0xff]  ;;  %v15374_v19 = vld [vmem:[#allocation2 + $0xe2] sm:$0xff]  ;;  %v15268_v39 = vld [vmem:[#allocation2 + $0xf8] sm:$0xff]  ;;  %v15471_v53 = vmax.f32 %v15439_v15, %v26109_v0 }
 0x5c8   : > { %v12480_v40 = vpop.f32.mrf.mxu0  ;;  %20516 = vmatprep.mubr.msk.f32.mxu1 %vm439_vm1, %v15467_v22  ;;  %v15303_v47 = vld [vmem:[#allocation2 + $0xf1] sm:$0xff]  ;;  %v14602_v22 = vld [vmem:[#allocation4 + $0xdc] sm:$0xff] }
 0x5c9   : > { %v26113_v56 = vadd.f32 %v20215_v23, %v12616_v9  ;;  %v12615_v27 = vadd.f32 %v12480_v40, %v25871_v42  ;;  %v12870_v59 = vpop.f32.mrf.mxu1  ;;  %v26125_v42 = vmax.f32 %v15336_v58, %v15372_v34  ;;  %v15304_v9 = vld [vmem:[#allocation2 + $0xf9] sm:$0xff]  ;;  %v15339_v62 = vmax.f32 %v15267_v20, %v15303_v47  ;;  %v15269_v34 = vld [vmem:[#allocation2 + $0x108] sm:$0xff] }
 0x5ca   : > { %v20168_v52 = vpop.f32.mrf.mxu0  ;;  %20467 = vmatmul.mubr.msk.f32.gmra.mxu0 %vm528_vm5, %v14601_v18  ;;  %v15375_v18 = vld [vmem:[#allocation2 + $0xf2] sm:$0xff]  ;;  %v15340_v63 = vmax.f32 %v15268_v39, %v15304_v9  ;;  %v15376_v47 = vld [vmem:[#allocation2 + $0xfa] sm:$0xff] }
 0x5cb   : > { %v26120_v8 = vadd.f32 %v12870_v59, %v12615_v27  ;;  %v12618_v45 = vadd.f32 %v20168_v52, %v25879_v14  ;;  %v20218_v13 = vpop.f32.mrf.mxu1  ;;  %20469 = vmatprep.mubr.msk.f32.mxu0 %vm528_vm5, %v14602_v22  ;;  %20517 = vmatmul.mubr.msk.f32.gmra.mxu1 %vm439_vm1, %v15468_v16  ;;  %v15441_v14 = vmax.f32 %v26089_v50, %v26109_v0  ;;  %v15305_v27 = vld [vmem:[#allocation2 + $0x109] sm:$0xff]  ;;  %v15306_v39 = vld [vmem:[#allocation2 + $0x111] sm:$0xff] }
 0x5cc   : > { %v12490_v23 = vpop.f32.mrf.mxu0  ;;  %20519 = vmatprep.mubr.msk.f32.mxu1 %vm439_vm1, %v15469_v2  ;;  %v14604_v2 = vld [vmem:[#allocation4 + $0xf4] sm:$0xff]  ;;  %v26137_v52 = vmax.f32 %v15338_v30, %v15374_v19  ;;  %v15442_v15 = vmax.f32 %v26098_v4, %v26125_v42  ;;  %v26149_v4 = vmax.f32 %v15339_v62, %v15375_v18  ;;  %v26158_v62 = vmax.f32 %v15340_v63, %v15376_v47 }
 0x5cd   : > { %v26133_v40 = vadd.f32 %v20218_v13, %v12618_v45  ;;  %v12617_v16 = vadd.f32 %v12490_v23, %v25883_v46  ;;  %v12880_v58 = vpop.f32.mrf.mxu1  ;;  %v15472_v46 = vmax.f32 %v15440_v51, %v26125_v42  ;;  %v14605_v45 = vld [vmem:[#allocation4 + $0xfc] sm:$0xff]  ;;  %v15473_v30 = vmax.f32 %v15441_v14, %v26129_v25  ;;  %v15270_v19 = vld [vmem:[#allocation2 + $0x110] sm:$0xff] }
 0x5ce   : > { %v20171_v59 = vpop.f32.mrf.mxu0  ;;  %20470 = vmatmul.mubr.msk.f32.gmra.mxu0 %vm528_vm5, %v14603_v7  ;;  %v15443_v13 = vmax.f32 %v26109_v0, %v26129_v25  ;;  %v15377_v23 = vld [vmem:[#allocation2 + $0x10a] sm:$0xff]  ;;  %v15271_v7 = vld [vmem:[#allocation2 + $0x120] sm:$0xff]  ;;  %v15474_v14 = vmax.f32 %v15442_v15, %v26137_v52  ;;  %v15444_v0 = vmax.f32 %v26125_v42, %v26137_v52  ;;  %v15445_v42 = vmax.f32 %v26129_v25, %v26149_v4 }
 0x5cf   : > { %v26141_v50 = vadd.f32 %v12880_v58, %v12617_v16  ;;  %v12620_v54 = vadd.f32 %v20171_v59, %v25891_v31  ;;  %v20221_v20 = vpop.f32.mrf.mxu1  ;;  %20472 = vmatprep.mubr.msk.f32.mxu0 %vm528_vm5, %v14604_v2  ;;  %20520 = vmatmul.mubr.msk.f32.gmra.mxu1 %vm439_vm1, %v15470_v1  ;;  %v15341_v31 = vmax.f32 %v15269_v34, %v15305_v27  ;;  %v15307_v16 = vld [vmem:[#allocation2 + $0x121] sm:$0xff]  ;;  %v15308_v2 = vld [vmem:[#allocation2 + $0x129] sm:$0xff] }
 0x5d0   : > { %v12500_v22 = vpop.f32.mrf.mxu0  ;;  %20522 = vmatprep.mubr.msk.f32.mxu1 %vm439_vm1, %v15471_v53  ;;  %v14606_v53 = vld [vmem:[#allocation4 + $0x10c] sm:$0xff]  ;;  %v15342_v27 = vmax.f32 %v15270_v19, %v15306_v39  ;;  %v15475_v15 = vmax.f32 %v15443_v13, %v26149_v4  ;;  %v15343_v47 = vmax.f32 %v15271_v7, %v15307_v16  ;;  %v15379_v19 = vld [vmem:[#allocation2 + $0x122] sm:$0xff]  ;;  %v15273_v39 = vld [vmem:[#allocation2 + $0x138] sm:$0xff]  ;;  %v15476_v13 = vmax.f32 %v15444_v0, %v26158_v62 }
 0x5d1   : > { %v26153_v9 = vadd.f32 %v20221_v20, %v12620_v54  ;;  %v12619_v1 = vadd.f32 %v12500_v22, %v25895_v37  ;;  %v12890_v51 = vpop.f32.mrf.mxu1  ;;  %v15272_v59 = vld [vmem:[#allocation2 + $0x128] sm:$0xff]  ;;  %v14607_v20 = vld [vmem:[#allocation4 + $0x114] sm:$0xff]  ;;  %v26169_v63 = vmax.f32 %v15341_v31, %v15377_v23  ;;  %v15446_v31 = vmax.f32 %v26137_v52, %v26158_v62 }
 0x5d2   : > { %v20174_v58 = vpop.f32.mrf.mxu0  ;;  %20473 = vmatmul.mubr.msk.f32.gmra.mxu0 %vm528_vm5, %v14605_v45  ;;  %v15344_v25 = vmax.f32 %v15272_v59, %v15308_v2  ;;  %v14609_v0 = vld [vmem:[#allocation4 + $0x12c] sm:$0xff]  ;;  %v26189_v59 = vmax.f32 %v15343_v47, %v15379_v19 }
 0x5d3   : > { %v26162_v18 = vadd.f32 %v12890_v51, %v12619_v1  ;;  %v12622_v34 = vadd.f32 %v20174_v58, %v25903_v48  ;;  %v20224_v37 = vpop.f32.mrf.mxu1  ;;  %20475 = vmatprep.mubr.msk.f32.mxu0 %vm528_vm5, %v14606_v53  ;;  %20523 = vmatmul.mubr.msk.f32.gmra.mxu1 %vm439_vm1, %v15472_v46  ;;  %v15378_v48 = vld [vmem:[#allocation2 + $0x112] sm:$0xff]  ;;  %v15380_v58 = vld [vmem:[#allocation2 + $0x12a] sm:$0xff]  ;;  %v15274_v53 = vld [vmem:[#allocation2 + $0x140] sm:$0xff]  ;;  %v15477_v52 = vmax.f32 %v15445_v42, %v26169_v63 }
 0x5d4   : > { %v12510_v54 = vpop.f32.mrf.mxu0  ;;  %20525 = vmatprep.mubr.msk.f32.mxu1 %vm439_vm1, %v15473_v30  ;;  %v15309_v1 = vld [vmem:[#allocation2 + $0x139] sm:$0xff]  ;;  %v14608_v30 = vld [vmem:[#allocation4 + $0x124] sm:$0xff] }
 0x5d5   : > { %v26173_v22 = vadd.f32 %v20224_v37, %v12622_v34  ;;  %v12621_v46 = vadd.f32 %v12510_v54, %v25907_v41  ;;  %v12900_v45 = vpop.f32.mrf.mxu1  ;;  %v26185_v41 = vmax.f32 %v15342_v27, %v15378_v48  ;;  %v15310_v34 = vld [vmem:[#allocation2 + $0x141] sm:$0xff]  ;;  %v15345_v2 = vmax.f32 %v15273_v39, %v15309_v1  ;;  %v15275_v48 = vld [vmem:[#allocation2 + $0x150] sm:$0xff] }
 0x5d6   : > { %v20177_v51 = vpop.f32.mrf.mxu0  ;;  %20476 = vmatmul.mubr.msk.f32.gmra.mxu0 %vm528_vm5, %v14607_v20  ;;  %v15381_v20 = vld [vmem:[#allocation2 + $0x13a] sm:$0xff]  ;;  %v15346_v47 = vmax.f32 %v15274_v53, %v15310_v34  ;;  %v15382_v1 = vld [vmem:[#allocation2 + $0x142] sm:$0xff] }
 0x5d7   : > { %v26180_v23 = vadd.f32 %v12900_v45, %v12621_v46  ;;  %v12624_v7 = vadd.f32 %v20177_v51, %v25915_v26  ;;  %v20227_v16 = vpop.f32.mrf.mxu1  ;;  %20478 = vmatprep.mubr.msk.f32.mxu0 %vm528_vm5, %v14608_v30  ;;  %20526 = vmatmul.mubr.msk.f32.gmra.mxu1 %vm439_vm1, %v15474_v14  ;;  %v15447_v26 = vmax.f32 %v26149_v4, %v26169_v63  ;;  %v15311_v46 = vld [vmem:[#allocation2 + $0x151] sm:$0xff]  ;;  %v15312_v53 = vld [vmem:[#allocation2 + $0x159] sm:$0xff] }
 0x5d8   : > { %v12520_v37 = vpop.f32.mrf.mxu0  ;;  %20528 = vmatprep.mubr.msk.f32.mxu1 %vm439_vm1, %v15475_v15  ;;  %v14610_v15 = vld [vmem:[#allocation4 + $0x13c] sm:$0xff]  ;;  %v26197_v51 = vmax.f32 %v15344_v25, %v15380_v58  ;;  %v15448_v42 = vmax.f32 %v26158_v62, %v26185_v41  ;;  %v26209_v62 = vmax.f32 %v15345_v2, %v15381_v20  ;;  %v26218_v2 = vmax.f32 %v15346_v47, %v15382_v1 }
 0x5d9   : > { %v26193_v54 = vadd.f32 %v20227_v16, %v12624_v7  ;;  %v12623_v14 = vadd.f32 %v12520_v37, %v25919_v11  ;;  %v12910_v27 = vpop.f32.mrf.mxu1  ;;  %v15478_v11 = vmax.f32 %v15446_v31, %v26185_v41  ;;  %v14611_v7 = vld [vmem:[#allocation4 + $0x144] sm:$0xff]  ;;  %v15479_v25 = vmax.f32 %v15447_v26, %v26189_v59  ;;  %v15276_v58 = vld [vmem:[#allocation2 + $0x158] sm:$0xff] }
 0x5da   : > { %v20180_v45 = vpop.f32.mrf.mxu0  ;;  %20479 = vmatmul.mubr.msk.f32.gmra.mxu0 %vm528_vm5, %v14609_v0  ;;  %v15449_v16 = vmax.f32 %v26169_v63, %v26189_v59  ;;  %v15383_v37 = vld [vmem:[#allocation2 + $0x152] sm:$0xff]  ;;  %v15277_v0 = vld [vmem:[#allocation2 + $0x168] sm:$0xff]  ;;  %v15480_v26 = vmax.f32 %v15448_v42, %v26197_v51  ;;  %v15450_v63 = vmax.f32 %v26185_v41, %v26197_v51  ;;  %v15451_v41 = vmax.f32 %v26189_v59, %v26209_v62 }
 0x5db   : > { %v26201_v4 = vadd.f32 %v12910_v27, %v12623_v14  ;;  %v12626_v19 = vadd.f32 %v20180_v45, %v25927_v12  ;;  %v20230_v39 = vpop.f32.mrf.mxu1  ;;  %20481 = vmatprep.mubr.msk.f32.mxu0 %vm528_vm5, %v14610_v15  ;;  %20529 = vmatmul.mubr.msk.f32.gmra.mxu1 %vm439_vm1, %v15476_v13  ;;  %v15347_v12 = vmax.f32 %v15275_v48, %v15311_v46  ;;  %v15313_v14 = vld [vmem:[#allocation2 + $0x169] sm:$0xff]  ;;  %v15314_v15 = vld [vmem:[#allocation2 + $0x171] sm:$0xff] }
 0x5dc   : > { %v12530_v30 = vpop.f32.mrf.mxu0  ;;  %20531 = vmatprep.mubr.msk.f32.mxu1 %vm439_vm1, %v15477_v52  ;;  %v14612_v52 = vld [vmem:[#allocation4 + $0x154] sm:$0xff]  ;;  %v15348_v46 = vmax.f32 %v15276_v58, %v15312_v53  ;;  %v15481_v42 = vmax.f32 %v15449_v16, %v26209_v62  ;;  %v15349_v1 = vmax.f32 %v15277_v0, %v15313_v14  ;;  %v15385_v58 = vld [vmem:[#allocation2 + $0x16a] sm:$0xff]  ;;  %v15279_v53 = vld [vmem:[#allocation2 + $0x180] sm:$0xff]  ;;  %v15482_v16 = vmax.f32 %v15450_v63, %v26218_v2 }
 0x5dd   : > { %v26213_v34 = vadd.f32 %v20230_v39, %v12626_v19  ;;  %v12625_v13 = vadd.f32 %v12530_v30, %v25931_v60  ;;  %v12920_v31 = vpop.f32.mrf.mxu1  ;;  %v15278_v45 = vld [vmem:[#allocation2 + $0x170] sm:$0xff]  ;;  %v14613_v39 = vld [vmem:[#allocation4 + $0x15c] sm:$0xff]  ;;  %v26229_v47 = vmax.f32 %v15347_v12, %v15383_v37  ;;  %v15452_v12 = vmax.f32 %v26197_v51, %v26218_v2 }
 0x5de   : > { %v20183_v27 = vpop.f32.mrf.mxu0  ;;  %20482 = vmatmul.mubr.msk.f32.gmra.mxu0 %vm528_vm5, %v14611_v7  ;;  %v15350_v59 = vmax.f32 %v15278_v45, %v15314_v15  ;;  %v14615_v63 = vld [vmem:[#allocation4 + $0x174] sm:$0xff]  ;;  %v26249_v45 = vmax.f32 %v15349_v1, %v15385_v58 }
 0x5df   : > { %v26222_v20 = vadd.f32 %v12920_v31, %v12625_v13  ;;  %v12628_v48 = vadd.f32 %v20183_v27, %v25939_v55  ;;  %v20233_v60 = vpop.f32.mrf.mxu1  ;;  %20484 = vmatprep.mubr.msk.f32.mxu0 %vm528_vm5, %v14612_v52  ;;  %20532 = vmatmul.mubr.msk.f32.gmra.mxu1 %vm439_vm1, %v15478_v11  ;;  %v15384_v55 = vld [vmem:[#allocation2 + $0x15a] sm:$0xff]  ;;  %v15386_v27 = vld [vmem:[#allocation2 + $0x172] sm:$0xff]  ;;  %v15280_v52 = vld [vmem:[#allocation2 + $0x188] sm:$0xff]  ;;  %v15483_v51 = vmax.f32 %v15451_v41, %v26229_v47 }
 0x5e0   : > { %v12540_v19 = vpop.f32.mrf.mxu0  ;;  %20534 = vmatprep.mubr.msk.f32.mxu1 %vm439_vm1, %v15479_v25  ;;  %v15315_v13 = vld [vmem:[#allocation2 + $0x181] sm:$0xff]  ;;  %v14614_v25 = vld [vmem:[#allocation4 + $0x16c] sm:$0xff] }
 0x5e1   : > { %v26233_v30 = vadd.f32 %v20233_v60, %v12628_v48  ;;  %v12627_v11 = vadd.f32 %v12540_v19, %v25943_v38  ;;  %v12930_v7 = vpop.f32.mrf.mxu1  ;;  %v26245_v38 = vmax.f32 %v15348_v46, %v15384_v55  ;;  %v15316_v48 = vld [vmem:[#allocation2 + $0x189] sm:$0xff]  ;;  %v15351_v15 = vmax.f32 %v15279_v53, %v15315_v13  ;;  %v15281_v55 = vld [vmem:[#allocation2 + $0x198] sm:$0xff] }
 0x5e2   : > { %v20186_v31 = vpop.f32.mrf.mxu0  ;;  %20485 = vmatmul.mubr.msk.f32.gmra.mxu0 %vm528_vm5, %v14613_v39  ;;  %v15387_v39 = vld [vmem:[#allocation2 + $0x182] sm:$0xff]  ;;  %v15352_v1 = vmax.f32 %v15280_v52, %v15316_v48  ;;  %v15388_v13 = vld [vmem:[#allocation2 + $0x18a] sm:$0xff] }
 0x5e3   : > { %v26240_v37 = vadd.f32 %v12930_v7, %v12627_v11  ;;  %v12630_v0 = vadd.f32 %v20186_v31, %v25951_v57  ;;  %v20236_v14 = vpop.f32.mrf.mxu1  ;;  %20487 = vmatprep.mubr.msk.f32.mxu0 %vm528_vm5, %v14614_v25  ;;  %20535 = vmatmul.mubr.msk.f32.gmra.mxu1 %vm439_vm1, %v15480_v26  ;;  %v15453_v57 = vmax.f32 %v26209_v62, %v26229_v47  ;;  %v15317_v11 = vld [vmem:[#allocation2 + $0x199] sm:$0xff] }
 0x5e4   : > { %v12550_v60 = vpop.f32.mrf.mxu0  ;;  %20537 = vmatprep.mubr.msk.f32.mxu1 %vm439_vm1, %v15481_v42  ;;  %v14616_v42 = vld [vmem:[#allocation4 + $0x184] sm:$0xff]  ;;  %v26257_v31 = vmax.f32 %v15350_v59, %v15386_v27  ;;  %v15454_v41 = vmax.f32 %v26218_v2, %v26245_v38  ;;  %v15455_v2 = vmax.f32 %v26229_v47, %v26249_v45 }
 0x5e5   : > { %v26253_v19 = vadd.f32 %v20236_v14, %v12630_v0  ;;  %v12629_v26 = vadd.f32 %v12550_v60, %v25955_v44  ;;  %v12940_v46 = vpop.f32.mrf.mxu1  ;;  %v15484_v44 = vmax.f32 %v15452_v12, %v26245_v38  ;;  %v15485_v59 = vmax.f32 %v15453_v57, %v26249_v45  ;;  %v15282_v27 = vld [vmem:[#allocation2 + $0x1a0] sm:$0xff]  ;;  %v14617_v60 = vld [vmem:[#allocation4 + $0x18c] sm:$0xff] }
 0x5e6   : > { %v20189_v7 = vpop.f32.mrf.mxu0  ;;  %20488 = vmatmul.mubr.msk.f32.gmra.mxu0 %vm528_vm5, %v14615_v63  ;;  %v15423_v0 = vmax.f32 %v15351_v15, %v15387_v39  ;;  %v15353_v14 = vmax.f32 %v15281_v55, %v15317_v11  ;;  %v15389_v12 = vld [vmem:[#allocation2 + $0x19a] sm:$0xff]  ;;  %v15486_v57 = vmax.f32 %v15454_v41, %v26257_v31  ;;  %v15424_v15 = vmax.f32 %v15352_v1, %v15388_v13  ;;  %v15390_v1 = vld [vmem:[#allocation2 + $0x1a2] sm:$0xff] }
 0x5e7   : > { %v26261_v62 = vadd.f32 %v12940_v46, %v12629_v26  ;;  %v12632_v58 = vadd.f32 %v20189_v7, %v25963_v6  ;;  %v20239_v53 = vpop.f32.mrf.mxu1  ;;  %20490 = vmatprep.mubr.msk.f32.mxu0 %vm528_vm5, %v14616_v42  ;;  %20538 = vmatmul.mubr.msk.f32.gmra.mxu1 %vm439_vm1, %v15482_v16  ;;  %v15318_v6 = vld [vmem:[#allocation2 + $0x1a1] sm:$0xff]  ;;  %v15456_v47 = vmax.f32 %v26245_v38, %v26257_v31  ;;  %v14620_v11 = vld [vmem:[#allocation4 + $0x1b4] sm:$0xff] }
 0x5e8   : > { %v12560_v25 = vpop.f32.mrf.mxu0  ;;  %20540 = vmatprep.mubr.msk.f32.mxu1 %vm439_vm1, %v15483_v51  ;;  %v14618_v51 = vld [vmem:[#allocation4 + $0x19c] sm:$0xff]  ;;  %v15487_v7 = vmax.f32 %v15455_v2, %v15423_v0  ;;  %v15425_v42 = vmax.f32 %v15353_v14, %v15389_v12  ;;  %v15457_v41 = vmax.f32 %v26249_v45, %v15423_v0  ;;  %v14622_v14 = vld [vmem:[#allocation4 + $0x1cc] sm:$0xff] }
 0x5e9   : > { %v26271_v52 = vadd.f32 %v20239_v53, %v12632_v58  ;;  %v12631_v48 = vadd.f32 %v12560_v25, %v25967_v28  ;;  %v12950_v16 = vpop.f32.mrf.mxu1  ;;  %v15354_v28 = vmax.f32 %v15282_v27, %v15318_v6  ;;  %v14619_v53 = vld [vmem:[#allocation4 + $0x1a4] sm:$0xff]  ;;  %v15458_v25 = vmax.f32 %v26257_v31, %v15424_v15  ;;  %v14621_v45 = vld [vmem:[#allocation4 + $0x1bc] sm:$0xff] }
 0x5ea   : > { %v20192_v63 = vpop.f32.mrf.mxu0  ;;  %20491 = vmatmul.mubr.msk.f32.gmra.mxu0 %vm528_vm5, %v14617_v60  ;;  %v15489_v6 = vmax.f32 %v15457_v41, %v15425_v42 }
 0x5eb   : > { %v26278_v26 = vadd.f32 %v12950_v16, %v12631_v48  ;;  %v12634_v46 = vadd.f32 %v20192_v63, %v25977_v29  ;;  %v20242_v39 = vpop.f32.mrf.mxu1  ;;  %20493 = vmatprep.mubr.msk.f32.mxu0 %vm528_vm5, %v14618_v51  ;;  %20541 = vmatmul.mubr.msk.f32.gmra.mxu1 %vm439_vm1, %v15484_v44  ;;  %v15488_v44 = vmax.f32 %v15456_v47, %v15424_v15  ;;  %v14623_v51 = vld [vmem:[#allocation4 + $0x1d4] sm:$0xff] }
 0x5ec   : > { %v12570_v55 = vpop.f32.mrf.mxu0  ;;  %20543 = vmatprep.mubr.msk.f32.mxu1 %vm439_vm1, %v15485_v59  ;;  %v15426_v0 = vmax.f32 %v15354_v28, %v15390_v1 }
 0x5ed   : > { %v26285_v38 = vadd.f32 %v20242_v39, %v12634_v46  ;;  %v12633_v58 = vadd.f32 %v12570_v55, %v25981_v17  ;;  %v12960_v29 = vpop.f32.mrf.mxu1 }
 0x5ee   : > { %v20195_v13 = vpop.f32.mrf.mxu0  ;;  %20494 = vmatmul.mubr.msk.f32.gmra.mxu0 %vm528_vm5, %v14619_v53 }
 0x5ef   : > { %v26290_v27 = vadd.f32 %v12960_v29, %v12633_v58  ;;  %v12636_v59 = vadd.f32 %v20195_v13, %v25994_v36  ;;  %v20245_v2 = vpop.f32.mrf.mxu1  ;;  %20496 = vmatprep.mubr.msk.f32.mxu0 %vm528_vm5, %v14620_v11  ;;  %20544 = vmatmul.mubr.msk.f32.gmra.mxu1 %vm439_vm1, %v15486_v57  ;;  %v15490_v57 = vmax.f32 %v15458_v25, %v15426_v0 }
 0x5f0   : > { %v12580_v17 = vpop.f32.mrf.mxu0  ;;  %20546 = vmatprep.mubr.msk.f32.mxu1 %vm439_vm1, %v15487_v7 }
 0x5f1   : > { %v26296_v48 = vadd.f32 %v20245_v2, %v12636_v59  ;;  %v12635_v31 = vadd.f32 %v12580_v17, %v26000_v43  ;;  %v12970_v16 = vpop.f32.mrf.mxu1 }
 0x5f2   : > { %v20198_v60 = vpop.f32.mrf.mxu0  ;;  %20497 = vmatmul.mubr.msk.f32.gmra.mxu0 %vm528_vm5, %v14621_v45 }
 0x5f3   : > { %v26300_v36 = vadd.f32 %v12970_v16, %v12635_v31  ;;  %v12638_v12 = vadd.f32 %v20198_v60, %v26013_v33  ;;  %v20248_v63 = vpop.f32.mrf.mxu1  ;;  %20499 = vmatprep.mubr.msk.f32.mxu0 %vm528_vm5, %v14622_v14  ;;  %20547 = vmatmul.mubr.msk.f32.gmra.mxu1 %vm439_vm1, %v15488_v44 }
 0x5f4   : > { %v12590_v15 = vpop.f32.mrf.mxu0  ;;  %20549 = vmatprep.mubr.msk.f32.mxu1 %vm439_vm1, %v15489_v6 }
 0x5f5   : > { %v26306_v47 = vadd.f32 %v20248_v63, %v12638_v12  ;;  %v12637_v43 = vadd.f32 %v12590_v15, %v26021_v24  ;;  %v12980_v46 = vpop.f32.mrf.mxu1 }
 0x5f6   : > { %v20201_v39 = vpop.f32.mrf.mxu0  ;;  %20500 = vmatmul.mubr.msk.f32.gmra.mxu0 %vm528_vm5, %v14623_v51 }
 0x5f7   : > { %v26310_v28 = vadd.f32 %v12980_v46, %v12637_v43  ;;  %v12640_v33 = vadd.f32 %v20201_v39, %v26033_v21  ;;  %v20251_v55 = vpop.f32.mrf.mxu1  ;;  %20550 = vmatmul.mubr.msk.f32.gmra.mxu1 %vm439_vm1, %v15490_v57 }
 0x5f8   : > { %v12600_v11 = vpop.f32.mrf.mxu0 }
 0x5f9   : > { %v26314_v7 = vadd.f32 %v20251_v55, %v12640_v33  ;;  %v12639_v42 = vadd.f32 %v12600_v11, %v26042_v35  ;;  %v12990_v41 = vpop.f32.mrf.mxu1 }
 0x5fa   : > { %v20256_v1 = vpop.f32.mrf.mxu0 }
 0x5fb   : > { %v26317_v58 = vadd.f32 %v12990_v41, %v12639_v42  ;;  %v13391_v24 = vadd.f32 %v20256_v1, %v26053_v5  ;;  %v20306_v29 = vpop.f32.mrf.mxu1 }
 0x5fc   : > { %v13231_v53 = vpop.f32.mrf.mxu0 }
 0x5fd   : > { %v26320_v13 = vadd.f32 %v20306_v29, %v13391_v24  ;;  %v13390_v21 = vadd.f32 %v13231_v53, %v26060_v61  ;;  %v13621_v44 = vpop.f32.mrf.mxu1 }
 0x5fe   : > { %v20259_v25 = vpop.f32.mrf.mxu0 }
 0x5ff   : > { %v26323_v59 = vadd.f32 %v13621_v44, %v13390_v21  ;;  %v13393_v2 = vadd.f32 %v20259_v25, %v26073_v32  ;;  %v20309_v45 = vpop.f32.mrf.mxu1 }
 0x600   : > { %v13241_v35 = vpop.f32.mrf.mxu0 }
 0x601   : > { %v26326_v0 = vadd.f32 %v20309_v45, %v13393_v2  ;;  %v13392_v17 = vadd.f32 %v13241_v35, %v26081_v10  ;;  %v13631_v14 = vpop.f32.mrf.mxu1 }
 0x602   : > { %v20262_v5 = vpop.f32.mrf.mxu0 }
 0x603   : > { %v26329_v6 = vadd.f32 %v13631_v14, %v13392_v17  ;;  %v13395_v31 = vadd.f32 %v20262_v5, %v26093_v49  ;;  %v20312_v16 = vpop.f32.mrf.mxu1 }
 0x604   : > { %v13251_v61 = vpop.f32.mrf.mxu0 }
 0x605   : > { %v26332_v60 = vadd.f32 %v20312_v16, %v13395_v31  ;;  %v13394_v12 = vadd.f32 %v13251_v61, %v26102_v3  ;;  %v13641_v63 = vpop.f32.mrf.mxu1 }
 0x606   : > { %v20265_v32 = vpop.f32.mrf.mxu0 }
 0x607   : > { %v26335_v51 = vadd.f32 %v13641_v63, %v13394_v12  ;;  %v13397_v57 = vadd.f32 %v20265_v32, %v26113_v56  ;;  %v20315_v15 = vpop.f32.mrf.mxu1 }
 0x608   : > { %v13261_v10 = vpop.f32.mrf.mxu0 }
 0x609   : > { %v26338_v43 = vadd.f32 %v20315_v15, %v13397_v57  ;;  %v13396_v46 = vadd.f32 %v13261_v10, %v26120_v8  ;;  %v13651_v39 = vpop.f32.mrf.mxu1 }
 0x60a   : > { %v20268_v49 = vpop.f32.mrf.mxu0 }
 0x60b   : > { %v26341_v33 = vadd.f32 %v13651_v39, %v13396_v46  ;;  %v13399_v55 = vadd.f32 %v20268_v49, %v26133_v40  ;;  %v20318_v11 = vpop.f32.mrf.mxu1 }
 0x60c   : > { %v13271_v3 = vpop.f32.mrf.mxu0 }
 0x60d   : > { %v26344_v42 = vadd.f32 %v20318_v11, %v13399_v55  ;;  %v13398_v41 = vadd.f32 %v13271_v3, %v26141_v50  ;;  %v13661_v1 = vpop.f32.mrf.mxu1 }
 0x60e   : > { %v20271_v56 = vpop.f32.mrf.mxu0 }
 0x60f   : > { %v26347_v24 = vadd.f32 %v13661_v1, %v13398_v41  ;;  %v13401_v29 = vadd.f32 %v20271_v56, %v26153_v9  ;;  %v20321_v53 = vpop.f32.mrf.mxu1 }
 0x610   : > { %v13281_v8 = vpop.f32.mrf.mxu0 }
 0x611   : > { %v26350_v21 = vadd.f32 %v20321_v53, %v13401_v29  ;;  %v13400_v44 = vadd.f32 %v13281_v8, %v26162_v18  ;;  %v13671_v25 = vpop.f32.mrf.mxu1 }
 0x612   : > { %v20274_v40 = vpop.f32.mrf.mxu0 }
 0x613   : > { %v26353_v2 = vadd.f32 %v13671_v25, %v13400_v44  ;;  %v13403_v45 = vadd.f32 %v20274_v40, %v26173_v22  ;;  %v20324_v35 = vpop.f32.mrf.mxu1 }
 0x614   : > { %v13291_v50 = vpop.f32.mrf.mxu0 }
 0x615   : > { %v26356_v17 = vadd.f32 %v20324_v35, %v13403_v45  ;;  %v13402_v14 = vadd.f32 %v13291_v50, %v26180_v23  ;;  %v13681_v5 = vpop.f32.mrf.mxu1 }
 0x616   : > { %v20277_v9 = vpop.f32.mrf.mxu0 }
 0x617   : > { %v26359_v31 = vadd.f32 %v13681_v5, %v13402_v14  ;;  %v13405_v16 = vadd.f32 %v20277_v9, %v26193_v54  ;;  %v20327_v61 = vpop.f32.mrf.mxu1 }
 0x618   : > { %v13301_v18 = vpop.f32.mrf.mxu0 }
 0x619   : > { %v26362_v12 = vadd.f32 %v20327_v61, %v13405_v16  ;;  %v13404_v63 = vadd.f32 %v13301_v18, %v26201_v4  ;;  %v13691_v32 = vpop.f32.mrf.mxu1 }
 0x61a   : > { %v20280_v22 = vpop.f32.mrf.mxu0 }
 0x61b   : > { %v26365_v57 = vadd.f32 %v13691_v32, %v13404_v63  ;;  %v13407_v15 = vadd.f32 %v20280_v22, %v26213_v34  ;;  %v20330_v10 = vpop.f32.mrf.mxu1 }
 0x61c   : > { %v13311_v23 = vpop.f32.mrf.mxu0 }
 0x61d   : > { %v26368_v46 = vadd.f32 %v20330_v10, %v13407_v15  ;;  %v13406_v39 = vadd.f32 %v13311_v23, %v26222_v20  ;;  %v13701_v49 = vpop.f32.mrf.mxu1 }
 0x61e   : > { %v20283_v54 = vpop.f32.mrf.mxu0 }
 0x61f   : > { %v26371_v55 = vadd.f32 %v13701_v49, %v13406_v39  ;;  %v13409_v11 = vadd.f32 %v20283_v54, %v26233_v30  ;;  %v20333_v3 = vpop.f32.mrf.mxu1 }
 0x620   : > { %v13321_v4 = vpop.f32.mrf.mxu0 }
 0x621   : > { %v26374_v41 = vadd.f32 %v20333_v3, %v13409_v11  ;;  %v13408_v1 = vadd.f32 %v13321_v4, %v26240_v37  ;;  %v13711_v56 = vpop.f32.mrf.mxu1 }
 0x622   : > { %v20286_v34 = vpop.f32.mrf.mxu0 }
 0x623   : > { %v26377_v29 = vadd.f32 %v13711_v56, %v13408_v1  ;;  %v13411_v53 = vadd.f32 %v20286_v34, %v26253_v19  ;;  %v20336_v8 = vpop.f32.mrf.mxu1 }
 0x624   : > { %v13331_v20 = vpop.f32.mrf.mxu0 }
 0x625   : > { %v26380_v44 = vadd.f32 %v20336_v8, %v13411_v53  ;;  %v13410_v25 = vadd.f32 %v13331_v20, %v26261_v62  ;;  %v13721_v40 = vpop.f32.mrf.mxu1 }
 0x626   : > { %v20289_v30 = vpop.f32.mrf.mxu0 }
 0x627   : > { %v26383_v45 = vadd.f32 %v13721_v40, %v13410_v25  ;;  %v13413_v35 = vadd.f32 %v20289_v30, %v26271_v52  ;;  %v20339_v50 = vpop.f32.mrf.mxu1 }
 0x628   : > { %v13341_v37 = vpop.f32.mrf.mxu0 }
 0x629   : > { %v26386_v14 = vadd.f32 %v20339_v50, %v13413_v35  ;;  %v13412_v5 = vadd.f32 %v13341_v37, %v26278_v26  ;;  %v13731_v9 = vpop.f32.mrf.mxu1 }
 0x62a   : > { %v20292_v19 = vpop.f32.mrf.mxu0 }
 0x62b   : > { %v26389_v16 = vadd.f32 %v13731_v9, %v13412_v5  ;;  %v13415_v61 = vadd.f32 %v20292_v19, %v26285_v38  ;;  %v20342_v18 = vpop.f32.mrf.mxu1 }
 0x62c   : > { %v13351_v62 = vpop.f32.mrf.mxu0 }
 0x62d   : > { %v26392_v63 = vadd.f32 %v20342_v18, %v13415_v61  ;;  %v13414_v32 = vadd.f32 %v13351_v62, %v26290_v27  ;;  %v13741_v22 = vpop.f32.mrf.mxu1 }
 0x62e   : > { %v20295_v52 = vpop.f32.mrf.mxu0 }
 0x62f   : > { %v26395_v15 = vadd.f32 %v13741_v22, %v13414_v32  ;;  %v13417_v10 = vadd.f32 %v20295_v52, %v26296_v48  ;;  %v20345_v23 = vpop.f32.mrf.mxu1 }
 0x630   : > { %v13361_v26 = vpop.f32.mrf.mxu0 }
 0x631   : > { %v26398_v39 = vadd.f32 %v20345_v23, %v13417_v10  ;;  %v13416_v49 = vadd.f32 %v13361_v26, %v26300_v36  ;;  %v13751_v54 = vpop.f32.mrf.mxu1 }
 0x632   : > { %v20298_v38 = vpop.f32.mrf.mxu0 }
 0x633   : > { %v26401_v11 = vadd.f32 %v13751_v54, %v13416_v49  ;;  %v13419_v3 = vadd.f32 %v20298_v38, %v26306_v47  ;;  %v20348_v4 = vpop.f32.mrf.mxu1 }
 0x634   : > { %v13371_v27 = vpop.f32.mrf.mxu0 }
 0x635   : > { %v26404_v1 = vadd.f32 %v20348_v4, %v13419_v3  ;;  %v13418_v56 = vadd.f32 %v13371_v27, %v26310_v28  ;;  %v13761_v34 = vpop.f32.mrf.mxu1 }
 0x636   : > { %v20301_v48 = vpop.f32.mrf.mxu0 }
 0x637   : > { %v26407_v53 = vadd.f32 %v13761_v34, %v13418_v56  ;;  %v13421_v8 = vadd.f32 %v20301_v48, %v26314_v7  ;;  %v20351_v20 = vpop.f32.mrf.mxu1 }
 0x638   : > { %v13381_v36 = vpop.f32.mrf.mxu0 }
 0x639   : > { %v26410_v25 = vadd.f32 %v20351_v20, %v13421_v8  ;;  %v13420_v40 = vadd.f32 %v13381_v36, %v26317_v58  ;;  %v13771_v30 = vpop.f32.mrf.mxu1 }
 0x63a   : > { %v20356_v47 = vpop.f32.mrf.mxu0 }
 0x63b   : > { %v26413_v35 = vadd.f32 %v13771_v30, %v13420_v40  ;;  %v14171_v50 = vadd.f32 %v20356_v47, %v26320_v13  ;;  %v20406_v37 = vpop.f32.mrf.mxu1 }
 0x63c   : > { %v14011_v28 = vpop.f32.mrf.mxu0 }
 0x63d   : > { %v26416_v5 = vadd.f32 %v20406_v37, %v14171_v50  ;;  %v14170_v9 = vadd.f32 %v14011_v28, %v26323_v59  ;;  %v14401_v19 = vpop.f32.mrf.mxu1 }
 0x63e   : > { %v20359_v7 = vpop.f32.mrf.mxu0 }
 0x63f   : > { %v26419_v61 = vadd.f32 %v14401_v19, %v14170_v9  ;;  %v14173_v18 = vadd.f32 %v20359_v7, %v26326_v0  ;;  %v20409_v62 = vpop.f32.mrf.mxu1 }
 0x640   : > { %v14021_v58 = vpop.f32.mrf.mxu0 }
 0x641   : > { %v26422_v32 = vadd.f32 %v20409_v62, %v14173_v18  ;;  %v14172_v22 = vadd.f32 %v14021_v58, %v26329_v6  ;;  %v14411_v52 = vpop.f32.mrf.mxu1 }
 0x642   : > { %v20362_v13 = vpop.f32.mrf.mxu0 }
 0x643   : > { %v26425_v10 = vadd.f32 %v14411_v52, %v14172_v22  ;;  %v14175_v23 = vadd.f32 %v20362_v13, %v26332_v60  ;;  %v20412_v26 = vpop.f32.mrf.mxu1 }
 0x644   : > { %v14031_v59 = vpop.f32.mrf.mxu0 }
 0x645   : > { %v26428_v49 = vadd.f32 %v20412_v26, %v14175_v23  ;;  %v14174_v54 = vadd.f32 %v14031_v59, %v26335_v51  ;;  %v14421_v38 = vpop.f32.mrf.mxu1 }
 0x646   : > { %v20365_v0 = vpop.f32.mrf.mxu0 }
 0x647   : > { %v26431_v3 = vadd.f32 %v14421_v38, %v14174_v54  ;;  %v14177_v4 = vadd.f32 %v20365_v0, %v26338_v43  ;;  %v20415_v27 = vpop.f32.mrf.mxu1 }
 0x648   : > { %v14041_v6 = vpop.f32.mrf.mxu0 }
 0x649   : > { %v26434_v56 = vadd.f32 %v20415_v27, %v14177_v4  ;;  %v14176_v34 = vadd.f32 %v14041_v6, %v26341_v33  ;;  %v14431_v48 = vpop.f32.mrf.mxu1 }
 0x64a   : > { %v20368_v60 = vpop.f32.mrf.mxu0 }
 0x64b   : > { %v26437_v8 = vadd.f32 %v14431_v48, %v14176_v34  ;;  %v14179_v20 = vadd.f32 %v20368_v60, %v26344_v42  ;;  %v20418_v36 = vpop.f32.mrf.mxu1 }
 0x64c   : > { %v14051_v51 = vpop.f32.mrf.mxu0 }
 0x64d   : > { %v26440_v40 = vadd.f32 %v20418_v36, %v14179_v20  ;;  %v14178_v30 = vadd.f32 %v14051_v51, %v26347_v24  ;;  %v14441_v47 = vpop.f32.mrf.mxu1 }
 0x64e   : > { %v20371_v43 = vpop.f32.mrf.mxu0 }
 0x64f   : > { %v26443_v50 = vadd.f32 %v14441_v47, %v14178_v30  ;;  %v14181_v37 = vadd.f32 %v20371_v43, %v26350_v21  ;;  %v20421_v28 = vpop.f32.mrf.mxu1 }
 0x650   : > { %v14061_v33 = vpop.f32.mrf.mxu0 }
 0x651   : > { %v26446_v9 = vadd.f32 %v20421_v28, %v14181_v37  ;;  %v14180_v19 = vadd.f32 %v14061_v33, %v26353_v2  ;;  %v14451_v7 = vpop.f32.mrf.mxu1 }
 0x652   : > { %v20374_v42 = vpop.f32.mrf.mxu0 }
 0x653   : > { %v26449_v18 = vadd.f32 %v14451_v7, %v14180_v19  ;;  %v14183_v62 = vadd.f32 %v20374_v42, %v26356_v17  ;;  %v20424_v58 = vpop.f32.mrf.mxu1 }
 0x654   : > { %v14071_v24 = vpop.f32.mrf.mxu0 }
 0x655   : > { %v26452_v22 = vadd.f32 %v20424_v58, %v14183_v62  ;;  %v14182_v52 = vadd.f32 %v14071_v24, %v26359_v31  ;;  %v14461_v13 = vpop.f32.mrf.mxu1 }
 0x656   : > { %v20377_v21 = vpop.f32.mrf.mxu0 }
 0x657   : > { %v26455_v23 = vadd.f32 %v14461_v13, %v14182_v52  ;;  %v14185_v26 = vadd.f32 %v20377_v21, %v26362_v12  ;;  %v20427_v59 = vpop.f32.mrf.mxu1 }
 0x658   : > { %v14081_v2 = vpop.f32.mrf.mxu0 }
 0x659   : > { %v26458_v54 = vadd.f32 %v20427_v59, %v14185_v26  ;;  %v14184_v38 = vadd.f32 %v14081_v2, %v26365_v57  ;;  %v14471_v0 = vpop.f32.mrf.mxu1 }
 0x65a   : > { %v20380_v17 = vpop.f32.mrf.mxu0 }
 0x65b   : > { %v26461_v4 = vadd.f32 %v14471_v0, %v14184_v38  ;;  %v14187_v27 = vadd.f32 %v20380_v17, %v26368_v46  ;;  %v20430_v6 = vpop.f32.mrf.mxu1 }
 0x65c   : > { %v14091_v31 = vpop.f32.mrf.mxu0 }
 0x65d   : > { %v26464_v34 = vadd.f32 %v20430_v6, %v14187_v27  ;;  %v14186_v48 = vadd.f32 %v14091_v31, %v26371_v55  ;;  %v14481_v60 = vpop.f32.mrf.mxu1 }
 0x65e   : > { %v20383_v12 = vpop.f32.mrf.mxu0 }
 0x65f   : > { %v26467_v20 = vadd.f32 %v14481_v60, %v14186_v48  ;;  %v14189_v36 = vadd.f32 %v20383_v12, %v26374_v41  ;;  %v20433_v51 = vpop.f32.mrf.mxu1 }
 0x660   : > { %v14101_v57 = vpop.f32.mrf.mxu0 }
 0x661   : > { %v26470_v30 = vadd.f32 %v20433_v51, %v14189_v36  ;;  %v14188_v47 = vadd.f32 %v14101_v57, %v26377_v29  ;;  %v14491_v43 = vpop.f32.mrf.mxu1 }
 0x662   : > { %v20386_v46 = vpop.f32.mrf.mxu0 }
 0x663   : > { %v26473_v37 = vadd.f32 %v14491_v43, %v14188_v47  ;;  %v14191_v28 = vadd.f32 %v20386_v46, %v26380_v44  ;;  %v20436_v33 = vpop.f32.mrf.mxu1 }
 0x664   : > { %v14111_v55 = vpop.f32.mrf.mxu0 }
 0x665   : > { %v26476_v19 = vadd.f32 %v20436_v33, %v14191_v28  ;;  %v14190_v7 = vadd.f32 %v14111_v55, %v26383_v45  ;;  %v14501_v42 = vpop.f32.mrf.mxu1 }
 0x666   : > { %v20389_v41 = vpop.f32.mrf.mxu0 }
 0x667   : > { %v26479_v62 = vadd.f32 %v14501_v42, %v14190_v7  ;;  %v14193_v58 = vadd.f32 %v20389_v41, %v26386_v14  ;;  %v20439_v24 = vpop.f32.mrf.mxu1 }
 0x668   : > { %v14121_v29 = vpop.f32.mrf.mxu0 }
 0x669   : > { %v26482_v52 = vadd.f32 %v20439_v24, %v14193_v58  ;;  %v14192_v13 = vadd.f32 %v14121_v29, %v26389_v16  ;;  %v14511_v21 = vpop.f32.mrf.mxu1 }
 0x66a   : > { %v20392_v44 = vpop.f32.mrf.mxu0 }
 0x66b   : > { %v26485_v26 = vadd.f32 %v14511_v21, %v14192_v13  ;;  %v14195_v59 = vadd.f32 %v20392_v44, %v26392_v63  ;;  %v20442_v2 = vpop.f32.mrf.mxu1 }
 0x66c   : > { %v14131_v45 = vpop.f32.mrf.mxu0 }
 0x66d   : > { %v26488_v38 = vadd.f32 %v20442_v2, %v14195_v59  ;;  %v14194_v0 = vadd.f32 %v14131_v45, %v26395_v15  ;;  %v14521_v17 = vpop.f32.mrf.mxu1 }
 0x66e   : > { %v20395_v14 = vpop.f32.mrf.mxu0 }
 0x66f   : > { %v26491_v27 = vadd.f32 %v14521_v17, %v14194_v0  ;;  %v14197_v6 = vadd.f32 %v20395_v14, %v26398_v39  ;;  %v20445_v31 = vpop.f32.mrf.mxu1 }
 0x670   : > { %v14141_v16 = vpop.f32.mrf.mxu0 }
 0x671   : > { %v26494_v48 = vadd.f32 %v20445_v31, %v14197_v6  ;;  %v14196_v60 = vadd.f32 %v14141_v16, %v26401_v11  ;;  %v14531_v12 = vpop.f32.mrf.mxu1 }
 0x672   : > { %v20398_v63 = vpop.f32.mrf.mxu0 }
 0x673   : > { %v26497_v36 = vadd.f32 %v14531_v12, %v14196_v60  ;;  %v14199_v51 = vadd.f32 %v20398_v63, %v26404_v1  ;;  %v20448_v57 = vpop.f32.mrf.mxu1  ;;  %v26512_v1 = vld [vmem:[%s26932_s12] ss:$0 sm:$0xff] }
 0x674   : > { %v14151_v15 = vpop.f32.mrf.mxu0 }
 0x675   : > { %v26500_v47 = vadd.f32 %v20448_v57, %v14199_v51  ;;  %v14198_v43 = vadd.f32 %v14151_v15, %v26407_v53  ;;  %v14541_v46 = vpop.f32.mrf.mxu1 }
 0x676   : > { %v20401_v39 = vpop.f32.mrf.mxu0 }
 0x677   : > { %v26503_v28 = vadd.f32 %v14541_v46, %v14198_v43  ;;  %v14201_v33 = vadd.f32 %v20401_v39, %v26410_v25  ;;  %v20451_v55 = vpop.f32.mrf.mxu1  ;;  %v26520_v25 = vld [vmem:[%s26930_s10] ss:$0 sm:$0xff] }
 0x678   : > { %v14161_v11 = vpop.f32.mrf.mxu0 }
 0x679   : > { %v26506_v7 = vadd.f32 %v20451_v55, %v14201_v33  ;;  %v14200_v42 = vadd.f32 %v14161_v11, %v26413_v35  ;;  %v14551_v41 = vpop.f32.mrf.mxu1 }
 0x67a   : > { %v20456_v58 = vpop.f32.mrf.mxu0 }
 0x67b   : > { %v26514_v53 = vadd.f32 %v14551_v41, %v14200_v42  ;;  %v14951_v24 = vadd.f32 %v20456_v58, %v26416_v5  ;;  %v20506_v29 = vpop.f32.mrf.mxu1 }
 0x67c   : > { %v15670_v13 = vadd.f32 %v20506_v29, %v26512_v1  ;;  %v14791_v35 = vpop.f32.mrf.mxu0 }
 0x67d   : > { %v14950_v21 = vadd.f32 %v14791_v35, %v26419_v61  ;;  %v15664_v44 = vpop.f32.mrf.mxu1  ;;  %v14990_v59 = vadd.f32 %v26520_v25, %v14951_v24 }
 0x67e   : > { %v15824_v2 = vmax.f32 %v15670_v13, 0.0  ;;  %v15665_v45 = vadd.f32 %v26512_v1, %v15664_v44  ;;  %v20459_v0 = vpop.f32.mrf.mxu0 }
 0x67f   : > { %v20509_v17 = vpop.f32.mrf.mxu1  ;;  %v14989_v5 = vadd.f32 %v26520_v25, %v14950_v21  ;;  %v15022_v60 = vmax.f32 %v14990_v59, 0.0  ;;  %v14953_v61 = vadd.f32 %v20459_v0, %v26422_v32 }
 0x680   : > { %v15823_v14 = vmax.f32 %v15665_v45, 0.0  ;;  %15889 = vrot.lane.b32.xlu1 %v15824_v2, %s20673_s15  ;;  %v14801_v6 = vpop.f32.mrf.mxu0  ;;  %v15680_v31 = vadd.f32 %v20509_v17, %v26512_v1 }
 0x681   : > { %v15674_v16 = vpop.f32.mrf.mxu1  ;;  %v15021_v63 = vmax.f32 %v14989_v5, 0.0  ;;  %v14952_v51 = vadd.f32 %v14801_v6, %v26425_v10  ;;  %v14992_v39 = vadd.f32 %v26520_v25, %v14953_v61 }
 0x682   : > { %15887 = vrot.lane.b32.xlu0 %v15823_v14, %s20673_s15  ;;  %v20462_v12 = vpop.f32.mrf.mxu0  ;;  %v15826_v57 = vmax.f32 %v15680_v31, 0.0  ;;  %v15675_v15 = vadd.f32 %v26512_v1, %v15674_v16 }
 0x683   : > { %v20512_v46 = vpop.f32.mrf.mxu1  ;;  %v14991_v32 = vadd.f32 %v26520_v25, %v14952_v51  ;;  %v15024_v41 = vmax.f32 %v14992_v39, 0.0  ;;  %v14955_v58 = vadd.f32 %v20462_v12, %v26428_v49 }
 0x684   : > { %15087 = vrot.lane.b32.xlu1 %v15022_v60, %s20674_s16  ;;  %v14811_v43 = vpop.f32.mrf.mxu0  ;;  %v15825_v55 = vmax.f32 %v15675_v15, 0.0  ;;  %v15690_v10 = vadd.f32 %v20512_v46, %v26512_v1 }
 0x685   : > { %v15684_v42 = vpop.f32.mrf.mxu1  ;;  %v15023_v29 = vmax.f32 %v14991_v32, 0.0  ;;  %v14954_v13 = vadd.f32 %v14811_v43, %v26431_v3  ;;  %v14994_v2 = vadd.f32 %v26520_v25, %v14955_v58 }
 0x686   : > { %15085 = vrot.lane.b32.xlu0 %v15021_v63, %s20674_s16  ;;  %v20465_v33 = vpop.f32.mrf.mxu0  ;;  %v15828_v35 = vmax.f32 %v15690_v10, 0.0  ;;  %v15685_v21 = vadd.f32 %v26512_v1, %v15684_v42 }
 0x687   : > { %v20515_v59 = vpop.f32.mrf.mxu1  ;;  %v14993_v49 = vadd.f32 %v26520_v25, %v14954_v13  ;;  %v15026_v14 = vmax.f32 %v14994_v2, 0.0  ;;  %v14957_v6 = vadd.f32 %v20465_v33, %v26434_v56 }
 0x688   : > { %15893 = vrot.lane.b32.xlu1 %v15826_v57, %s20673_s15  ;;  %v14821_v11 = vpop.f32.mrf.mxu0  ;;  %v15827_v0 = vmax.f32 %v15685_v21, 0.0  ;;  %v15700_v3 = vadd.f32 %v20515_v59, %v26512_v1 }
 0x689   : > { %v15694_v5 = vpop.f32.mrf.mxu1  ;;  %v15025_v16 = vmax.f32 %v14993_v49, 0.0  ;;  %v14956_v60 = vadd.f32 %v14821_v11, %v26437_v8  ;;  %v14996_v57 = vadd.f32 %v26520_v25, %v14957_v6 }
 0x68a   : > { %15891 = vrot.lane.b32.xlu0 %v15825_v55, %s20673_s15  ;;  %v20468_v24 = vpop.f32.mrf.mxu0  ;;  %v15830_v61 = vmax.f32 %v15700_v3, 0.0  ;;  %v15695_v12 = vadd.f32 %v26512_v1, %v15694_v5 }
 0x68b   : > { %v20518_v51 = vpop.f32.mrf.mxu1  ;;  %v14995_v15 = vadd.f32 %v26520_v25, %v14956_v60  ;;  %v15028_v33 = vmax.f32 %v14996_v57, 0.0  ;;  %v14959_v32 = vadd.f32 %v20468_v24, %v26440_v40 }
 0x68c   : > { %15091 = vrot.lane.b32.xlu1 %v15024_v41, %s20674_s16  ;;  %v14831_v44 = vpop.f32.mrf.mxu0  ;;  %v15829_v43 = vmax.f32 %v15695_v12, 0.0  ;;  %v15710_v46 = vadd.f32 %v20518_v51, %v26512_v1 }
 0x68d   : > { %v15704_v39 = vpop.f32.mrf.mxu1  ;;  %v15027_v10 = vmax.f32 %v14995_v15, 0.0  ;;  %v14958_v42 = vadd.f32 %v14831_v44, %v26443_v50  ;;  %v14998_v24 = vadd.f32 %v26520_v25, %v14959_v32 }
 0x68e   : > { %15089 = vrot.lane.b32.xlu0 %v15023_v29, %s20674_s16  ;;  %v20471_v45 = vpop.f32.mrf.mxu0  ;;  %v15832_v41 = vmax.f32 %v15710_v46, 0.0  ;;  %v15705_v58 = vadd.f32 %v26512_v1, %v15704_v39 }
 0x68f   : > { %v20521_v40 = vpop.f32.mrf.mxu1  ;;  %v14997_v44 = vadd.f32 %v26520_v25, %v14958_v42  ;;  %v15030_v5 = vmax.f32 %v14998_v24, 0.0 }
 0x690   : > { %15897 = vrot.lane.b32.xlu1 %v15828_v35, %s20673_s15  ;;  %v14841_v17 = vpop.f32.mrf.mxu0  ;;  %v15831_v59 = vmax.f32 %v15705_v58, 0.0  ;;  %v15720_v49 = vadd.f32 %v20521_v40, %v26512_v1 }
 0x691   : > { %v15714_v3 = vpop.f32.mrf.mxu1  ;;  %v15029_v60 = vmax.f32 %v14997_v44, 0.0 }
 0x692   : > { %15895 = vrot.lane.b32.xlu0 %v15827_v0, %s20673_s15  ;;  %v26551_v31 = vpop.f32.mrf.mxu0  ;;  %v15834_v12 = vmax.f32 %v15720_v49, 0.0  ;;  %v15715_v51 = vadd.f32 %v26512_v1, %v15714_v3 }
 0x694   : > { %15095 = vrot.lane.b32.xlu1 %v15026_v14, %s20674_s16  ;;  %v26556_v63 = vpop.f32.mrf.mxu0  ;;  %v14961_v14 = vadd.f32 %v20471_v45, %v26446_v9  ;;  %v20524_v45 = vpop.f32.mrf.mxu1  ;;  %v15833_v46 = vmax.f32 %v15715_v51, 0.0 }
 0x696   : > { %15093 = vrot.lane.b32.xlu0 %v15025_v16, %s20674_s16  ;;  %v26560_v56 = vpop.f32.mrf.mxu0  ;;  %v15000_v15 = vadd.f32 %v26520_v25, %v14961_v14 }
 0x698   : > { %15901 = vrot.lane.b32.xlu1 %v15830_v61, %s20673_s15  ;;  %v26564_v8 = vpop.f32.mrf.mxu0  ;;  %v14960_v61 = vadd.f32 %v14841_v17, %v26449_v18 }
 0x69a   : > { %15899 = vrot.lane.b32.xlu0 %v15829_v43, %s20673_s15  ;;  %v20480_v55 = vpop.f32.mrf.mxu0  ;;  %v14999_v17 = vadd.f32 %v26520_v25, %v14960_v61 }
 0x69b   : > { %v14967_v11 = vadd.f32 %v20480_v55, %v26464_v34  ;;  %v15724_v55 = vpop.f32.mrf.mxu1 }
 0x69c   : > { %15099 = vrot.lane.b32.xlu1 %v15028_v33, %s20674_s16  ;;  %v14871_v29 = vpop.f32.mrf.mxu0  ;;  %v15730_v33 = vadd.f32 %v20524_v45, %v26512_v1  ;;  %v15031_v58 = vmax.f32 %v14999_v17, 0.0 }
 0x69d   : > { %v26574_v13 = vadd.f32 %v26520_v25, %v14967_v11  ;;  %v14966_v35 = vadd.f32 %v14871_v29, %v26467_v20  ;;  %v15032_v11 = vmax.f32 %v15000_v15, 0.0  ;;  %v14962_v29 = vadd.f32 %v26556_v63, %v26455_v23  ;;  %v20527_v24 = vpop.f32.mrf.mxu1 }
 0x69e   : > { %15097 = vrot.lane.b32.xlu0 %v15027_v10, %s20674_s16  ;;  %v20483_v34 = vpop.f32.mrf.mxu0  ;;  %v14963_v10 = vadd.f32 %v26551_v31, %v26452_v22 }
 0x69f   : > { %v26580_v21 = vadd.f32 %v26520_v25, %v14966_v35  ;;  %v14969_v50 = vadd.f32 %v20483_v34, %v26470_v30  ;;  %v15836_v35 = vmax.f32 %v15730_v33, 0.0  ;;  %v15001_v63 = vadd.f32 %v26520_v25, %v14962_v29 }
 0x6a0   : > { %15905 = vrot.lane.b32.xlu1 %v15832_v41, %s20673_s15  ;;  %v14881_v2 = vpop.f32.mrf.mxu0  ;;  %v15002_v34 = vadd.f32 %v26520_v25, %v14963_v10 }
 0x6a1   : > { %v26587_v20 = vadd.f32 %v26520_v25, %v14969_v50  ;;  %v14968_v0 = vadd.f32 %v14881_v2, %v26473_v37  ;;  %v15740_v2 = vadd.f32 %v20527_v24, %v26512_v1 }
 0x6a2   : > { %15903 = vrot.lane.b32.xlu0 %v15831_v59, %s20673_s15  ;;  %v20486_v30 = vpop.f32.mrf.mxu0  ;;  %v15034_v3 = vmax.f32 %v15002_v34, 0.0 }
 0x6a3   : > { %v26593_v6 = vadd.f32 %v26520_v25, %v14968_v0  ;;  %v14971_v16 = vadd.f32 %v20486_v30, %v26476_v19  ;;  %v15734_v0 = vpop.f32.mrf.mxu1  ;;  %v15838_v61 = vmax.f32 %v15740_v2, 0.0 }
 0x6a4   : > { %15103 = vrot.lane.b32.xlu1 %v15030_v5, %s20674_s16  ;;  %v14891_v37 = vpop.f32.mrf.mxu0  ;;  %v14965_v5 = vadd.f32 %v26560_v56, %v26458_v54 }
 0x6a5   : > { %v26600_v57 = vadd.f32 %v26520_v25, %v14971_v16  ;;  %v14970_v9 = vadd.f32 %v14891_v37, %v26479_v62  ;;  %v15033_v16 = vmax.f32 %v15001_v63, 0.0  ;;  %v20530_v51 = vpop.f32.mrf.mxu1 }
 0x6a6   : > { %15101 = vrot.lane.b32.xlu0 %v15029_v60, %s20674_s16  ;;  %v20489_v19 = vpop.f32.mrf.mxu0  ;;  %v14964_v60 = vadd.f32 %v26564_v8, %v26461_v4  ;;  %v15004_v37 = vadd.f32 %v26520_v25, %v14965_v5 }
 0x6a7   : > { %v26606_v43 = vadd.f32 %v26520_v25, %v14970_v9  ;;  %v14973_v18 = vadd.f32 %v20489_v19, %v26482_v52  ;;  %v15750_v19 = vadd.f32 %v20530_v51, %v26512_v1  ;;  %v15744_v17 = vpop.f32.mrf.mxu1 }
 0x6a8   : > { %15909 = vrot.lane.b32.xlu1 %v15834_v12, %s20673_s15  ;;  %v14901_v39 = vpop.f32.mrf.mxu0  ;;  %v15003_v8 = vadd.f32 %v26520_v25, %v14964_v60 }
 0x6a9   : > { %v26613_v62 = vadd.f32 %v26520_v25, %v14973_v18  ;;  %v14972_v32 = vadd.f32 %v14901_v39, %v26485_v26  ;;  %v15725_v26 = vadd.f32 %v26512_v1, %v15724_v55  ;;  %v15840_v33 = vmax.f32 %v15750_v19, 0.0  ;;  %v20533_v55 = vpop.f32.mrf.mxu1 }
 0x6aa   : > { %15907 = vrot.lane.b32.xlu0 %v15833_v46, %s20673_s15  ;;  %v20492_v52 = vpop.f32.mrf.mxu0  ;;  %v15036_v46 = vmax.f32 %v15004_v37, 0.0 }
 0x6ab   : > { %v26620_v42 = vadd.f32 %v26520_v25, %v14972_v32  ;;  %v14975_v41 = vadd.f32 %v20492_v52, %v26488_v38  ;;  %v15835_v44 = vmax.f32 %v15725_v26, 0.0  ;;  %v15745_v32 = vadd.f32 %v26512_v1, %v15744_v17  ;;  %v15754_v10 = vpop.f32.mrf.mxu1 }
 0x6ac   : > { %15107 = vrot.lane.b32.xlu1 %v15032_v11, %s20674_s16  ;;  %v14911_v40 = vpop.f32.mrf.mxu0  ;;  %v15038_v52 = vmax.f32 %v26574_v13, 0.0  ;;  %v15040_v13 = vmax.f32 %v26587_v20, 0.0  ;;  %v15042_v20 = vmax.f32 %v26600_v57, 0.0  ;;  %v15044_v57 = vmax.f32 %v26613_v62, 0.0 }
 0x6ad   : > { %v26628_v22 = vadd.f32 %v26520_v25, %v14975_v41  ;;  %v14974_v31 = vadd.f32 %v14911_v40, %v26491_v27  ;;  %v15839_v11 = vmax.f32 %v15745_v32, 0.0  ;;  %v20536_v29 = vpop.f32.mrf.mxu1 }
 0x6ae   : > { %15105 = vrot.lane.b32.xlu0 %v15031_v58, %s20674_s16  ;;  %v20495_v38 = vpop.f32.mrf.mxu0  ;;  %v15755_v58 = vadd.f32 %v26512_v1, %v15754_v10  ;;  %v15770_v26 = vadd.f32 %v20536_v29, %v26512_v1 }
 0x6af   : > { %v26634_v50 = vadd.f32 %v26520_v25, %v14974_v31  ;;  %v14977_v23 = vadd.f32 %v20495_v38, %v26494_v48  ;;  %v15764_v40 = vpop.f32.mrf.mxu1  ;;  %v15046_v62 = vmax.f32 %v26628_v22, 0.0 }
 0x6b0   : > { %15913 = vrot.lane.b32.xlu1 %v15836_v35, %s20673_s15  ;;  %v14921_v59 = vpop.f32.mrf.mxu0  ;;  %v15841_v35 = vmax.f32 %v15755_v58, 0.0  ;;  %v15844_v31 = vmax.f32 %v15770_v26, 0.0  ;;  %v15765_v24 = vadd.f32 %v26512_v1, %v15764_v40 }
 0x6b1   : > { %v26641_v27 = vadd.f32 %v26520_v25, %v14977_v23  ;;  %v14976_v49 = vadd.f32 %v14921_v59, %v26497_v36  ;;  %v15735_v36 = vadd.f32 %v26512_v1, %v15734_v0  ;;  %v20539_v34 = vpop.f32.mrf.mxu1 }
 0x6b2   : > { %15911 = vrot.lane.b32.xlu0 %v15835_v44, %s20673_s15  ;;  %v20498_v48 = vpop.f32.mrf.mxu0  ;;  %v15843_v38 = vmax.f32 %v15765_v24, 0.0  ;;  %v15780_v23 = vadd.f32 %v20539_v34, %v26512_v1 }
 0x6b3   : > { %v26648_v14 = vadd.f32 %v26520_v25, %v14976_v49  ;;  %v14979_v30 = vadd.f32 %v20498_v48, %v26500_v47  ;;  %v15837_v45 = vmax.f32 %v15735_v36, 0.0  ;;  %v15774_v63 = vpop.f32.mrf.mxu1  ;;  %v15048_v22 = vmax.f32 %v26641_v27, 0.0 }
 0x6b4   : > { %15111 = vrot.lane.b32.xlu1 %v15034_v3, %s20674_s16  ;;  %v14931_v12 = vpop.f32.mrf.mxu0  ;;  %v15846_v44 = vmax.f32 %v15780_v23, 0.0  ;;  %v15775_v59 = vadd.f32 %v26512_v1, %v15774_v63 }
 0x6b5   : > { %v26656_v54 = vadd.f32 %v26520_v25, %v14979_v30  ;;  %v14978_v56 = vadd.f32 %v14931_v12, %v26503_v28  ;;  %v20542_v2 = vpop.f32.mrf.mxu1 }
 0x6b6   : > { %15109 = vrot.lane.b32.xlu0 %v15033_v16, %s20674_s16  ;;  %v20501_v47 = vpop.f32.mrf.mxu0  ;;  %v15845_v49 = vmax.f32 %v15775_v59, 0.0  ;;  %v15790_v0 = vadd.f32 %v20542_v2, %v26512_v1 }
 0x6b7   : > { %v26662_v9 = vadd.f32 %v26520_v25, %v14978_v56  ;;  %v14981_v4 = vadd.f32 %v20501_v47, %v26506_v7  ;;  %v15035_v7 = vmax.f32 %v15003_v8, 0.0  ;;  %v15784_v3 = vpop.f32.mrf.mxu1  ;;  %v15050_v19 = vmax.f32 %v26656_v54, 0.0 }
 0x6b8   : > { %15917 = vrot.lane.b32.xlu1 %v15838_v61, %s20673_s15  ;;  %v14941_v15 = vpop.f32.mrf.mxu0  ;;  %v15848_v5 = vmax.f32 %v15790_v0, 0.0  ;;  %v15785_v48 = vadd.f32 %v26512_v1, %v15784_v3 }
 0x6b9   : > { %v26669_v28 = vadd.f32 %v26520_v25, %v14981_v4  ;;  %v14980_v18 = vadd.f32 %v14941_v15, %v26514_v53  ;;  %v15760_v53 = vadd.f32 %v20533_v55, %v26512_v1  ;;  %v20545_v30 = vpop.f32.mrf.mxu1 }
 0x6ba   : > { %15915 = vrot.lane.b32.xlu0 %v15837_v45, %s20673_s15  ;;  %v15847_v16 = vmax.f32 %v15785_v48, 0.0  ;;  %v15800_v60 = vadd.f32 %v20545_v30, %v26512_v1 }
 0x6bb   : > { %v26674_v39 = vadd.f32 %v26520_v25, %v14980_v18  ;;  %v15037_v25 = vmax.f32 %v26580_v21, 0.0  ;;  %v15842_v41 = vmax.f32 %v15760_v53, 0.0  ;;  %v15039_v21 = vmax.f32 %v26593_v6, 0.0  ;;  %v15794_v61 = vpop.f32.mrf.mxu1 }
 0x6bc   : > { %15115 = vrot.lane.b32.xlu1 %v15036_v46, %s20674_s16  ;;  %v15041_v6 = vmax.f32 %v26606_v43, 0.0  ;;  %v15043_v43 = vmax.f32 %v26620_v42, 0.0  ;;  %v15045_v42 = vmax.f32 %v26634_v50, 0.0  ;;  %v15850_v36 = vmax.f32 %v15800_v60, 0.0 }
 0x6bd   : > { %v15795_v12 = vadd.f32 %v26512_v1, %v15794_v61  ;;  %v20548_v56 = vpop.f32.mrf.mxu1  ;;  %v15047_v50 = vmax.f32 %v26648_v14, 0.0  ;;  %v15049_v14 = vmax.f32 %v26662_v9, 0.0  ;;  %v15051_v54 = vmax.f32 %v26674_v39, 0.0 }
 0x6be   : > { %15113 = vrot.lane.b32.xlu0 %v15035_v7, %s20674_s16  ;;  %v15810_v37 = vadd.f32 %v20548_v56, %v26512_v1  ;;  %v15052_v7 = vmax.f32 %v26669_v28, 0.0 }
 0x6bf   : > { %v15849_v51 = vmax.f32 %v15795_v12, 0.0  ;;  %v15804_v47 = vpop.f32.mrf.mxu1 }
 0x6c0   : > { %15921 = vrot.lane.b32.xlu1 %v15840_v33, %s20673_s15  ;;  %v15852_v4 = vmax.f32 %v15810_v37, 0.0  ;;  %v15805_v8 = vadd.f32 %v26512_v1, %v15804_v47 }
 0x6c1   : > { %v20551_v15 = vpop.f32.mrf.mxu1 }
 0x6c2   : > { %15919 = vrot.lane.b32.xlu0 %v15839_v11, %s20673_s15  ;;  %v15851_v45 = vmax.f32 %v15805_v8, 0.0  ;;  %v15820_v17 = vadd.f32 %v20551_v15, %v26512_v1 }
 0x6c3   : > { %v15814_v46 = vpop.f32.mrf.mxu1 }
 0x6c4   : > { %15119 = vrot.lane.b32.xlu1 %v15038_v52, %s20674_s16  ;;  %v15854_v9 = vmax.f32 %v15820_v17, 0.0  ;;  %v15815_v32 = vadd.f32 %v26512_v1, %v15814_v46 }
 0x6c6   : > { %15117 = vrot.lane.b32.xlu0 %v15037_v25, %s20674_s16  ;;  %v15853_v39 = vmax.f32 %v15815_v32, 0.0 }
 0x6c8   : > { %15925 = vrot.lane.b32.xlu1 %v15842_v41, %s20673_s15 }
 0x6ca   : > { %15923 = vrot.lane.b32.xlu0 %v15841_v35, %s20673_s15 }
 0x6cc   : > { %15123 = vrot.lane.b32.xlu1 %v15040_v13, %s20674_s16 }
 0x6ce   : > { %15121 = vrot.lane.b32.xlu0 %v15039_v21, %s20674_s16 }
 0x6d0   : > { %15929 = vrot.lane.b32.xlu1 %v15844_v31, %s20673_s15 }
 0x6d2   : > { %15927 = vrot.lane.b32.xlu0 %v15843_v38, %s20673_s15 }
 0x6d4   : > { %15127 = vrot.lane.b32.xlu1 %v15042_v20, %s20674_s16 }
 0x6d6   : > { %15125 = vrot.lane.b32.xlu0 %v15041_v6, %s20674_s16 }
 0x6d8   : > { %15933 = vrot.lane.b32.xlu1 %v15846_v44, %s20673_s15 }
 0x6da   : > { %15931 = vrot.lane.b32.xlu0 %v15845_v49, %s20673_s15 }
 0x6dc   : > { %15131 = vrot.lane.b32.xlu1 %v15044_v57, %s20674_s16 }
 0x6de   : > { %15129 = vrot.lane.b32.xlu0 %v15043_v43, %s20674_s16 }
 0x6e0   : > { %15937 = vrot.lane.b32.xlu1 %v15848_v5, %s20673_s15 }
 0x6e2   : > { %15935 = vrot.lane.b32.xlu0 %v15847_v16, %s20673_s15 }
 0x6e4   : > { %15135 = vrot.lane.b32.xlu1 %v15046_v62, %s20674_s16 }
 0x6e6   : > { %15133 = vrot.lane.b32.xlu0 %v15045_v42, %s20674_s16 }
 0x6e8   : > { %15941 = vrot.lane.b32.xlu1 %v15850_v36, %s20673_s15 }
 0x6ea   : > { %15939 = vrot.lane.b32.xlu0 %v15849_v51, %s20673_s15 }
 0x6ec   : > { %15139 = vrot.lane.b32.xlu1 %v15048_v22, %s20674_s16 }
 0x6ee   : > { %15137 = vrot.lane.b32.xlu0 %v15047_v50, %s20674_s16 }
 0x6f0   : > { %15945 = vrot.lane.b32.xlu1 %v15852_v4, %s20673_s15 }
 0x6f2   : > { %v15890_v27 = vpop.permute.xlu1 %15889  ;;  %15943 = vrot.lane.b32.xlu0 %v15851_v45, %s20673_s15 }
 0x6f4   : > { %15143 = vrot.lane.b32.xlu1 %v15050_v19, %s20674_s16  ;;  %v15888_v18 = vpop.permute.xlu0 %15887 }
 0x6f6   : > { %v15088_v33 = vpop.permute.xlu1 %15087  ;;  %15141 = vrot.lane.b32.xlu0 %v15049_v14, %s20674_s16 }
 0x6f7   : > { %15183 = vst.msk [vmem:[%s21298_s23 + $0x8] sm:$0xff] %vm15181_vm9, %v15088_v33 }
 0x6f8   : > { %15985 = vst.msk [vmem:[%s21298_s23 + $0x8] sm:$0xff] %vm15983_vm10, %v15890_v27  ;;  %15147 = vrot.lane.b32.xlu1 %v15052_v7, %s20674_s16  ;;  %v15086_v55 = vpop.permute.xlu0 %15085 }
 0x6f9   : > { %15182 = vst.msk [vmem:[%s21298_s23] sm:$0xff] %vm15181_vm9, %v15086_v55 }
 0x6fa   : > { %15984 = vst.msk [vmem:[%s21298_s23] sm:$0xff] %vm15983_vm10, %v15888_v18  ;;  %v15894_v28 = vpop.permute.xlu1 %15893  ;;  %15145 = vrot.lane.b32.xlu0 %v15051_v54, %s20674_s16  ;;  %s20608_s16 = scalar_lea.vmem %s26872_s21, 4096 }
 0x6fb   : > { %p20609_p11 = scmp.ne.s32.totalorder %s26872_s21, %s20608_s16 }
 0x6fc   : > { %15949 = vrot.lane.b32.xlu1 %v15854_v9, %s20673_s15  ;;  %v15892_v11 = vpop.permute.xlu0 %15891 }
 0x6fd   : > { %p20610_p12 = pnand %p20609_p11, %p20786_p5 }
 0x6fe   : > { %v15092_v1 = vpop.permute.xlu1 %15091  ;;  %15947 = vrot.lane.b32.xlu0 %v15853_v39, %s20673_s15  ;;  %s26870_s15 = scalar_lea.hbm %s26933_s13, %s17397_s20  ;;  %s20675_s20 = smov [#allocation5]  }
 0x6ff   : > { %15185 = vst.msk [vmem:[%s21298_s23 + $0x18] sm:$0xff] %vm15181_vm9, %v15092_v1  ;;  %p20611_p13 = pneg %p20610_p12  ;;  %s20612_s22 = sshll.u32 %s20675_s20, 4  ;;  %s20613_s22 = int_to_ptr.vmem [resolvable:$false] %s20612_s22 }
 0x700   : > { %15987 = vst.msk [vmem:[%s21298_s23 + $0x18] sm:$0xff] %vm15983_vm10, %v15894_v28  ;;  %v15090_v53 = vpop.permute.xlu0 %15089  ;;  %s20614_s24 = scalar_lea.vmem %s20613_s22, 8192  ;;  %p20615_p0 = scmp.lt.s32.totalorder %s26872_s21, %s20613_s22 }
 0x701   : > { %15184 = vst.msk [vmem:[%s21298_s23 + $0x10] sm:$0xff] %vm15181_vm9, %v15090_v53  ;;  %p20616_p1 = scmp.lt.s32.totalorder %s20614_s24, %s20608_s16 }
 0x702   : > { %15986 = vst.msk [vmem:[%s21298_s23 + $0x10] sm:$0xff] %vm15983_vm10, %v15892_v11  ;;  %v15898_v10 = vpop.permute.xlu1 %15897 }
 0x703   : > { %p20617_p2 = por %p20616_p1, %p20615_p0 }
 0x704   : > { %v15896_v52 = vpop.permute.xlu0 %15895 }
 0x705   : > { %p20618_p3 = pnand %p20617_p2, %p20611_p13 }
 0x706   : > { %v15096_v25 = vpop.permute.xlu1 %15095 }
 0x707   : > { %15187 = vst.msk [vmem:[%s21298_s23 + $0x28] sm:$0xff] %vm15181_vm9, %v15096_v25 }
 0x708   : > { %15989 = vst.msk [vmem:[%s21298_s23 + $0x28] sm:$0xff] %vm15983_vm10, %v15898_v10  ;;  %v15094_v41 = vpop.permute.xlu0 %15093 }
 0x709   : > { %15186 = vst.msk [vmem:[%s21298_s23 + $0x20] sm:$0xff] %vm15181_vm9, %v15094_v41 }
 0x70a   : > { %15988 = vst.msk [vmem:[%s21298_s23 + $0x20] sm:$0xff] %vm15983_vm10, %v15896_v52  ;;  %v15902_v58 = vpop.permute.xlu1 %15901 }
 0x70c   : > { %v15900_v29 = vpop.permute.xlu0 %15899 }
 0x70e   : > { %v15100_v35 = vpop.permute.xlu1 %15099 }
 0x70f   : > { %15189 = vst.msk [vmem:[%s21298_s23 + $0x38] sm:$0xff] %vm15181_vm9, %v15100_v35 }
 0x710   : > { %15991 = vst.msk [vmem:[%s21298_s23 + $0x38] sm:$0xff] %vm15983_vm10, %v15902_v58  ;;  %v15098_v26 = vpop.permute.xlu0 %15097 }
 0x711   : > { %15188 = vst.msk [vmem:[%s21298_s23 + $0x30] sm:$0xff] %vm15181_vm9, %v15098_v26 }
 0x712   : > { %15990 = vst.msk [vmem:[%s21298_s23 + $0x30] sm:$0xff] %vm15983_vm10, %v15900_v29  ;;  %v15906_v40 = vpop.permute.xlu1 %15905 }
 0x714   : > { %v15904_v13 = vpop.permute.xlu0 %15903 }
 0x716   : > { %v15104_v21 = vpop.permute.xlu1 %15103 }
 0x717   : > { %15191 = vst.msk [vmem:[%s21298_s23 + $0x48] sm:$0xff] %vm15181_vm9, %v15104_v21 }
 0x718   : > { %15993 = vst.msk [vmem:[%s21298_s23 + $0x48] sm:$0xff] %vm15983_vm10, %v15906_v40  ;;  %v15102_v31 = vpop.permute.xlu0 %15101 }
 0x719   : > { %15190 = vst.msk [vmem:[%s21298_s23 + $0x40] sm:$0xff] %vm15181_vm9, %v15102_v31 }
 0x71a   : > { %15992 = vst.msk [vmem:[%s21298_s23 + $0x40] sm:$0xff] %vm15983_vm10, %v15904_v13  ;;  %v15910_v24 = vpop.permute.xlu1 %15909 }
 0x71c   : > { %v15908_v34 = vpop.permute.xlu0 %15907 }
 0x71e   : > { %v15108_v38 = vpop.permute.xlu1 %15107 }
 0x71f   : > { %15193 = vst.msk [vmem:[%s21298_s23 + $0x58] sm:$0xff] %vm15181_vm9, %v15108_v38 }
 0x720   : > { %15995 = vst.msk [vmem:[%s21298_s23 + $0x58] sm:$0xff] %vm15983_vm10, %v15910_v24  ;;  %v15106_v23 = vpop.permute.xlu0 %15105 }
 0x721   : > { %15192 = vst.msk [vmem:[%s21298_s23 + $0x50] sm:$0xff] %vm15181_vm9, %v15106_v23 }
 0x722   : > { %15994 = vst.msk [vmem:[%s21298_s23 + $0x50] sm:$0xff] %vm15983_vm10, %v15908_v34  ;;  %v15914_v63 = vpop.permute.xlu1 %15913 }
 0x724   : > { %v15912_v20 = vpop.permute.xlu0 %15911 }
 0x726   : > { %v15112_v6 = vpop.permute.xlu1 %15111 }
 0x727   : > { %15195 = vst.msk [vmem:[%s21298_s23 + $0x68] sm:$0xff] %vm15181_vm9, %v15112_v6 }
 0x728   : > { %15997 = vst.msk [vmem:[%s21298_s23 + $0x68] sm:$0xff] %vm15983_vm10, %v15914_v63  ;;  %v15110_v44 = vpop.permute.xlu0 %15109 }
 0x729   : > { %15194 = vst.msk [vmem:[%s21298_s23 + $0x60] sm:$0xff] %vm15181_vm9, %v15110_v44 }
 0x72a   : > { %15996 = vst.msk [vmem:[%s21298_s23 + $0x60] sm:$0xff] %vm15983_vm10, %v15912_v20  ;;  %v15918_v59 = vpop.permute.xlu1 %15917 }
 0x72c   : > { %v15916_v2 = vpop.permute.xlu0 %15915 }
 0x72e   : > { %v15116_v49 = vpop.permute.xlu1 %15115 }
 0x72f   : > { %15197 = vst.msk [vmem:[%s21298_s23 + $0x78] sm:$0xff] %vm15181_vm9, %v15116_v49 }
 0x730   : > { %15999 = vst.msk [vmem:[%s21298_s23 + $0x78] sm:$0xff] %vm15983_vm10, %v15918_v59  ;;  %v15114_v0 = vpop.permute.xlu0 %15113 }
 0x731   : > { %15196 = vst.msk [vmem:[%s21298_s23 + $0x70] sm:$0xff] %vm15181_vm9, %v15114_v0 }
 0x732   : > { %15998 = vst.msk [vmem:[%s21298_s23 + $0x70] sm:$0xff] %vm15983_vm10, %v15916_v2  ;;  %v15922_v3 = vpop.permute.xlu1 %15921 }
 0x734   : > { %v15920_v57 = vpop.permute.xlu0 %15919 }
 0x736   : > { %v15120_v43 = vpop.permute.xlu1 %15119 }
 0x737   : > { %15199 = vst.msk [vmem:[%s21298_s23 + $0x88] sm:$0xff] %vm15181_vm9, %v15120_v43 }
 0x738   : > { %16001 = vst.msk [vmem:[%s21298_s23 + $0x88] sm:$0xff] %vm15983_vm10, %v15922_v3  ;;  %v15118_v5 = vpop.permute.xlu0 %15117 }
 0x739   : > { %15198 = vst.msk [vmem:[%s21298_s23 + $0x80] sm:$0xff] %vm15181_vm9, %v15118_v5 }
 0x73a   : > { %16000 = vst.msk [vmem:[%s21298_s23 + $0x80] sm:$0xff] %vm15983_vm10, %v15920_v57  ;;  %v15926_v48 = vpop.permute.xlu1 %15925 }
 0x73c   : > { %v15924_v30 = vpop.permute.xlu0 %15923 }
 0x73e   : > { %v15124_v16 = vpop.permute.xlu1 %15123 }
 0x73f   : > { %15201 = vst.msk [vmem:[%s21298_s23 + $0x98] sm:$0xff] %vm15181_vm9, %v15124_v16 }
 0x740   : > { %16003 = vst.msk [vmem:[%s21298_s23 + $0x98] sm:$0xff] %vm15983_vm10, %v15926_v48  ;;  %v15122_v60 = vpop.permute.xlu0 %15121 }
 0x741   : > { %15200 = vst.msk [vmem:[%s21298_s23 + $0x90] sm:$0xff] %vm15181_vm9, %v15122_v60 }
 0x742   : > { %16002 = vst.msk [vmem:[%s21298_s23 + $0x90] sm:$0xff] %vm15983_vm10, %v15924_v30  ;;  %v15930_v61 = vpop.permute.xlu1 %15929 }
 0x744   : > { %v15928_v62 = vpop.permute.xlu0 %15927 }
 0x746   : > { %v15128_v42 = vpop.permute.xlu1 %15127 }
 0x747   : > { %15203 = vst.msk [vmem:[%s21298_s23 + $0xa8] sm:$0xff] %vm15181_vm9, %v15128_v42 }
 0x748   : > { %16005 = vst.msk [vmem:[%s21298_s23 + $0xa8] sm:$0xff] %vm15983_vm10, %v15930_v61  ;;  %v15126_v36 = vpop.permute.xlu0 %15125 }
 0x749   : > { %15202 = vst.msk [vmem:[%s21298_s23 + $0xa0] sm:$0xff] %vm15181_vm9, %v15126_v36 }
 0x74a   : > { %16004 = vst.msk [vmem:[%s21298_s23 + $0xa0] sm:$0xff] %vm15983_vm10, %v15928_v62  ;;  %v15934_v12 = vpop.permute.xlu1 %15933 }
 0x74c   : > { %v15932_v56 = vpop.permute.xlu0 %15931 }
 0x74e   : > { %v15132_v51 = vpop.permute.xlu1 %15131 }
 0x74f   : > { %15205 = vst.msk [vmem:[%s21298_s23 + $0xb8] sm:$0xff] %vm15181_vm9, %v15132_v51 }
 0x750   : > { %16007 = vst.msk [vmem:[%s21298_s23 + $0xb8] sm:$0xff] %vm15983_vm10, %v15934_v12  ;;  %v15130_v37 = vpop.permute.xlu0 %15129 }
 0x751   : > { %15204 = vst.msk [vmem:[%s21298_s23 + $0xb0] sm:$0xff] %vm15181_vm9, %v15130_v37 }
 0x752   : > { %16006 = vst.msk [vmem:[%s21298_s23 + $0xb0] sm:$0xff] %vm15983_vm10, %v15932_v56  ;;  %v15938_v47 = vpop.permute.xlu1 %15937 }
 0x754   : > { %v15936_v22 = vpop.permute.xlu0 %15935 }
 0x756   : > { %v15136_v50 = vpop.permute.xlu1 %15135 }
 0x757   : > { %15207 = vst.msk [vmem:[%s21298_s23 + $0xc8] sm:$0xff] %vm15181_vm9, %v15136_v50 }
 0x758   : > { %16009 = vst.msk [vmem:[%s21298_s23 + $0xc8] sm:$0xff] %vm15983_vm10, %v15938_v47  ;;  %v15134_v4 = vpop.permute.xlu0 %15133 }
 0x759   : > { %15206 = vst.msk [vmem:[%s21298_s23 + $0xc0] sm:$0xff] %vm15181_vm9, %v15134_v4 }
 0x75a   : > { %16008 = vst.msk [vmem:[%s21298_s23 + $0xc0] sm:$0xff] %vm15983_vm10, %v15936_v22  ;;  %v15942_v8 = vpop.permute.xlu1 %15941 }
 0x75c   : > { %v15940_v45 = vpop.permute.xlu0 %15939 }
 0x75e   : > { %v15140_v15 = vpop.permute.xlu1 %15139 }
 0x75f   : > { %15209 = vst.msk [vmem:[%s21298_s23 + $0xd8] sm:$0xff] %vm15181_vm9, %v15140_v15 }
 0x760   : > { %16011 = vst.msk [vmem:[%s21298_s23 + $0xd8] sm:$0xff] %vm15983_vm10, %v15942_v8  ;;  %v15138_v19 = vpop.permute.xlu0 %15137 }
 0x761   : > { %15208 = vst.msk [vmem:[%s21298_s23 + $0xd0] sm:$0xff] %vm15181_vm9, %v15138_v19 }
 0x762   : > { %16010 = vst.msk [vmem:[%s21298_s23 + $0xd0] sm:$0xff] %vm15983_vm10, %v15940_v45  ;;  %v15946_v27 = vpop.permute.xlu1 %15945 }
 0x764   : > { %v15944_v14 = vpop.permute.xlu0 %15943 }
 0x766   : > { %v15144_v18 = vpop.permute.xlu1 %15143 }
 0x767   : > { %15211 = vst.msk [vmem:[%s21298_s23 + $0xe8] sm:$0xff] %vm15181_vm9, %v15144_v18 }
 0x768   : > { %16013 = vst.msk [vmem:[%s21298_s23 + $0xe8] sm:$0xff] %vm15983_vm10, %v15946_v27  ;;  %v15142_v17 = vpop.permute.xlu0 %15141 }
 0x769   : > { %15210 = vst.msk [vmem:[%s21298_s23 + $0xe0] sm:$0xff] %vm15181_vm9, %v15142_v17 }
 0x76a   : > { %16012 = vst.msk [vmem:[%s21298_s23 + $0xe0] sm:$0xff] %vm15983_vm10, %v15944_v14  ;;  %v15148_v46 = vpop.permute.xlu1 %15147 }
 0x76b   : > { %15213 = vst.msk [vmem:[%s21298_s23 + $0xf8] sm:$0xff] %vm15181_vm9, %v15148_v46 }
 0x76c   : > { %v15146_v7 = vpop.permute.xlu0 %15145 }
 0x76d   : > { %15212 = vst.msk [vmem:[%s21298_s23 + $0xf0] sm:$0xff] %vm15181_vm9, %v15146_v7 }
 0x76e   : > { %v15950_v33 = vpop.permute.xlu1 %15949 }
 0x76f   : > { %16015 = vst.msk [vmem:[%s21298_s23 + $0xf8] sm:$0xff] %vm15983_vm10, %v15950_v33 }
 0x770   : > { %v15948_v54 = vpop.permute.xlu0 %15947 }
 0x771   : > { %16014 = vst.msk [vmem:[%s21298_s23 + $0xf0] sm:$0xff] %vm15983_vm10, %v15948_v54 }
 0x772   : > { %20621 = shalt.err (!%p20618_p3)
}
 0x773   : > { %s20622_s30 = scalar_lea.hbm %s26870_s15, 4096  ;;  %s20626_s20 = scalar_lea.hbm %s26933_s13, 8192 }
 0x774   : > { %p20623_p4 = scmp.ne.s32.totalorder %s26870_s15, %s20622_s30  ;;  %p20627_p9 = scmp.lt.s32.totalorder %s26870_s15, %s26933_s13 }
 0x775   : > { %p20628_p10 = scmp.lt.s32.totalorder %s20626_s20, %s20622_s30 }
 0x776   : > { %p20624_p7 = pnand %p20623_p4, %p20786_p5 }
 0x777   : > { %p20629_p11 = por %p20628_p10, %p20627_p9 }
 0x778   : > { %p20625_p8 = pneg %p20624_p7 }
 0x77a   : > { %p20630_p12 = pnand %p20629_p11, %p20625_p8 }
 0x77c   : > { %20633 = shalt.err (!%p20630_p12)
}
 0x77d   : > { %s20676_s16 = smov 128   ;;  %s20677_s22 = smov 8  }
 0x77e   : > { %20552 = dma.vmem_to_hbm [thread:$0]  (%p20786_p5), %s26872_s21, 4096, %s26870_s15, %s26880_s29, %s20676_s16, %s20676_s16, %s20677_s22  }
 0x77f PF: > { %p20558_p13 = scmp.ge.s32.totalorder %s20668_s28, 2  ;;  %s16045_s0 = sand.u32 1, %s20656_s25  }
 0x780   : > { %s16046_s1 = scalar_lea.sflag [#allocation6], %s16045_s0 }
 0x781   : > { %p20555_p0 = pnand %p20558_p13, %p20790_p6 }
 0x783   : > { %p20556_p1 = pneg %p20555_p0 }
 0x785   : > { %20651 = dma.done.wait (%p20556_p1), %s16046_s1, 4096  }
 0x786   : > { %20653 = vsyncadd (%p20556_p1), %s16046_s1, 4294963200  ;;  %p23_p2 = scmp.ge.s32.totalorder %s20773_s14, 4   ;;  %s27695_s25 = smov %s20660_s26 }
 0x787   : > { %s27696_s26 = smov %s20664_s27  ;;  %s27697_s27 = smov %s20784_s17 }
 0x788   : > { %s27698_s28 = smov %s20773_s14  ;;  %25 = sbr.rel (!%p23_p2) target bundleno = 7 (0x7), region = 149 }
 0x78d   :  { %16051 = vsyncpa [#allocation6], 1 }
 0x78e   :  { %16053 = vsyncpa [#allocation6 + $0x1], 1 }

</bundles_post_ra>
